<compile_context>
chip_gen: v7x
topology: tpu7x:2x2x1
jax: 0.10.0
libtpu: 0.0.40
codegen_flags: <defaults>
</compile_context>

<pallas_src>
import jax
import jax.numpy as jnp
import numpy as np
from jax.experimental import pallas as pl
from jax.experimental.pallas import tpu as pltpu


def _fused_cnn_kernel(a_ref, w1_ref, w2_ref, b2_ref, wf1_ref, bf1_ref,
                      wf2_ref, bf2_ref, o_ref):
    """One batch block of NB images.

    Row index inside the block is (grid_position * NB + image) with
    grid_position = ypad*16 + xpad on the zero-padded 16x16 pooled-conv1 grid,
    i.e. batch-minor, so every row shift below is a multiple of NB (aligned).
    """
    nb = o_ref.shape[0]
    f32 = jnp.float32

    # ---- conv1 (3x3, pad 1) + bias + 2x2 maxpool: one matmul, lanes = (pool cand, oc).
    o1 = jnp.dot(a_ref[...], w1_ref[...], preferred_element_type=f32)      # (256*nb, 32)
    p1 = jnp.maximum(jnp.maximum(o1[:, 0:8], o1[:, 8:16]),
                     jnp.maximum(o1[:, 16:24], o1[:, 24:32]))              # (256*nb, 8)
    # p1 = pooled conv1 map on the padded 16x16 grid; the zero border (conv2's
    # padding=1) is already there because the corresponding im2col rows are zero.

    # ---- conv2 (2x2, pad 1) + bias + ReLU: lane-concat the 4 taps (row shifts
    # {0,1,16,17}*nb, all sublane-aligned) and do one K=32 bf16 matmul.
    L2 = 188 * nb      # covers every conv2 output (y,x) with y,x < 12 (all pool reads)
    c2in = jnp.concatenate(
        [p1[0:L2], p1[nb:nb + L2], p1[16 * nb:16 * nb + L2], p1[17 * nb:17 * nb + L2]],
        axis=1).astype(jnp.bfloat16)                                       # (L2, 32)
    a2 = jnp.dot(c2in, w2_ref[...], preferred_element_type=f32) + b2_ref[...]
    a2 = jnp.maximum(a2, 0.0)                                              # (L2, 16)

    # ---- 4x4 / stride-4 maxpool: separable shifted-slice maxima (aligned shifts).
    lx = 185 * nb
    mx = a2[0:lx]
    for dx in (1, 2, 3):
        mx = jnp.maximum(mx, a2[dx * nb:dx * nb + lx])
    ly = 137 * nb
    m2 = mx[0:ly]
    for dy in (1, 2, 3):
        m2 = jnp.maximum(m2, mx[16 * dy * nb:16 * dy * nb + ly])
    # pooled value of window (Y, X) for image n sits at row (64*Y + 4*X)*nb + n.

    # ---- fc1 (144->64) + ReLU + fc2 (64->10), batched over the nb images.
    h = None
    for pos in range(9):
        yy, xx = divmod(pos, 3)
        s = (64 * yy + 4 * xx) * nb
        chunk = m2[s:s + nb, :].astype(jnp.bfloat16)                       # (nb, 16)
        d = jnp.dot(chunk, wf1_ref[16 * pos:16 * (pos + 1), :],
                    preferred_element_type=f32)
        h = d if h is None else h + d
    h = jnp.maximum(h + bf1_ref[...], 0.0).astype(jnp.bfloat16)            # (nb, 64)
    o_ref[...] = jnp.dot(h, wf2_ref[...], preferred_element_type=f32) + bf2_ref[...]


def mnist_cnn_forward(x, p, *, nb=8):
    """Forward pass of mnist_CNN as a single batched, pipelined Pallas TPU kernel."""
    assert nb % 8 == 0, "nb must be a multiple of 8 (sublane alignment of all shifts)"
    N, C, H, W = x.shape
    assert H == 28 and W == 28, "Linear(16*3*3, 64) hard-codes 28x28 spatial inputs"
    f32, bf16 = jnp.float32, jnp.bfloat16
    x = x.astype(f32)

    K1 = ((16 * C + 1 + 7) // 8) * 8        # 4x4 patch * C taps + bias column, padded

    # ---- conv1+pool1 im2col: rows = zero-padded 16x16 pooled grid, lanes = taps.
    xp1 = jnp.pad(x, ((0, 0), (0, 0), (1, 1), (1, 1)))                     # (N, C, 30, 30)
    taps = [xp1[:, :, di:di + 28:2, dj:dj + 28:2]                          # (N, C, 14, 14)
            for di in range(4) for dj in range(4)]
    t = jnp.stack(taps, axis=-1)                                           # (N, C, 14, 14, 16)
    t = t.transpose(0, 2, 3, 4, 1).reshape(N, 14, 14, 16 * C)
    a = jnp.zeros((N, 16, 16, K1), f32)
    a = a.at[:, 1:15, 1:15, :16 * C].set(t)
    a = a.at[:, 1:15, 1:15, 16 * C].set(1.0)      # bias column (0 on the padding border)

    # Batch-pad to a multiple of nb and reorder each block batch-minor:
    # row inside a block = (ypad*16 + xpad)*nb + n.
    nblk = (N + nb - 1) // nb
    npad = nblk * nb
    a = jnp.pad(a, ((0, npad - N), (0, 0), (0, 0), (0, 0)))
    a = a.reshape(nblk, nb, 256, K1).transpose(0, 2, 1, 3).reshape(nblk * 256 * nb, K1)
    a = a.astype(bf16)

    # ---- conv1 weight, packed (K1, 32): cols = (pool candidate py,px) x oc, bias folded.
    w1 = p["conv1_w"].astype(f32)                                          # (8, C, 3, 3)
    w1p = jnp.zeros((K1, 32), f32)
    for py in range(2):
        for px in range(2):
            col = (py * 2 + px) * 8
            for di in range(4):
                for dj in range(4):
                    i, j = di - py, dj - px
                    if 0 <= i < 3 and 0 <= j < 3:
                        tap = di * 4 + dj
                        w1p = w1p.at[tap * C:(tap + 1) * C, col:col + 8].set(w1[:, :, i, j].T)
    w1p = w1p.at[16 * C, :].set(jnp.tile(p["conv1_b"].astype(f32), 4))
    w1p = w1p.astype(bf16)

    # ---- conv2 weight: rows = (tap i*2+j)*8 + ic, matching the in-kernel lane concat.
    w2m = p["conv2_w"].astype(f32).transpose(2, 3, 1, 0).reshape(32, 16).astype(bf16)
    b2r = p["conv2_b"].reshape(1, 16).astype(f32)

    # ---- fc weights: fc1 regrouped position-major (rows = (Y*3+X)*16 + c), fc2 transposed.
    wf1 = (p["fc1_w"].astype(f32).reshape(64, 16, 3, 3)
           .transpose(2, 3, 1, 0).reshape(144, 64).astype(bf16))
    bf1 = p["fc1_b"].reshape(1, 64).astype(f32)
    wf2 = p["fc2_w"].astype(f32).T.astype(bf16)                            # (64, 10)
    bf2 = p["fc2_b"].reshape(1, 10).astype(f32)

    out = pl.pallas_call(
        _fused_cnn_kernel,
        out_shape=jax.ShapeDtypeStruct((npad, 10), f32),
        grid=(nblk,),
        in_specs=[
            pl.BlockSpec((256 * nb, K1), lambda b: (b, 0)),   # im2col'd input, blocked
            pl.BlockSpec((K1, 32), lambda b: (0, 0)),         # weights: resident block
            pl.BlockSpec((32, 16), lambda b: (0, 0)),
            pl.BlockSpec((1, 16), lambda b: (0, 0)),
            pl.BlockSpec((144, 64), lambda b: (0, 0)),
            pl.BlockSpec((1, 64), lambda b: (0, 0)),
            pl.BlockSpec((64, 10), lambda b: (0, 0)),
            pl.BlockSpec((1, 10), lambda b: (0, 0)),
        ],
        out_specs=pl.BlockSpec((nb, 10), lambda b: (b, 0)),
        compiler_params=pltpu.CompilerParams(
            dimension_semantics=("parallel",),                 # megacore split on v7x
        ),
    )(a, w1p, w2m, b2r, wf1, bf1, wf2, bf2)
    return out[:N]


# --------------------------------------------------------------------- params / reference
def init_params(key, channels):
    ks = jax.random.split(key, 8)

    def uni(k, shape, fan_in):
        bound = 1.0 / np.sqrt(fan_in)
        return jax.random.uniform(k, shape, jnp.float32, -bound, bound)

    return {
        "conv1_w": uni(ks[0], (8, channels, 3, 3), channels * 9),
        "conv1_b": uni(ks[1], (8,), channels * 9),
        "conv2_w": uni(ks[2], (16, 8, 2, 2), 8 * 4),
        "conv2_b": uni(ks[3], (16,), 8 * 4),
        "fc1_w": uni(ks[4], (64, 16 * 3 * 3), 16 * 3 * 3),
        "fc1_b": uni(ks[5], (64,), 16 * 3 * 3),
        "fc2_w": uni(ks[6], (10, 64), 64),
        "fc2_b": uni(ks[7], (10,), 64),
    }


def reference_forward(x, p):
    dn = ("NCHW", "OIHW", "NCHW")
    y = jax.lax.conv_general_dilated(x, p["conv1_w"], (1, 1), [(1, 1), (1, 1)],
                                     dimension_numbers=dn)
    y = y + p["conv1_b"][None, :, None, None]
    y = jax.lax.reduce_window(y, -jnp.inf, jax.lax.max, (1, 1, 2, 2), (1, 1, 2, 2), "VALID")
    y = jax.lax.conv_general_dilated(y, p["conv2_w"], (1, 1), [(1, 1), (1, 1)],
                                     dimension_numbers=dn)
    y = y + p["conv2_b"][None, :, None, None]
    y = jnp.maximum(y, 0.0)
    y = jax.lax.reduce_window(y, -jnp.inf, jax.lax.max, (1, 1, 4, 4), (1, 1, 4, 4), "VALID")
    y = y.reshape(y.shape[0], -1)
    y = jnp.maximum(y @ p["fc1_w"].T + p["fc1_b"], 0.0)
    y = y @ p["fc2_w"].T + p["fc2_b"]
    return y


if __name__ == "__main__":
    key = jax.random.PRNGKey(0)
    k_x, k_p = jax.random.split(key)

    # channels=1 (MNIST); 28x28 spatial is required by the Linear(16*3*3, 64) layer.
    # batch=10 with nb=8 exercises 2 grid steps plus the batch-padding path.
    batch, channels = 10, 1
    x = jax.random.normal(k_x, (batch, channels, 28, 28), dtype=jnp.float32)
    params = init_params(k_p, channels)

    fwd = jax.jit(mnist_cnn_forward)
    out = jax.block_until_ready(fwd(x, params))
    ref = jax.block_until_ready(reference_forward(x, params))

    assert out.shape == (batch, 10), out.shape
    # bf16 matmul operands with f32 accumulation -> bf16-appropriate tolerance.
    np.testing.assert_allclose(np.asarray(out), np.asarray(ref), rtol=2e-2, atol=2e-2)
    print("KERNEL_OK")
</pallas_src>

<mosaic_0001>
module attributes {stable_mosaic.version = 11 : i64} {
  func.func @_fused_cnn_kernel(%arg0: i32, %arg1: memref<2048x24xbf16, #tpu.memory_space<vmem>>, %arg2: memref<24x32xbf16, #tpu.memory_space<vmem>>, %arg3: memref<32x16xbf16, #tpu.memory_space<vmem>>, %arg4: memref<1x16xf32, #tpu.memory_space<vmem>>, %arg5: memref<144x64xbf16, #tpu.memory_space<vmem>>, %arg6: memref<1x64xf32, #tpu.memory_space<vmem>>, %arg7: memref<64x10xbf16, #tpu.memory_space<vmem>>, %arg8: memref<1x10xf32, #tpu.memory_space<vmem>>, %arg9: memref<8x10xf32, #tpu.memory_space<vmem>>) attributes {dimension_semantics = [#tpu.dimension_semantics<parallel>], iteration_bounds = array<i64: 2>, scalar_prefetch = 0 : i64, scratch_operands = 0 : i64, tpu.core_type = #tpu.core_type<tc>, window_params = [{transform_indices = @transform_0, window_bounds = array<i64: 2048, 24>}, {pipeline_mode = #tpu.pipeline_mode<synchronous>, transform_indices = @transform_1, window_bounds = array<i64: 24, 32>}, {pipeline_mode = #tpu.pipeline_mode<synchronous>, transform_indices = @transform_2, window_bounds = array<i64: 32, 16>}, {pipeline_mode = #tpu.pipeline_mode<synchronous>, transform_indices = @transform_3, window_bounds = array<i64: 1, 16>}, {pipeline_mode = #tpu.pipeline_mode<synchronous>, transform_indices = @transform_4, window_bounds = array<i64: 144, 64>}, {pipeline_mode = #tpu.pipeline_mode<synchronous>, transform_indices = @transform_5, window_bounds = array<i64: 1, 64>}, {pipeline_mode = #tpu.pipeline_mode<synchronous>, transform_indices = @transform_6, window_bounds = array<i64: 64, 10>}, {pipeline_mode = #tpu.pipeline_mode<synchronous>, transform_indices = @transform_7, window_bounds = array<i64: 1, 10>}, {transform_indices = @transform_8, window_bounds = array<i64: 8, 10>}]} {
    %c0 = arith.constant 0 : index
    %c0_0 = arith.constant 0 : index
    %0 = vector.load %arg1[%c0, %c0_0] : memref<2048x24xbf16, #tpu.memory_space<vmem>>, vector<2048x24xbf16>
    %c0_1 = arith.constant 0 : index
    %c0_2 = arith.constant 0 : index
    %1 = vector.load %arg2[%c0_1, %c0_2] : memref<24x32xbf16, #tpu.memory_space<vmem>>, vector<24x32xbf16>
    %cst = arith.constant dense<0.000000e+00> : vector<2048x32xf32>
    %2 = tpu.matmul %0, %1, %cst {dimension_numbers = #tpu.dot_dimension_numbers<[1], [0], [0], [1], [0, 0, 1, 1], [], []>} : vector<2048x24xbf16>, vector<24x32xbf16>, vector<2048x32xf32> -> vector<2048x32xf32>
    %3 = vector.extract_strided_slice %2 {offsets = [0, 0], sizes = [2048, 8], strides = [1, 1]} : vector<2048x32xf32> to vector<2048x8xf32>
    %4 = vector.extract_strided_slice %2 {offsets = [0, 8], sizes = [2048, 8], strides = [1, 1]} : vector<2048x32xf32> to vector<2048x8xf32>
    %5 = arith.maximumf %3, %4 : vector<2048x8xf32>
    %6 = vector.extract_strided_slice %2 {offsets = [0, 16], sizes = [2048, 8], strides = [1, 1]} : vector<2048x32xf32> to vector<2048x8xf32>
    %7 = vector.extract_strided_slice %2 {offsets = [0, 24], sizes = [2048, 8], strides = [1, 1]} : vector<2048x32xf32> to vector<2048x8xf32>
    %8 = arith.maximumf %6, %7 : vector<2048x8xf32>
    %9 = arith.maximumf %5, %8 : vector<2048x8xf32>
    %10 = vector.extract_strided_slice %9 {offsets = [0, 0], sizes = [1504, 8], strides = [1, 1]} : vector<2048x8xf32> to vector<1504x8xf32>
    %11 = vector.extract_strided_slice %9 {offsets = [8, 0], sizes = [1504, 8], strides = [1, 1]} : vector<2048x8xf32> to vector<1504x8xf32>
    %12 = vector.extract_strided_slice %9 {offsets = [128, 0], sizes = [1504, 8], strides = [1, 1]} : vector<2048x8xf32> to vector<1504x8xf32>
    %13 = vector.extract_strided_slice %9 {offsets = [136, 0], sizes = [1504, 8], strides = [1, 1]} : vector<2048x8xf32> to vector<1504x8xf32>
    %14 = tpu.concatenate %10, %11, %12, %13 in 1 : vector<1504x8xf32>, vector<1504x8xf32>, vector<1504x8xf32>, vector<1504x8xf32> -> vector<1504x32xf32>
    %15 = arith.truncf %14 : vector<1504x32xf32> to vector<1504x32xbf16>
    %c0_3 = arith.constant 0 : index
    %c0_4 = arith.constant 0 : index
    %16 = vector.load %arg3[%c0_3, %c0_4] : memref<32x16xbf16, #tpu.memory_space<vmem>>, vector<32x16xbf16>
    %cst_5 = arith.constant dense<0.000000e+00> : vector<1504x16xf32>
    %17 = tpu.matmul %15, %16, %cst_5 {dimension_numbers = #tpu.dot_dimension_numbers<[1], [0], [0], [1], [0, 0, 1, 1], [], []>} : vector<1504x32xbf16>, vector<32x16xbf16>, vector<1504x16xf32> -> vector<1504x16xf32>
    %c0_6 = arith.constant 0 : index
    %c0_7 = arith.constant 0 : index
    %18 = vector.load %arg4[%c0_6, %c0_7] : memref<1x16xf32, #tpu.memory_space<vmem>>, vector<1x16xf32>
    %19 = vector.broadcast %18 : vector<1x16xf32> to vector<1504x16xf32>
    %20 = arith.addf %17, %19 : vector<1504x16xf32>
    %cst_8 = arith.constant 0.000000e+00 : f32
    %21 = vector.broadcast %cst_8 : f32 to vector<1504x16xf32>
    %22 = arith.maximumf %20, %21 : vector<1504x16xf32>
    %23 = vector.extract_strided_slice %22 {offsets = [0, 0], sizes = [1480, 16], strides = [1, 1]} : vector<1504x16xf32> to vector<1480x16xf32>
    %24 = vector.extract_strided_slice %22 {offsets = [8, 0], sizes = [1480, 16], strides = [1, 1]} : vector<1504x16xf32> to vector<1480x16xf32>
    %25 = arith.maximumf %23, %24 : vector<1480x16xf32>
    %26 = vector.extract_strided_slice %22 {offsets = [16, 0], sizes = [1480, 16], strides = [1, 1]} : vector<1504x16xf32> to vector<1480x16xf32>
    %27 = arith.maximumf %25, %26 : vector<1480x16xf32>
    %28 = vector.extract_strided_slice %22 {offsets = [24, 0], sizes = [1480, 16], strides = [1, 1]} : vector<1504x16xf32> to vector<1480x16xf32>
    %29 = arith.maximumf %27, %28 : vector<1480x16xf32>
    %30 = vector.extract_strided_slice %29 {offsets = [0, 0], sizes = [1096, 16], strides = [1, 1]} : vector<1480x16xf32> to vector<1096x16xf32>
    %31 = vector.extract_strided_slice %29 {offsets = [128, 0], sizes = [1096, 16], strides = [1, 1]} : vector<1480x16xf32> to vector<1096x16xf32>
    %32 = arith.maximumf %30, %31 : vector<1096x16xf32>
    %33 = vector.extract_strided_slice %29 {offsets = [256, 0], sizes = [1096, 16], strides = [1, 1]} : vector<1480x16xf32> to vector<1096x16xf32>
    %34 = arith.maximumf %32, %33 : vector<1096x16xf32>
    %35 = vector.extract_strided_slice %29 {offsets = [384, 0], sizes = [1096, 16], strides = [1, 1]} : vector<1480x16xf32> to vector<1096x16xf32>
    %36 = arith.maximumf %34, %35 : vector<1096x16xf32>
    %37 = vector.extract_strided_slice %36 {offsets = [0, 0], sizes = [8, 16], strides = [1, 1]} : vector<1096x16xf32> to vector<8x16xf32>
    %38 = arith.truncf %37 : vector<8x16xf32> to vector<8x16xbf16>
    %c0_9 = arith.constant 0 : index
    %c0_10 = arith.constant 0 : index
    %39 = vector.load %arg5[%c0_9, %c0_10] : memref<144x64xbf16, #tpu.memory_space<vmem>>, vector<16x64xbf16>
    %cst_11 = arith.constant dense<0.000000e+00> : vector<8x64xf32>
    %40 = tpu.matmul %38, %39, %cst_11 {dimension_numbers = #tpu.dot_dimension_numbers<[1], [0], [0], [1], [0, 0, 1, 1], [], []>} : vector<8x16xbf16>, vector<16x64xbf16>, vector<8x64xf32> -> vector<8x64xf32>
    %41 = vector.extract_strided_slice %36 {offsets = [32, 0], sizes = [8, 16], strides = [1, 1]} : vector<1096x16xf32> to vector<8x16xf32>
    %42 = arith.truncf %41 : vector<8x16xf32> to vector<8x16xbf16>
    %c16 = arith.constant 16 : index
    %c0_12 = arith.constant 0 : index
    %43 = vector.load %arg5[%c16, %c0_12] : memref<144x64xbf16, #tpu.memory_space<vmem>>, vector<16x64xbf16>
    %cst_13 = arith.constant dense<0.000000e+00> : vector<8x64xf32>
    %44 = tpu.matmul %42, %43, %cst_13 {dimension_numbers = #tpu.dot_dimension_numbers<[1], [0], [0], [1], [0, 0, 1, 1], [], []>} : vector<8x16xbf16>, vector<16x64xbf16>, vector<8x64xf32> -> vector<8x64xf32>
    %45 = arith.addf %40, %44 : vector<8x64xf32>
    %46 = vector.extract_strided_slice %36 {offsets = [64, 0], sizes = [8, 16], strides = [1, 1]} : vector<1096x16xf32> to vector<8x16xf32>
    %47 = arith.truncf %46 : vector<8x16xf32> to vector<8x16xbf16>
    %c32 = arith.constant 32 : index
    %c0_14 = arith.constant 0 : index
    %48 = vector.load %arg5[%c32, %c0_14] : memref<144x64xbf16, #tpu.memory_space<vmem>>, vector<16x64xbf16>
    %cst_15 = arith.constant dense<0.000000e+00> : vector<8x64xf32>
    %49 = tpu.matmul %47, %48, %cst_15 {dimension_numbers = #tpu.dot_dimension_numbers<[1], [0], [0], [1], [0, 0, 1, 1], [], []>} : vector<8x16xbf16>, vector<16x64xbf16>, vector<8x64xf32> -> vector<8x64xf32>
    %50 = arith.addf %45, %49 : vector<8x64xf32>
    %51 = vector.extract_strided_slice %36 {offsets = [512, 0], sizes = [8, 16], strides = [1, 1]} : vector<1096x16xf32> to vector<8x16xf32>
    %52 = arith.truncf %51 : vector<8x16xf32> to vector<8x16xbf16>
    %c48 = arith.constant 48 : index
    %c0_16 = arith.constant 0 : index
    %53 = vector.load %arg5[%c48, %c0_16] : memref<144x64xbf16, #tpu.memory_space<vmem>>, vector<16x64xbf16>
    %cst_17 = arith.constant dense<0.000000e+00> : vector<8x64xf32>
    %54 = tpu.matmul %52, %53, %cst_17 {dimension_numbers = #tpu.dot_dimension_numbers<[1], [0], [0], [1], [0, 0, 1, 1], [], []>} : vector<8x16xbf16>, vector<16x64xbf16>, vector<8x64xf32> -> vector<8x64xf32>
    %55 = arith.addf %50, %54 : vector<8x64xf32>
    %56 = vector.extract_strided_slice %36 {offsets = [544, 0], sizes = [8, 16], strides = [1, 1]} : vector<1096x16xf32> to vector<8x16xf32>
    %57 = arith.truncf %56 : vector<8x16xf32> to vector<8x16xbf16>
    %c64 = arith.constant 64 : index
    %c0_18 = arith.constant 0 : index
    %58 = vector.load %arg5[%c64, %c0_18] : memref<144x64xbf16, #tpu.memory_space<vmem>>, vector<16x64xbf16>
    %cst_19 = arith.constant dense<0.000000e+00> : vector<8x64xf32>
    %59 = tpu.matmul %57, %58, %cst_19 {dimension_numbers = #tpu.dot_dimension_numbers<[1], [0], [0], [1], [0, 0, 1, 1], [], []>} : vector<8x16xbf16>, vector<16x64xbf16>, vector<8x64xf32> -> vector<8x64xf32>
    %60 = arith.addf %55, %59 : vector<8x64xf32>
    %61 = vector.extract_strided_slice %36 {offsets = [576, 0], sizes = [8, 16], strides = [1, 1]} : vector<1096x16xf32> to vector<8x16xf32>
    %62 = arith.truncf %61 : vector<8x16xf32> to vector<8x16xbf16>
    %c80 = arith.constant 80 : index
    %c0_20 = arith.constant 0 : index
    %63 = vector.load %arg5[%c80, %c0_20] : memref<144x64xbf16, #tpu.memory_space<vmem>>, vector<16x64xbf16>
    %cst_21 = arith.constant dense<0.000000e+00> : vector<8x64xf32>
    %64 = tpu.matmul %62, %63, %cst_21 {dimension_numbers = #tpu.dot_dimension_numbers<[1], [0], [0], [1], [0, 0, 1, 1], [], []>} : vector<8x16xbf16>, vector<16x64xbf16>, vector<8x64xf32> -> vector<8x64xf32>
    %65 = arith.addf %60, %64 : vector<8x64xf32>
    %66 = vector.extract_strided_slice %36 {offsets = [1024, 0], sizes = [8, 16], strides = [1, 1]} : vector<1096x16xf32> to vector<8x16xf32>
    %67 = arith.truncf %66 : vector<8x16xf32> to vector<8x16xbf16>
    %c96 = arith.constant 96 : index
    %c0_22 = arith.constant 0 : index
    %68 = vector.load %arg5[%c96, %c0_22] : memref<144x64xbf16, #tpu.memory_space<vmem>>, vector<16x64xbf16>
    %cst_23 = arith.constant dense<0.000000e+00> : vector<8x64xf32>
    %69 = tpu.matmul %67, %68, %cst_23 {dimension_numbers = #tpu.dot_dimension_numbers<[1], [0], [0], [1], [0, 0, 1, 1], [], []>} : vector<8x16xbf16>, vector<16x64xbf16>, vector<8x64xf32> -> vector<8x64xf32>
    %70 = arith.addf %65, %69 : vector<8x64xf32>
    %71 = vector.extract_strided_slice %36 {offsets = [1056, 0], sizes = [8, 16], strides = [1, 1]} : vector<1096x16xf32> to vector<8x16xf32>
    %72 = arith.truncf %71 : vector<8x16xf32> to vector<8x16xbf16>
    %c112 = arith.constant 112 : index
    %c0_24 = arith.constant 0 : index
    %73 = vector.load %arg5[%c112, %c0_24] : memref<144x64xbf16, #tpu.memory_space<vmem>>, vector<16x64xbf16>
    %cst_25 = arith.constant dense<0.000000e+00> : vector<8x64xf32>
    %74 = tpu.matmul %72, %73, %cst_25 {dimension_numbers = #tpu.dot_dimension_numbers<[1], [0], [0], [1], [0, 0, 1, 1], [], []>} : vector<8x16xbf16>, vector<16x64xbf16>, vector<8x64xf32> -> vector<8x64xf32>
    %75 = arith.addf %70, %74 : vector<8x64xf32>
    %76 = vector.extract_strided_slice %36 {offsets = [1088, 0], sizes = [8, 16], strides = [1, 1]} : vector<1096x16xf32> to vector<8x16xf32>
    %77 = arith.truncf %76 : vector<8x16xf32> to vector<8x16xbf16>
    %c128 = arith.constant 128 : index
    %c0_26 = arith.constant 0 : index
    %78 = vector.load %arg5[%c128, %c0_26] : memref<144x64xbf16, #tpu.memory_space<vmem>>, vector<16x64xbf16>
    %cst_27 = arith.constant dense<0.000000e+00> : vector<8x64xf32>
    %79 = tpu.matmul %77, %78, %cst_27 {dimension_numbers = #tpu.dot_dimension_numbers<[1], [0], [0], [1], [0, 0, 1, 1], [], []>} : vector<8x16xbf16>, vector<16x64xbf16>, vector<8x64xf32> -> vector<8x64xf32>
    %80 = arith.addf %75, %79 : vector<8x64xf32>
    %c0_28 = arith.constant 0 : index
    %c0_29 = arith.constant 0 : index
    %81 = vector.load %arg6[%c0_28, %c0_29] : memref<1x64xf32, #tpu.memory_space<vmem>>, vector<1x64xf32>
    %82 = vector.broadcast %81 : vector<1x64xf32> to vector<8x64xf32>
    %83 = arith.addf %80, %82 : vector<8x64xf32>
    %cst_30 = arith.constant 0.000000e+00 : f32
    %84 = vector.broadcast %cst_30 : f32 to vector<8x64xf32>
    %85 = arith.maximumf %83, %84 : vector<8x64xf32>
    %86 = arith.truncf %85 : vector<8x64xf32> to vector<8x64xbf16>
    %c0_31 = arith.constant 0 : index
    %c0_32 = arith.constant 0 : index
    %87 = vector.load %arg7[%c0_31, %c0_32] : memref<64x10xbf16, #tpu.memory_space<vmem>>, vector<64x10xbf16>
    %cst_33 = arith.constant dense<0.000000e+00> : vector<8x10xf32>
    %88 = tpu.matmul %86, %87, %cst_33 {dimension_numbers = #tpu.dot_dimension_numbers<[1], [0], [0], [1], [0, 0, 1, 1], [], []>} : vector<8x64xbf16>, vector<64x10xbf16>, vector<8x10xf32> -> vector<8x10xf32>
    %c0_34 = arith.constant 0 : index
    %c0_35 = arith.constant 0 : index
    %89 = vector.load %arg8[%c0_34, %c0_35] : memref<1x10xf32, #tpu.memory_space<vmem>>, vector<1x10xf32>
    %90 = vector.broadcast %89 : vector<1x10xf32> to vector<8x10xf32>
    %91 = arith.addf %88, %90 : vector<8x10xf32>
    %c0_36 = arith.constant 0 : index
    %c0_37 = arith.constant 0 : index
    %92 = vector.load %arg9[%c0_36, %c0_37] : memref<8x10xf32, #tpu.memory_space<vmem>>, vector<8x10xf32>
    tpu.vector_store %arg9[%c0_36, %c0_37], %91 {strides = array<i32>} : memref<8x10xf32, #tpu.memory_space<vmem>>, vector<8x10xf32>,
    return
  }
  func.func @transform_0(%arg0: i32) -> (i32, i32) {
    %c0_i32 = arith.constant 0 : i32
    %c0_i32_0 = arith.constant 0 : i32
    return %arg0, %c0_i32 : i32, i32
  }
  func.func @transform_1(%arg0: i32) -> (i32, i32) {
    %c0_i32 = arith.constant 0 : i32
    %c0_i32_0 = arith.constant 0 : i32
    %c0_i32_1 = arith.constant 0 : i32
    return %c0_i32, %c0_i32_0 : i32, i32
  }
  func.func @transform_2(%arg0: i32) -> (i32, i32) {
    %c0_i32 = arith.constant 0 : i32
    %c0_i32_0 = arith.constant 0 : i32
    %c0_i32_1 = arith.constant 0 : i32
    return %c0_i32, %c0_i32_0 : i32, i32
  }
  func.func @transform_3(%arg0: i32) -> (i32, i32) {
    %c0_i32 = arith.constant 0 : i32
    %c0_i32_0 = arith.constant 0 : i32
    %c0_i32_1 = arith.constant 0 : i32
    return %c0_i32, %c0_i32_0 : i32, i32
  }
  func.func @transform_4(%arg0: i32) -> (i32, i32) {
    %c0_i32 = arith.constant 0 : i32
    %c0_i32_0 = arith.constant 0 : i32
    %c0_i32_1 = arith.constant 0 : i32
    return %c0_i32, %c0_i32_0 : i32, i32
  }
  func.func @transform_5(%arg0: i32) -> (i32, i32) {
    %c0_i32 = arith.constant 0 : i32
    %c0_i32_0 = arith.constant 0 : i32
    %c0_i32_1 = arith.constant 0 : i32
    return %c0_i32, %c0_i32_0 : i32, i32
  }
  func.func @transform_6(%arg0: i32) -> (i32, i32) {
    %c0_i32 = arith.constant 0 : i32
    %c0_i32_0 = arith.constant 0 : i32
    %c0_i32_1 = arith.constant 0 : i32
    return %c0_i32, %c0_i32_0 : i32, i32
  }
  func.func @transform_7(%arg0: i32) -> (i32, i32) {
    %c0_i32 = arith.constant 0 : i32
    %c0_i32_0 = arith.constant 0 : i32
    %c0_i32_1 = arith.constant 0 : i32
    return %c0_i32, %c0_i32_0 : i32, i32
  }
  func.func @transform_8(%arg0: i32) -> (i32, i32) {
    %c0_i32 = arith.constant 0 : i32
    %c0_i32_0 = arith.constant 0 : i32
    return %arg0, %c0_i32 : i32, i32
  }
}

</mosaic_0001>

<bundles_post_ra>
// kernel: tile.8
= control target key start
LH: loop header
LB: loop body
LE: loop exit
PB: predicated region body
PF: predicated region fallthrough
CT: control target
= control target key end

     0   :  { %v8_v1 = vmov 0.0   ;;  %s25_s0 = inlined_call_operand.vmem [shape: f32[8], index: 0, kind: input, shape index: {}]   ;;  %s26_s1 = inlined_call_operand.vmem [shape: bf16[4,8], index: 1, kind: output, shape index: {}]  }
   0x1   :  { %v4_v0 = vld [vmem:[%s25_s0] ss:$0 sm:$0xff] }
   0x2   :  { %v5_v2 = vpack.c.bf16 %v8_v1, %v4_v0 }
   0x4   :  { %6 = vst [vmem:[%s26_s1] sm:$0x3] %v5_v2 }

// kernel: mnist_cnn_forward.1
= control target key start
LH: loop header
LB: loop body
LE: loop exit
PB: predicated region body
PF: predicated region fallthrough
CT: control target
= control target key end

     0   :  { %13 = vsyncpa [#allocation3], 0  ;;  %s18775_s0 = inlined_call_operand.vmem [shape: bf16[4096,24], index: 0, kind: input, shape index: {}]   ;;  %s18776_s1 = inlined_call_operand.vmem [shape: bf16[24,32], index: 1, kind: input, shape index: {}]   ;;  %s18777_s2 = inlined_call_operand.vmem [shape: bf16[32,16], index: 2, kind: input, shape index: {}]   ;;  %s18778_s3 = inlined_call_operand.vmem [shape: f32[1,16], index: 3, kind: input, shape index: {}]   ;;  %s18779_s4 = inlined_call_operand.vmem [shape: bf16[144,64], index: 4, kind: input, shape index: {}]   ;;  %s18780_s5 = inlined_call_operand.vmem [shape: f32[1,64], index: 5, kind: input, shape index: {}]   ;;  %s18781_s6 = inlined_call_operand.vmem [shape: bf16[64,10], index: 6, kind: input, shape index: {}]   ;;  %s18782_s7 = inlined_call_operand.vmem [shape: f32[1,10], index: 7, kind: input, shape index: {}]   ;;  %s18783_s8 = inlined_call_operand.hbm [shape: f32[16,10], index: 8, kind: output, shape index: {}]  }
   0x1   :  { %15 = vsyncpa [#allocation3 + $0x1], 0  ;;  %s13091_s27 = smov 0   ;;  %s13093_s28 = smov 0  }
   0x2   :  { %s13095_s29 = smov 0   ;;  %s13097_s30 = smov 0  }
   0x3 LB: > { %s13112_s9 = sadd.s32 4294967295, %s13036_s30   ;;  %s9185_s10 = sadd.s32 4294967294, %s13036_s30   ;;  %s13036_s30 = sphi %s13097_s30, %s20489_s30   ;;  %s13032_s29 = sphi %s13095_s29, %s20488_s29   ;;  %s13028_s28 = sphi %s13093_s28, %s20487_s28   ;;  %s13024_s27 = sphi %s13091_s27, %s20486_s27  }
   0x4   : > { %s13116_s11 = sadd.s32 1, %s13036_s30   ;;  %s201_s12 = sadd.s32 1, %s13032_s29 }
   0x5   : > { %s198_s13 = ssub.s32 %s13036_s30, %s13116_s11  ;;  %p211_p0 = scmp.ne.s32.totalorder %s13032_s29, %s13028_s28 }
   0x6   : > { %p199_p1 = scmp.eq.s32.totalorder %s198_s13, 0  ;;  %p212_p2 = scmp.eq.s32.totalorder %s13112_s9, 1 }
   0x7   : > { %p217_p3 = scmp.ne.s32.totalorder %s13028_s28, %s13024_s27  ;;  %p218_p4 = scmp.eq.s32.totalorder %s9185_s10, 1 }
   0x8   : > { %s13127_s14 = scalar_select %p199_p1, %s13032_s29, %s201_s12  }
   0x9   : > { %p13129_p5 = por %p212_p2, %p211_p0  ;;  %p13133_p6 = por %p218_p4, %p217_p3 }
   0xa   : > { %p9188_p7 = scmp.ge.s32.totalorder %s13036_s30, 1  ;;  %p266_p8 = scmp.lt.s32.totalorder %s13036_s30, 3 }
   0xc   : > { %p267_p9 = pnand %p9188_p7, %p266_p8 }
   0xe   : > { %270 = sbr.rel (%p267_p9) target bundleno = 2083 (0x823), region = 52 }
  0x15   : > { %v12825_v0 = vld [vmem:[%s18776_s1] sm:$0xff]   ;;  %v12826_v1 = vld [vmem:[%s18776_s1 + $0x8] ss:$0 sps:$4 sm:$0xff]   ;;  %vm1600_vm0 = vcmask 1043456   ;;  %s9190_s21 = sshll.u32 %s13112_s9, 8  ;;  %vm1215_vm1 = vcmask 195584  }
  0x16   : > { %9825 = vmatprep.subr.bf16.mxu0 %v12825_v0  ;;  %p301_p10 = scmp.lt.s32.totalorder %s9190_s21, 511  ;;  %10343 = vmatprep.subr.bf16.mxu1 %v12825_v0  ;;  %v1602_v2 = vsel %vm1600_vm0, %v12826_v1, 0  ;;  %s13038_s26 = smov 120   ;;  %vm6556_vm2 = vcmask 64512   ;;  %vm6745_vm3 = vcmask 130048   ;;  %vm7239_vm4 = vcmask 261120  }
  0x17   : > { %9826 = vmatpush3.bf16.msra.mxu0 %v12825_v0  ;;  %10345 = vmatpush3.bf16.msra.mxu1 %v12825_v0  ;;  %s13039_s10 = smov 112   ;;  %s13040_s12 = smov 8   ;;  %vm13044_vm5 = vmmov 0   ;;  %vm9066_vm6 = vcmask 523264   ;;  %vm9110_vm7 = vcmask 80896  }
  0x18   : > { %10347 = vmatprep.subr.msk.bf16.mxu0 %vm1600_vm0, %v12826_v1  ;;  %s20491_s21 = smov (!%p301_p10, %s9190_s21), 511  ;;  %10348 = vmatprep.subr.msk.bf16.mxu1 %vm1600_vm0, %v12826_v1  ;;  %s13041_s13 = smov 16  }
  0x19   : > { %s9191_s22 = sshll.u32 %s20491_s21, 2  ;;  %s13042_s19 = smov 24  }
  0x1a   : > { %s13149_s25 = scalar_lea.vmem %s18775_s0, %s9191_s22  ;;  %s297_s23 = sand.u32 1, %s13028_s28  }
  0x1b   : > { %9828 = vmatpush3.bf16.msra.mxu0 %v1602_v2  ;;  %10346 = vmatpush3.bf16.msra.mxu1 %v1602_v2  ;;  %v12827_v3 = vld [vmem:[%s13149_s25] sm:$0xff]   ;;  %v12828_v4 = vld [vmem:[%s13149_s25 + $0x8] sm:$0xff]   ;;  %v12829_v5 = vld [vmem:[%s13149_s25 + $0x10] sm:$0xff]   ;;  %s9189_s24 = sshll.u32 %s297_s23, 3  ;;  %s9573_s17 = sshll.u32 %s13112_s9, 7 }
  0x1c   : > { %9829 = vmatprep.mubr.msk.bf16.mxu0 %vm1215_vm1, %v12827_v3  ;;  %v12830_v6 = vld [vmem:[%s13149_s25 + $0x18] sm:$0xff]   ;;  %v12831_v7 = vld [vmem:[%s13149_s25 + $0x20] sm:$0xff]   ;;  %v12832_v8 = vld [vmem:[%s13149_s25 + $0x28] sm:$0xff]   ;;  %s299_s18 = scalar_lea.vmem [#allocation2], %s9189_s24  ;;  %s9113_s9 = scalar_lea.sflag [#allocation3], %s297_s23 }
  0x1d   : > { %v12833_v9 = vld [vmem:[%s13149_s25 + $0x30] sm:$0xff]   ;;  %v12834_v10 = vld [vmem:[%s13149_s25 + $0x38] sm:$0xff]   ;;  %v12835_v11 = vld [vmem:[%s13149_s25 + $0x40] sm:$0xff]   ;;  %s9126_s20 = sshll.u32 %s299_s18, 4  ;;  %s18735_s20 = int_to_ptr.vmem [resolvable:$true] %s9126_s20 }
  0x1e   : > { %9830 = vmatmul.mubr.msk.bf16.vlgmr.msra.gmra.mrb[0].mxu0 %vm1215_vm1, %v12828_v4  ;;  %v12836_v12 = vld [vmem:[%s13149_s25 + $0x48] sm:$0xff]   ;;  %v12837_v13 = vld [vmem:[%s13149_s25 + $0x50] sm:$0xff]   ;;  %v12838_v14 = vld [vmem:[%s13149_s25 + $0x58] sm:$0xff]  }
  0x1f   : > { %9833 = vmatprep.mubr.msk.bf16.mxu0 %vm1215_vm1, %v12829_v5  ;;  %v12839_v15 = vld [vmem:[%s13149_s25 + $0x60] sm:$0xff]   ;;  %v12840_v16 = vld [vmem:[%s13149_s25 + $0x68] sm:$0xff]   ;;  %v12841_v17 = vld [vmem:[%s13149_s25 + $0x70] sm:$0xff]  }
  0x20   : > { %v12842_v18 = vld [vmem:[%s13149_s25 + $0x78] sm:$0xff]   ;;  %v12843_v19 = vld [vmem:[%s13149_s25 + $0x80] sm:$0xff]   ;;  %v12844_v20 = vld [vmem:[%s13149_s25 + $0x88] sm:$0xff]  }
  0x21   : > { %v12845_v21 = vld [vmem:[%s13149_s25 + $0x90] sm:$0xff]   ;;  %v12846_v22 = vld [vmem:[%s13149_s25 + $0x98] sm:$0xff]   ;;  %v12847_v23 = vld [vmem:[%s13149_s25 + $0xa0] sm:$0xff]  }
  0x22   : > { %v12848_v24 = vld [vmem:[%s13149_s25 + $0xa8] sm:$0xff]   ;;  %v12849_v25 = vld [vmem:[%s13149_s25 + $0xb0] sm:$0xff]   ;;  %v12850_v26 = vld [vmem:[%s13149_s25 + $0xb8] sm:$0xff]  }
  0x23   : > { %v12851_v27 = vld [vmem:[%s13149_s25 + $0xc0] sm:$0xff]   ;;  %v12852_v28 = vld [vmem:[%s13149_s25 + $0xc8] sm:$0xff]   ;;  %v12853_v29 = vld [vmem:[%s13149_s25 + $0xd0] sm:$0xff]  }
  0x24   : > { %v12854_v30 = vld [vmem:[%s13149_s25 + $0xd8] sm:$0xff]   ;;  %v12855_v31 = vld [vmem:[%s13149_s25 + $0xe0] sm:$0xff]   ;;  %v12856_v32 = vld [vmem:[%s13149_s25 + $0xe8] sm:$0xff]  }
  0x25   : > { %v12857_v33 = vld [vmem:[%s13149_s25 + $0xf0] sm:$0xff]   ;;  %v12858_v34 = vld [vmem:[%s13149_s25 + $0xf8] sm:$0xff]   ;;  %v12859_v35 = vld [vmem:[%s13149_s25 + $0x100] sm:$0xff]  }
  0x26   : > { %9834 = vmatmul.mubr.msk.bf16.gmra.mrb[4].mxu0 %vm1215_vm1, %v12830_v6  ;;  %v12860_v36 = vld [vmem:[%s13149_s25 + $0x108] sm:$0xff]   ;;  %v12861_v37 = vld [vmem:[%s13149_s25 + $0x110] sm:$0xff]   ;;  %v12862_v38 = vld [vmem:[%s13149_s25 + $0x118] sm:$0xff]  }
  0x27   : > { %9837 = vmatprep.mubr.msk.bf16.mxu0 %vm1215_vm1, %v12831_v7  ;;  %v12863_v39 = vld [vmem:[%s13149_s25 + $0x120] sm:$0xff]   ;;  %v12864_v40 = vld [vmem:[%s13149_s25 + $0x128] sm:$0xff]   ;;  %v12865_v41 = vld [vmem:[%s13149_s25 + $0x130] sm:$0xff]  }
  0x28   : > { %v12866_v42 = vld [vmem:[%s13149_s25 + $0x138] sm:$0xff]   ;;  %v12867_v43 = vld [vmem:[%s13149_s25 + $0x140] sm:$0xff]   ;;  %v12868_v44 = vld [vmem:[%s13149_s25 + $0x148] sm:$0xff]  }
  0x29   : > { %v12869_v45 = vld [vmem:[%s13149_s25 + $0x150] sm:$0xff]   ;;  %v12870_v46 = vld [vmem:[%s13149_s25 + $0x158] sm:$0xff]   ;;  %v12871_v47 = vld [vmem:[%s13149_s25 + $0x160] sm:$0xff]  }
  0x2a   : > { %v12872_v48 = vld [vmem:[%s13149_s25 + $0x168] sm:$0xff]   ;;  %v12873_v49 = vld [vmem:[%s13149_s25 + $0x170] sm:$0xff]   ;;  %v12874_v50 = vld [vmem:[%s13149_s25 + $0x178] sm:$0xff]  }
  0x2b   : > { %v12875_v51 = vld [vmem:[%s13149_s25 + $0x180] sm:$0xff]   ;;  %v12876_v52 = vld [vmem:[%s13149_s25 + $0x188] sm:$0xff]   ;;  %v12877_v53 = vld [vmem:[%s13149_s25 + $0x190] sm:$0xff]  }
  0x2c   : > { %v12878_v54 = vld [vmem:[%s13149_s25 + $0x198] sm:$0xff]   ;;  %v12879_v55 = vld [vmem:[%s13149_s25 + $0x1a0] sm:$0xff]   ;;  %v12880_v56 = vld [vmem:[%s13149_s25 + $0x1a8] sm:$0xff]  }
  0x2d   : > { %v12881_v57 = vld [vmem:[%s13149_s25 + $0x1b0] sm:$0xff]   ;;  %v12882_v60 = vld [vmem:[%s13149_s25 + $0x1b8] sm:$0xff]   ;;  %v12883_v62 = vld [vmem:[%s13149_s25 + $0x1c0] sm:$0xff]  }
  0x2e   : > { %9838 = vmatmul.mubr.msk.bf16.gmra.mrb[8].mxu0 %vm1215_vm1, %v12832_v8  ;;  %v12884_v4 = vld [vmem:[%s13149_s25 + $0x1c8] sm:$0xff]   ;;  %v12885_v6 = vld [vmem:[%s13149_s25 + $0x1d0] sm:$0xff]  }
  0x2f   : > { %9841 = vmatprep.mubr.msk.bf16.mxu0 %vm1215_vm1, %v12833_v9 }
  0x36   : > { %9842 = vmatmul.mubr.msk.bf16.gmra.mrb[12].mxu0 %vm1215_vm1, %v12834_v10 }
  0x37   : > { %9845 = vmatprep.mubr.msk.bf16.mxu0 %vm1215_vm1, %v12835_v11 }
  0x3e   : > { %9846 = vmatmul.mubr.msk.bf16.gmra.mrb[16].mxu0 %vm1215_vm1, %v12836_v12  ;;  %v12886_v12 = vld [vmem:[%s13149_s25 + $0x1d8] sm:$0xff]  }
  0x3f   : > { %9849 = vmatprep.mubr.msk.bf16.mxu0 %vm1215_vm1, %v12837_v13 }
  0x46   : > { %9850 = vmatmul.mubr.msk.bf16.gmra.mrb[20].mxu0 %vm1215_vm1, %v12838_v14  ;;  %v12887_v14 = vld [vmem:[%s13149_s25 + $0x1e0] sm:$0xff]  }
  0x47   : > { %9853 = vmatprep.mubr.msk.bf16.mxu0 %vm1215_vm1, %v12839_v15 }
  0x4e   : > { %9854 = vmatmul.mubr.msk.bf16.gmra.mrb[24].mxu0 %vm1215_vm1, %v12840_v16 }
  0x4f   : > { %9857 = vmatprep.mubr.msk.bf16.mxu0 %vm1215_vm1, %v12841_v17 }
  0x56   : > { %9858 = vmatmul.mubr.msk.bf16.gmra.mrb[28].mxu0 %vm1215_vm1, %v12842_v18 }
  0x57   : > { %9861 = vmatprep.mubr.msk.bf16.mxu0 %vm1215_vm1, %v12843_v19 }
  0x5e   : > { %9862 = vmatmul.mubr.msk.bf16.gmra.mrb[32].mxu0 %vm1215_vm1, %v12844_v20  ;;  %v12888_v20 = vld [vmem:[%s13149_s25 + $0x1e8] sm:$0xff]  }
  0x5f   : > { %9865 = vmatprep.mubr.msk.bf16.mxu0 %vm1215_vm1, %v12845_v21 }
  0x66   : > { %9866 = vmatmul.mubr.msk.bf16.gmra.mrb[36].mxu0 %vm1215_vm1, %v12846_v22  ;;  %v12889_v22 = vld [vmem:[%s13149_s25 + $0x1f0] sm:$0xff]  }
  0x67   : > { %9869 = vmatprep.mubr.msk.bf16.mxu0 %vm1215_vm1, %v12847_v23 }
  0x6e   : > { %9870 = vmatmul.mubr.msk.bf16.gmra.mrb[40].mxu0 %vm1215_vm1, %v12848_v24 }
  0x6f   : > { %9873 = vmatprep.mubr.msk.bf16.mxu0 %vm1215_vm1, %v12849_v25 }
  0x76   : > { %9874 = vmatmul.mubr.msk.bf16.gmra.mrb[44].mxu0 %vm1215_vm1, %v12850_v26 }
  0x77   : > { %9877 = vmatprep.mubr.msk.bf16.mxu0 %vm1215_vm1, %v12851_v27 }
  0x7e   : > { %9878 = vmatmul.mubr.msk.bf16.gmra.mrb[48].mxu0 %vm1215_vm1, %v12852_v28  ;;  %v12890_v28 = vld [vmem:[%s13149_s25 + $0x1f8] sm:$0xff]  }
  0x7f   : > { %9881 = vmatprep.mubr.msk.bf16.mxu0 %vm1215_vm1, %v12853_v29 }
  0x86   : > { %9882 = vmatmul.mubr.msk.bf16.gmra.mrb[52].mxu0 %vm1215_vm1, %v12854_v30  ;;  %v12891_v30 = vld [vmem:[%s13149_s25 + $0x200] sm:$0xff]  }
  0x87   : > { %9885 = vmatprep.mubr.msk.bf16.mxu0 %vm1215_vm1, %v12855_v31 }
  0x8e   : > { %9886 = vmatmul.mubr.msk.bf16.gmra.mrb[56].mxu0 %vm1215_vm1, %v12856_v32 }
  0x8f   : > { %9889 = vmatprep.mubr.msk.bf16.mxu0 %vm1215_vm1, %v12857_v33 }
  0x96   : > { %9890 = vmatmul.mubr.msk.bf16.gmra.mrb[60].mxu0 %vm1215_vm1, %v12858_v34 }
  0x97   : > { %9893 = vmatprep.mubr.msk.bf16.mxu0 %vm1215_vm1, %v12859_v35 }
  0x9e   : > { %9894 = vmatmul.mubr.msk.bf16.gmra.mrb[64].mxu0 %vm1215_vm1, %v12860_v36  ;;  %v12892_v36 = vld [vmem:[%s13149_s25 + $0x208] sm:$0xff]  }
  0x9f   : > { %9897 = vmatprep.mubr.msk.bf16.mxu0 %vm1215_vm1, %v12861_v37 }
  0xa6   : > { %9898 = vmatmul.mubr.msk.bf16.gmra.mrb[68].mxu0 %vm1215_vm1, %v12862_v38  ;;  %v12893_v38 = vld [vmem:[%s13149_s25 + $0x210] sm:$0xff]  }
  0xa7   : > { %9901 = vmatprep.mubr.msk.bf16.mxu0 %vm1215_vm1, %v12863_v39 }
  0xae   : > { %9902 = vmatmul.mubr.msk.bf16.gmra.mrb[72].mxu0 %vm1215_vm1, %v12864_v40 }
  0xaf   : > { %9905 = vmatprep.mubr.msk.bf16.mxu0 %vm1215_vm1, %v12865_v41 }
  0xb6   : > { %9906 = vmatmul.mubr.msk.bf16.gmra.mrb[76].mxu0 %vm1215_vm1, %v12866_v42 }
  0xb7   : > { %9909 = vmatprep.mubr.msk.bf16.mxu0 %vm1215_vm1, %v12867_v43 }
  0xbe   : > { %9910 = vmatmul.mubr.msk.bf16.gmra.mrb[80].mxu0 %vm1215_vm1, %v12868_v44  ;;  %v12894_v44 = vld [vmem:[%s13149_s25 + $0x218] sm:$0xff]  }
  0xbf   : > { %9913 = vmatprep.mubr.msk.bf16.mxu0 %vm1215_vm1, %v12869_v45 }
  0xc6   : > { %9914 = vmatmul.mubr.msk.bf16.gmra.mrb[84].mxu0 %vm1215_vm1, %v12870_v46  ;;  %v12895_v46 = vld [vmem:[%s13149_s25 + $0x220] sm:$0xff]  }
  0xc7   : > { %9917 = vmatprep.mubr.msk.bf16.mxu0 %vm1215_vm1, %v12871_v47 }
  0xce   : > { %9918 = vmatmul.mubr.msk.bf16.gmra.mrb[88].mxu0 %vm1215_vm1, %v12872_v48 }
  0xcf   : > { %9921 = vmatprep.mubr.msk.bf16.mxu0 %vm1215_vm1, %v12873_v49 }
  0xd6   : > { %9922 = vmatmul.mubr.msk.bf16.gmra.mrb[92].mxu0 %vm1215_vm1, %v12874_v50 }
  0xd7   : > { %9925 = vmatprep.mubr.msk.bf16.mxu0 %vm1215_vm1, %v12875_v51 }
  0xde   : > { %9926 = vmatmul.mubr.msk.bf16.gmra.mrb[96].mxu0 %vm1215_vm1, %v12876_v52  ;;  %v12896_v52 = vld [vmem:[%s13149_s25 + $0x228] sm:$0xff]  }
  0xdf   : > { %9929 = vmatprep.mubr.msk.bf16.mxu0 %vm1215_vm1, %v12877_v53 }
  0xe6   : > { %9930 = vmatmul.mubr.msk.bf16.gmra.mrb[100].mxu0 %vm1215_vm1, %v12878_v54  ;;  %v12897_v54 = vld [vmem:[%s13149_s25 + $0x230] sm:$0xff]  }
  0xe7   : > { %9933 = vmatprep.mubr.msk.bf16.mxu0 %vm1215_vm1, %v12879_v55 }
  0xee   : > { %9934 = vmatmul.mubr.msk.bf16.gmra.mrb[104].mxu0 %vm1215_vm1, %v12880_v56 }
  0xef   : > { %9937 = vmatprep.mubr.msk.bf16.mxu0 %vm1215_vm1, %v12881_v57 }
  0xf1   : > { %v13261_v58 = vpop.f32.mrb[0].mxu0 }
  0xf2   : > { %v13263_v59 = vpop.f32.mrb[1].mxu0 }
  0xf3   : > { %v13266_v61 = vpop.f32.mrb[2].mxu0 }
  0xf4   : > { %v13269_v63 = vpop.f32.mrb[3].mxu0  ;;  %v10395_v0 = vpack.i.bf16 %v13266_v61, %v13261_v58 }
  0xf5   : > { %v10400_v1 = vpack.i.bf16 %v13269_v63, %v13263_v59 }
  0xf6   : > { %10396 = vrot.lane.b32.xlu0 %v10395_v0, %s13038_s26  ;;  %9938 = vmatmul.mubr.msk.bf16.gmra.mrb[108].mxu0 %vm1215_vm1, %v12882_v60  ;;  %v12898_v0 = vld [vmem:[%s13149_s25 + $0x238] sm:$0xff]  }
  0xf7   : > { %9941 = vmatprep.mubr.msk.bf16.mxu0 %vm1215_vm1, %v12883_v62 }
  0xf9   : > { %v13278_v2 = vpop.f32.mrb[4].mxu0 }
  0xfa   : > { %10401 = vrot.lane.b32.xlu0 %v10400_v1, %s13038_s26  ;;  %v13281_v3 = vpop.f32.mrb[5].mxu0 }
  0xfb   : > { %v13284_v5 = vpop.f32.mrb[6].mxu0 }
  0xfc   : > { %v13287_v7 = vpop.f32.mrb[7].mxu0  ;;  %v10405_v8 = vpack.i.bf16 %v13284_v5, %v13278_v2 }
  0xfd   : > { %v10410_v9 = vpack.i.bf16 %v13287_v7, %v13281_v3 }
  0xfe   : > { %10406 = vrot.lane.b32.xlu1 %v10405_v8, %s13038_s26  ;;  %9942 = vmatmul.mubr.msk.bf16.gmra.mrb[112].mxu0 %vm1215_vm1, %v12884_v4  ;;  %v12899_v4 = vld [vmem:[%s13149_s25 + $0x240] sm:$0xff]  }
  0xff   : > { %9945 = vmatprep.mubr.msk.bf16.mxu0 %vm1215_vm1, %v12885_v6 }
 0x101   : > { %v13296_v10 = vpop.f32.mrb[8].mxu0 }
 0x102   : > { %10411 = vrot.lane.b32.xlu1 %v10410_v9, %s13038_s26  ;;  %v13299_v11 = vpop.f32.mrb[9].mxu0 }
 0x103   : > { %v13302_v13 = vpop.f32.mrb[10].mxu0 }
 0x104   : > { %v10415_v15 = vpack.i.bf16 %v13302_v13, %v13296_v10  ;;  %v13307_v16 = vpop.f32.mrb[11].mxu0 }
 0x105   : > { %v10420_v17 = vpack.i.bf16 %v13307_v16, %v13299_v11 }
 0x106   : > { %10416 = vrot.lane.b32.xlu1 %v10415_v15, %s13038_s26  ;;  %9946 = vmatmul.mubr.msk.bf16.gmra.mrb[116].mxu0 %vm1215_vm1, %v12886_v12  ;;  %v12900_v15 = vld [vmem:[%s13149_s25 + $0x248] sm:$0xff]  }
 0x107   : > { %10421 = vrot.lane.b32.xlu0 %v10420_v17, %s13038_s26  ;;  %9949 = vmatprep.mubr.msk.bf16.mxu0 %vm1215_vm1, %v12887_v14 }
 0x109   : > { %v13315_v18 = vpop.f32.mrb[12].mxu0 }
 0x10a   : > { %v13317_v19 = vpop.f32.mrb[13].mxu0 }
 0x10b   : > { %v13320_v21 = vpop.f32.mrb[14].mxu0 }
 0x10c   : > { %v10425_v23 = vpack.i.bf16 %v13320_v21, %v13315_v18  ;;  %v13325_v24 = vpop.f32.mrb[15].mxu0 }
 0x10d   : > { %v10430_v25 = vpack.i.bf16 %v13325_v24, %v13317_v19 }
 0x10e   : > { %10426 = vrot.lane.b32.xlu1 %v10425_v23, %s13038_s26  ;;  %9950 = vmatmul.mubr.msk.bf16.gmra.mrb[120].mxu0 %vm1215_vm1, %v12888_v20  ;;  %v12901_v20 = vld [vmem:[%s13149_s25 + $0x250] sm:$0xff]  }
 0x10f   : > { %10431 = vrot.lane.b32.xlu0 %v10430_v25, %s13038_s26  ;;  %9953 = vmatprep.mubr.msk.bf16.mxu0 %vm1215_vm1, %v12889_v22 }
 0x111   : > { %v13333_v26 = vpop.f32.mrb[16].mxu0 }
 0x112   : > { %v13335_v27 = vpop.f32.mrb[17].mxu0 }
 0x113   : > { %v13338_v29 = vpop.f32.mrb[18].mxu0 }
 0x114   : > { %v10435_v31 = vpack.i.bf16 %v13338_v29, %v13333_v26  ;;  %v13343_v32 = vpop.f32.mrb[19].mxu0 }
 0x115   : > { %v10440_v33 = vpack.i.bf16 %v13343_v32, %v13335_v27 }
 0x116   : > { %10436 = vrot.lane.b32.xlu1 %v10435_v31, %s13038_s26  ;;  %9954 = vmatmul.mubr.msk.bf16.gmra.mrb[124].mxu0 %vm1215_vm1, %v12890_v28  ;;  %v12902_v31 = vld [vmem:[%s13149_s25 + $0x258] sm:$0xff]  }
 0x117   : > { %10441 = vrot.lane.b32.xlu0 %v10440_v33, %s13038_s26  ;;  %9957 = vmatprep.mubr.msk.bf16.mxu0 %vm1215_vm1, %v12891_v30 }
 0x119   : > { %v13351_v34 = vpop.f32.mrb[20].mxu0 }
 0x11a   : > { %v13353_v35 = vpop.f32.mrb[21].mxu0 }
 0x11b   : > { %v13356_v37 = vpop.f32.mrb[22].mxu0 }
 0x11c   : > { %v10445_v39 = vpack.i.bf16 %v13356_v37, %v13351_v34  ;;  %v13361_v40 = vpop.f32.mrb[23].mxu0 }
 0x11d   : > { %v10450_v41 = vpack.i.bf16 %v13361_v40, %v13353_v35 }
 0x11e   : > { %10446 = vrot.lane.b32.xlu1 %v10445_v39, %s13038_s26  ;;  %9958 = vmatmul.mubr.msk.bf16.gmra.mrb[128].mxu0 %vm1215_vm1, %v12892_v36  ;;  %v12903_v36 = vld [vmem:[%s13149_s25 + $0x260] sm:$0xff]  }
 0x11f   : > { %10451 = vrot.lane.b32.xlu0 %v10450_v41, %s13038_s26  ;;  %9961 = vmatprep.mubr.msk.bf16.mxu0 %vm1215_vm1, %v12893_v38 }
 0x121   : > { %v13369_v42 = vpop.f32.mrb[24].mxu0 }
 0x122   : > { %v13371_v43 = vpop.f32.mrb[25].mxu0 }
 0x123   : > { %v13374_v45 = vpop.f32.mrb[26].mxu0 }
 0x124   : > { %v10455_v47 = vpack.i.bf16 %v13374_v45, %v13369_v42  ;;  %v13379_v48 = vpop.f32.mrb[27].mxu0 }
 0x125   : > { %v10460_v49 = vpack.i.bf16 %v13379_v48, %v13371_v43 }
 0x126   : > { %10456 = vrot.lane.b32.xlu1 %v10455_v47, %s13038_s26  ;;  %9962 = vmatmul.mubr.msk.bf16.gmra.mrb[132].mxu0 %vm1215_vm1, %v12894_v44  ;;  %v12904_v47 = vld [vmem:[%s13149_s25 + $0x268] sm:$0xff]  }
 0x127   : > { %10461 = vrot.lane.b32.xlu0 %v10460_v49, %s13038_s26  ;;  %9965 = vmatprep.mubr.msk.bf16.mxu0 %vm1215_vm1, %v12895_v46 }
 0x129   : > { %v13387_v50 = vpop.f32.mrb[28].mxu0 }
 0x12a   : > { %v13389_v51 = vpop.f32.mrb[29].mxu0 }
 0x12b   : > { %v13392_v53 = vpop.f32.mrb[30].mxu0 }
 0x12c   : > { %v10465_v55 = vpack.i.bf16 %v13392_v53, %v13387_v50  ;;  %v13397_v56 = vpop.f32.mrb[31].mxu0 }
 0x12d   : > { %v10470_v57 = vpack.i.bf16 %v13397_v56, %v13389_v51 }
 0x12e   : > { %10466 = vrot.lane.b32.xlu1 %v10465_v55, %s13038_s26  ;;  %9966 = vmatmul.mubr.msk.bf16.gmra.mrb[136].mxu0 %vm1215_vm1, %v12896_v52  ;;  %v12905_v52 = vld [vmem:[%s13149_s25 + $0x270] sm:$0xff]  }
 0x12f   : > { %10471 = vrot.lane.b32.xlu0 %v10470_v57, %s13038_s26  ;;  %9969 = vmatprep.mubr.msk.bf16.mxu0 %vm1215_vm1, %v12897_v54 }
 0x131   : > { %v13405_v60 = vpop.f32.mrb[32].mxu0 }
 0x132   : > { %v13407_v62 = vpop.f32.mrb[33].mxu0 }
 0x133   : > { %v13410_v1 = vpop.f32.mrb[34].mxu0 }
 0x134   : > { %v10475_v6 = vpack.i.bf16 %v13410_v1, %v13405_v60  ;;  %v13415_v8 = vpop.f32.mrb[35].mxu0 }
 0x135   : > { %v10480_v9 = vpack.i.bf16 %v13415_v8, %v13407_v62 }
 0x136   : > { %10476 = vrot.lane.b32.xlu1 %v10475_v6, %s13038_s26  ;;  %9970 = vmatmul.mubr.msk.bf16.gmra.mrb[140].mxu0 %vm1215_vm1, %v12898_v0  ;;  %v12906_v6 = vld [vmem:[%s13149_s25 + $0x278] sm:$0xff]  }
 0x137   : > { %10481 = vrot.lane.b32.xlu0 %v10480_v9, %s13038_s26  ;;  %9973 = vmatprep.mubr.msk.bf16.mxu0 %vm1215_vm1, %v12899_v4 }
 0x139   : > { %v13423_v12 = vpop.f32.mrb[36].mxu0 }
 0x13a   : > { %v13425_v14 = vpop.f32.mrb[37].mxu0 }
 0x13b   : > { %v13428_v17 = vpop.f32.mrb[38].mxu0 }
 0x13c   : > { %v10485_v22 = vpack.i.bf16 %v13428_v17, %v13423_v12  ;;  %v13433_v23 = vpop.f32.mrb[39].mxu0 }
 0x13d   : > { %v10490_v25 = vpack.i.bf16 %v13433_v23, %v13425_v14 }
 0x13e   : > { %10486 = vrot.lane.b32.xlu1 %v10485_v22, %s13038_s26  ;;  %9974 = vmatmul.mubr.msk.bf16.gmra.mrb[144].mxu0 %vm1215_vm1, %v12900_v15  ;;  %v12907_v15 = vld [vmem:[%s13149_s25 + $0x280] sm:$0xff]  }
 0x13f   : > { %10491 = vrot.lane.b32.xlu0 %v10490_v25, %s13038_s26  ;;  %9977 = vmatprep.mubr.msk.bf16.mxu0 %vm1215_vm1, %v12901_v20 }
 0x141   : > { %v13441_v28 = vpop.f32.mrb[40].mxu0 }
 0x142   : > { %v13443_v30 = vpop.f32.mrb[41].mxu0 }
 0x143   : > { %v13446_v33 = vpop.f32.mrb[42].mxu0 }
 0x144   : > { %v10495_v38 = vpack.i.bf16 %v13446_v33, %v13441_v28  ;;  %v13451_v39 = vpop.f32.mrb[43].mxu0 }
 0x145   : > { %v10500_v41 = vpack.i.bf16 %v13451_v39, %v13443_v30 }
 0x146   : > { %10496 = vrot.lane.b32.xlu1 %v10495_v38, %s13038_s26  ;;  %9978 = vmatmul.mubr.msk.bf16.gmra.mrb[148].mxu0 %vm1215_vm1, %v12902_v31  ;;  %v12908_v38 = vld [vmem:[%s13149_s25 + $0x288] sm:$0xff]  }
 0x147   : > { %10501 = vrot.lane.b32.xlu0 %v10500_v41, %s13038_s26  ;;  %9981 = vmatprep.mubr.msk.bf16.mxu0 %vm1215_vm1, %v12903_v36 }
 0x149   : > { %v13459_v44 = vpop.f32.mrb[44].mxu0 }
 0x14a   : > { %v13461_v46 = vpop.f32.mrb[45].mxu0 }
 0x14b   : > { %v13464_v49 = vpop.f32.mrb[46].mxu0 }
 0x14c   : > { %v10505_v54 = vpack.i.bf16 %v13464_v49, %v13459_v44  ;;  %v13469_v55 = vpop.f32.mrb[47].mxu0 }
 0x14d   : > { %v10510_v57 = vpack.i.bf16 %v13469_v55, %v13461_v46 }
 0x14e   : > { %10506 = vrot.lane.b32.xlu1 %v10505_v54, %s13038_s26  ;;  %9982 = vmatmul.mubr.msk.bf16.gmra.mrb[152].mxu0 %vm1215_vm1, %v12904_v47  ;;  %v12909_v47 = vld [vmem:[%s13149_s25 + $0x290] sm:$0xff]  }
 0x14f   : > { %10511 = vrot.lane.b32.xlu0 %v10510_v57, %s13038_s26  ;;  %9985 = vmatprep.mubr.msk.bf16.mxu0 %vm1215_vm1, %v12905_v52 }
 0x151   : > { %v13477_v0 = vpop.f32.mrb[48].mxu0 }
 0x152   : > { %v13479_v4 = vpop.f32.mrb[49].mxu0 }
 0x153   : > { %19343 = vst [vmem:[#allocation5_spill] sm:$0xff] %v13479_v4  ;;  %v13482_v9 = vpop.f32.mrb[50].mxu0 }
 0x154   : > { %v10515_v20 = vpack.i.bf16 %v13482_v9, %v13477_v0  ;;  %v13487_v22 = vpop.f32.mrb[51].mxu0 }
 0x155   : > { %19344 = vst [vmem:[#allocation6_spill] sm:$0xff] %v13487_v22  ;;  %v10520_v25 = vpack.i.bf16 %v13487_v22, %v13479_v4 }
 0x156   : > { %10516 = vrot.lane.b32.xlu1 %v10515_v20, %s13038_s26  ;;  %9986 = vmatmul.mubr.msk.bf16.gmra.mrb[156].mxu0 %vm1215_vm1, %v12906_v6  ;;  %v12910_v20 = vld [vmem:[%s13149_s25 + $0x298] sm:$0xff]  }
 0x157   : > { %10521 = vrot.lane.b32.xlu0 %v10520_v25, %s13038_s26  ;;  %9989 = vmatprep.mubr.msk.bf16.mxu0 %vm1215_vm1, %v12907_v15 }
 0x159   : > { %v13495_v31 = vpop.f32.mrb[52].mxu0 }
 0x15a   : > { %19345 = vst [vmem:[#allocation7_spill] sm:$0xff] %v13495_v31  ;;  %v13497_v36 = vpop.f32.mrb[53].mxu0 }
 0x15b   : > { %19346 = vst [vmem:[#allocation8_spill] sm:$0xff] %v13497_v36  ;;  %v13500_v41 = vpop.f32.mrb[54].mxu0 }
 0x15c   : > { %19347 = vst [vmem:[#allocation9_spill] sm:$0xff] %v13500_v41  ;;  %v10525_v52 = vpack.i.bf16 %v13500_v41, %v13495_v31  ;;  %v13505_v54 = vpop.f32.mrb[55].mxu0 }
 0x15d   : > { %19348 = vst [vmem:[#allocation10_spill] sm:$0xff] %v13505_v54  ;;  %v10530_v57 = vpack.i.bf16 %v13505_v54, %v13497_v36 }
 0x15e   : > { %10526 = vrot.lane.b32.xlu1 %v10525_v52, %s13038_s26  ;;  %9990 = vmatmul.mubr.msk.bf16.gmra.mrb[160].mxu0 %vm1215_vm1, %v12908_v38 }
 0x15f   : > { %10531 = vrot.lane.b32.xlu0 %v10530_v57, %s13038_s26  ;;  %9993 = vmatprep.mubr.msk.bf16.mxu0 %vm1215_vm1, %v12909_v47  ;;  %v12911_v47 = vld [vmem:[%s13149_s25 + $0x2a0] sm:$0xff]  }
 0x161   : > { %v13513_v6 = vpop.f32.mrb[56].mxu0 }
 0x162   : > { %19349 = vst [vmem:[#allocation11_spill] sm:$0xff] %v13513_v6  ;;  %v13515_v15 = vpop.f32.mrb[57].mxu0 }
 0x163   : > { %19350 = vst [vmem:[#allocation12_spill] sm:$0xff] %v13515_v15  ;;  %v13518_v25 = vpop.f32.mrb[58].mxu0 }
 0x164   : > { %19351 = vst [vmem:[#allocation13_spill] sm:$0xff] %v13518_v25  ;;  %v10535_v31 = vpack.i.bf16 %v13518_v25, %v13513_v6  ;;  %v13522_v36 = vpop.f32.mrb[59].mxu0  ;;  %v12912_v25 = vld [vmem:[%s13149_s25 + $0x2a8] sm:$0xff]  }
 0x165   : > { %19352 = vst [vmem:[#allocation14_spill] sm:$0xff] %v13522_v36  ;;  %v10540_v38 = vpack.i.bf16 %v13522_v36, %v13515_v15 }
 0x166   : > { %10536 = vrot.lane.b32.xlu1 %v10535_v31, %s13038_s26  ;;  %9994 = vmatmul.mubr.msk.bf16.gmra.mrb[164].mxu0 %vm1215_vm1, %v12910_v20 }
 0x167   : > { %10541 = vrot.lane.b32.xlu0 %v10540_v38, %s13038_s26  ;;  %9997 = vmatprep.mubr.msk.bf16.mxu0 %vm1215_vm1, %v12911_v47 }
 0x168   : > { %v10397_v52 = vpop.permute.xlu0 %10396 }
 0x169   : > { %v10399_v57 = vunpack.i.h.bf16 %v10397_v52  ;;  %v10398_v54 = vunpack.i.l.bf16 %v10397_v52  ;;  %v13530_v41 = vpop.f32.mrb[60].mxu0 }
 0x16a   : > { %19353 = vst [vmem:[#allocation15_spill] sm:$0xff] %v13530_v41  ;;  %v13533_v6 = vpop.f32.mrb[61].mxu0 }
 0x16b   : > { %19354 = vst [vmem:[#allocation16_spill] sm:$0xff] %v13533_v6  ;;  %v13537_v4 = vmax.f32 %v13266_v61, %v10399_v57  ;;  %v13540_v31 = vmax.f32 %v13261_v58, %v10398_v54  ;;  %v13542_v20 = vpop.f32.mrb[62].mxu0 }
 0x16c   : > { %19356 = vst [vmem:[#allocation18_spill] sm:$0xff] %v13542_v20  ;;  %v10402_v38 = vpop.permute.xlu0 %10401  ;;  %v10555_v15 = vpack.i.bf16 %v13542_v20, %v13530_v41  ;;  %v13546_v52 = vpop.f32.mrb[63].mxu0 }
 0x16d   : > { %19355 = vst [vmem:[#allocation17_spill] sm:$0xff] %v13537_v4  ;;  %v10404_v36 = vunpack.i.h.bf16 %v10402_v38  ;;  %v10403_v22 = vunpack.i.l.bf16 %v10402_v38  ;;  %v10560_v47 = vpack.i.bf16 %v13546_v52, %v13533_v6  ;;  %v10545_v61 = vpack.i.bf16 %v13537_v4, %v13540_v31 }
 0x16e   : > { %9998 = vmatmul.mubr.msk.bf16.gmra.mrb[168].mxu0 %vm1215_vm1, %v12912_v25 }
 0x16f   : > { %v13554_v58 = vmax.f32 %v13269_v63, %v10404_v36  ;;  %v13557_v54 = vmax.f32 %v13263_v59, %v10403_v22  ;;  %10546 = vrot.lane.b32.xlu0 %v10545_v61, %s13039_s10 }
 0x170   : > { %v10407_v57 = vpop.permute.xlu1 %10406 }
 0x171   : > { %19357 = vst [vmem:[#allocation19_spill] sm:$0xff] %v13557_v54  ;;  %v10409_v41 = vunpack.i.h.bf16 %v10407_v57  ;;  %v10408_v38 = vunpack.i.l.bf16 %v10407_v57  ;;  %v10550_v20 = vpack.i.bf16 %v13554_v58, %v13557_v54  ;;  %v13562_v6 = vpop.f32.mrb[64].mxu0 }
 0x172   : > { %19358 = vst [vmem:[#allocation20_spill] sm:$0xff] %v13562_v6  ;;  %v13564_v4 = vpop.f32.mrb[65].mxu0 }
 0x173   : > { %19359 = vst [vmem:[#allocation21_spill] sm:$0xff] %v13564_v4  ;;  %v13567_v25 = vmax.f32 %v13284_v5, %v10409_v41  ;;  %v13570_v63 = vmax.f32 %v13278_v2, %v10408_v38  ;;  %10551 = vrot.lane.b32.xlu1 %v10550_v20, %s13039_s10  ;;  %10561 = vrot.lane.b32.xlu0 %v10560_v47, %s13038_s26  ;;  %v13574_v59 = vpop.f32.mrb[66].mxu0 }
 0x174   : > { %19362 = vst [vmem:[#allocation24_spill] sm:$0xff] %v13574_v59  ;;  %v10412_v22 = vpop.permute.xlu1 %10411  ;;  %v10575_v36 = vpack.i.bf16 %v13574_v59, %v13562_v6  ;;  %v13578_v61 = vpop.f32.mrb[67].mxu0 }
 0x175   : > { %19360 = vst [vmem:[#allocation22_spill] sm:$0xff] %v13567_v25  ;;  %19361 = vst [vmem:[#allocation23_spill] sm:$0xff] %v13570_v63  ;;  %v10414_v57 = vunpack.i.h.bf16 %v10412_v22  ;;  %v10413_v54 = vunpack.i.l.bf16 %v10412_v22  ;;  %v10565_v5 = vpack.i.bf16 %v13567_v25, %v13570_v63  ;;  %v10580_v2 = vpack.i.bf16 %v13578_v61, %v13564_v4 }
 0x177   : > { %v13585_v41 = vmax.f32 %v13287_v7, %v10414_v57  ;;  %v13588_v20 = vmax.f32 %v13281_v3, %v10413_v54  ;;  %10556 = vrot.lane.b32.xlu1 %v10555_v15, %s13038_s26  ;;  %10566 = vrot.lane.b32.xlu0 %v10565_v5, %s13039_s10 }
 0x178   : > { %v10417_v47 = vpop.permute.xlu1 %10416 }
 0x179   : > { %v10419_v38 = vunpack.i.h.bf16 %v10417_v47  ;;  %v10418_v22 = vunpack.i.l.bf16 %v10417_v47  ;;  %v10422_v6 = vpop.permute.xlu0 %10421  ;;  %v10570_v25 = vpack.i.bf16 %v13585_v41, %v13588_v20  ;;  %v13594_v59 = vpop.f32.mrb[68].mxu0 }
 0x17a   : > { %19363 = vst [vmem:[#allocation25_spill] sm:$0xff] %v13594_v59  ;;  %v10424_v7 = vunpack.i.h.bf16 %v10422_v6  ;;  %v10423_v57 = vunpack.i.l.bf16 %v10422_v6  ;;  %v13596_v63 = vpop.f32.mrb[69].mxu0  ;;  %v12913_v6 = vld [vmem:[%s13149_s25 + $0x2b0] sm:$0xff]  }
 0x17b   : > { %v13599_v3 = vmax.f32 %v13302_v13, %v10419_v38  ;;  %v13602_v15 = vmax.f32 %v13296_v10, %v10418_v22  ;;  %10571 = vrot.lane.b32.xlu1 %v10570_v25, %s13039_s10  ;;  %10581 = vrot.lane.b32.xlu0 %v10580_v2, %s13038_s26  ;;  %v13606_v54 = vpop.f32.mrb[70].mxu0  ;;  %v12914_v2 = vld [vmem:[%s13149_s25 + $0x2b8] sm:$0xff]  }
 0x17c   : > { %19365 = vst [vmem:[#allocation27_spill] sm:$0xff] %v13606_v54  ;;  %v10595_v5 = vpack.i.bf16 %v13606_v54, %v13594_v59  ;;  %v13610_v47 = vpop.f32.mrb[71].mxu0  ;;  %v13614_v4 = vmax.f32 %v13307_v16, %v10424_v7  ;;  %v13617_v13 = vmax.f32 %v13299_v11, %v10423_v57  ;;  %10001 = vmatprep.mubr.msk.bf16.mxu0 %vm1215_vm1, %v12913_v6 }
 0x17d   : > { %19364 = vst [vmem:[#allocation26_spill] sm:$0xff] %v13599_v3  ;;  %v10585_v10 = vpack.i.bf16 %v13599_v3, %v13602_v15  ;;  %v10600_v25 = vpack.i.bf16 %v13610_v47, %v13596_v63  ;;  %10002 = vmatmul.mubr.msk.bf16.gmra.mrb[172].mxu0 %vm1215_vm1, %v12914_v2 }
 0x17e   : > { %v10590_v7 = vpack.i.bf16 %v13614_v4, %v13617_v13 }
 0x17f   : > { %10576 = vrot.lane.b32.xlu1 %v10575_v36, %s13038_s26  ;;  %10586 = vrot.lane.b32.xlu0 %v10585_v10, %s13039_s10 }
 0x180   : > { %v10427_v38 = vpop.permute.xlu1 %10426 }
 0x181   : > { %v10429_v16 = vunpack.i.h.bf16 %v10427_v38  ;;  %v10428_v22 = vunpack.i.l.bf16 %v10427_v38  ;;  %v10432_v11 = vpop.permute.xlu0 %10431  ;;  %v13630_v57 = vpop.f32.mrb[72].mxu0 }
 0x182   : > { %19366 = vst [vmem:[#allocation28_spill] sm:$0xff] %v13630_v57  ;;  %v10434_v3 = vunpack.i.h.bf16 %v10432_v11  ;;  %v10433_v59 = vunpack.i.l.bf16 %v10432_v11  ;;  %v13632_v54 = vpop.f32.mrb[73].mxu0 }
 0x183   : > { %v13635_v6 = vmax.f32 %v13320_v21, %v10429_v16  ;;  %v13638_v36 = vmax.f32 %v13315_v18, %v10428_v22  ;;  %10591 = vrot.lane.b32.xlu1 %v10590_v7, %s13039_s10  ;;  %10601 = vrot.lane.b32.xlu0 %v10600_v25, %s13038_s26  ;;  %v13642_v10 = vpop.f32.mrb[74].mxu0 }
 0x184   : > { %19369 = vst [vmem:[#allocation31_spill] sm:$0xff] %v13642_v10  ;;  %v10615_v2 = vpack.i.bf16 %v13642_v10, %v13630_v57  ;;  %v13646_v38 = vpop.f32.mrb[75].mxu0  ;;  %v13649_v11 = vmax.f32 %v13325_v24, %v10434_v3  ;;  %v13652_v21 = vmax.f32 %v13317_v19, %v10433_v59 }
 0x185   : > { %19367 = vst [vmem:[#allocation29_spill] sm:$0xff] %v13635_v6  ;;  %19368 = vst [vmem:[#allocation30_spill] sm:$0xff] %v13638_v36  ;;  %v10605_v18 = vpack.i.bf16 %v13635_v6, %v13638_v36  ;;  %v10620_v16 = vpack.i.bf16 %v13646_v38, %v13632_v54 }
 0x186   : > { %v10610_v24 = vpack.i.bf16 %v13649_v11, %v13652_v21 }
 0x187   : > { %10596 = vrot.lane.b32.xlu1 %v10595_v5, %s13038_s26  ;;  %10606 = vrot.lane.b32.xlu0 %v10605_v18, %s13039_s10 }
 0x188   : > { %v10437_v25 = vpop.permute.xlu1 %10436 }
 0x189   : > { %v10439_v22 = vunpack.i.h.bf16 %v10437_v25  ;;  %v10438_v7 = vunpack.i.l.bf16 %v10437_v25  ;;  %v10442_v57 = vpop.permute.xlu0 %10441  ;;  %v13662_v3 = vpop.f32.mrb[76].mxu0 }
 0x18a   : > { %19370 = vst [vmem:[#allocation32_spill] sm:$0xff] %v13662_v3  ;;  %v10444_v19 = vunpack.i.h.bf16 %v10442_v57  ;;  %v10443_v59 = vunpack.i.l.bf16 %v10442_v57  ;;  %v13664_v6 = vpop.f32.mrb[77].mxu0 }
 0x18b   : > { %19371 = vst [vmem:[#allocation33_spill] sm:$0xff] %v13664_v6  ;;  %v13667_v10 = vmax.f32 %v13338_v29, %v10439_v22  ;;  %v13670_v5 = vmax.f32 %v13333_v26, %v10438_v7  ;;  %10611 = vrot.lane.b32.xlu1 %v10610_v24, %s13039_s10  ;;  %10621 = vrot.lane.b32.xlu0 %v10620_v16, %s13038_s26  ;;  %v13674_v18 = vpop.f32.mrb[78].mxu0  ;;  %v12915_v7 = vld [vmem:[%s13149_s25 + $0x2c0] sm:$0xff]  }
 0x18c   : > { %19374 = vst [vmem:[#allocation36_spill] sm:$0xff] %v13674_v18  ;;  %v10635_v25 = vpack.i.bf16 %v13674_v18, %v13662_v3  ;;  %v13678_v57 = vpop.f32.mrb[79].mxu0  ;;  %v13681_v36 = vmax.f32 %v13343_v32, %v10444_v19  ;;  %v13684_v29 = vmax.f32 %v13335_v27, %v10443_v59  ;;  %v12916_v19 = vld [vmem:[%s13149_s25 + $0x2c8] sm:$0xff]   ;;  %10005 = vmatprep.mubr.msk.bf16.mxu0 %vm1215_vm1, %v12915_v7 }
 0x18d   : > { %19372 = vst [vmem:[#allocation34_spill] sm:$0xff] %v13667_v10  ;;  %19373 = vst [vmem:[#allocation35_spill] sm:$0xff] %v13670_v5  ;;  %v10625_v26 = vpack.i.bf16 %v13667_v10, %v13670_v5  ;;  %v10640_v16 = vpack.i.bf16 %v13678_v57, %v13664_v6  ;;  %10006 = vmatmul.mubr.msk.bf16.gmra.mrb[176].mxu0 %vm1215_vm1, %v12916_v19 }
 0x18e   : > { %v10630_v32 = vpack.i.bf16 %v13681_v36, %v13684_v29 }
 0x18f   : > { %10616 = vrot.lane.b32.xlu1 %v10615_v2, %s13038_s26  ;;  %10626 = vrot.lane.b32.xlu0 %v10625_v26, %s13039_s10 }
 0x190   : > { %v10447_v22 = vpop.permute.xlu1 %10446 }
 0x191   : > { %v10449_v24 = vunpack.i.h.bf16 %v10447_v22  ;;  %v10448_v3 = vunpack.i.l.bf16 %v10447_v22  ;;  %v10452_v18 = vpop.permute.xlu0 %10451  ;;  %v13695_v27 = vpop.f32.mrb[80].mxu0 }
 0x192   : > { %19375 = vst [vmem:[#allocation37_spill] sm:$0xff] %v13695_v27  ;;  %v10454_v59 = vunpack.i.h.bf16 %v10452_v18  ;;  %v10453_v5 = vunpack.i.l.bf16 %v10452_v18  ;;  %v13698_v10 = vpop.f32.mrb[81].mxu0 }
 0x193   : > { %19376 = vst [vmem:[#allocation38_spill] sm:$0xff] %v13698_v10  ;;  %v13702_v2 = vmax.f32 %v13356_v37, %v10449_v24  ;;  %v13705_v26 = vmax.f32 %v13351_v34, %v10448_v3  ;;  %10631 = vrot.lane.b32.xlu1 %v10630_v32, %s13039_s10  ;;  %10641 = vrot.lane.b32.xlu0 %v10640_v16, %s13038_s26  ;;  %v13709_v22 = vpop.f32.mrb[82].mxu0 }
 0x194   : > { %19377 = vst [vmem:[#allocation39_spill] sm:$0xff] %v13709_v22  ;;  %v10655_v6 = vpack.i.bf16 %v13709_v22, %v13695_v27  ;;  %v13713_v18 = vpop.f32.mrb[83].mxu0  ;;  %v13717_v7 = vmax.f32 %v13361_v40, %v10454_v59  ;;  %v13720_v37 = vmax.f32 %v13353_v35, %v10453_v5 }
 0x195   : > { %v10645_v34 = vpack.i.bf16 %v13702_v2, %v13705_v26  ;;  %v10660_v3 = vpack.i.bf16 %v13713_v18, %v13698_v10 }
 0x196   : > { %v10650_v40 = vpack.i.bf16 %v13717_v7, %v13720_v37 }
 0x197   : > { %10636 = vrot.lane.b32.xlu1 %v10635_v25, %s13038_s26  ;;  %10646 = vrot.lane.b32.xlu0 %v10645_v34, %s13039_s10 }
 0x198   : > { %v10457_v16 = vpop.permute.xlu1 %10456 }
 0x199   : > { %v10459_v24 = vunpack.i.h.bf16 %v10457_v16  ;;  %v10458_v32 = vunpack.i.l.bf16 %v10457_v16  ;;  %v10462_v19 = vpop.permute.xlu0 %10461  ;;  %v13730_v59 = vpop.f32.mrb[84].mxu0 }
 0x19a   : > { %19378 = vst [vmem:[#allocation40_spill] sm:$0xff] %v13730_v59  ;;  %v10464_v35 = vunpack.i.h.bf16 %v10462_v19  ;;  %v10463_v5 = vunpack.i.l.bf16 %v10462_v19  ;;  %v13732_v27 = vpop.f32.mrb[85].mxu0 }
 0x19b   : > { %19379 = vst [vmem:[#allocation41_spill] sm:$0xff] %v13732_v27  ;;  %v13735_v22 = vmax.f32 %v13374_v45, %v10459_v24  ;;  %v13738_v25 = vmax.f32 %v13369_v42, %v10458_v32  ;;  %10651 = vrot.lane.b32.xlu1 %v10650_v40, %s13039_s10  ;;  %10661 = vrot.lane.b32.xlu0 %v10660_v3, %s13038_s26  ;;  %v13742_v34 = vpop.f32.mrb[86].mxu0 }
 0x19c   : > { %19380 = vst [vmem:[#allocation42_spill] sm:$0xff] %v13742_v34  ;;  %v10675_v16 = vpack.i.bf16 %v13742_v34, %v13730_v59  ;;  %v13746_v10 = vpop.f32.mrb[87].mxu0  ;;  %v13749_v19 = vmax.f32 %v13379_v48, %v10464_v35  ;;  %v13752_v45 = vmax.f32 %v13371_v43, %v10463_v5 }
 0x19d   : > { %19381 = vst [vmem:[#allocation43_spill] sm:$0xff] %v13746_v10  ;;  %v10665_v42 = vpack.i.bf16 %v13735_v22, %v13738_v25  ;;  %v10680_v24 = vpack.i.bf16 %v13746_v10, %v13732_v27 }
 0x19e   : > { %v10670_v48 = vpack.i.bf16 %v13749_v19, %v13752_v45 }
 0x19f   : > { %10656 = vrot.lane.b32.xlu1 %v10655_v6, %s13038_s26  ;;  %10666 = vrot.lane.b32.xlu0 %v10665_v42, %s13039_s10 }
 0x1a0   : > { %v10467_v3 = vpop.permute.xlu1 %10466 }
 0x1a1   : > { %v10469_v32 = vunpack.i.h.bf16 %v10467_v3  ;;  %v10468_v40 = vunpack.i.l.bf16 %v10467_v3  ;;  %v10472_v59 = vpop.permute.xlu0 %10471  ;;  %v13762_v43 = vpop.f32.mrb[88].mxu0 }
 0x1a2   : > { %19382 = vst [vmem:[#allocation44_spill] sm:$0xff] %v13762_v43  ;;  %v10474_v35 = vunpack.i.h.bf16 %v10472_v59  ;;  %v10473_v5 = vunpack.i.l.bf16 %v10472_v59  ;;  %v13764_v34 = vpop.f32.mrb[89].mxu0 }
 0x1a3   : > { %19383 = vst [vmem:[#allocation45_spill] sm:$0xff] %v13764_v34  ;;  %v13767_v27 = vmax.f32 %v13392_v53, %v10469_v32  ;;  %v13770_v6 = vmax.f32 %v13387_v50, %v10468_v40  ;;  %10671 = vrot.lane.b32.xlu1 %v10670_v48, %s13039_s10  ;;  %10681 = vrot.lane.b32.xlu0 %v10680_v24, %s13038_s26  ;;  %v13774_v42 = vpop.f32.mrb[90].mxu0  ;;  %v12917_v24 = vld [vmem:[%s13149_s25 + $0x2d0] sm:$0xff]   ;;  %v12918_v40 = vld [vmem:[%s13149_s25 + $0x2d8] sm:$0xff]  }
 0x1a4   : > { %19384 = vst [vmem:[#allocation46_spill] sm:$0xff] %v13774_v42  ;;  %v10695_v3 = vpack.i.bf16 %v13774_v42, %v13762_v43  ;;  %v13778_v10 = vpop.f32.mrb[91].mxu0  ;;  %v13781_v59 = vmax.f32 %v13397_v56, %v10474_v35  ;;  %v13784_v53 = vmax.f32 %v13389_v51, %v10473_v5  ;;  %10009 = vmatprep.mubr.msk.bf16.mxu0 %vm1215_vm1, %v12917_v24 }
 0x1a5   : > { %19385 = vst [vmem:[#allocation47_spill] sm:$0xff] %v13778_v10  ;;  %v10685_v50 = vpack.i.bf16 %v13767_v27, %v13770_v6  ;;  %v10700_v32 = vpack.i.bf16 %v13778_v10, %v13764_v34  ;;  %10010 = vmatmul.mubr.msk.bf16.gmra.mrb[180].mxu0 %vm1215_vm1, %v12918_v40 }
 0x1a6   : > { %v10690_v51 = vpack.i.bf16 %v13781_v59, %v13784_v53 }
 0x1a7   : > { %10676 = vrot.lane.b32.xlu1 %v10675_v16, %s13038_s26  ;;  %10686 = vrot.lane.b32.xlu0 %v10685_v50, %s13039_s10 }
 0x1a8   : > { %v10477_v48 = vpop.permute.xlu1 %10476 }
 0x1a9   : > { %v10479_v56 = vunpack.i.h.bf16 %v10477_v48  ;;  %v10478_v35 = vunpack.i.l.bf16 %v10477_v48  ;;  %v10482_v43 = vpop.permute.xlu0 %10481  ;;  %v13797_v5 = vpop.f32.mrb[92].mxu0 }
 0x1aa   : > { %19386 = vst [vmem:[#allocation48_spill] sm:$0xff] %v13797_v5  ;;  %v10484_v42 = vunpack.i.h.bf16 %v10482_v43  ;;  %v10483_v34 = vunpack.i.l.bf16 %v10482_v43  ;;  %v13800_v10 = vpop.f32.mrb[93].mxu0 }
 0x1ab   : > { %19387 = vst [vmem:[#allocation49_spill] sm:$0xff] %v13800_v10  ;;  %v13803_v16 = vmax.f32 %v13410_v1, %v10479_v56  ;;  %v13806_v50 = vmax.f32 %v13405_v60, %v10478_v35  ;;  %10691 = vrot.lane.b32.xlu1 %v10690_v51, %s13039_s10  ;;  %10701 = vrot.lane.b32.xlu0 %v10700_v32, %s13038_s26  ;;  %v13810_v24 = vpop.f32.mrb[94].mxu0 }
 0x1ac   : > { %19389 = vst [vmem:[#allocation51_spill] sm:$0xff] %v13810_v24  ;;  %v10715_v48 = vpack.i.bf16 %v13810_v24, %v13797_v5  ;;  %v13814_v40 = vpop.f32.mrb[95].mxu0  ;;  %v13817_v43 = vmax.f32 %v13415_v8, %v10484_v42  ;;  %v13820_v1 = vmax.f32 %v13407_v62, %v10483_v34 }
 0x1ad   : > { %19388 = vst [vmem:[#allocation50_spill] sm:$0xff] %v13806_v50  ;;  %v10705_v60 = vpack.i.bf16 %v13803_v16, %v13806_v50  ;;  %v10720_v56 = vpack.i.bf16 %v13814_v40, %v13800_v10 }
 0x1ae   : > { %v10710_v8 = vpack.i.bf16 %v13817_v43, %v13820_v1 }
 0x1af   : > { %10696 = vrot.lane.b32.xlu1 %v10695_v3, %s13038_s26  ;;  %10706 = vrot.lane.b32.xlu0 %v10705_v60, %s13039_s10 }
 0x1b0   : > { %v10487_v32 = vpop.permute.xlu1 %10486 }
 0x1b1   : > { %v10489_v35 = vunpack.i.h.bf16 %v10487_v32  ;;  %v10488_v51 = vunpack.i.l.bf16 %v10487_v32  ;;  %v10492_v5 = vpop.permute.xlu0 %10491  ;;  %v13830_v42 = vpop.f32.mrb[96].mxu0 }
 0x1b2   : > { %19390 = vst [vmem:[#allocation52_spill] sm:$0xff] %v13830_v42  ;;  %v10494_v62 = vunpack.i.h.bf16 %v10492_v5  ;;  %v10493_v34 = vunpack.i.l.bf16 %v10492_v5  ;;  %v13832_v24 = vpop.f32.mrb[97].mxu0 }
 0x1b3   : > { %19391 = vst [vmem:[#allocation53_spill] sm:$0xff] %v13832_v24  ;;  %v13835_v50 = vmax.f32 %v13428_v17, %v10489_v35  ;;  %v13838_v3 = vmax.f32 %v13423_v12, %v10488_v51  ;;  %10711 = vrot.lane.b32.xlu1 %v10710_v8, %s13039_s10  ;;  %10721 = vrot.lane.b32.xlu0 %v10720_v56, %s13038_s26  ;;  %v13842_v60 = vpop.f32.mrb[98].mxu0 }
 0x1b4   : > { %19393 = vst [vmem:[#allocation55_spill] sm:$0xff] %v13842_v60  ;;  %v10735_v32 = vpack.i.bf16 %v13842_v60, %v13830_v42  ;;  %v13846_v10 = vpop.f32.mrb[99].mxu0  ;;  %v13849_v5 = vmax.f32 %v13433_v23, %v10494_v62  ;;  %v13852_v17 = vmax.f32 %v13425_v14, %v10493_v34  ;;  %v12919_v62 = vld [vmem:[%s13149_s25 + $0x2e0] sm:$0xff]  }
 0x1b5   : > { %19392 = vst [vmem:[#allocation54_spill] sm:$0xff] %v13838_v3  ;;  %19394 = vst [vmem:[#allocation56_spill] sm:$0xff] %v13846_v10  ;;  %v10725_v12 = vpack.i.bf16 %v13835_v50, %v13838_v3  ;;  %v10740_v56 = vpack.i.bf16 %v13846_v10, %v13832_v24  ;;  %10013 = vmatprep.mubr.msk.bf16.mxu0 %vm1215_vm1, %v12919_v62 }
 0x1b6   : > { %19395 = vst [vmem:[#allocation57_spill] sm:$0xff] %v13849_v5  ;;  %v10730_v23 = vpack.i.bf16 %v13849_v5, %v13852_v17 }
 0x1b7   : > { %10716 = vrot.lane.b32.xlu1 %v10715_v48, %s13038_s26  ;;  %10726 = vrot.lane.b32.xlu0 %v10725_v12, %s13039_s10 }
 0x1b8   : > { %v10497_v35 = vpop.permute.xlu1 %10496 }
 0x1b9   : > { %v10499_v51 = vunpack.i.h.bf16 %v10497_v35  ;;  %v10498_v8 = vunpack.i.l.bf16 %v10497_v35  ;;  %v10502_v42 = vpop.permute.xlu0 %10501  ;;  %v13862_v14 = vpop.f32.mrb[100].mxu0  ;;  %v12920_v35 = vld [vmem:[%s13149_s25 + $0x2e8] sm:$0xff]  }
 0x1ba   : > { %19396 = vst [vmem:[#allocation58_spill] sm:$0xff] %v13862_v14  ;;  %v10504_v34 = vunpack.i.h.bf16 %v10502_v42  ;;  %v10503_v60 = vunpack.i.l.bf16 %v10502_v42  ;;  %v13865_v3 = vpop.f32.mrb[101].mxu0  ;;  %10014 = vmatmul.mubr.msk.bf16.gmra.mrb[184].mxu0 %vm1215_vm1, %v12920_v35 }
 0x1bb   : > { %19397 = vst [vmem:[#allocation59_spill] sm:$0xff] %v13865_v3  ;;  %v13868_v24 = vmax.f32 %v13446_v33, %v10499_v51  ;;  %v13871_v48 = vmax.f32 %v13441_v28, %v10498_v8  ;;  %10731 = vrot.lane.b32.xlu1 %v10730_v23, %s13039_s10  ;;  %10741 = vrot.lane.b32.xlu0 %v10740_v56, %s13038_s26  ;;  %v13875_v12 = vpop.f32.mrb[102].mxu0 }
 0x1bc   : > { %19400 = vst [vmem:[#allocation62_spill] sm:$0xff] %v13875_v12  ;;  %v10755_v10 = vpack.i.bf16 %v13875_v12, %v13862_v14  ;;  %v13880_v5 = vpop.f32.mrb[103].mxu0  ;;  %v13884_v33 = vmax.f32 %v13451_v39, %v10504_v34  ;;  %v13887_v28 = vmax.f32 %v13443_v30, %v10503_v60 }
 0x1bd   : > { %19398 = vst [vmem:[#allocation60_spill] sm:$0xff] %v13868_v24  ;;  %19399 = vst [vmem:[#allocation61_spill] sm:$0xff] %v13871_v48  ;;  %v10745_v42 = vpack.i.bf16 %v13868_v24, %v13871_v48  ;;  %v10760_v56 = vpack.i.bf16 %v13880_v5, %v13865_v3  ;;  %v19540_v48 = vld [vmem:[#allocation36_spill] sm:$0xff] }
 0x1be   : > { %19401 = vst [vmem:[#allocation63_spill] sm:$0xff] %v13880_v5  ;;  %19402 = vst [vmem:[#allocation64_spill] sm:$0xff] %v13884_v33  ;;  %v10750_v30 = vpack.i.bf16 %v13884_v33, %v13887_v28 }
 0x1bf   : > { %19403 = vst [vmem:[#allocation65_spill] sm:$0xff] %v13887_v28  ;;  %10736 = vrot.lane.b32.xlu1 %v10735_v32, %s13038_s26  ;;  %10746 = vrot.lane.b32.xlu0 %v10745_v42, %s13039_s10 }
 0x1c0   : > { %v10507_v51 = vpop.permute.xlu1 %10506 }
 0x1c1   : > { %v10509_v8 = vunpack.i.h.bf16 %v10507_v51  ;;  %v10508_v23 = vunpack.i.l.bf16 %v10507_v51  ;;  %v10512_v39 = vpop.permute.xlu0 %10511  ;;  %v13898_v60 = vpop.f32.mrb[104].mxu0 }
 0x1c2   : > { %19404 = vst [vmem:[#allocation66_spill] sm:$0xff] %v13898_v60  ;;  %v10514_v62 = vunpack.i.h.bf16 %v10512_v39  ;;  %v10513_v34 = vunpack.i.l.bf16 %v10512_v39  ;;  %v13900_v14 = vpop.f32.mrb[105].mxu0 }
 0x1c3   : > { %19405 = vst [vmem:[#allocation67_spill] sm:$0xff] %v13900_v14  ;;  %v13903_v12 = vmax.f32 %v13464_v49, %v10509_v8  ;;  %v13906_v32 = vmax.f32 %v13459_v44, %v10508_v23  ;;  %10751 = vrot.lane.b32.xlu1 %v10750_v30, %s13039_s10  ;;  %10761 = vrot.lane.b32.xlu0 %v10760_v56, %s13038_s26  ;;  %v13910_v35 = vpop.f32.mrb[106].mxu0 }
 0x1c4   : > { %19408 = vst [vmem:[#allocation70_spill] sm:$0xff] %v13910_v35  ;;  %v10775_v42 = vpack.i.bf16 %v13910_v35, %v13898_v60  ;;  %v13914_v51 = vpop.f32.mrb[107].mxu0  ;;  %v13917_v39 = vmax.f32 %v13469_v55, %v10514_v62  ;;  %v13920_v49 = vmax.f32 %v13461_v46, %v10513_v34 }
 0x1c5   : > { %19406 = vst [vmem:[#allocation68_spill] sm:$0xff] %v13903_v12  ;;  %19407 = vst [vmem:[#allocation69_spill] sm:$0xff] %v13906_v32  ;;  %v10765_v44 = vpack.i.bf16 %v13903_v12, %v13906_v32  ;;  %v10780_v8 = vpack.i.bf16 %v13914_v51, %v13900_v14  ;;  %v19420_v32 = vld [vmem:[#allocation5_spill] sm:$0xff] }
 0x1c6   : > { %19409 = vst [vmem:[#allocation71_spill] sm:$0xff] %v13914_v51  ;;  %19410 = vst [vmem:[#allocation72_spill] sm:$0xff] %v13917_v39  ;;  %v10770_v55 = vpack.i.bf16 %v13917_v39, %v13920_v49 }
 0x1c7   : > { %19411 = vst [vmem:[#allocation73_spill] sm:$0xff] %v13920_v49  ;;  %10756 = vrot.lane.b32.xlu1 %v10755_v10, %s13038_s26  ;;  %10766 = vrot.lane.b32.xlu0 %v10765_v44, %s13039_s10 }
 0x1c8   : > { %v10517_v56 = vpop.permute.xlu1 %10516 }
 0x1c9   : > { %v10519_v23 = vunpack.i.h.bf16 %v10517_v56  ;;  %v10518_v30 = vunpack.i.l.bf16 %v10517_v56  ;;  %v10522_v60 = vpop.permute.xlu0 %10521  ;;  %v13930_v46 = vpop.f32.mrb[108].mxu0 }
 0x1ca   : > { %19412 = vst [vmem:[#allocation74_spill] sm:$0xff] %v13930_v46  ;;  %v10524_v62 = vunpack.i.h.bf16 %v10522_v60  ;;  %v10523_v34 = vunpack.i.l.bf16 %v10522_v60  ;;  %v13932_v35 = vpop.f32.mrb[109].mxu0  ;;  %v19418_v60 = vld [vmem:[#allocation6_spill] sm:$0xff] }
 0x1cb   : > { %19413 = vst [vmem:[#allocation75_spill] sm:$0xff] %v13932_v35  ;;  %v13935_v14 = vmax.f32 %v13482_v9, %v10519_v23  ;;  %v13938_v10 = vmax.f32 %v13477_v0, %v10518_v30  ;;  %10771 = vrot.lane.b32.xlu1 %v10770_v55, %s13039_s10  ;;  %10781 = vrot.lane.b32.xlu0 %v10780_v8, %s13038_s26  ;;  %v13942_v44 = vpop.f32.mrb[110].mxu0  ;;  %v12921_v8 = vld [vmem:[%s13149_s25 + $0x2f0] sm:$0xff]   ;;  %v12922_v30 = vld [vmem:[%s13149_s25 + $0x2f8] sm:$0xff]  }
 0x1cc   : > { %19416 = vst [vmem:[#allocation78_spill] sm:$0xff] %v13942_v44  ;;  %v10795_v56 = vpack.i.bf16 %v13942_v44, %v13930_v46  ;;  %v13946_v51 = vpop.f32.mrb[111].mxu0  ;;  %v13949_v39 = vmax.f32 %v19418_v60, %v10524_v62  ;;  %v13952_v9 = vmax.f32 %v19420_v32, %v10523_v34  ;;  %10017 = vmatprep.mubr.msk.bf16.mxu0 %vm1215_vm1, %v12921_v8 }
 0x1cd   : > { %19414 = vst [vmem:[#allocation76_spill] sm:$0xff] %v13935_v14  ;;  %19415 = vst [vmem:[#allocation77_spill] sm:$0xff] %v13938_v10  ;;  %v10785_v0 = vpack.i.bf16 %v13935_v14, %v13938_v10  ;;  %v10800_v23 = vpack.i.bf16 %v13946_v51, %v13932_v35  ;;  %10018 = vmatmul.mubr.msk.bf16.gmra.mrb[188].mxu0 %vm1215_vm1, %v12922_v30  ;;  %v19426_v10 = vld [vmem:[#allocation7_spill] sm:$0xff] }
 0x1ce   : > { %19417 = vst [vmem:[#allocation79_spill] sm:$0xff] %v13946_v51  ;;  %19419 = vst [vmem:[#allocation6_spill] sm:$0xff] %v13949_v39  ;;  %v10790_v32 = vpack.i.bf16 %v13949_v39, %v13952_v9 }
 0x1cf   : > { %19421 = vst [vmem:[#allocation5_spill] sm:$0xff] %v13952_v9  ;;  %10776 = vrot.lane.b32.xlu1 %v10775_v42, %s13038_s26  ;;  %10786 = vrot.lane.b32.xlu0 %v10785_v0, %s13039_s10  ;;  %v19424_v42 = vld [vmem:[#allocation9_spill] sm:$0xff]  ;;  %v19432_v9 = vld [vmem:[#allocation8_spill] sm:$0xff] }
 0x1d0   : > { %v10527_v55 = vpop.permute.xlu1 %10526 }
 0x1d1   : > { %v10529_v62 = vunpack.i.h.bf16 %v10527_v55  ;;  %v10528_v60 = vunpack.i.l.bf16 %v10527_v55  ;;  %v10532_v46 = vpop.permute.xlu0 %10531  ;;  %v13965_v34 = vpop.f32.mrb[112].mxu0 }
 0x1d2   : > { %19422 = vst [vmem:[#allocation80_spill] sm:$0xff] %v13965_v34  ;;  %v10534_v44 = vunpack.i.h.bf16 %v10532_v46  ;;  %v10533_v35 = vunpack.i.l.bf16 %v10532_v46  ;;  %v13968_v51 = vpop.f32.mrb[113].mxu0  ;;  %v19430_v46 = vld [vmem:[#allocation10_spill] sm:$0xff] }
 0x1d3   : > { %19423 = vst [vmem:[#allocation81_spill] sm:$0xff] %v13968_v51  ;;  %v13971_v0 = vmax.f32 %v19424_v42, %v10529_v62  ;;  %v13974_v14 = vmax.f32 %v19426_v10, %v10528_v60  ;;  %10791 = vrot.lane.b32.xlu1 %v10790_v32, %s13039_s10  ;;  %10801 = vrot.lane.b32.xlu0 %v10800_v23, %s13038_s26  ;;  %v13978_v8 = vpop.f32.mrb[114].mxu0 }
 0x1d4   : > { %19428 = vst [vmem:[#allocation82_spill] sm:$0xff] %v13978_v8  ;;  %v10815_v55 = vpack.i.bf16 %v13978_v8, %v13965_v34  ;;  %v13982_v30 = vpop.f32.mrb[115].mxu0  ;;  %v13985_v39 = vmax.f32 %v19430_v46, %v10534_v44  ;;  %v13988_v62 = vmax.f32 %v19432_v9, %v10533_v35 }
 0x1d5   : > { %19425 = vst [vmem:[#allocation9_spill] sm:$0xff] %v13971_v0  ;;  %19427 = vst [vmem:[#allocation7_spill] sm:$0xff] %v13974_v14  ;;  %v10805_v10 = vpack.i.bf16 %v13971_v0, %v13974_v14  ;;  %v10820_v60 = vpack.i.bf16 %v13982_v30, %v13968_v51  ;;  %v19436_v14 = vld [vmem:[#allocation13_spill] sm:$0xff]  ;;  %v19438_v51 = vld [vmem:[#allocation11_spill] sm:$0xff] }
 0x1d6   : > { %19429 = vst [vmem:[#allocation83_spill] sm:$0xff] %v13982_v30  ;;  %19431 = vst [vmem:[#allocation10_spill] sm:$0xff] %v13985_v39  ;;  %v10810_v44 = vpack.i.bf16 %v13985_v39, %v13988_v62  ;;  %v19442_v30 = vld [vmem:[#allocation14_spill] sm:$0xff] }
 0x1d7   : > { %19433 = vst [vmem:[#allocation8_spill] sm:$0xff] %v13988_v62  ;;  %10796 = vrot.lane.b32.xlu1 %v10795_v56, %s13038_s26  ;;  %10806 = vrot.lane.b32.xlu0 %v10805_v10, %s13039_s10 }
 0x1d8   : > { %v10537_v23 = vpop.permute.xlu1 %10536 }
 0x1d9   : > { %v10539_v32 = vunpack.i.h.bf16 %v10537_v23  ;;  %v10538_v42 = vunpack.i.l.bf16 %v10537_v23  ;;  %v10542_v34 = vpop.permute.xlu0 %10541  ;;  %v13998_v46 = vpop.f32.mrb[116].mxu0 }
 0x1da   : > { %19434 = vst [vmem:[#allocation84_spill] sm:$0xff] %v13998_v46  ;;  %v10544_v35 = vunpack.i.h.bf16 %v10542_v34  ;;  %v10543_v9 = vunpack.i.l.bf16 %v10542_v34  ;;  %v14000_v8 = vpop.f32.mrb[117].mxu0 }
 0x1db   : > { %19435 = vst [vmem:[#allocation85_spill] sm:$0xff] %v14000_v8  ;;  %v14003_v0 = vmax.f32 %v19436_v14, %v10539_v32  ;;  %v14006_v56 = vmax.f32 %v19438_v51, %v10538_v42  ;;  %10811 = vrot.lane.b32.xlu1 %v10810_v44, %s13039_s10  ;;  %10821 = vrot.lane.b32.xlu0 %v10820_v60, %s13038_s26  ;;  %v14010_v10 = vpop.f32.mrb[118].mxu0  ;;  %v19444_v14 = vld [vmem:[#allocation12_spill] sm:$0xff] }
 0x1dc   : > { %19440 = vst [vmem:[#allocation86_spill] sm:$0xff] %v14010_v10  ;;  %v10835_v23 = vpack.i.bf16 %v14010_v10, %v13998_v46  ;;  %v14014_v34 = vpop.f32.mrb[119].mxu0  ;;  %v14017_v39 = vmax.f32 %v19442_v30, %v10544_v35  ;;  %v14020_v32 = vmax.f32 %v19444_v14, %v10543_v9  ;;  %v12923_v35 = vld [vmem:[%s13149_s25 + $0x300] sm:$0xff]   ;;  %v12924_v9 = vld [vmem:[%s13149_s25 + $0x308] sm:$0xff]  }
 0x1dd   : > { %19437 = vst [vmem:[#allocation13_spill] sm:$0xff] %v14003_v0  ;;  %19439 = vst [vmem:[#allocation11_spill] sm:$0xff] %v14006_v56  ;;  %v10825_v51 = vpack.i.bf16 %v14003_v0, %v14006_v56  ;;  %v10840_v42 = vpack.i.bf16 %v14014_v34, %v14000_v8  ;;  %10021 = vmatprep.mubr.msk.bf16.mxu0 %vm1215_vm1, %v12923_v35 }
 0x1de   : > { %19441 = vst [vmem:[#allocation87_spill] sm:$0xff] %v14014_v34  ;;  %19443 = vst [vmem:[#allocation14_spill] sm:$0xff] %v14017_v39  ;;  %v10830_v44 = vpack.i.bf16 %v14017_v39, %v14020_v32  ;;  %10022 = vmatmul.mubr.msk.bf16.gmra.mrb[192].mxu0 %vm1215_vm1, %v12924_v9 }
 0x1df   : > { %19445 = vst [vmem:[#allocation12_spill] sm:$0xff] %v14020_v32  ;;  %10816 = vrot.lane.b32.xlu1 %v10815_v55, %s13038_s26  ;;  %10826 = vrot.lane.b32.xlu0 %v10825_v51, %s13039_s10 }
 0x1e1   : > { %v10547_v60 = vpop.permute.xlu0 %10546  ;;  %v14030_v46 = vpop.f32.mrb[120].mxu0 }
 0x1e2   : > { %19446 = vst [vmem:[#allocation88_spill] sm:$0xff] %v14030_v46  ;;  %v14032_v30 = vpop.f32.mrb[121].mxu0  ;;  %v10548_v10 = vunpack.i.l.bf16 %v10547_v60 }
 0x1e3   : > { %19447 = vst [vmem:[#allocation89_spill] sm:$0xff] %v14032_v30  ;;  %10831 = vrot.lane.b32.xlu1 %v10830_v44, %s13039_s10  ;;  %10841 = vrot.lane.b32.xlu0 %v10840_v42, %s13038_s26  ;;  %v14038_v14 = vpop.f32.mrb[122].mxu0 }
 0x1e4   : > { %19448 = vst [vmem:[#allocation90_spill] sm:$0xff] %v14038_v14  ;;  %v10860_v55 = vpack.i.bf16 %v14038_v14, %v14030_v46  ;;  %v14042_v51 = vpop.f32.mrb[123].mxu0  ;;  %v19453_v14 = vld [vmem:[#allocation16_spill] sm:$0xff]  ;;  %v14062_v32 = vmax.f32 %v13540_v31, %v10548_v10  ;;  %v19460_v31 = vld [vmem:[#allocation15_spill] sm:$0xff] }
 0x1e5   : > { %19449 = vst [vmem:[#allocation91_spill] sm:$0xff] %v14042_v51  ;;  %v14045_v8 = vpop.permute.xlu1 %10551  ;;  %v10562_v34 = vpop.permute.xlu0 %10561  ;;  %v10865_v39 = vpack.i.bf16 %v14042_v51, %v14032_v30 }
 0x1e6   : > { %19450 = vst [vmem:[#allocation92_spill] sm:$0xff] %v14045_v8  ;;  %v10554_v42 = vunpack.i.h.bf16 %v14045_v8  ;;  %v10564_v44 = vunpack.i.h.bf16 %v10562_v34  ;;  %v10563_v56 = vunpack.i.l.bf16 %v10562_v34  ;;  %19455 = vst [vmem:[#allocation95_spill] sm:$0xff] %v14062_v32  ;;  %v19542_v8 = vld [vmem:[#allocation32_spill] sm:$0xff] }
 0x1e7   : > { %10836 = vrot.lane.b32.xlu1 %v10835_v23, %s13038_s26 }
 0x1e8   : > { %v14053_v46 = vmax.f32 %v13554_v58, %v10554_v42  ;;  %v14056_v35 = vmax.f32 %v13546_v52, %v10564_v44  ;;  %v14059_v0 = vmax.f32 %v19453_v14, %v10563_v56  ;;  %v19458_v56 = vld [vmem:[#allocation18_spill] sm:$0xff]  ;;  %v10549_v44 = vunpack.i.h.bf16 %v10547_v60 }
 0x1e9   : > { %v10557_v30 = vpop.permute.xlu1 %10556  ;;  %v14064_v9 = vpop.permute.xlu0 %10566 }
 0x1ea   : > { %19451 = vst [vmem:[#allocation93_spill] sm:$0xff] %v14053_v46  ;;  %19452 = vst [vmem:[#allocation94_spill] sm:$0xff] %v14056_v35  ;;  %v10559_v51 = vunpack.i.h.bf16 %v10557_v30  ;;  %v10558_v62 = vunpack.i.l.bf16 %v10557_v30  ;;  %v14066_v34 = vpop.f32.mrb[124].mxu0  ;;  %v10855_v58 = vpack.i.bf16 %v14056_v35, %v14059_v0  ;;  %v10845_v52 = vpack.i.bf16 %v14062_v32, %v14053_v46 }
 0x1eb   : > { %19454 = vst [vmem:[#allocation16_spill] sm:$0xff] %v14059_v0  ;;  %19456 = vst [vmem:[#allocation96_spill] sm:$0xff] %v14066_v34  ;;  %v14072_v23 = vpop.f32.mrb[125].mxu0 }
 0x1ec   : > { %19457 = vst [vmem:[#allocation97_spill] sm:$0xff] %v14072_v23  ;;  %v14075_v14 = vmax.f32 %v19458_v56, %v10559_v51  ;;  %v14078_v10 = vmax.f32 %v19460_v31, %v10558_v62  ;;  %v14080_v42 = vpop.f32.mrb[126].mxu0  ;;  %10856 = vrot.lane.b32.xlu1 %v10855_v58, %s13039_s10  ;;  %10846 = vrot.lane.b32.xlu0 %v10845_v52, %s13040_s12  ;;  %v10568_v58 = vunpack.i.l.bf16 %v14064_v9  ;;  %v19465_v31 = vld [vmem:[#allocation17_spill] sm:$0xff] }
 0x1ed   : > { %19462 = vst [vmem:[#allocation98_spill] sm:$0xff] %v14080_v42  ;;  %v10572_v30 = vpop.permute.xlu1 %10571  ;;  %v10582_v35 = vpop.permute.xlu0 %10581  ;;  %v10890_v0 = vpack.i.bf16 %v14080_v42, %v14066_v34  ;;  %v14097_v46 = vmax.f32 %v19465_v31, %v10549_v44  ;;  %v19469_v42 = vld [vmem:[#allocation21_spill] sm:$0xff]  ;;  %v19473_v31 = vld [vmem:[#allocation23_spill] sm:$0xff] }
 0x1ee   : > { %19459 = vst [vmem:[#allocation18_spill] sm:$0xff] %v14075_v14  ;;  %19461 = vst [vmem:[#allocation15_spill] sm:$0xff] %v14078_v10  ;;  %v10574_v12 = vunpack.i.h.bf16 %v10572_v30  ;;  %v10573_v32 = vunpack.i.l.bf16 %v10572_v30  ;;  %v10584_v51 = vunpack.i.h.bf16 %v10582_v35  ;;  %v10583_v56 = vunpack.i.l.bf16 %v10582_v35  ;;  %v14086_v49 = vpop.f32.mrb[127].mxu0 }
 0x1ef   : > { %19463 = vst [vmem:[#allocation99_spill] sm:$0xff] %v14086_v49  ;;  %v10850_v62 = vpack.i.bf16 %v14075_v14, %v14078_v10  ;;  %19466 = vst [vmem:[#allocation17_spill] sm:$0xff] %v14097_v46 }
 0x1f0   : > { %v14094_v52 = vmax.f32 %v13588_v20, %v10573_v32  ;;  %10861 = vrot.lane.b32.xlu1 %v10860_v55, %s13038_s26  ;;  %v14104_v34 = vmax.f32 %v13585_v41, %v10574_v12  ;;  %v14107_v60 = vmax.f32 %v13578_v61, %v10584_v51  ;;  %v14110_v10 = vmax.f32 %v19469_v42, %v10583_v56 }
 0x1f1   : > { %10851 = vrot.lane.b32.xlu0 %v10850_v62, %s13039_s10  ;;  %v10577_v35 = vpop.permute.xlu1 %10576  ;;  %v14101_v30 = vpop.permute.xlu0 %10586  ;;  %v14119_v41 = vmax.f32 %v19473_v31, %v10568_v58  ;;  %v12925_v58 = vld [vmem:[%s13149_s25 + $0x310] sm:$0xff]   ;;  %v12926_v31 = vld [vmem:[%s13149_s25 + $0x318] sm:$0xff]  }
 0x1f2   : > { %19464 = vst [vmem:[#allocation100_spill] sm:$0xff] %v14094_v52  ;;  %19467 = vst [vmem:[#allocation101_spill] sm:$0xff] %v14104_v34  ;;  %v14112_v20 = vpop.f32.mrb[128].mxu0  ;;  %v10579_v32 = vunpack.i.h.bf16 %v10577_v35  ;;  %v10578_v44 = vunpack.i.l.bf16 %v10577_v35  ;;  %v10870_v55 = vpack.i.bf16 %v14094_v52, %v14097_v46  ;;  %v10885_v56 = vpack.i.bf16 %v14107_v60, %v14110_v10  ;;  %v19477_v52 = vld [vmem:[#allocation24_spill] sm:$0xff]  ;;  %10025 = vmatprep.mubr.msk.bf16.mxu0 %vm1215_vm1, %v12925_v58 }
 0x1f3   : > { %19468 = vst [vmem:[#allocation102_spill] sm:$0xff] %v14107_v60  ;;  %19470 = vst [vmem:[#allocation21_spill] sm:$0xff] %v14110_v10  ;;  %v14116_v62 = vpop.f32.mrb[129].mxu0  ;;  %v10875_v35 = vpack.i.bf16 %v14119_v41, %v14104_v34  ;;  %v10569_v60 = vunpack.i.h.bf16 %v14064_v9  ;;  %10026 = vmatmul.mubr.msk.bf16.gmra.mrb[196].mxu0 %vm1215_vm1, %v12926_v31 }
 0x1f4   : > { %19471 = vst [vmem:[#allocation103_spill] sm:$0xff] %v14112_v20  ;;  %19472 = vst [vmem:[#allocation104_spill] sm:$0xff] %v14116_v62  ;;  %v14121_v12 = vpop.f32.mrb[130].mxu0  ;;  %10871 = vrot.lane.b32.xlu1 %v10870_v55, %s13040_s12  ;;  %v14136_v46 = vmax.f32 %v19477_v52, %v10579_v32  ;;  %v19479_v55 = vld [vmem:[#allocation20_spill] sm:$0xff] }
 0x1f5   : > { %19474 = vst [vmem:[#allocation23_spill] sm:$0xff] %v14119_v41  ;;  %19475 = vst [vmem:[#allocation105_spill] sm:$0xff] %v14121_v12  ;;  %10866 = vrot.lane.b32.xlu0 %v10865_v39, %s13038_s26  ;;  %v10592_v61 = vpop.permute.xlu1 %10591  ;;  %v10602_v42 = vpop.permute.xlu0 %10601  ;;  %v14139_v39 = vmax.f32 %v19479_v55, %v10578_v44 }
 0x1f6   : > { %v14131_v14 = vpop.f32.mrb[131].mxu0  ;;  %19478 = vst [vmem:[#allocation24_spill] sm:$0xff] %v14136_v46  ;;  %v10593_v3 = vunpack.i.l.bf16 %v10592_v61  ;;  %v10594_v52 = vunpack.i.h.bf16 %v10592_v61  ;;  %v10604_v32 = vunpack.i.h.bf16 %v10602_v42  ;;  %v10603_v34 = vunpack.i.l.bf16 %v10602_v42 }
 0x1f7   : > { %19476 = vst [vmem:[#allocation106_spill] sm:$0xff] %v14131_v14  ;;  %19480 = vst [vmem:[#allocation20_spill] sm:$0xff] %v14139_v39  ;;  %v10880_v9 = vpack.i.bf16 %v14136_v46, %v14139_v39  ;;  %v10588_v61 = vunpack.i.l.bf16 %v14101_v30 }
 0x1f8   : > { %10886 = vrot.lane.b32.xlu1 %v10885_v56, %s13039_s10  ;;  %v14153_v55 = vmax.f32 %v13617_v13, %v10593_v3  ;;  %v14170_v3 = vmax.f32 %v13614_v4, %v10594_v52  ;;  %v14173_v39 = vmax.f32 %v13610_v47, %v10604_v32  ;;  %v19492_v4 = vpack.i.bf16 %v14086_v49, %v14072_v23  ;;  %v19494_v52 = vld [vmem:[#allocation27_spill] sm:$0xff] }
 0x1f9   : > { %10876 = vrot.lane.b32.xlu0 %v10875_v35, %s13040_s12  ;;  %v10597_v10 = vpop.permute.xlu1 %10596  ;;  %v14147_v41 = vpop.permute.xlu0 %10606  ;;  %v19485_v35 = vld [vmem:[#allocation22_spill] sm:$0xff]  ;;  %v14185_v13 = vmax.f32 %v13602_v15, %v10588_v61  ;;  %v19496_v15 = vld [vmem:[#allocation25_spill] sm:$0xff]  ;;  %v10589_v49 = vunpack.i.h.bf16 %v14101_v30 }
 0x1fa   : > { %v14149_v44 = vpop.f32.mrb[132].mxu0  ;;  %19482 = vst [vmem:[#allocation108_spill] sm:$0xff] %v14153_v55  ;;  %v14162_v51 = vmax.f32 %v19485_v35, %v10569_v60  ;;  %19487 = vst [vmem:[#allocation111_spill] sm:$0xff] %v14170_v3  ;;  %v14176_v60 = vmax.f32 %v13596_v63, %v10603_v34  ;;  %v10599_v46 = vunpack.i.h.bf16 %v10597_v10 }
 0x1fb   : > { %19481 = vst [vmem:[#allocation107_spill] sm:$0xff] %v14149_v44  ;;  %v14157_v58 = vpop.f32.mrb[133].mxu0  ;;  %19488 = vst [vmem:[#allocation112_spill] sm:$0xff] %v14173_v39  ;;  %v10905_v5 = vpack.i.bf16 %v14185_v13, %v14170_v3  ;;  %v10608_v3 = vunpack.i.l.bf16 %v14147_v41 }
 0x1fc   : > { %19483 = vst [vmem:[#allocation109_spill] sm:$0xff] %v14157_v58  ;;  %v14159_v56 = vpop.f32.mrb[134].mxu0  ;;  %19486 = vst [vmem:[#allocation22_spill] sm:$0xff] %v14162_v51  ;;  %10891 = vrot.lane.b32.xlu1 %v10890_v0, %s13038_s26  ;;  %v10900_v0 = vpack.i.bf16 %v14153_v55, %v14162_v51  ;;  %v10915_v34 = vpack.i.bf16 %v14173_v39, %v14176_v60  ;;  %v14199_v32 = vmax.f32 %v19494_v52, %v10599_v46  ;;  %v12927_v55 = vld [vmem:[%s13149_s25 + $0x3d0] sm:$0xff]  }
 0x1fd   : > { %19484 = vst [vmem:[#allocation110_spill] sm:$0xff] %v14159_v56  ;;  %10881 = vrot.lane.b32.xlu0 %v10880_v9, %s13039_s10  ;;  %v10612_v42 = vpop.permute.xlu1 %10611  ;;  %v10622_v31 = vpop.permute.xlu0 %10621  ;;  %19489 = vst [vmem:[#allocation113_spill] sm:$0xff] %v14176_v60  ;;  %v10598_v9 = vunpack.i.l.bf16 %v10597_v10  ;;  %10073 = vmatprep.mubr.msk.bf16.mxu1 %vm1215_vm1, %v12927_v55 }
 0x1fe   : > { %v14178_v35 = vpop.f32.mrb[135].mxu0  ;;  %19491 = vst [vmem:[#allocation115_spill] sm:$0xff] %v14185_v13  ;;  %19495 = vst [vmem:[#allocation27_spill] sm:$0xff] %v14199_v32  ;;  %v10624_v39 = vunpack.i.h.bf16 %v10622_v31  ;;  %v10623_v60 = vunpack.i.l.bf16 %v10622_v31  ;;  %v19502_v31 = vld [vmem:[#allocation26_spill] sm:$0xff] }
 0x1ff   : > { %19490 = vst [vmem:[#allocation114_spill] sm:$0xff] %v14178_v35  ;;  %v14202_v61 = vmax.f32 %v19496_v15, %v10598_v9  ;;  %v10614_v15 = vunpack.i.h.bf16 %v10612_v42  ;;  %v14233_v9 = vmax.f32 %v19502_v31, %v10589_v49 }
 0x200   : > { %10901 = vrot.lane.b32.xlu1 %v10900_v0, %s13040_s12  ;;  %v10613_v0 = vunpack.i.l.bf16 %v10612_v42  ;;  %v12928_v42 = vld [vmem:[%s13149_s25 + $0x3d8] sm:$0xff]   ;;  %v14248_v55 = vmax.f32 %v13646_v38, %v10624_v39  ;;  %v14251_v49 = vmax.f32 %v13632_v54, %v10623_v60  ;;  %v19513_v54 = vpack.i.bf16 %v14131_v14, %v14116_v62  ;;  %v19515_v62 = vld [vmem:[#allocation31_spill] sm:$0xff]  ;;  %v19517_v14 = vld [vmem:[#allocation28_spill] sm:$0xff] }
 0x201   : > { %10896 = vrot.lane.b32.xlu0 %v19492_v4, %s13038_s26  ;;  %v10617_v63 = vpop.permute.xlu1 %10616  ;;  %v14192_v47 = vpop.permute.xlu0 %10626  ;;  %19497 = vst [vmem:[#allocation25_spill] sm:$0xff] %v14202_v61  ;;  %19503 = vst [vmem:[#allocation26_spill] sm:$0xff] %v14233_v9  ;;  %10074 = vmatmul.mubr.msk.bf16.vlgmr.msra.gmra.mrb[0].mxu1 %vm1215_vm1, %v12928_v42 }
 0x202   : > { %v14196_v10 = vpop.f32.mrb[136].mxu0  ;;  %v14223_v30 = vmax.f32 %v13652_v21, %v10613_v0  ;;  %v19504_v21 = vpack.i.bf16 %v14121_v12, %v14112_v20  ;;  %19506 = vst [vmem:[#allocation122_spill] sm:$0xff] %v14248_v55  ;;  %19507 = vst [vmem:[#allocation123_spill] sm:$0xff] %v14251_v49  ;;  %v12930_v20 = vld [vmem:[%s13149_s25 + $0x328] sm:$0xff]   ;;  %v10618_v12 = vunpack.i.l.bf16 %v10617_v63  ;;  %v10945_v42 = vpack.i.bf16 %v14248_v55, %v14251_v49 }
 0x203   : > { %19493 = vst [vmem:[#allocation116_spill] sm:$0xff] %v14196_v10  ;;  %v14206_v4 = vpop.f32.mrb[137].mxu0  ;;  %v12932_v55 = vld [vmem:[%s13149_s25 + $0x3e8] sm:$0xff]   ;;  %v10609_v49 = vunpack.i.h.bf16 %v14147_v41 }
 0x204   : > { %19498 = vst [vmem:[#allocation117_spill] sm:$0xff] %v14206_v4  ;;  %v14208_v23 = vpop.f32.mrb[138].mxu0  ;;  %10916 = vrot.lane.b32.xlu1 %v10915_v34, %s13039_s10  ;;  %19501 = vst [vmem:[#allocation120_spill] sm:$0xff] %v14223_v30  ;;  %v14245_v34 = vmax.f32 %v13649_v11, %v10614_v15  ;;  %v19510_v15 = vld [vmem:[#allocation30_spill] sm:$0xff] }
 0x205   : > { %19499 = vst [vmem:[#allocation118_spill] sm:$0xff] %v14208_v23  ;;  %10906 = vrot.lane.b32.xlu0 %v10905_v5, %s13040_s12  ;;  %v14213_v46 = vpop.permute.xlu1 %10631  ;;  %v14215_v52 = vpop.permute.xlu0 %10641  ;;  %v10910_v5 = vpack.i.bf16 %v14199_v32, %v14202_v61  ;;  %v10930_v32 = vpack.i.bf16 %v14223_v30, %v14233_v9  ;;  %v14263_v38 = vmax.f32 %v19510_v15, %v10608_v3 }
 0x206   : > { %v14219_v13 = vpop.f32.mrb[139].mxu0  ;;  %19505 = vst [vmem:[#allocation121_spill] sm:$0xff] %v14245_v34  ;;  %v14291_v30 = vmax.f32 %v19517_v14, %v10618_v12  ;;  %v10633_v9 = vunpack.i.l.bf16 %v14213_v46  ;;  %v10629_v14 = vunpack.i.h.bf16 %v14192_v47 }
 0x207   : > { %19500 = vst [vmem:[#allocation119_spill] sm:$0xff] %v14219_v13  ;;  %19511 = vst [vmem:[#allocation30_spill] sm:$0xff] %v14263_v38 }
 0x208   : > { %10921 = vrot.lane.b32.xlu1 %v19504_v21, %s13038_s26  ;;  %v10619_v21 = vunpack.i.h.bf16 %v10617_v63  ;;  %19518 = vst [vmem:[#allocation28_spill] sm:$0xff] %v14291_v30  ;;  %v14312_v41 = vmax.f32 %v13684_v29, %v10633_v9  ;;  %v12934_v9 = vld [vmem:[%s13149_s25 + $0x3f8] sm:$0xff]  }
 0x209   : > { %10911 = vrot.lane.b32.xlu0 %v10910_v5, %s13039_s10  ;;  %v14240_v0 = vpop.permute.xlu1 %10636  ;;  %v14242_v61 = vpop.permute.xlu0 %10646  ;;  %v12929_v5 = vld [vmem:[%s13149_s25 + $0x320] sm:$0xff]  }
 0x20a   : > { %v14253_v31 = vpop.f32.mrb[140].mxu0  ;;  %10029 = vmatprep.mubr.msk.bf16.mxu0 %vm1215_vm1, %v12929_v5  ;;  %v10935_v5 = vpack.i.bf16 %v14263_v38, %v14245_v34  ;;  %19520 = vst [vmem:[#allocation129_spill] sm:$0xff] %v14312_v41  ;;  %v19523_v38 = vld [vmem:[#allocation29_spill] sm:$0xff] }
 0x20b   : > { %19508 = vst [vmem:[#allocation124_spill] sm:$0xff] %v14253_v31  ;;  %v14260_v11 = vpop.f32.mrb[141].mxu0  ;;  %10030 = vmatmul.mubr.msk.bf16.gmra.mrb[200].mxu0 %vm1215_vm1, %v12930_v20  ;;  %v14321_v34 = vmax.f32 %v19523_v38, %v10609_v49  ;;  %v12933_v49 = vld [vmem:[%s13149_s25 + $0x3f0] sm:$0xff]   ;;  %v19529_v38 = vld [vmem:[#allocation35_spill] sm:$0xff] }
 0x20c   : > { %19509 = vst [vmem:[#allocation125_spill] sm:$0xff] %v14260_v11  ;;  %v14265_v39 = vpop.f32.mrb[142].mxu0  ;;  %10931 = vrot.lane.b32.xlu1 %v10930_v32, %s13040_s12  ;;  %v12931_v32 = vld [vmem:[%s13149_s25 + $0x3e0] sm:$0xff]  }
 0x20d   : > { %19512 = vst [vmem:[#allocation126_spill] sm:$0xff] %v14265_v39  ;;  %10926 = vrot.lane.b32.xlu0 %v19513_v54, %s13038_s26  ;;  %v14273_v60 = vpop.permute.xlu1 %10651  ;;  %v14275_v63 = vpop.permute.xlu0 %10661  ;;  %v14288_v54 = vmax.f32 %v19515_v62, %v10619_v21  ;;  %10077 = vmatprep.mubr.msk.bf16.mxu1 %vm1215_vm1, %v12931_v32  ;;  %v10628_v21 = vunpack.i.l.bf16 %v14192_v47  ;;  %v10634_v32 = vunpack.i.h.bf16 %v14213_v46  ;;  %19524 = vst [vmem:[#allocation29_spill] sm:$0xff] %v14321_v34 }
 0x20e   : > { %v14283_v15 = vpop.f32.mrb[143].mxu0  ;;  %10078 = vmatmul.mubr.msk.bf16.gmra.mrb[4].mxu1 %vm1215_vm1, %v12932_v55  ;;  %v19525_v47 = vpack.i.bf16 %v14159_v56, %v14149_v44  ;;  %v19526_v55 = vld [vmem:[#allocation34_spill] sm:$0xff] }
 0x20f   : > { %19514 = vst [vmem:[#allocation127_spill] sm:$0xff] %v14283_v15  ;;  %19516 = vst [vmem:[#allocation31_spill] sm:$0xff] %v14288_v54  ;;  %v14344_v51 = vmax.f32 %v13681_v36, %v10634_v32  ;;  %10081 = vmatprep.mubr.msk.bf16.mxu1 %vm1215_vm1, %v12933_v49  ;;  %v10644_v32 = vunpack.i.h.bf16 %v14215_v52  ;;  %v10639_v49 = vunpack.i.h.bf16 %v14240_v0 }
 0x210   : > { %10946 = vrot.lane.b32.xlu1 %v10945_v42, %s13039_s10  ;;  %v10940_v42 = vpack.i.bf16 %v14288_v54, %v14291_v30  ;;  %v14335_v30 = vmax.f32 %v19526_v55, %v10629_v14  ;;  %v19532_v14 = vpack.i.bf16 %v14178_v35, %v14157_v58  ;;  %v10643_v55 = vunpack.i.l.bf16 %v14215_v52  ;;  %v12935_v35 = vld [vmem:[%s18777_s2] sm:$0xff]  }
 0x211   : > { %10936 = vrot.lane.b32.xlu0 %v10935_v5, %s13040_s12  ;;  %v14301_v20 = vpop.permute.xlu1 %10656  ;;  %v14303_v62 = vpop.permute.xlu0 %10666  ;;  %19531 = vst [vmem:[#allocation133_spill] sm:$0xff] %v14344_v51  ;;  %v10975_v44 = vpack.i.bf16 %v14344_v51, %v14312_v41  ;;  %v14398_v24 = vmax.f32 %v19540_v48, %v10639_v49  ;;  %10085 = vmatprep.subr.bf16.mxu1 %v12935_v35  ;;  %v12936_v48 = vld [vmem:[%s18777_s2 + $0x8] sm:$0xff]  }
 0x212   : > { %v14306_v12 = vpop.f32.mrb[144].mxu0  ;;  %19527 = vst [vmem:[#allocation34_spill] sm:$0xff] %v14335_v30  ;;  %10086 = vmatpush3.bf16.msra.mxu1 %v12935_v35 }
 0x213   : > { %19519 = vst [vmem:[#allocation128_spill] sm:$0xff] %v14306_v12  ;;  %v14316_v5 = vpop.f32.mrb[145].mxu0  ;;  %19541 = vst [vmem:[#allocation36_spill] sm:$0xff] %v14398_v24  ;;  %10087 = vmatprep.subr.bf16.mxu1 %v12936_v48 }
 0x214   : > { %19521 = vst [vmem:[#allocation130_spill] sm:$0xff] %v14316_v5  ;;  %v14318_v3 = vpop.f32.mrb[146].mxu0  ;;  %10951 = vrot.lane.b32.xlu1 %v19525_v47, %s13038_s26  ;;  %v10960_v47 = vpack.i.bf16 %v14312_v41, %v14321_v34  ;;  %v14388_v41 = vmax.f32 %v13678_v57, %v10644_v32  ;;  %v19537_v34 = vld [vmem:[#allocation33_spill] sm:$0xff]  ;;  %v10653_v32 = vunpack.i.l.bf16 %v14273_v60 }
 0x215   : > { %19522 = vst [vmem:[#allocation131_spill] sm:$0xff] %v14318_v3  ;;  %10941 = vrot.lane.b32.xlu0 %v10940_v42, %s13039_s10  ;;  %v14328_v29 = vpop.permute.xlu1 %10671  ;;  %v14330_v46 = vpop.permute.xlu0 %10681  ;;  %v14341_v42 = vmax.f32 %v19529_v38, %v10628_v21  ;;  %v14391_v33 = vmax.f32 %v19537_v34, %v10643_v55 }
 0x216   : > { %v14337_v54 = vpop.f32.mrb[147].mxu0  ;;  %10082 = vmatmul.mubr.msk.bf16.gmra.mrb[8].mxu1 %vm1215_vm1, %v12934_v9  ;;  %19536 = vst [vmem:[#allocation137_spill] sm:$0xff] %v14388_v41 }
 0x217   : > { %19528 = vst [vmem:[#allocation132_spill] sm:$0xff] %v14337_v54  ;;  %19530 = vst [vmem:[#allocation35_spill] sm:$0xff] %v14341_v42  ;;  %v10990_v35 = vpack.i.bf16 %v14388_v41, %v14391_v33  ;;  %10088 = vmatpush3.bf16.msra.mxu1 %v12936_v48  ;;  %v10654_v48 = vunpack.i.h.bf16 %v14273_v60 }
 0x218   : > { %10961 = vrot.lane.b32.xlu1 %v10960_v47, %s13040_s12  ;;  %v10638_v47 = vunpack.i.l.bf16 %v14240_v0  ;;  %19538 = vst [vmem:[#allocation33_spill] sm:$0xff] %v14391_v33 }
 0x219   : > { %10956 = vrot.lane.b32.xlu0 %v19532_v14, %s13038_s26  ;;  %v14357_v21 = vpop.permute.xlu1 %10676  ;;  %v14359_v36 = vpop.permute.xlu0 %10686  ;;  %v10965_v14 = vpack.i.bf16 %v14335_v30, %v14341_v42 }
 0x21a   : > { %v14363_v38 = vpop.f32.mrb[148].mxu0  ;;  %v14401_v0 = vmax.f32 %v19542_v8, %v10638_v47 }
 0x21b   : > { %19533 = vst [vmem:[#allocation134_spill] sm:$0xff] %v14363_v38  ;;  %v14372_v56 = vpop.f32.mrb[149].mxu0 }
 0x21c   : > { %19534 = vst [vmem:[#allocation135_spill] sm:$0xff] %v14372_v56  ;;  %v14374_v58 = vpop.f32.mrb[150].mxu0  ;;  %10976 = vrot.lane.b32.xlu1 %v10975_v44, %s13041_s13  ;;  %v10980_v44 = vpack.i.bf16 %v14341_v42, %v14344_v51  ;;  %19543 = vst [vmem:[#allocation32_spill] sm:$0xff] %v14401_v0  ;;  %v10985_v55 = vpack.i.bf16 %v14398_v24, %v14401_v0  ;;  %v10649_v0 = vunpack.i.h.bf16 %v14242_v61  ;;  %v10648_v24 = vunpack.i.l.bf16 %v14242_v61  ;;  %v12937_v42 = vld [vmem:[%s13149_s25 + $0x330] sm:$0xff]  }
 0x21d   : > { %19535 = vst [vmem:[#allocation136_spill] sm:$0xff] %v14374_v58  ;;  %10966 = vrot.lane.b32.xlu0 %v10965_v14, %s13041_s13  ;;  %v14378_v52 = vpop.permute.xlu1 %10691  ;;  %v14380_v9 = vpop.permute.xlu0 %10701  ;;  %v19549_v51 = vpack.i.bf16 %v14208_v23, %v14196_v10  ;;  %v19550_v61 = vpack.i.bf16 %v14219_v13, %v14206_v4  ;;  %10033 = vmatprep.mubr.msk.bf16.mxu0 %vm1215_vm1, %v12937_v42  ;;  %v10663_v42 = vunpack.i.l.bf16 %v14275_v63  ;;  %v19564_v13 = vld [vmem:[#allocation37_spill] sm:$0xff] }
 0x21e   : > { %v14395_v14 = vpop.f32.mrb[151].mxu0 }
 0x21f   : > { %19539 = vst [vmem:[#allocation138_spill] sm:$0xff] %v14395_v14 }
 0x220   : > { %10981 = vrot.lane.b32.xlu1 %v10980_v44, %s13042_s19 }
 0x221   : > { %10971 = vrot.lane.b32.xlu0 %v10980_v44, %s13040_s12  ;;  %v14407_v57 = vpop.permute.xlu1 %10696  ;;  %v14409_v34 = vpop.permute.xlu0 %10706 }
 0x222   : > { %v14414_v8 = vpop.f32.mrb[152].mxu0 }
 0x223   : > { %19544 = vst [vmem:[#allocation139_spill] sm:$0xff] %v14414_v8  ;;  %v14421_v49 = vpop.f32.mrb[153].mxu0 }
 0x224   : > { %19545 = vst [vmem:[#allocation140_spill] sm:$0xff] %v14421_v49  ;;  %v14423_v47 = vpop.f32.mrb[154].mxu0  ;;  %10991 = vrot.lane.b32.xlu1 %v10990_v35, %s13039_s10  ;;  %v14439_v35 = vmax.f32 %v13720_v37, %v10653_v32  ;;  %v12938_v37 = vld [vmem:[%s13149_s25 + $0x338] sm:$0xff]   ;;  %v14458_v32 = vmax.f32 %v13702_v2, %v10649_v0 }
 0x225   : > { %19546 = vst [vmem:[#allocation141_spill] sm:$0xff] %v14423_v47  ;;  %10986 = vrot.lane.b32.xlu0 %v10985_v55, %s13039_s10  ;;  %v14427_v44 = vpop.permute.xlu1 %10711  ;;  %v14429_v28 = vpop.permute.xlu0 %10721  ;;  %v14461_v55 = vmax.f32 %v13705_v26, %v10648_v24  ;;  %10034 = vmatmul.mubr.msk.bf16.gmra.mrb[204].mxu0 %vm1215_vm1, %v12938_v37  ;;  %v10664_v24 = vunpack.i.h.bf16 %v14275_v63  ;;  %v10659_v37 = vunpack.i.h.bf16 %v14301_v20 }
 0x226   : > { %v14435_v33 = vpop.f32.mrb[155].mxu0  ;;  %19548 = vst [vmem:[#allocation143_spill] sm:$0xff] %v14439_v35  ;;  %19551 = vst [vmem:[#allocation144_spill] sm:$0xff] %v14458_v32 }
 0x227   : > { %19547 = vst [vmem:[#allocation142_spill] sm:$0xff] %v14435_v33  ;;  %19552 = vst [vmem:[#allocation145_spill] sm:$0xff] %v14461_v55  ;;  %v11015_v0 = vpack.i.bf16 %v14458_v32, %v14461_v55 }
 0x228   : > { %10996 = vrot.lane.b32.xlu1 %v19549_v51, %s13038_s26  ;;  %v14467_v51 = vmax.f32 %v13717_v7, %v10654_v48 }
 0x229   : > { %11001 = vrot.lane.b32.xlu0 %v19550_v61, %s13038_s26  ;;  %v14452_v41 = vpop.permute.xlu1 %10716  ;;  %v14454_v60 = vpop.permute.xlu0 %10726  ;;  %v11010_v61 = vpack.i.bf16 %v14439_v35, %v14335_v30  ;;  %v14503_v30 = vmax.f32 %v13713_v18, %v10664_v24  ;;  %v10673_v24 = vunpack.i.l.bf16 %v14328_v29 }
 0x22a   : > { %v14463_v49 = vpop.f32.mrb[156].mxu0  ;;  %19554 = vst [vmem:[#allocation147_spill] sm:$0xff] %v14467_v51  ;;  %v11020_v4 = vpack.i.bf16 %v14467_v51, %v14439_v35  ;;  %v19562_v35 = vld [vmem:[#allocation39_spill] sm:$0xff] }
 0x22b   : > { %19553 = vst [vmem:[#allocation146_spill] sm:$0xff] %v14463_v49  ;;  %v14471_v10 = vpop.f32.mrb[157].mxu0  ;;  %19558 = vst [vmem:[#allocation151_spill] sm:$0xff] %v14503_v30  ;;  %v19559_v49 = vld [vmem:[#allocation38_spill] sm:$0xff]  ;;  %v14511_v33 = vmax.f32 %v19562_v35, %v10659_v37 }
 0x22c   : > { %19555 = vst [vmem:[#allocation148_spill] sm:$0xff] %v14471_v10  ;;  %v14474_v23 = vpop.f32.mrb[158].mxu0  ;;  %11011 = vrot.lane.b32.xlu1 %v11010_v61, %s13040_s12 }
 0x22d   : > { %19556 = vst [vmem:[#allocation149_spill] sm:$0xff] %v14474_v23  ;;  %11006 = vrot.lane.b32.xlu0 %v11010_v61, %s13042_s19  ;;  %v14478_v2 = vpop.permute.xlu1 %10731  ;;  %v14480_v26 = vpop.permute.xlu0 %10741  ;;  %v10658_v61 = vunpack.i.l.bf16 %v14301_v20  ;;  %v14506_v23 = vmax.f32 %v19559_v49, %v10663_v42  ;;  %19563 = vst [vmem:[#allocation39_spill] sm:$0xff] %v14511_v33 }
 0x22e   : > { %v14488_v48 = vpop.f32.mrb[159].mxu0 }
 0x22f   : > { %19557 = vst [vmem:[#allocation150_spill] sm:$0xff] %v14488_v48  ;;  %19560 = vst [vmem:[#allocation38_spill] sm:$0xff] %v14506_v23  ;;  %v14514_v10 = vmax.f32 %v19564_v13, %v10658_v61  ;;  %v11040_v42 = vpack.i.bf16 %v14503_v30, %v14506_v23  ;;  %v10674_v30 = vunpack.i.h.bf16 %v14328_v29 }
 0x230   : > { %11021 = vrot.lane.b32.xlu1 %v11020_v4, %s13041_s13  ;;  %v11025_v4 = vpack.i.bf16 %v14461_v55, %v14467_v51  ;;  %v10669_v55 = vunpack.i.h.bf16 %v14303_v62  ;;  %v10668_v51 = vunpack.i.l.bf16 %v14303_v62  ;;  %v19574_v62 = vpack.i.bf16 %v14283_v15, %v14260_v11 }
 0x231   : > { %11016 = vrot.lane.b32.xlu0 %v11015_v0, %s13041_s13  ;;  %v14498_v63 = vpop.permute.xlu1 %10736  ;;  %v14500_v7 = vpop.permute.xlu0 %10746  ;;  %19565 = vst [vmem:[#allocation37_spill] sm:$0xff] %v14514_v10  ;;  %v11035_v37 = vpack.i.bf16 %v14511_v33, %v14514_v10  ;;  %v14551_v10 = vmax.f32 %v13752_v45, %v10673_v24  ;;  %v10678_v45 = vunpack.i.l.bf16 %v14357_v21 }
 0x232   : > { %v14508_v20 = vpop.f32.mrb[160].mxu0  ;;  %v14572_v24 = vmax.f32 %v13735_v22, %v10669_v55  ;;  %v14575_v23 = vmax.f32 %v13738_v25, %v10668_v51  ;;  %v10684_v25 = vunpack.i.h.bf16 %v14330_v46  ;;  %v10683_v51 = vunpack.i.l.bf16 %v14330_v46 }
 0x233   : > { %19561 = vst [vmem:[#allocation152_spill] sm:$0xff] %v14508_v20  ;;  %v14518_v0 = vpop.f32.mrb[161].mxu0  ;;  %19570 = vst [vmem:[#allocation157_spill] sm:$0xff] %v14551_v10 }
 0x234   : > { %19566 = vst [vmem:[#allocation153_spill] sm:$0xff] %v14518_v0  ;;  %v14520_v48 = vpop.f32.mrb[162].mxu0  ;;  %11026 = vrot.lane.b32.xlu1 %v11025_v4, %s13042_s19  ;;  %19575 = vst [vmem:[#allocation160_spill] sm:$0xff] %v14572_v24 }
 0x235   : > { %19567 = vst [vmem:[#allocation154_spill] sm:$0xff] %v14520_v48  ;;  %11031 = vrot.lane.b32.xlu0 %v11025_v4, %s13040_s12  ;;  %v14524_v18 = vpop.permute.xlu1 %10751  ;;  %v14526_v49 = vpop.permute.xlu0 %10761  ;;  %19576 = vst [vmem:[#allocation161_spill] sm:$0xff] %v14575_v23 }
 0x236   : > { %v14530_v13 = vpop.f32.mrb[163].mxu0 }
 0x237   : > { %19568 = vst [vmem:[#allocation155_spill] sm:$0xff] %v14530_v13 }
 0x238   : > { %11041 = vrot.lane.b32.xlu1 %v11040_v42, %s13039_s10 }
 0x239   : > { %11036 = vrot.lane.b32.xlu0 %v11035_v37, %s13039_s10  ;;  %v14541_v4 = vpop.permute.xlu1 %10756  ;;  %v14543_v35 = vpop.permute.xlu0 %10766  ;;  %v19573_v37 = vpack.i.bf16 %v14265_v39, %v14253_v31 }
 0x23a   : > { %v14547_v20 = vpop.f32.mrb[164].mxu0 }
 0x23b   : > { %19569 = vst [vmem:[#allocation156_spill] sm:$0xff] %v14547_v20  ;;  %v14553_v61 = vpop.f32.mrb[165].mxu0 }
 0x23c   : > { %19571 = vst [vmem:[#allocation158_spill] sm:$0xff] %v14553_v61  ;;  %v14555_v42 = vpop.f32.mrb[166].mxu0  ;;  %11046 = vrot.lane.b32.xlu1 %v19573_v37, %s13038_s26  ;;  %v14580_v37 = vmax.f32 %v13749_v19, %v10674_v30  ;;  %v10679_v30 = vunpack.i.h.bf16 %v14357_v21  ;;  %v19585_v61 = vld [vmem:[#allocation43_spill] sm:$0xff] }
 0x23d   : > { %19572 = vst [vmem:[#allocation159_spill] sm:$0xff] %v14555_v42  ;;  %11051 = vrot.lane.b32.xlu0 %v19574_v62, %s13038_s26  ;;  %v14565_v33 = vpop.permute.xlu1 %10771  ;;  %v14567_v29 = vpop.permute.xlu0 %10781  ;;  %v11060_v62 = vpack.i.bf16 %v14551_v10, %v14458_v32 }
 0x23e   : > { %v14577_v31 = vpop.f32.mrb[167].mxu0  ;;  %19578 = vst [vmem:[#allocation163_spill] sm:$0xff] %v14580_v37  ;;  %v11070_v39 = vpack.i.bf16 %v14580_v37, %v14551_v10  ;;  %v14615_v10 = vmax.f32 %v19585_v61, %v10684_v25  ;;  %v11075_v42 = vpack.i.bf16 %v14575_v23, %v14580_v37  ;;  %v10693_v25 = vunpack.i.l.bf16 %v14378_v52 }
 0x23f   : > { %19577 = vst [vmem:[#allocation162_spill] sm:$0xff] %v14577_v31  ;;  %v19587_v31 = vld [vmem:[#allocation41_spill] sm:$0xff] }
 0x240   : > { %11061 = vrot.lane.b32.xlu1 %v11060_v62, %s13040_s12  ;;  %19586 = vst [vmem:[#allocation43_spill] sm:$0xff] %v14615_v10  ;;  %v14618_v20 = vmax.f32 %v19587_v31, %v10683_v51  ;;  %v14651_v21 = vmax.f32 %v13784_v53, %v10693_v25 }
 0x241   : > { %11056 = vrot.lane.b32.xlu0 %v11060_v62, %s13042_s19  ;;  %v14588_v22 = vpop.permute.xlu1 %10776  ;;  %v14590_v55 = vpop.permute.xlu0 %10786  ;;  %v11065_v62 = vpack.i.bf16 %v14572_v24, %v14575_v23 }
 0x242   : > { %19579 = vst [vmem:[#allocation164_spill] sm:$0xff] %v14588_v22  ;;  %19580 = vst [vmem:[#allocation165_spill] sm:$0xff] %v14590_v55  ;;  %v14594_v19 = vpop.f32.mrb[168].mxu0  ;;  %v11090_v51 = vpack.i.bf16 %v14615_v10, %v14618_v20  ;;  %v19595_v10 = vpack.i.bf16 %v14318_v3, %v14306_v12  ;;  %v11110_v25 = vpack.i.bf16 %v14651_v21, %v14572_v24  ;;  %v19609_v24 = vld [vmem:[#allocation46_spill] sm:$0xff] }
 0x243   : > { %19581 = vst [vmem:[#allocation166_spill] sm:$0xff] %v14594_v19  ;;  %v14602_v11 = vpop.f32.mrb[169].mxu0  ;;  %19588 = vst [vmem:[#allocation41_spill] sm:$0xff] %v14618_v20  ;;  %v19607_v20 = vld [vmem:[#allocation45_spill] sm:$0xff] }
 0x244   : > { %19582 = vst [vmem:[#allocation167_spill] sm:$0xff] %v14602_v11  ;;  %v14604_v15 = vpop.f32.mrb[170].mxu0  ;;  %11071 = vrot.lane.b32.xlu1 %v11070_v39, %s13041_s13  ;;  %v19590_v39 = vld [vmem:[#allocation42_spill] sm:$0xff]  ;;  %19594 = vst [vmem:[#allocation171_spill] sm:$0xff] %v14651_v21 }
 0x245   : > { %19583 = vst [vmem:[#allocation168_spill] sm:$0xff] %v14604_v15  ;;  %11066 = vrot.lane.b32.xlu0 %v11065_v62, %s13041_s13  ;;  %v14608_v46 = vpop.permute.xlu1 %10791  ;;  %v14610_v32 = vpop.permute.xlu0 %10801  ;;  %v14625_v62 = vmax.f32 %v19590_v39, %v10679_v30  ;;  %v10694_v39 = vunpack.i.h.bf16 %v14378_v52 }
 0x246   : > { %19584 = vst [vmem:[#allocation169_spill] sm:$0xff] %v14608_v46  ;;  %v14622_v55 = vpop.f32.mrb[171].mxu0  ;;  %v19592_v46 = vld [vmem:[#allocation40_spill] sm:$0xff] }
 0x247   : > { %19589 = vst [vmem:[#allocation170_spill] sm:$0xff] %v14622_v55  ;;  %19591 = vst [vmem:[#allocation42_spill] sm:$0xff] %v14625_v62  ;;  %v14628_v22 = vmax.f32 %v19592_v46, %v10678_v45  ;;  %v10688_v46 = vunpack.i.l.bf16 %v14359_v36  ;;  %v14672_v52 = vmax.f32 %v13781_v59, %v10694_v39  ;;  %v10699_v59 = vunpack.i.h.bf16 %v14407_v57 }
 0x248   : > { %11076 = vrot.lane.b32.xlu1 %v11075_v42, %s13042_s19 }
 0x249   : > { %19593 = vst [vmem:[#allocation40_spill] sm:$0xff] %v14628_v22  ;;  %11081 = vrot.lane.b32.xlu0 %v11075_v42, %s13040_s12  ;;  %v14634_v31 = vpop.permute.xlu1 %10796  ;;  %v14636_v61 = vpop.permute.xlu0 %10806  ;;  %v11085_v45 = vpack.i.bf16 %v14625_v62, %v14628_v22  ;;  %v10689_v42 = vunpack.i.h.bf16 %v14359_v36  ;;  %v14669_v53 = vmax.f32 %v13770_v6, %v10688_v46  ;;  %19599 = vst [vmem:[#allocation174_spill] sm:$0xff] %v14672_v52  ;;  %v10703_v6 = vunpack.i.l.bf16 %v14380_v9  ;;  %v19605_v22 = vld [vmem:[#allocation47_spill] sm:$0xff] }
 0x24a   : > { %v10698_v46 = vunpack.i.l.bf16 %v14407_v57  ;;  %v11120_v39 = vpack.i.bf16 %v14672_v52, %v14651_v21  ;;  %v14713_v37 = vmax.f32 %v19609_v24, %v10699_v59  ;;  %v10709_v59 = vunpack.i.h.bf16 %v14409_v34 }
 0x24b   : > { %v14666_v36 = vmax.f32 %v13767_v27, %v10689_v42  ;;  %19598 = vst [vmem:[#allocation173_spill] sm:$0xff] %v14669_v53  ;;  %v10704_v27 = vunpack.i.h.bf16 %v14380_v9  ;;  %v14710_v21 = vmax.f32 %v19607_v20, %v10703_v6 }
 0x24c   : > { %11091 = vrot.lane.b32.xlu1 %v11090_v51, %s13039_s10  ;;  %v19596_v51 = vpack.i.bf16 %v14337_v54, %v14316_v5  ;;  %19610 = vst [vmem:[#allocation46_spill] sm:$0xff] %v14713_v37  ;;  %v11125_v54 = vpack.i.bf16 %v14669_v53, %v14672_v52 }
 0x24d   : > { %11086 = vrot.lane.b32.xlu0 %v11085_v45, %s13039_s10  ;;  %v14645_v30 = vpop.permute.xlu1 %10811  ;;  %v14653_v23 = vpop.permute.xlu0 %10821  ;;  %19597 = vst [vmem:[#allocation172_spill] sm:$0xff] %v14666_v36  ;;  %v11115_v3 = vpack.i.bf16 %v14666_v36, %v14669_v53  ;;  %v14707_v62 = vmax.f32 %v19605_v22, %v10704_v27  ;;  %19608 = vst [vmem:[#allocation45_spill] sm:$0xff] %v14710_v21  ;;  %v10713_v22 = vunpack.i.l.bf16 %v14427_v44 }
 0x24f   : > { %19606 = vst [vmem:[#allocation47_spill] sm:$0xff] %v14707_v62  ;;  %v11140_v24 = vpack.i.bf16 %v14707_v62, %v14710_v21  ;;  %v19615_v62 = vpack.i.bf16 %v14374_v58, %v14363_v38 }
 0x250   : > { %11096 = vrot.lane.b32.xlu1 %v19595_v10, %s13038_s26  ;;  %v14676_v10 = vpop.f32.mrb[172].mxu0 }
 0x251   : > { %11101 = vrot.lane.b32.xlu0 %v19596_v51, %s13038_s26  ;;  %v14663_v45 = vpop.permute.xlu1 %10816  ;;  %19600 = vst [vmem:[#allocation175_spill] sm:$0xff] %v14676_v10  ;;  %v14678_v12 = vpop.permute.xlu0 %10826 }
 0x252   : > { %19601 = vst [vmem:[#allocation176_spill] sm:$0xff] %v14678_v12  ;;  %v14686_v42 = vpop.f32.mrb[173].mxu0 }
 0x253   : > { %19602 = vst [vmem:[#allocation177_spill] sm:$0xff] %v14686_v42  ;;  %v14694_v5 = vpop.f32.mrb[174].mxu0 }
 0x254   : > { %11111 = vrot.lane.b32.xlu1 %v11110_v25, %s13040_s12  ;;  %19603 = vst [vmem:[#allocation178_spill] sm:$0xff] %v14694_v5 }
 0x255   : > { %11106 = vrot.lane.b32.xlu0 %v11110_v25, %s13042_s19  ;;  %v14682_v51 = vpop.permute.xlu1 %10831  ;;  %v14696_v25 = vpop.f32.mrb[175].mxu0 }
 0x256   : > { %19604 = vst [vmem:[#allocation179_spill] sm:$0xff] %v14696_v25 }
 0x258   : > { %11121 = vrot.lane.b32.xlu1 %v11120_v39, %s13041_s13  ;;  %v19611_v39 = vld [vmem:[#allocation44_spill] sm:$0xff] }
 0x259   : > { %11116 = vrot.lane.b32.xlu0 %v11115_v3, %s13041_s13  ;;  %v14700_v9 = vpop.permute.xlu1 %10836  ;;  %v14716_v12 = vmax.f32 %v19611_v39, %v10698_v46  ;;  %v14718_v3 = vpop.permute.xlu0 %10841  ;;  %v10714_v46 = vunpack.i.h.bf16 %v14427_v44  ;;  %v14739_v39 = vmax.f32 %v13820_v1, %v10713_v22  ;;  %v19618_v44 = vld [vmem:[#allocation50_spill] sm:$0xff]  ;;  %v10724_v22 = vunpack.i.h.bf16 %v14429_v28 }
 0x25b   : > { %19612 = vst [vmem:[#allocation44_spill] sm:$0xff] %v14716_v12  ;;  %v11135_v6 = vpack.i.bf16 %v14713_v37, %v14716_v12  ;;  %19613 = vst [vmem:[#allocation180_spill] sm:$0xff] %v14739_v39  ;;  %v10723_v12 = vunpack.i.l.bf16 %v14429_v28  ;;  %v14781_v28 = vmax.f32 %v13814_v40, %v10724_v22  ;;  %v10718_v22 = vunpack.i.l.bf16 %v14452_v41 }
 0x25c   : > { %11126 = vrot.lane.b32.xlu1 %v11125_v54, %s13042_s19 }
 0x25d   : > { %11131 = vrot.lane.b32.xlu0 %v11125_v54, %s13040_s12  ;;  %v10708_v54 = vunpack.i.l.bf16 %v14409_v34  ;;  %v14754_v34 = vmax.f32 %v13803_v16, %v10709_v59  ;;  %19624 = vst [vmem:[#allocation187_spill] sm:$0xff] %v14781_v28 }
 0x25e   : > { %v14725_v27 = vpop.permute.xlu1 %10856  ;;  %v14727_v20 = vpop.permute.xlu0 %10846 }
 0x25f   : > { %19617 = vst [vmem:[#allocation182_spill] sm:$0xff] %v14754_v34  ;;  %v14757_v1 = vmax.f32 %v19618_v44, %v10708_v54  ;;  %v19625_v54 = vld [vmem:[#allocation49_spill] sm:$0xff] }
 0x260   : > { %11141 = vrot.lane.b32.xlu1 %v11140_v24, %s13039_s10  ;;  %v19616_v24 = vpack.i.bf16 %v14395_v14, %v14372_v56  ;;  %v14770_v58 = vpop.f32.mrb[176].mxu0 }
 0x261   : > { %11136 = vrot.lane.b32.xlu0 %v11135_v6, %s13039_s10  ;;  %19619 = vst [vmem:[#allocation50_spill] sm:$0xff] %v14757_v1  ;;  %v14761_v6 = vmax.f32 %v13817_v43, %v10714_v46  ;;  %19621 = vst [vmem:[#allocation184_spill] sm:$0xff] %v14770_v58  ;;  %v14774_v16 = vpop.f32.mrb[177].mxu0  ;;  %v11165_v43 = vpack.i.bf16 %v14754_v34, %v14757_v1  ;;  %v14784_v46 = vmax.f32 %v19625_v54, %v10723_v12 }
 0x262   : > { %v14743_v53 = vpop.permute.xlu1 %10861  ;;  %19622 = vst [vmem:[#allocation185_spill] sm:$0xff] %v14774_v16  ;;  %v14778_v59 = vpop.f32.mrb[178].mxu0  ;;  %v10719_v12 = vunpack.i.h.bf16 %v14452_v41  ;;  %v10733_v54 = vunpack.i.l.bf16 %v14478_v2  ;;  %v19633_v41 = vld [vmem:[#allocation48_spill] sm:$0xff] }
 0x263   : > { %v14741_v57 = vpop.permute.xlu0 %10851  ;;  %19614 = vst [vmem:[#allocation181_spill] sm:$0xff] %v14743_v53  ;;  %19620 = vst [vmem:[#allocation183_spill] sm:$0xff] %v14761_v6  ;;  %v14794_v37 = vpop.f32.mrb[179].mxu0  ;;  %v11190_v14 = vpack.i.bf16 %v14781_v28, %v14784_v46  ;;  %v10744_v28 = vunpack.i.h.bf16 %v14480_v26 }
 0x264   : > { %11146 = vrot.lane.b32.xlu1 %v19615_v62, %s13038_s26  ;;  %19623 = vst [vmem:[#allocation186_spill] sm:$0xff] %v14778_v59  ;;  %19626 = vst [vmem:[#allocation49_spill] sm:$0xff] %v14784_v46  ;;  %v14820_v52 = vmax.f32 %v13852_v17, %v10733_v54 }
 0x265   : > { %11151 = vrot.lane.b32.xlu0 %v19616_v24, %s13038_s26  ;;  %v11160_v24 = vpack.i.bf16 %v14739_v39, %v14666_v36  ;;  %19628 = vst [vmem:[#allocation189_spill] sm:$0xff] %v14794_v37  ;;  %v14817_v36 = vmax.f32 %v19633_v41, %v10718_v22  ;;  %v10734_v22 = vunpack.i.h.bf16 %v14478_v2  ;;  %v19642_v2 = vld [vmem:[#allocation57_spill] sm:$0xff] }
 0x266   : > { %v14764_v38 = vpop.permute.xlu1 %10871  ;;  %19635 = vst [vmem:[#allocation192_spill] sm:$0xff] %v14820_v52 }
 0x267   : > { %v14766_v62 = vpop.permute.xlu0 %10866  ;;  %19634 = vst [vmem:[#allocation48_spill] sm:$0xff] %v14817_v36 }
 0x268   : > { %11161 = vrot.lane.b32.xlu1 %v11160_v24, %s13040_s12 }
 0x269   : > { %11156 = vrot.lane.b32.xlu0 %v11160_v24, %s13042_s19  ;;  %v11170_v24 = vpack.i.bf16 %v14761_v6, %v14739_v39 }
 0x26a   : > { %v14786_v44 = vpop.permute.xlu1 %10886 }
 0x26b   : > { %19627 = vst [vmem:[#allocation188_spill] sm:$0xff] %v14786_v44  ;;  %v14788_v56 = vpop.permute.xlu0 %10876 }
 0x26c   : > { %11166 = vrot.lane.b32.xlu1 %v11165_v43, %s13041_s13  ;;  %v11175_v43 = vpack.i.bf16 %v14757_v1, %v14761_v6 }
 0x26d   : > { %11171 = vrot.lane.b32.xlu0 %v11170_v24, %s13041_s13  ;;  %v19631_v24 = vld [vmem:[#allocation51_spill] sm:$0xff] }
 0x26e   : > { %v14805_v39 = vpop.permute.xlu1 %10891  ;;  %v14814_v40 = vmax.f32 %v19631_v24, %v10719_v12  ;;  %v10729_v12 = vunpack.i.h.bf16 %v14454_v60  ;;  %v10728_v24 = vunpack.i.l.bf16 %v14454_v60  ;;  %v19640_v60 = vld [vmem:[#allocation54_spill] sm:$0xff] }
 0x26f   : > { %v14803_v21 = vpop.permute.xlu0 %10881  ;;  %19630 = vst [vmem:[#allocation191_spill] sm:$0xff] %v14805_v39 }
 0x270   : > { %19629 = vst [vmem:[#allocation190_spill] sm:$0xff] %v14803_v21  ;;  %11191 = vrot.lane.b32.xlu1 %v11190_v14, %s13039_s10  ;;  %19632 = vst [vmem:[#allocation51_spill] sm:$0xff] %v14814_v40  ;;  %v19637_v14 = vpack.i.bf16 %v14423_v47, %v14414_v8  ;;  %v11185_v54 = vpack.i.bf16 %v14814_v40, %v14817_v36  ;;  %v14848_v8 = vmax.f32 %v19640_v60, %v10728_v24 }
 0x271   : > { %11176 = vrot.lane.b32.xlu0 %v11175_v43, %s13042_s19  ;;  %v14851_v47 = vmax.f32 %v19642_v2, %v10734_v22  ;;  %v10743_v36 = vunpack.i.l.bf16 %v14480_v26  ;;  %v19652_v26 = vld [vmem:[#allocation56_spill] sm:$0xff] }
 0x272   : > { %v14822_v39 = vpop.permute.xlu1 %10901  ;;  %19641 = vst [vmem:[#allocation54_spill] sm:$0xff] %v14848_v8  ;;  %v14873_v1 = vmax.f32 %v19652_v26, %v10744_v28  ;;  %v10738_v28 = vunpack.i.l.bf16 %v14498_v63  ;;  %v10753_v26 = vunpack.i.l.bf16 %v14524_v18 }
 0x273   : > { %v14824_v21 = vpop.permute.xlu0 %10896  ;;  %19643 = vst [vmem:[#allocation57_spill] sm:$0xff] %v14851_v47 }
 0x274   : > { %19636 = vst [vmem:[#allocation193_spill] sm:$0xff] %v14824_v21  ;;  %11196 = vrot.lane.b32.xlu1 %v19637_v14, %s13038_s26  ;;  %v14845_v14 = vmax.f32 %v13835_v50, %v10729_v12  ;;  %v19647_v50 = vld [vmem:[#allocation142_spill] sm:$0xff]  ;;  %v19648_v12 = vld [vmem:[#allocation140_spill] sm:$0xff]  ;;  %19653 = vst [vmem:[#allocation56_spill] sm:$0xff] %v14873_v1 }
 0x275   : > { %11181 = vrot.lane.b32.xlu0 %v11175_v43, %s13040_s12  ;;  %v11205_v43 = vpack.i.bf16 %v14820_v52, %v14754_v34  ;;  %v19649_v24 = vpack.i.bf16 %v19647_v50, %v19648_v12  ;;  %v19654_v34 = vld [vmem:[#allocation53_spill] sm:$0xff] }
 0x276   : > { %v14834_v41 = vpop.permute.xlu1 %10916  ;;  %19639 = vst [vmem:[#allocation195_spill] sm:$0xff] %v14845_v14  ;;  %v11215_v22 = vpack.i.bf16 %v14845_v14, %v14848_v8  ;;  %v14876_v6 = vmax.f32 %v19654_v34, %v10743_v36  ;;  %v10739_v34 = vunpack.i.h.bf16 %v14498_v63  ;;  %v19661_v63 = vld [vmem:[#allocation52_spill] sm:$0xff] }
 0x277   : > { %19638 = vst [vmem:[#allocation194_spill] sm:$0xff] %v14834_v41  ;;  %v14836_v17 = vpop.permute.xlu0 %10906  ;;  %v19663_v41 = vld [vmem:[#allocation65_spill] sm:$0xff] }
 0x278   : > { %11206 = vrot.lane.b32.xlu1 %v11205_v43, %s13042_s19  ;;  %19655 = vst [vmem:[#allocation53_spill] sm:$0xff] %v14876_v6  ;;  %v11240_v12 = vpack.i.bf16 %v14873_v1, %v14876_v6  ;;  %v19667_v1 = vld [vmem:[#allocation149_spill] sm:$0xff] }
 0x279   : > { %11186 = vrot.lane.b32.xlu0 %v11185_v54, %s13039_s10  ;;  %v14859_v54 = vpop.f32.mrb[180].mxu0 }
 0x27a   : > { %v14857_v46 = vpop.permute.xlu1 %10921  ;;  %19646 = vst [vmem:[#allocation198_spill] sm:$0xff] %v14859_v54  ;;  %v14866_v60 = vpop.f32.mrb[181].mxu0  ;;  %v19684_v54 = vld [vmem:[#allocation63_spill] sm:$0xff] }
 0x27b   : > { %v14855_v40 = vpop.permute.xlu0 %10911  ;;  %19645 = vst [vmem:[#allocation197_spill] sm:$0xff] %v14857_v46  ;;  %19650 = vst [vmem:[#allocation199_spill] sm:$0xff] %v14866_v60  ;;  %v14870_v2 = vpop.f32.mrb[182].mxu0 }
 0x27c   : > { %19644 = vst [vmem:[#allocation196_spill] sm:$0xff] %v14855_v40  ;;  %11211 = vrot.lane.b32.xlu1 %v11205_v43, %s13040_s12  ;;  %19651 = vst [vmem:[#allocation200_spill] sm:$0xff] %v14870_v2  ;;  %v14886_v50 = vpop.f32.mrb[183].mxu0  ;;  %v14909_v40 = vmax.f32 %v19661_v63, %v10738_v28  ;;  %v10754_v28 = vunpack.i.h.bf16 %v14524_v18  ;;  %v19674_v18 = vld [vmem:[#allocation61_spill] sm:$0xff] }
 0x27d   : > { %11201 = vrot.lane.b32.xlu0 %v19649_v24, %s13038_s26  ;;  %v11220_v24 = vpack.i.bf16 %v14851_v47, %v14820_v52  ;;  %19657 = vst [vmem:[#allocation202_spill] sm:$0xff] %v14886_v50 }
 0x27e   : > { %v14878_v46 = vpop.permute.xlu1 %10931  ;;  %19662 = vst [vmem:[#allocation52_spill] sm:$0xff] %v14909_v40 }
 0x27f   : > { %v14880_v43 = vpop.permute.xlu0 %10926 }
 0x280   : > { %19656 = vst [vmem:[#allocation201_spill] sm:$0xff] %v14880_v43  ;;  %11216 = vrot.lane.b32.xlu1 %v11215_v22, %s13041_s13  ;;  %v11225_v22 = vpack.i.bf16 %v14848_v8, %v14851_v47  ;;  %v19676_v47 = vld [vmem:[#allocation64_spill] sm:$0xff] }
 0x281   : > { %11221 = vrot.lane.b32.xlu0 %v11220_v24, %s13041_s13  ;;  %v19659_v24 = vld [vmem:[#allocation55_spill] sm:$0xff] }
 0x282   : > { %v14895_v43 = vpop.permute.xlu1 %10946  ;;  %v14906_v36 = vmax.f32 %v19659_v24, %v10739_v34  ;;  %v10749_v34 = vunpack.i.h.bf16 %v14500_v7  ;;  %v10748_v24 = vunpack.i.l.bf16 %v14500_v7 }
 0x283   : > { %19658 = vst [vmem:[#allocation203_spill] sm:$0xff] %v14895_v43  ;;  %v14897_v52 = vpop.permute.xlu0 %10936  ;;  %v14912_v43 = vmax.f32 %v19663_v41, %v10753_v26 }
 0x284   : > { %11241 = vrot.lane.b32.xlu1 %v11240_v12, %s13039_s10  ;;  %19660 = vst [vmem:[#allocation55_spill] sm:$0xff] %v14906_v36  ;;  %v19668_v12 = vld [vmem:[#allocation146_spill] sm:$0xff]  ;;  %v11235_v26 = vpack.i.bf16 %v14906_v36, %v14909_v40  ;;  %v14941_v8 = vmax.f32 %v19674_v18, %v10748_v24  ;;  %v10764_v40 = vunpack.i.h.bf16 %v14526_v49  ;;  %v10763_v36 = vunpack.i.l.bf16 %v14526_v49  ;;  %v19680_v24 = vld [vmem:[#allocation148_spill] sm:$0xff]  ;;  %v19682_v49 = vld [vmem:[#allocation19_spill] sm:$0xff] }
 0x285   : > { %11226 = vrot.lane.b32.xlu0 %v11225_v22, %s13042_s19  ;;  %19664 = vst [vmem:[#allocation65_spill] sm:$0xff] %v14912_v43  ;;  %v19669_v6 = vpack.i.bf16 %v19667_v1, %v19668_v12  ;;  %v19672_v1 = vld [vmem:[#allocation60_spill] sm:$0xff] }
 0x286   : > { %v14916_v50 = vpop.permute.xlu1 %10951  ;;  %v14938_v7 = vmax.f32 %v19672_v1, %v10749_v34  ;;  %19675 = vst [vmem:[#allocation60_spill] sm:$0xff] %v14941_v8  ;;  %v14963_v2 = vmax.f32 %v19684_v54, %v10764_v40 }
 0x287   : > { %v14914_v60 = vpop.permute.xlu0 %10941  ;;  %19666 = vst [vmem:[#allocation205_spill] sm:$0xff] %v14916_v50  ;;  %v14944_v50 = vmax.f32 %v19676_v47, %v10754_v28  ;;  %v19679_v47 = vld [vmem:[#allocation150_spill] sm:$0xff] }
 0x288   : > { %19665 = vst [vmem:[#allocation204_spill] sm:$0xff] %v14914_v60  ;;  %11246 = vrot.lane.b32.xlu1 %v19669_v6, %s13038_s26  ;;  %v19671_v6 = vld [vmem:[#allocation92_spill] sm:$0xff]  ;;  %v19681_v28 = vpack.i.bf16 %v19679_v47, %v19680_v24  ;;  %19685 = vst [vmem:[#allocation63_spill] sm:$0xff] %v14963_v2  ;;  %v19688_v24 = vld [vmem:[#allocation93_spill] sm:$0xff] }
 0x289   : > { %11231 = vrot.lane.b32.xlu0 %v11225_v22, %s13040_s12  ;;  %v11255_v22 = vpack.i.bf16 %v14912_v43, %v14845_v14  ;;  %v10553_v12 = vunpack.i.l.bf16 %v19671_v6  ;;  %19673 = vst [vmem:[#allocation92_spill] sm:$0xff] %v14938_v7  ;;  %19677 = vst [vmem:[#allocation61_spill] sm:$0xff] %v14944_v50  ;;  %v10848_v6 = vunpack.i.l.bf16 %v14727_v20 }
 0x28a   : > { %v14926_v63 = vpop.permute.xlu1 %10961 }
 0x28b   : > { %v14928_v41 = vpop.permute.xlu0 %10956  ;;  %v4455_v18 = vmax.f32 %v19682_v49, %v10553_v12 }
 0x28c   : > { %19670 = vst [vmem:[#allocation206_spill] sm:$0xff] %v14928_v41  ;;  %11256 = vrot.lane.b32.xlu1 %v11255_v22, %s13042_s19 }
 0x28d   : > { %11236 = vrot.lane.b32.xlu0 %v11235_v26, %s13039_s10  ;;  %v10849_v26 = vunpack.i.h.bf16 %v14727_v20  ;;  %v14952_v60 = vpop.f32.mrb[184].mxu0  ;;  %v19686_v20 = vld [vmem:[#allocation59_spill] sm:$0xff]  ;;  %v6557_v49 = vsel %vm6556_vm2, %v4455_v18, %v10848_v6 }
 0x28e   : > { %v10977_v14 = vpop.permute.xlu1 %10976  ;;  %19678 = vst [vmem:[#allocation64_spill] sm:$0xff] %v14952_v60  ;;  %v14960_v21 = vpop.f32.mrb[185].mxu0  ;;  %v14966_v44 = vmax.f32 %v19686_v20, %v10763_v36 }
 0x28f   : > { %v14948_v41 = vpop.permute.xlu0 %10966  ;;  %v10979_v1 = vunpack.i.h.bf16 %v10977_v14  ;;  %v10978_v34 = vunpack.i.l.bf16 %v10977_v14  ;;  %19683 = vst [vmem:[#allocation19_spill] sm:$0xff] %v14960_v21  ;;  %v6558_v12 = vsel %vm6556_vm2, %v19688_v24, %v10849_v26  ;;  %v14977_v54 = vpop.f32.mrb[186].mxu0  ;;  %v10759_v26 = vunpack.i.h.bf16 %v14541_v4 }
 0x290   : > { %11261 = vrot.lane.b32.xlu1 %v11255_v22, %s13040_s12  ;;  %19687 = vst [vmem:[#allocation59_spill] sm:$0xff] %v14966_v44  ;;  %v11265_v22 = vpack.i.bf16 %v14938_v7, %v14941_v8  ;;  %19689 = vst [vmem:[#allocation93_spill] sm:$0xff] %v14977_v54  ;;  %v14985_v16 = vpop.f32.mrb[187].mxu0 }
 0x291   : > { %11251 = vrot.lane.b32.xlu0 %v19681_v28, %s13038_s26  ;;  %v11270_v28 = vpack.i.bf16 %v14944_v50, %v14912_v43  ;;  %v6747_v36 = vsel %vm6745_vm3, %v6558_v12, %v10979_v1  ;;  %v6746_v20 = vsel %vm6745_vm3, %v6557_v49, %v10978_v34  ;;  %19690 = vst [vmem:[#allocation207_spill] sm:$0xff] %v14985_v16  ;;  %v10773_v34 = vunpack.i.l.bf16 %v14565_v33 }
 0x292   : > { %v10982_v53 = vpop.permute.xlu1 %10981  ;;  %v10874_v43 = vunpack.i.h.bf16 %v14764_v38 }
 0x293   : > { %v14968_v14 = vpop.permute.xlu0 %10971  ;;  %v10984_v47 = vunpack.i.h.bf16 %v10982_v53  ;;  %v10983_v40 = vunpack.i.l.bf16 %v10982_v53  ;;  %v10758_v53 = vunpack.i.l.bf16 %v14541_v4  ;;  %v11275_v4 = vpack.i.bf16 %v14941_v8, %v14944_v50  ;;  %v19703_v8 = vld [vmem:[#allocation17_spill] sm:$0xff] }
 0x294   : > { %11266 = vrot.lane.b32.xlu1 %v11265_v22, %s13041_s13  ;;  %v6560_v50 = vsel %vm6556_vm2, %v19703_v8, %v10874_v43 }
 0x295   : > { %11271 = vrot.lane.b32.xlu0 %v11270_v28, %s13041_s13  ;;  %v6934_v6 = vsel %vm1215_vm1, %v6746_v20, %v10983_v40  ;;  %v6935_v1 = vsel %vm1215_vm1, %v6747_v36, %v10984_v47  ;;  %v11290_v28 = vpack.i.bf16 %v14963_v2, %v14966_v44  ;;  %v19693_v47 = vld [vmem:[#allocation62_spill] sm:$0xff]  ;;  %v19697_v20 = vld [vmem:[#allocation73_spill] sm:$0xff]  ;;  %v10969_v2 = vunpack.i.h.bf16 %v14948_v41 }
 0x296   : > { %v14992_v24 = vpop.permute.xlu1 %10991  ;;  %v7122_v22 = vpack.c.bf16 %v6935_v1, %v6934_v6  ;;  %v15006_v49 = vmax.f32 %v19693_v47, %v10759_v26  ;;  %v19695_v40 = vld [vmem:[#allocation58_spill] sm:$0xff]  ;;  %v15012_v6 = vmax.f32 %v19697_v20, %v10773_v34  ;;  %v10968_v26 = vunpack.i.l.bf16 %v14948_v41 }
 0x297   : > { %19691 = vst [vmem:[#allocation208_spill] sm:$0xff] %v14992_v24  ;;  %v14994_v18 = vpop.permute.xlu0 %10986  ;;  %v15009_v36 = vmax.f32 %v19695_v40, %v10758_v53  ;;  %v19701_v53 = vld [vmem:[#allocation152_spill] sm:$0xff]  ;;  %v10768_v34 = vunpack.i.l.bf16 %v14543_v35  ;;  %v10774_v40 = vunpack.i.h.bf16 %v14565_v33  ;;  %v6749_v33 = vsel %vm6745_vm3, %v6560_v50, %v10969_v2 }
 0x298   : > { %19692 = vst [vmem:[#allocation209_spill] sm:$0xff] %v14994_v18  ;;  %10089 = vmatprep.mubr.msk.bf16.mxu1 %vm7239_vm4, %v7122_v22  ;;  %11291 = vrot.lane.b32.xlu1 %v11290_v28, %s13039_s10  ;;  %19694 = vst [vmem:[#allocation62_spill] sm:$0xff] %v15006_v49  ;;  %v10873_v22 = vunpack.i.l.bf16 %v14764_v38  ;;  %v10769_v28 = vunpack.i.h.bf16 %v14543_v35  ;;  %v19702_v47 = vpack.i.bf16 %v14520_v48, %v19701_v53  ;;  %v19704_v53 = vld [vmem:[#allocation95_spill] sm:$0xff]  ;;  %v10783_v50 = vunpack.i.l.bf16 %v14567_v29 }
 0x299   : > { %11276 = vrot.lane.b32.xlu0 %v11275_v4, %s13042_s19  ;;  %19696 = vst [vmem:[#allocation58_spill] sm:$0xff] %v15009_v36  ;;  %19698 = vst [vmem:[#allocation73_spill] sm:$0xff] %v15012_v6  ;;  %v11285_v44 = vpack.i.bf16 %v15006_v49, %v15009_v36  ;;  %v11305_v41 = vpack.i.bf16 %v15012_v6, %v14938_v7  ;;  %v19707_v36 = vld [vmem:[#allocation69_spill] sm:$0xff]  ;;  %v10784_v7 = vunpack.i.h.bf16 %v14567_v29  ;;  %v10934_v24 = vunpack.i.h.bf16 %v14878_v46 }
 0x29a   : > { %v15014_v1 = vpop.permute.xlu1 %10996  ;;  %v15047_v49 = vmax.f32 %v19707_v36, %v10768_v34  ;;  %v10879_v36 = vunpack.i.h.bf16 %v14788_v56  ;;  %v10878_v34 = vunpack.i.l.bf16 %v14788_v56 }
 0x29b   : > { %19699 = vst [vmem:[#allocation210_spill] sm:$0xff] %v15014_v1  ;;  %v15016_v12 = vpop.permute.xlu0 %11001 }
 0x29c   : > { %19700 = vst [vmem:[#allocation211_spill] sm:$0xff] %v15016_v12  ;;  %11296 = vrot.lane.b32.xlu1 %v19702_v47, %s13038_s26  ;;  %v6559_v47 = vsel %vm6556_vm2, %v19704_v53, %v10873_v22  ;;  %19708 = vst [vmem:[#allocation95_spill] sm:$0xff] %v15047_v49  ;;  %v19709_v22 = vld [vmem:[#allocation72_spill] sm:$0xff] }
 0x29d   : > { %11281 = vrot.lane.b32.xlu0 %v11275_v4, %s13040_s12  ;;  %v19705_v4 = vld [vmem:[#allocation68_spill] sm:$0xff]  ;;  %v6748_v12 = vsel %vm6745_vm3, %v6559_v47, %v10968_v26 }
 0x29e   : > { %v15030_v20 = vpop.permute.xlu1 %11011  ;;  %v15041_v1 = vmax.f32 %v19705_v4, %v10769_v28  ;;  %v15054_v28 = vmax.f32 %v19709_v22, %v10774_v40  ;;  %v19716_v40 = vld [vmem:[#allocation67_spill] sm:$0xff] }
 0x29f   : > { %v11007_v38 = vpop.permute.xlu0 %11006  ;;  %v15075_v56 = vmax.f32 %v19716_v40, %v10783_v50 }
 0x2a0   : > { %v11009_v35 = vunpack.i.h.bf16 %v11007_v38  ;;  %v11008_v48 = vunpack.i.l.bf16 %v11007_v38  ;;  %19706 = vst [vmem:[#allocation17_spill] sm:$0xff] %v15041_v1  ;;  %11306 = vrot.lane.b32.xlu1 %v11305_v41, %s13042_s19  ;;  %19710 = vst [vmem:[#allocation68_spill] sm:$0xff] %v15054_v28  ;;  %v15061_v38 = vpop.f32.mrb[188].mxu0 }
 0x2a1   : > { %11286 = vrot.lane.b32.xlu0 %v11285_v44, %s13039_s10  ;;  %19711 = vst [vmem:[#allocation69_spill] sm:$0xff] %v15061_v38  ;;  %v15069_v29 = vpop.f32.mrb[189].mxu0  ;;  %v19714_v44 = vld [vmem:[#allocation71_spill] sm:$0xff]  ;;  %19717 = vst [vmem:[#allocation67_spill] sm:$0xff] %v15075_v56 }
 0x2a2   : > { %v6937_v8 = vsel %vm1215_vm1, %v6749_v33, %v11009_v35  ;;  %v6936_v43 = vsel %vm1215_vm1, %v6748_v12, %v11008_v48  ;;  %v11022_v26 = vpop.permute.xlu1 %11021  ;;  %v19712_v48 = vpack.i.bf16 %v14530_v13, %v14518_v0  ;;  %19713 = vst [vmem:[#allocation72_spill] sm:$0xff] %v15069_v29  ;;  %v15072_v12 = vmax.f32 %v19714_v44, %v10784_v7  ;;  %v15087_v44 = vpop.f32.mrb[190].mxu0 }
 0x2a3   : > { %v7123_v2 = vpack.c.bf16 %v6937_v8, %v6936_v43  ;;  %v15057_v53 = vpop.permute.xlu0 %11016  ;;  %v11024_v47 = vunpack.i.h.bf16 %v11022_v26  ;;  %v11023_v35 = vunpack.i.l.bf16 %v11022_v26  ;;  %v11315_v8 = vpack.i.bf16 %v15041_v1, %v15047_v49  ;;  %v19718_v43 = vld [vmem:[#allocation101_spill] sm:$0xff]  ;;  %v15094_v13 = vpop.f32.mrb[191].mxu0 }
 0x2a4   : > { %11311 = vrot.lane.b32.xlu1 %v11305_v41, %s13040_s12  ;;  %19715 = vst [vmem:[#allocation71_spill] sm:$0xff] %v15072_v12  ;;  %v11320_v41 = vpack.i.bf16 %v15054_v28, %v15012_v6  ;;  %v6562_v22 = vsel %vm6556_vm2, %v19718_v43, %v10879_v36  ;;  %19720 = vst [vmem:[#allocation101_spill] sm:$0xff] %v15087_v44  ;;  %v19722_v6 = vld [vmem:[#allocation164_spill] sm:$0xff] }
 0x2a5   : > { %10090 = vmatmul.mubr.msk.bf16.vlgmr.msra.gmra.mrb[12].mxu1 %vm7239_vm4, %v7123_v2  ;;  %11301 = vrot.lane.b32.xlu0 %v19712_v48, %s13038_s26  ;;  %v19719_v2 = vld [vmem:[#allocation100_spill] sm:$0xff]  ;;  %v6751_v50 = vsel %vm6745_vm3, %v6562_v22, %v11024_v47  ;;  %v10779_v36 = vunpack.i.h.bf16 %v19722_v6  ;;  %v10778_v43 = vunpack.i.l.bf16 %v19722_v6  ;;  %v19723_v47 = vld [vmem:[#allocation169_spill] sm:$0xff]  ;;  %v11325_v6 = vpack.i.bf16 %v15047_v49, %v15054_v28 }
 0x2a6   : > { %v11027_v4 = vpop.permute.xlu1 %11026  ;;  %v6561_v26 = vsel %vm6556_vm2, %v19719_v2, %v10878_v34  ;;  %19721 = vst [vmem:[#allocation100_spill] sm:$0xff] %v15094_v13  ;;  %v10793_v22 = vunpack.i.l.bf16 %v19723_v47  ;;  %v11019_v49 = vunpack.i.h.bf16 %v15057_v53 }
 0x2a7   : > { %v15077_v33 = vpop.permute.xlu0 %11031  ;;  %v11029_v7 = vunpack.i.h.bf16 %v11027_v4  ;;  %v11028_v48 = vunpack.i.l.bf16 %v11027_v4  ;;  %v6750_v40 = vsel %vm6745_vm3, %v6561_v26, %v11023_v35  ;;  %v11340_v26 = vpack.i.bf16 %v15072_v12, %v15075_v56 }
 0x2a8   : > { %11316 = vrot.lane.b32.xlu1 %v11315_v8, %s13041_s13  ;;  %v10904_v12 = vunpack.i.h.bf16 %v14822_v39 }
 0x2a9   : > { %v6938_v34 = vsel %vm1215_vm1, %v6750_v40, %v11028_v48  ;;  %v6939_v4 = vsel %vm1215_vm1, %v6751_v50, %v11029_v7  ;;  %11321 = vrot.lane.b32.xlu0 %v11320_v41, %s13041_s13  ;;  %v19726_v41 = vld [vmem:[#allocation70_spill] sm:$0xff]  ;;  %v19730_v40 = vld [vmem:[#allocation5_spill] sm:$0xff] }
 0x2aa   : > { %v15102_v35 = vpop.permute.xlu1 %11041  ;;  %v7124_v2 = vpack.c.bf16 %v6939_v4, %v6938_v34  ;;  %v15116_v7 = vmax.f32 %v19726_v41, %v10779_v36  ;;  %v19728_v48 = vld [vmem:[#allocation66_spill] sm:$0xff]  ;;  %v15122_v34 = vmax.f32 %v19730_v40, %v10793_v22  ;;  %v11018_v36 = vunpack.i.l.bf16 %v15057_v53  ;;  %v19736_v41 = vld [vmem:[#allocation156_spill] sm:$0xff] }
 0x2ab   : > { %19724 = vst [vmem:[#allocation164_spill] sm:$0xff] %v15102_v35  ;;  %v15104_v8 = vpop.permute.xlu0 %11036  ;;  %v15119_v50 = vmax.f32 %v19728_v48, %v10778_v43  ;;  %v19735_v43 = vld [vmem:[#allocation159_spill] sm:$0xff]  ;;  %v10794_v40 = vunpack.i.h.bf16 %v19723_v47 }
 0x2ac   : > { %19725 = vst [vmem:[#allocation169_spill] sm:$0xff] %v15104_v8  ;;  %10093 = vmatprep.mubr.msk.bf16.mxu1 %vm7239_vm4, %v7124_v2  ;;  %11341 = vrot.lane.b32.xlu1 %v11340_v26, %s13039_s10  ;;  %19727 = vst [vmem:[#allocation70_spill] sm:$0xff] %v15116_v7  ;;  %v10903_v2 = vunpack.i.l.bf16 %v14822_v39  ;;  %v19734_v26 = vld [vmem:[#allocation165_spill] sm:$0xff]  ;;  %v19737_v48 = vpack.i.bf16 %v19735_v43, %v19736_v41  ;;  %v11355_v53 = vpack.i.bf16 %v15122_v34, %v15041_v1  ;;  %v19739_v41 = vld [vmem:[#allocation23_spill] sm:$0xff] }
 0x2ad   : > { %11326 = vrot.lane.b32.xlu0 %v11325_v6, %s13042_s19  ;;  %19729 = vst [vmem:[#allocation66_spill] sm:$0xff] %v15119_v50  ;;  %19731 = vst [vmem:[#allocation5_spill] sm:$0xff] %v15122_v34  ;;  %v10789_v56 = vunpack.i.h.bf16 %v19734_v26  ;;  %v10788_v22 = vunpack.i.l.bf16 %v19734_v26  ;;  %v10804_v1 = vunpack.i.h.bf16 %v14610_v32 }
 0x2ae   : > { %v15124_v4 = vpop.permute.xlu1 %11046 }
 0x2af   : > { %19732 = vst [vmem:[#allocation212_spill] sm:$0xff] %v15124_v4  ;;  %v15126_v0 = vpop.permute.xlu0 %11051  ;;  %v11335_v4 = vpack.i.bf16 %v15116_v7, %v15119_v50  ;;  %v19742_v50 = vld [vmem:[#allocation77_spill] sm:$0xff] }
 0x2b0   : > { %19733 = vst [vmem:[#allocation213_spill] sm:$0xff] %v15126_v0  ;;  %11346 = vrot.lane.b32.xlu1 %v19737_v48, %s13038_s26  ;;  %v19738_v0 = vld [vmem:[#allocation22_spill] sm:$0xff]  ;;  %v6563_v48 = vsel %vm6556_vm2, %v19739_v41, %v10903_v2  ;;  %v15157_v7 = vmax.f32 %v19742_v50, %v10788_v22  ;;  %v10909_v50 = vunpack.i.h.bf16 %v14836_v17  ;;  %v10908_v22 = vunpack.i.l.bf16 %v14836_v17 }
 0x2b1   : > { %11331 = vrot.lane.b32.xlu0 %v11325_v6, %s13040_s12  ;;  %v6564_v8 = vsel %vm6556_vm2, %v19738_v0, %v10904_v12  ;;  %v19740_v6 = vld [vmem:[#allocation76_spill] sm:$0xff]  ;;  %v6752_v18 = vsel %vm6745_vm3, %v6563_v48, %v11018_v36  ;;  %v19744_v2 = vld [vmem:[#allocation6_spill] sm:$0xff] }
 0x2b2   : > { %v15140_v28 = vpop.permute.xlu1 %11061  ;;  %v15151_v35 = vmax.f32 %v19740_v6, %v10789_v56  ;;  %v6753_v47 = vsel %vm6745_vm3, %v6564_v8, %v11019_v49  ;;  %19743 = vst [vmem:[#allocation22_spill] sm:$0xff] %v15157_v7  ;;  %v15164_v56 = vmax.f32 %v19744_v2, %v10794_v40  ;;  %v10803_v49 = vunpack.i.l.bf16 %v14610_v32  ;;  %v19751_v40 = vld [vmem:[#allocation79_spill] sm:$0xff] }
 0x2b3   : > { %v11057_v39 = vpop.permute.xlu0 %11056  ;;  %v15182_v6 = vmax.f32 %v19751_v40, %v10804_v1 }
 0x2b4   : > { %v11059_v26 = vunpack.i.h.bf16 %v11057_v39  ;;  %v11058_v43 = vunpack.i.l.bf16 %v11057_v39  ;;  %19741 = vst [vmem:[#allocation165_spill] sm:$0xff] %v15151_v35  ;;  %11356 = vrot.lane.b32.xlu1 %v11355_v53, %s13042_s19  ;;  %19745 = vst [vmem:[#allocation23_spill] sm:$0xff] %v15164_v56  ;;  %v15171_v39 = vpop.f32.mrb[192].mxu0  ;;  %v11365_v2 = vpack.i.bf16 %v15151_v35, %v15157_v7 }
 0x2b5   : > { %11336 = vrot.lane.b32.xlu0 %v11335_v4, %s13039_s10  ;;  %19746 = vst [vmem:[#allocation76_spill] sm:$0xff] %v15171_v39  ;;  %v19748_v4 = vld [vmem:[#allocation158_spill] sm:$0xff]  ;;  %19752 = vst [vmem:[#allocation6_spill] sm:$0xff] %v15182_v6 }
 0x2b6   : > { %v6941_v0 = vsel %vm1215_vm1, %v6753_v47, %v11059_v26  ;;  %v6940_v12 = vsel %vm1215_vm1, %v6752_v18, %v11058_v43  ;;  %v11072_v8 = vpop.permute.xlu1 %11071  ;;  %v19747_v18 = vld [vmem:[#allocation162_spill] sm:$0xff]  ;;  %v15179_v43 = vpop.f32.mrb[193].mxu0  ;;  %v19753_v47 = vld [vmem:[#allocation75_spill] sm:$0xff] }
 0x2b7   : > { %v15167_v36 = vpop.permute.xlu0 %11066  ;;  %v7125_v41 = vpack.c.bf16 %v6941_v0, %v6940_v12  ;;  %v11074_v48 = vunpack.i.h.bf16 %v11072_v8  ;;  %v11073_v26 = vunpack.i.l.bf16 %v11072_v8  ;;  %v19749_v32 = vpack.i.bf16 %v19747_v18, %v19748_v4  ;;  %19750 = vst [vmem:[#allocation77_spill] sm:$0xff] %v15179_v43  ;;  %v19755_v8 = vld [vmem:[#allocation111_spill] sm:$0xff]  ;;  %v15197_v18 = vpop.f32.mrb[194].mxu0 }
 0x2b8   : > { %11361 = vrot.lane.b32.xlu1 %v11355_v53, %s13040_s12  ;;  %v15185_v17 = vmax.f32 %v19753_v47, %v10803_v49  ;;  %v11370_v53 = vpack.i.bf16 %v15164_v56, %v15122_v34  ;;  %19757 = vst [vmem:[#allocation75_spill] sm:$0xff] %v15197_v18  ;;  %v15204_v34 = vpop.f32.mrb[195].mxu0 }
 0x2b9   : > { %10094 = vmatmul.mubr.msk.bf16.gmra.mrb[16].mxu1 %vm7239_vm4, %v7125_v41  ;;  %11351 = vrot.lane.b32.xlu0 %v19749_v32, %s13038_s26  ;;  %v6566_v41 = vsel %vm6556_vm2, %v19755_v8, %v10909_v50  ;;  %v19756_v32 = vld [vmem:[#allocation108_spill] sm:$0xff]  ;;  %19758 = vst [vmem:[#allocation111_spill] sm:$0xff] %v15204_v34  ;;  %v10799_v50 = vunpack.i.h.bf16 %v14634_v31  ;;  %v10798_v8 = vunpack.i.l.bf16 %v14634_v31  ;;  %v11375_v31 = vpack.i.bf16 %v15157_v7, %v15164_v56 }
 0x2ba   : > { %19754 = vst [vmem:[#allocation79_spill] sm:$0xff] %v15185_v17  ;;  %v11077_v0 = vpop.permute.xlu1 %11076  ;;  %v6565_v4 = vsel %vm6556_vm2, %v19756_v32, %v10908_v22  ;;  %v6755_v49 = vsel %vm6745_vm3, %v6566_v41, %v11074_v48  ;;  %v10813_v48 = vunpack.i.l.bf16 %v14645_v30  ;;  %v11390_v41 = vpack.i.bf16 %v15182_v6, %v15185_v17  ;;  %v19767_v17 = vld [vmem:[#allocation26_spill] sm:$0xff] }
 0x2bb   : > { %v15187_v12 = vpop.permute.xlu0 %11081  ;;  %v11079_v1 = vunpack.i.h.bf16 %v11077_v0  ;;  %v11078_v40 = vunpack.i.l.bf16 %v11077_v0  ;;  %v6754_v47 = vsel %vm6745_vm3, %v6565_v4, %v11073_v26  ;;  %v11069_v6 = vunpack.i.h.bf16 %v15167_v36 }
 0x2bc   : > { %11366 = vrot.lane.b32.xlu1 %v11365_v2, %s13041_s13  ;;  %v6568_v7 = vsel %vm6556_vm2, %v19767_v17, %v10934_v24  ;;  %v19773_v17 = vld [vmem:[#allocation10_spill] sm:$0xff] }
 0x2bd   : > { %v6942_v22 = vsel %vm1215_vm1, %v6754_v47, %v11078_v40  ;;  %v6943_v0 = vsel %vm1215_vm1, %v6755_v49, %v11079_v1  ;;  %11371 = vrot.lane.b32.xlu0 %v11370_v53, %s13041_s13  ;;  %v19759_v53 = vld [vmem:[#allocation78_spill] sm:$0xff]  ;;  %v19763_v47 = vld [vmem:[#allocation8_spill] sm:$0xff] }
 0x2be   : > { %v15212_v26 = vpop.permute.xlu1 %11091  ;;  %v7126_v2 = vpack.c.bf16 %v6943_v0, %v6942_v22  ;;  %v15226_v1 = vmax.f32 %v19759_v53, %v10799_v50  ;;  %v19761_v40 = vld [vmem:[#allocation74_spill] sm:$0xff]  ;;  %v15232_v22 = vmax.f32 %v19763_v47, %v10813_v48  ;;  %v11068_v50 = vunpack.i.l.bf16 %v15167_v36 }
 0x2bf   : > { %v15214_v4 = vpop.permute.xlu0 %11086  ;;  %v15229_v49 = vmax.f32 %v19761_v40, %v10798_v8  ;;  %v19766_v8 = vpack.i.bf16 %v14604_v15, %v14594_v19  ;;  %v10808_v48 = vunpack.i.l.bf16 %v14636_v61  ;;  %v10814_v53 = vunpack.i.h.bf16 %v14645_v30  ;;  %v19768_v19 = vld [vmem:[#allocation115_spill] sm:$0xff] }
 0x2c0   : > { %10097 = vmatprep.mubr.msk.bf16.mxu1 %vm7239_vm4, %v7126_v2  ;;  %11391 = vrot.lane.b32.xlu1 %v11390_v41, %s13039_s10  ;;  %19760 = vst [vmem:[#allocation108_spill] sm:$0xff] %v15226_v1  ;;  %19764 = vst [vmem:[#allocation74_spill] sm:$0xff] %v15232_v22  ;;  %v10933_v2 = vunpack.i.l.bf16 %v14878_v46  ;;  %v10809_v41 = vunpack.i.h.bf16 %v14636_v61  ;;  %v11405_v36 = vpack.i.bf16 %v15232_v22, %v15151_v35  ;;  %v10824_v35 = vunpack.i.h.bf16 %v14653_v23 }
 0x2c1   : > { %11376 = vrot.lane.b32.xlu0 %v11375_v31, %s13042_s19  ;;  %19762 = vst [vmem:[#allocation78_spill] sm:$0xff] %v15229_v49  ;;  %v11385_v47 = vpack.i.bf16 %v15226_v1, %v15229_v49  ;;  %v6757_v30 = vsel %vm6745_vm3, %v6568_v7, %v11069_v6  ;;  %v19771_v49 = vld [vmem:[#allocation7_spill] sm:$0xff]  ;;  %v10823_v7 = vunpack.i.l.bf16 %v14653_v23  ;;  %v19776_v23 = vpack.i.bf16 %v14622_v55, %v14602_v11 }
 0x2c2   : > { %v15234_v0 = vpop.permute.xlu1 %11096  ;;  %v15267_v1 = vmax.f32 %v19771_v49, %v10808_v48  ;;  %v10939_v49 = vunpack.i.h.bf16 %v14897_v52  ;;  %v10938_v48 = vunpack.i.l.bf16 %v14897_v52  ;;  %v10964_v11 = vunpack.i.h.bf16 %v14926_v63 }
 0x2c3   : > { %19765 = vst [vmem:[#allocation8_spill] sm:$0xff] %v15234_v0  ;;  %v15236_v32 = vpop.permute.xlu0 %11101 }
 0x2c4   : > { %11396 = vrot.lane.b32.xlu1 %v19766_v8, %s13038_s26  ;;  %v6567_v8 = vsel %vm6556_vm2, %v19768_v19, %v10933_v2  ;;  %19772 = vst [vmem:[#allocation115_spill] sm:$0xff] %v15267_v1  ;;  %v15274_v2 = vmax.f32 %v19773_v17, %v10814_v53  ;;  %v19778_v53 = vld [vmem:[#allocation83_spill] sm:$0xff] }
 0x2c5   : > { %11381 = vrot.lane.b32.xlu0 %v11375_v31, %s13040_s12  ;;  %v19769_v31 = vld [vmem:[#allocation9_spill] sm:$0xff]  ;;  %v6756_v0 = vsel %vm6745_vm3, %v6567_v8, %v11068_v50 }
 0x2c6   : > { %v15250_v40 = vpop.permute.xlu1 %11111  ;;  %v15261_v56 = vmax.f32 %v19769_v31, %v10809_v41  ;;  %19774 = vst [vmem:[#allocation9_spill] sm:$0xff] %v15274_v2 }
 0x2c7   : > { %v11107_v46 = vpop.permute.xlu0 %11106 }
 0x2c8   : > { %v11109_v61 = vunpack.i.h.bf16 %v11107_v46  ;;  %v11108_v15 = vunpack.i.l.bf16 %v11107_v46  ;;  %19770 = vst [vmem:[#allocation26_spill] sm:$0xff] %v15261_v56  ;;  %11406 = vrot.lane.b32.xlu1 %v11405_v36, %s13042_s19 }
 0x2c9   : > { %11386 = vrot.lane.b32.xlu0 %v11385_v47, %s13039_s10  ;;  %v15292_v47 = vmax.f32 %v19778_v53, %v10824_v35 }
 0x2ca   : > { %v6945_v24 = vsel %vm1215_vm1, %v6757_v30, %v11109_v61  ;;  %v6944_v19 = vsel %vm1215_vm1, %v6756_v0, %v11108_v15  ;;  %v11122_v6 = vpop.permute.xlu1 %11121  ;;  %v15283_v15 = vpop.f32.mrb[196].mxu0  ;;  %v19780_v61 = vld [vmem:[#allocation81_spill] sm:$0xff] }
 0x2cb   : > { %v15277_v41 = vpop.permute.xlu0 %11116  ;;  %v7127_v50 = vpack.c.bf16 %v6945_v24, %v6944_v19  ;;  %v11124_v46 = vunpack.i.h.bf16 %v11122_v6  ;;  %v11123_v8 = vunpack.i.l.bf16 %v11122_v6  ;;  %19775 = vst [vmem:[#allocation7_spill] sm:$0xff] %v15283_v15  ;;  %v15289_v0 = vpop.f32.mrb[197].mxu0  ;;  %19779 = vst [vmem:[#allocation83_spill] sm:$0xff] %v15292_v47  ;;  %v15295_v52 = vmax.f32 %v19780_v61, %v10823_v7  ;;  %v19782_v19 = vld [vmem:[#allocation121_spill] sm:$0xff]  ;;  %v19783_v6 = vld [vmem:[#allocation120_spill] sm:$0xff] }
 0x2cc   : > { %11411 = vrot.lane.b32.xlu1 %v11405_v36, %s13040_s12  ;;  %19777 = vst [vmem:[#allocation10_spill] sm:$0xff] %v15289_v0  ;;  %v11415_v36 = vpack.i.bf16 %v15261_v56, %v15267_v1  ;;  %v11420_v24 = vpack.i.bf16 %v15274_v2, %v15232_v22  ;;  %v6570_v17 = vsel %vm6556_vm2, %v19782_v19, %v10939_v49  ;;  %v15307_v53 = vpop.f32.mrb[198].mxu0  ;;  %v10819_v49 = vunpack.i.h.bf16 %v14663_v45 }
 0x2cd   : > { %10098 = vmatmul.mubr.msk.bf16.gmra.mrb[20].mxu1 %vm7239_vm4, %v7127_v50  ;;  %11401 = vrot.lane.b32.xlu0 %v19776_v23, %s13038_s26  ;;  %19781 = vst [vmem:[#allocation81_spill] sm:$0xff] %v15295_v52  ;;  %v6569_v50 = vsel %vm6556_vm2, %v19783_v6, %v10938_v48  ;;  %19784 = vst [vmem:[#allocation121_spill] sm:$0xff] %v15307_v53  ;;  %v6759_v7 = vsel %vm6745_vm3, %v6570_v17, %v11124_v46  ;;  %v15314_v55 = vpop.f32.mrb[199].mxu0  ;;  %v10818_v19 = vunpack.i.l.bf16 %v14663_v45 }
 0x2ce   : > { %v11127_v31 = vpop.permute.xlu1 %11126  ;;  %v6758_v61 = vsel %vm6745_vm3, %v6569_v50, %v11123_v8  ;;  %19785 = vst [vmem:[#allocation120_spill] sm:$0xff] %v15314_v55  ;;  %v10833_v46 = vunpack.i.l.bf16 %v14682_v51  ;;  %v11440_v6 = vpack.i.bf16 %v15292_v47, %v15295_v52  ;;  %v11425_v45 = vpack.i.bf16 %v15267_v1, %v15274_v2  ;;  %v19795_v1 = vld [vmem:[#allocation29_spill] sm:$0xff] }
 0x2cf   : > { %v15297_v30 = vpop.permute.xlu0 %11131  ;;  %v11129_v35 = vunpack.i.h.bf16 %v11127_v31  ;;  %v11128_v23 = vunpack.i.l.bf16 %v11127_v31  ;;  %v11119_v52 = vunpack.i.h.bf16 %v15277_v41  ;;  %v6572_v22 = vsel %vm6556_vm2, %v19795_v1, %v10964_v11 }
 0x2d0   : > { %11416 = vrot.lane.b32.xlu1 %v11415_v36, %s13041_s13  ;;  %v10844_v11 = vunpack.i.h.bf16 %v14718_v3 }
 0x2d1   : > { %v6946_v48 = vsel %vm1215_vm1, %v6758_v61, %v11128_v23  ;;  %v6947_v31 = vsel %vm1215_vm1, %v6759_v7, %v11129_v35  ;;  %11421 = vrot.lane.b32.xlu0 %v11420_v24, %s13041_s13  ;;  %v19786_v24 = vld [vmem:[#allocation82_spill] sm:$0xff]  ;;  %v19788_v23 = vld [vmem:[#allocation80_spill] sm:$0xff] }
 0x2d2   : > { %v15322_v8 = vpop.permute.xlu1 %11141  ;;  %v7128_v17 = vpack.c.bf16 %v6947_v31, %v6946_v48  ;;  %v15336_v35 = vmax.f32 %v19786_v24, %v10819_v49  ;;  %v15339_v7 = vmax.f32 %v19788_v23, %v10818_v19  ;;  %v19790_v61 = vld [vmem:[#allocation12_spill] sm:$0xff]  ;;  %v11118_v49 = vunpack.i.l.bf16 %v15277_v41 }
 0x2d3   : > { %v15324_v36 = vpop.permute.xlu0 %11136  ;;  %v15342_v48 = vmax.f32 %v19790_v61, %v10833_v46  ;;  %v19794_v19 = vpack.i.bf16 %v14694_v5, %v14676_v10  ;;  %v10834_v24 = vunpack.i.h.bf16 %v14682_v51  ;;  %v19796_v10 = vld [vmem:[#allocation30_spill] sm:$0xff]  ;;  %v6761_v51 = vsel %vm6745_vm3, %v6572_v22, %v11119_v52 }
 0x2d4   : > { %10101 = vmatprep.mubr.msk.bf16.mxu1 %vm7239_vm4, %v7128_v17  ;;  %11441 = vrot.lane.b32.xlu1 %v11440_v6, %s13039_s10  ;;  %19787 = vst [vmem:[#allocation82_spill] sm:$0xff] %v15336_v35  ;;  %19789 = vst [vmem:[#allocation80_spill] sm:$0xff] %v15339_v7  ;;  %v10963_v17 = vunpack.i.l.bf16 %v14926_v63  ;;  %v19793_v6 = vld [vmem:[#allocation176_spill] sm:$0xff]  ;;  %v11435_v61 = vpack.i.bf16 %v15336_v35, %v15339_v7  ;;  %v10075_v7 = vpop.f32.mrb[0].mxu1  ;;  %v19799_v35 = vld [vmem:[#allocation11_spill] sm:$0xff]  ;;  %v10843_v22 = vunpack.i.l.bf16 %v14718_v3 }
 0x2d5   : > { %11426 = vrot.lane.b32.xlu0 %v11425_v45, %s13042_s19  ;;  %19791 = vst [vmem:[#allocation12_spill] sm:$0xff] %v15342_v48  ;;  %v10829_v47 = vunpack.i.h.bf16 %v19793_v6  ;;  %v10828_v46 = vunpack.i.l.bf16 %v19793_v6  ;;  %v11455_v41 = vpack.i.bf16 %v15342_v48, %v15261_v56  ;;  %v19804_v3 = vpack.i.bf16 %v14696_v25, %v14686_v42  ;;  %v19819_v42 = vld [vmem:[#allocation16_spill] sm:$0xff] }
 0x2d6   : > { %v15344_v31 = vpop.permute.xlu1 %11146 }
 0x2d7   : > { %19792 = vst [vmem:[#allocation214_spill] sm:$0xff] %v15344_v31  ;;  %v15346_v50 = vpop.permute.xlu0 %11151  ;;  %v15377_v56 = vmax.f32 %v19799_v35, %v10828_v46  ;;  %v10974_v35 = vunpack.i.h.bf16 %v14968_v14  ;;  %v10973_v46 = vunpack.i.l.bf16 %v14968_v14  ;;  %v19808_v14 = vld [vmem:[#allocation85_spill] sm:$0xff] }
 0x2d8   : > { %11446 = vrot.lane.b32.xlu1 %v19794_v19, %s13038_s26  ;;  %v6571_v19 = vsel %vm6556_vm2, %v19796_v10, %v10963_v17  ;;  %v19801_v17 = vld [vmem:[#allocation14_spill] sm:$0xff] }
 0x2d9   : > { %11431 = vrot.lane.b32.xlu0 %v11425_v45, %s13040_s12  ;;  %v19797_v45 = vld [vmem:[#allocation13_spill] sm:$0xff]  ;;  %v6760_v31 = vsel %vm6745_vm3, %v6571_v19, %v11118_v49  ;;  %19800 = vst [vmem:[#allocation29_spill] sm:$0xff] %v15377_v56 }
 0x2da   : > { %v15360_v23 = vpop.permute.xlu1 %11161  ;;  %v15371_v2 = vmax.f32 %v19797_v45, %v10829_v47  ;;  %v2575_v47 = vpop.f32.mrb[1].mxu1 }
 0x2db   : > { %v11157_v63 = vpop.permute.xlu0 %11156  ;;  %v10076_v19 = vpop.f32.mrb[2].mxu1 }
 0x2dc   : > { %v11159_v6 = vunpack.i.h.bf16 %v11157_v63  ;;  %v11158_v5 = vunpack.i.l.bf16 %v11157_v63  ;;  %19798 = vst [vmem:[#allocation176_spill] sm:$0xff] %v15371_v2  ;;  %11456 = vrot.lane.b32.xlu1 %v11455_v41, %s13042_s19  ;;  %v15384_v63 = vmax.f32 %v19801_v17, %v10834_v24  ;;  %v19811_v19 = vld [vmem:[#allocation129_spill] sm:$0xff] }
 0x2dd   : > { %11436 = vrot.lane.b32.xlu0 %v11435_v61, %s13039_s10  ;;  %v19806_v61 = vld [vmem:[#allocation87_spill] sm:$0xff] }
 0x2de   : > { %v6949_v1 = vsel %vm1215_vm1, %v6761_v51, %v11159_v6  ;;  %v6948_v10 = vsel %vm1215_vm1, %v6760_v31, %v11158_v5  ;;  %19802 = vst [vmem:[#allocation30_spill] sm:$0xff] %v15384_v63  ;;  %v15387_v52 = vpop.permute.xlu1 %11166  ;;  %v15393_v5 = vpop.f32.mrb[200].mxu0  ;;  %v15402_v51 = vmax.f32 %v19806_v61, %v10844_v11  ;;  %v11470_v17 = vpack.i.bf16 %v15384_v63, %v15342_v48 }
 0x2df   : > { %v11172_v7 = vpop.permute.xlu0 %11171  ;;  %v7129_v49 = vpack.c.bf16 %v6949_v1, %v6948_v10  ;;  %19803 = vst [vmem:[#allocation13_spill] sm:$0xff] %v15393_v5  ;;  %v2577_v31 = vpop.f32.mrb[3].mxu1  ;;  %v15405_v1 = vmax.f32 %v19808_v14, %v10843_v22 }
 0x2e0   : > { %v11174_v6 = vunpack.i.h.bf16 %v11172_v7  ;;  %v11173_v45 = vunpack.i.l.bf16 %v11172_v7  ;;  %11461 = vrot.lane.b32.xlu1 %v11455_v41, %s13040_s12  ;;  %v15399_v24 = vpop.f32.mrb[201].mxu0  ;;  %19807 = vst [vmem:[#allocation14_spill] sm:$0xff] %v15402_v51  ;;  %v11465_v41 = vpack.i.bf16 %v15371_v2, %v15377_v56  ;;  %v19810_v7 = vld [vmem:[#allocation133_spill] sm:$0xff]  ;;  %v6573_v31 = vsel %vm6556_vm2, %v19811_v19, %v10973_v46 }
 0x2e1   : > { %10102 = vmatmul.mubr.msk.bf16.gmra.mrb[24].mxu1 %vm7239_vm4, %v7129_v49  ;;  %11451 = vrot.lane.b32.xlu0 %v19804_v3, %s13038_s26  ;;  %19805 = vst [vmem:[#allocation11_spill] sm:$0xff] %v15399_v24  ;;  %19809 = vst [vmem:[#allocation87_spill] sm:$0xff] %v15405_v1  ;;  %v6574_v49 = vsel %vm6556_vm2, %v19810_v7, %v10974_v35  ;;  %v15417_v61 = vpop.f32.mrb[202].mxu0  ;;  %v10079_v48 = vpop.f32.mrb[4].mxu1  ;;  %v10839_v35 = vunpack.i.h.bf16 %v14700_v9  ;;  %v10838_v46 = vunpack.i.l.bf16 %v14700_v9  ;;  %v19817_v9 = vld [vmem:[#allocation84_spill] sm:$0xff] }
 0x2e2   : > { %v15407_v10 = vpop.permute.xlu1 %11191  ;;  %19812 = vst [vmem:[#allocation85_spill] sm:$0xff] %v15417_v61  ;;  %v6763_v22 = vsel %vm6745_vm3, %v6574_v49, %v11174_v6  ;;  %v6762_v14 = vsel %vm6745_vm3, %v6573_v31, %v11173_v45  ;;  %v15424_v25 = vpop.f32.mrb[203].mxu0  ;;  %v10858_v45 = vunpack.i.l.bf16 %v14725_v27  ;;  %v11490_v48 = vpack.i.bf16 %v15402_v51, %v15405_v1 }
 0x2e3   : > { %v11177_v47 = vpop.permute.xlu0 %11176  ;;  %19813 = vst [vmem:[#allocation133_spill] sm:$0xff] %v15424_v25  ;;  %v2587_v6 = vpop.f32.mrb[5].mxu1  ;;  %v11014_v31 = vunpack.i.h.bf16 %v15030_v20 }
 0x2e4   : > { %v11179_v11 = vunpack.i.h.bf16 %v11177_v47  ;;  %v11178_v3 = vunpack.i.l.bf16 %v11177_v47  ;;  %11466 = vrot.lane.b32.xlu1 %v11465_v41, %s13041_s13  ;;  %v15456_v51 = vmax.f32 %v19819_v42, %v10858_v45  ;;  %v19823_v42 = vpack.i.bf16 %v14778_v59, %v14770_v58 }
 0x2e5   : > { %11471 = vrot.lane.b32.xlu0 %v11470_v17, %s13041_s13  ;;  %v11475_v17 = vpack.i.bf16 %v15377_v56, %v15384_v63  ;;  %v19822_v56 = vld [vmem:[#allocation35_spill] sm:$0xff]  ;;  %v10859_v45 = vunpack.i.h.bf16 %v14725_v27 }
 0x2e6   : > { %v6950_v47 = vsel %vm1215_vm1, %v6762_v14, %v11178_v3  ;;  %v6951_v7 = vsel %vm1215_vm1, %v6763_v22, %v11179_v11  ;;  %v15434_v49 = vpop.permute.xlu1 %11196  ;;  %v11013_v11 = vunpack.i.l.bf16 %v15030_v20  ;;  %v10080_v3 = vpop.f32.mrb[6].mxu1  ;;  %v11169_v22 = vunpack.i.h.bf16 %v15387_v52  ;;  %19820 = vst [vmem:[#allocation16_spill] sm:$0xff] %v15456_v51 }
 0x2e7   : > { %v15432_v41 = vpop.permute.xlu0 %11181  ;;  %19814 = vst [vmem:[#allocation129_spill] sm:$0xff] %v15434_v49  ;;  %v7130_v19 = vpack.c.bf16 %v6951_v7, %v6950_v47  ;;  %v11168_v14 = vunpack.i.l.bf16 %v15387_v52  ;;  %v2589_v47 = vpop.f32.mrb[7].mxu1  ;;  %v19815_v7 = vld [vmem:[#allocation86_spill] sm:$0xff]  ;;  %v15453_v20 = vmax.f32 %v19817_v9, %v10838_v46 }
 0x2e8   : > { %11491 = vrot.lane.b32.xlu1 %v11490_v48, %s13039_s10  ;;  %v15450_v6 = vmax.f32 %v19815_v7, %v10839_v35  ;;  %v19821_v52 = vld [vmem:[#allocation34_spill] sm:$0xff]  ;;  %v6575_v48 = vsel %vm6556_vm2, %v19822_v56, %v11013_v11  ;;  %v10853_v11 = vunpack.i.l.bf16 %v14741_v57 }
 0x2e9   : > { %10105 = vmatprep.mubr.msk.bf16.mxu1 %vm7239_vm4, %v7130_v19  ;;  %11476 = vrot.lane.b32.xlu0 %v11475_v17, %s13042_s19  ;;  %19818 = vst [vmem:[#allocation84_spill] sm:$0xff] %v15453_v20  ;;  %v6576_v19 = vsel %vm6556_vm2, %v19821_v52, %v11014_v31  ;;  %v6764_v7 = vsel %vm6745_vm3, %v6575_v48, %v11168_v14  ;;  %v10083_v46 = vpop.f32.mrb[8].mxu1 }
 0x2ea   : > { %19816 = vst [vmem:[#allocation86_spill] sm:$0xff] %v15450_v6  ;;  %v11207_v1 = vpop.permute.xlu1 %11206  ;;  %v6765_v35 = vsel %vm6745_vm3, %v6576_v19, %v11169_v22  ;;  %v2599_v56 = vpop.f32.mrb[9].mxu1  ;;  %v11505_v19 = vpack.i.bf16 %v15456_v51, %v15371_v2  ;;  %v11485_v27 = vpack.i.bf16 %v15450_v6, %v15453_v20  ;;  %v10869_v46 = vunpack.i.h.bf16 %v14766_v62 }
 0x2eb   : > { %v15458_v3 = vpop.permute.xlu0 %11186  ;;  %v11209_v47 = vunpack.i.h.bf16 %v11207_v1  ;;  %v11208_v63 = vunpack.i.l.bf16 %v11207_v1  ;;  %v10854_v1 = vunpack.i.h.bf16 %v14741_v57  ;;  %v10084_v48 = vpop.f32.mrb[10].mxu1  ;;  %v19826_v57 = vld [vmem:[#allocation18_spill] sm:$0xff] }
 0x2ec   : > { %11496 = vrot.lane.b32.xlu1 %v19823_v42, %s13038_s26  ;;  %v11033_v48 = vunpack.i.l.bf16 %v15077_v33 }
 0x2ed   : > { %v6953_v9 = vsel %vm1215_vm1, %v6765_v35, %v11209_v47  ;;  %v6952_v31 = vsel %vm1215_vm1, %v6764_v7, %v11208_v63  ;;  %11481 = vrot.lane.b32.xlu0 %v11475_v17, %s13040_s12  ;;  %v2601_v63 = vpop.f32.mrb[11].mxu1  ;;  %v19824_v17 = vld [vmem:[#allocation94_spill] sm:$0xff]  ;;  %v15491_v35 = vmax.f32 %v19826_v57, %v10854_v1  ;;  %v19828_v7 = vld [vmem:[#allocation15_spill] sm:$0xff]  ;;  %v19830_v1 = vld [vmem:[#allocation185_spill] sm:$0xff] }
 0x2ee   : > { %v15476_v22 = vpop.permute.xlu1 %11211  ;;  %v7131_v52 = vpack.c.bf16 %v6953_v9, %v6952_v31  ;;  %v15487_v47 = vmax.f32 %v19824_v17, %v10859_v45  ;;  %v15494_v42 = vmax.f32 %v19828_v7, %v10853_v11  ;;  %v10868_v9 = vunpack.i.l.bf16 %v14766_v62  ;;  %v19832_v11 = vld [vmem:[#allocation91_spill] sm:$0xff]  ;;  %v19834_v57 = vld [vmem:[#allocation89_spill] sm:$0xff] }
 0x2ef   : > { %v15478_v14 = vpop.permute.xlu0 %11201  ;;  %19827 = vst [vmem:[#allocation35_spill] sm:$0xff] %v15491_v35  ;;  %v15506_v17 = vmax.f32 %v19832_v11, %v10869_v46 }
 0x2f0   : > { %10106 = vmatmul.mubr.msk.bf16.gmra.mrb[28].mxu1 %vm7239_vm4, %v7131_v52  ;;  %11506 = vrot.lane.b32.xlu1 %v11505_v19, %s13042_s19  ;;  %19825 = vst [vmem:[#allocation34_spill] sm:$0xff] %v15487_v47  ;;  %19829 = vst [vmem:[#allocation94_spill] sm:$0xff] %v15494_v42  ;;  %v11034_v52 = vunpack.i.h.bf16 %v15077_v33  ;;  %v15509_v62 = vmax.f32 %v19834_v57, %v10868_v9  ;;  %v11515_v33 = vpack.i.bf16 %v15491_v35, %v15494_v42 }
 0x2f1   : > { %11486 = vrot.lane.b32.xlu0 %v11485_v27, %s13039_s10  ;;  %v19831_v27 = vpack.i.bf16 %v14794_v37, %v19830_v1  ;;  %19833 = vst [vmem:[#allocation18_spill] sm:$0xff] %v15506_v17  ;;  %v19837_v1 = vld [vmem:[#allocation143_spill] sm:$0xff]  ;;  %v19838_v37 = vld [vmem:[#allocation181_spill] sm:$0xff] }
 0x2f2   : > { %v11217_v31 = vpop.permute.xlu1 %11216  ;;  %19835 = vst [vmem:[#allocation15_spill] sm:$0xff] %v15509_v62  ;;  %v10864_v20 = vunpack.i.h.bf16 %v19838_v37 }
 0x2f3   : > { %v11222_v56 = vpop.permute.xlu0 %11221 }
 0x2f4   : > { %v11224_v45 = vunpack.i.h.bf16 %v11222_v56  ;;  %v11223_v63 = vunpack.i.l.bf16 %v11222_v56  ;;  %11511 = vrot.lane.b32.xlu1 %v11505_v19, %s13040_s12  ;;  %v11520_v19 = vpack.i.bf16 %v15487_v47, %v15456_v51  ;;  %v19836_v56 = vld [vmem:[#allocation147_spill] sm:$0xff] }
 0x2f5   : > { %11501 = vrot.lane.b32.xlu0 %v19831_v27, %s13038_s26  ;;  %v6578_v59 = vsel %vm6556_vm2, %v19836_v56, %v11034_v52  ;;  %v6577_v27 = vsel %vm6556_vm2, %v19837_v1, %v11033_v48  ;;  %v10863_v52 = vunpack.i.l.bf16 %v19838_v37  ;;  %v19839_v56 = vld [vmem:[#allocation188_spill] sm:$0xff] }
 0x2f6   : > { %v15511_v7 = vpop.permute.xlu1 %11241  ;;  %v6767_v9 = vsel %vm6745_vm3, %v6578_v59, %v11224_v45  ;;  %v6766_v57 = vsel %vm6745_vm3, %v6577_v27, %v11223_v63  ;;  %v10888_v48 = vunpack.i.l.bf16 %v19839_v56  ;;  %v11540_v45 = vpack.i.bf16 %v15506_v17, %v15509_v62 }
 0x2f7   : > { %v11227_v58 = vpop.permute.xlu0 %11226  ;;  %v11064_v63 = vunpack.i.h.bf16 %v15140_v28  ;;  %v11525_v27 = vpack.i.bf16 %v15494_v42, %v15487_v47  ;;  %v19849_v42 = vld [vmem:[#allocation145_spill] sm:$0xff] }
 0x2f8   : > { %v11229_v46 = vunpack.i.h.bf16 %v11227_v58  ;;  %v11228_v11 = vunpack.i.l.bf16 %v11227_v58  ;;  %11516 = vrot.lane.b32.xlu1 %v11515_v33, %s13041_s13  ;;  %v11063_v33 = vunpack.i.l.bf16 %v15140_v28  ;;  %v10035_v37 = vpop.f32.mrb[204].mxu0 }
 0x2f9   : > { %11521 = vrot.lane.b32.xlu0 %v11520_v19, %s13041_s13  ;;  %v11219_v19 = vunpack.i.h.bf16 %v11217_v31  ;;  %v15558_v2 = vpop.f32.mrb[205].mxu0 }
 0x2fa   : > { %v6954_v6 = vsel %vm1215_vm1, %v6766_v57, %v11228_v11  ;;  %v6955_v51 = vsel %vm1215_vm1, %v6767_v9, %v11229_v46  ;;  %v15532_v58 = vpop.permute.xlu1 %11246  ;;  %v11218_v46 = vunpack.i.l.bf16 %v11217_v31  ;;  %v19843_v11 = vld [vmem:[#allocation88_spill] sm:$0xff]  ;;  %v19845_v57 = vld [vmem:[#allocation21_spill] sm:$0xff]  ;;  %19850 = vst [vmem:[#allocation188_spill] sm:$0xff] %v15558_v2 }
 0x2fb   : > { %v15530_v1 = vpop.permute.xlu0 %11231  ;;  %19840 = vst [vmem:[#allocation91_spill] sm:$0xff] %v15532_v58  ;;  %v7132_v59 = vpack.c.bf16 %v6955_v51, %v6954_v6  ;;  %v19841_v51 = vld [vmem:[#allocation90_spill] sm:$0xff]  ;;  %v15547_v9 = vmax.f32 %v19843_v11, %v10863_v52  ;;  %v15550_v28 = vmax.f32 %v19845_v57, %v10888_v48  ;;  %v19848_v31 = vld [vmem:[#allocation144_spill] sm:$0xff]  ;;  %v10036_v57 = vpop.f32.mrb[206].mxu0 }
 0x2fc   : > { %11541 = vrot.lane.b32.xlu1 %v11540_v45, %s13039_s10  ;;  %v15544_v6 = vmax.f32 %v19841_v51, %v10864_v20  ;;  %v6579_v45 = vsel %vm6556_vm2, %v19849_v42, %v11063_v33  ;;  %v19851_v48 = vld [vmem:[#allocation200_spill] sm:$0xff]  ;;  %v19852_v51 = vld [vmem:[#allocation198_spill] sm:$0xff]  ;;  %v2457_v42 = vpop.f32.mrb[207].mxu0 }
 0x2fd   : > { %10109 = vmatprep.mubr.msk.bf16.mxu1 %vm7239_vm4, %v7132_v59  ;;  %11526 = vrot.lane.b32.xlu0 %v11525_v27, %s13042_s19  ;;  %19844 = vst [vmem:[#allocation147_spill] sm:$0xff] %v15547_v9  ;;  %19846 = vst [vmem:[#allocation143_spill] sm:$0xff] %v15550_v28  ;;  %v6580_v59 = vsel %vm6556_vm2, %v19848_v31, %v11064_v63  ;;  %v6768_v52 = vsel %vm6745_vm3, %v6579_v45, %v11218_v46 }
 0x2fe   : > { %19842 = vst [vmem:[#allocation89_spill] sm:$0xff] %v15544_v6  ;;  %v11257_v62 = vpop.permute.xlu1 %11256  ;;  %v6769_v20 = vsel %vm6745_vm3, %v6580_v59, %v11219_v19  ;;  %v19853_v11 = vpack.i.bf16 %v19851_v48, %v19852_v51  ;;  %v11555_v45 = vpack.i.bf16 %v15550_v28, %v15491_v35  ;;  %v19866_v51 = vld [vmem:[#allocation99_spill] sm:$0xff]  ;;  %v19868_v48 = vld [vmem:[#allocation97_spill] sm:$0xff] }
 0x2ff   : > { %v15552_v17 = vpop.permute.xlu0 %11236  ;;  %v11259_v47 = vunpack.i.h.bf16 %v11257_v62  ;;  %v11258_v37 = vunpack.i.l.bf16 %v11257_v62  ;;  %v19854_v62 = vld [vmem:[#allocation190_spill] sm:$0xff] }
 0x300   : > { %19847 = vst [vmem:[#allocation181_spill] sm:$0xff] %v15552_v17  ;;  %11546 = vrot.lane.b32.xlu1 %v19853_v11, %s13038_s26  ;;  %v10884_v33 = vunpack.i.h.bf16 %v19854_v62  ;;  %v10883_v31 = vunpack.i.l.bf16 %v19854_v62  ;;  %v10889_v11 = vunpack.i.h.bf16 %v19839_v56  ;;  %v19861_v62 = vld [vmem:[#allocation102_spill] sm:$0xff] }
 0x301   : > { %v6957_v58 = vsel %vm1215_vm1, %v6769_v20, %v11259_v47  ;;  %v6956_v63 = vsel %vm1215_vm1, %v6768_v52, %v11258_v37  ;;  %11531 = vrot.lane.b32.xlu0 %v11525_v27, %s13040_s12  ;;  %v11535_v47 = vpack.i.bf16 %v15544_v6, %v15547_v9  ;;  %v19856_v27 = vld [vmem:[#allocation24_spill] sm:$0xff]  ;;  %v11083_v6 = vunpack.i.l.bf16 %v15187_v12 }
 0x302   : > { %v15571_v19 = vpop.permute.xlu1 %11261  ;;  %v7133_v59 = vpack.c.bf16 %v6957_v58, %v6956_v63  ;;  %v15584_v37 = vmax.f32 %v19856_v27, %v10884_v33  ;;  %v19858_v20 = vld [vmem:[#allocation20_spill] sm:$0xff]  ;;  %v19860_v58 = vld [vmem:[#allocation193_spill] sm:$0xff]  ;;  %v15592_v9 = vmax.f32 %v19861_v62, %v10889_v11  ;;  %v19864_v27 = vld [vmem:[#allocation199_spill] sm:$0xff] }
 0x303   : > { %v15573_v46 = vpop.permute.xlu0 %11251  ;;  %v15587_v52 = vmax.f32 %v19858_v20, %v10883_v31  ;;  %v10899_v57 = vunpack.i.h.bf16 %v19860_v58  ;;  %v10898_v63 = vunpack.i.l.bf16 %v19860_v58  ;;  %v19863_v31 = vld [vmem:[#allocation202_spill] sm:$0xff] }
 0x304   : > { %19855 = vst [vmem:[#allocation90_spill] sm:$0xff] %v15573_v46  ;;  %10110 = vmatmul.mubr.msk.bf16.gmra.mrb[32].mxu1 %vm7239_vm4, %v7133_v59  ;;  %11556 = vrot.lane.b32.xlu1 %v11555_v45, %s13042_s19  ;;  %19857 = vst [vmem:[#allocation88_spill] sm:$0xff] %v15584_v37  ;;  %v11084_v59 = vunpack.i.h.bf16 %v15187_v12  ;;  %v19865_v20 = vpack.i.bf16 %v19863_v31, %v19864_v27  ;;  %v19872_v27 = vld [vmem:[#allocation157_spill] sm:$0xff] }
 0x305   : > { %11536 = vrot.lane.b32.xlu0 %v11535_v47, %s13039_s10  ;;  %19859 = vst [vmem:[#allocation21_spill] sm:$0xff] %v15587_v52  ;;  %19862 = vst [vmem:[#allocation144_spill] sm:$0xff] %v15592_v9  ;;  %v15602_v58 = vmax.f32 %v19866_v51, %v10899_v57  ;;  %v15605_v35 = vmax.f32 %v19868_v48, %v10898_v63  ;;  %v11565_v12 = vpack.i.bf16 %v15584_v37, %v15587_v52  ;;  %v19873_v48 = vld [vmem:[#allocation191_spill] sm:$0xff] }
 0x306   : > { %v11267_v56 = vpop.permute.xlu1 %11266  ;;  %v10894_v63 = vunpack.i.h.bf16 %v19873_v48  ;;  %v10893_v31 = vunpack.i.l.bf16 %v19873_v48 }
 0x307   : > { %v11272_v42 = vpop.permute.xlu0 %11271  ;;  %19867 = vst [vmem:[#allocation145_spill] sm:$0xff] %v15602_v58  ;;  %19869 = vst [vmem:[#allocation190_spill] sm:$0xff] %v15605_v35 }
 0x308   : > { %11561 = vrot.lane.b32.xlu1 %v11555_v45, %s13040_s12  ;;  %v11274_v33 = vunpack.i.h.bf16 %v11272_v42  ;;  %v11273_v47 = vunpack.i.l.bf16 %v11272_v42  ;;  %v11570_v45 = vpack.i.bf16 %v15592_v9, %v15550_v28  ;;  %v19871_v42 = vld [vmem:[#allocation163_spill] sm:$0xff]  ;;  %v19874_v28 = vld [vmem:[#allocation194_spill] sm:$0xff] }
 0x309   : > { %11551 = vrot.lane.b32.xlu0 %v19865_v20, %s13038_s26  ;;  %v6582_v46 = vsel %vm6556_vm2, %v19871_v42, %v11084_v59  ;;  %v6581_v20 = vsel %vm6556_vm2, %v19872_v27, %v11083_v6  ;;  %v10918_v49 = vunpack.i.l.bf16 %v19874_v28  ;;  %v11113_v42 = vunpack.i.l.bf16 %v15250_v40 }
 0x30a   : > { %v15607_v11 = vpop.permute.xlu1 %11291  ;;  %v6770_v17 = vsel %vm6745_vm3, %v6581_v20, %v11273_v47  ;;  %v11575_v47 = vpack.i.bf16 %v15587_v52, %v15592_v9  ;;  %v11268_v20 = vunpack.i.l.bf16 %v11267_v56 }
 0x30b   : > { %19870 = vst [vmem:[#allocation24_spill] sm:$0xff] %v15607_v11  ;;  %v11277_v62 = vpop.permute.xlu0 %11276  ;;  %v6771_v11 = vsel %vm6745_vm3, %v6582_v46, %v11274_v33 }
 0x30c   : > { %v11279_v51 = vunpack.i.h.bf16 %v11277_v62  ;;  %v11278_v57 = vunpack.i.l.bf16 %v11277_v62  ;;  %11566 = vrot.lane.b32.xlu1 %v11565_v12, %s13041_s13  ;;  %v11590_v12 = vpack.i.bf16 %v15602_v58, %v15605_v35  ;;  %v11114_v62 = vunpack.i.h.bf16 %v15250_v40  ;;  %v19879_v40 = vld [vmem:[#allocation113_spill] sm:$0xff] }
 0x30d   : > { %11571 = vrot.lane.b32.xlu0 %v11570_v45, %s13041_s13  ;;  %v11269_v45 = vunpack.i.h.bf16 %v11267_v56  ;;  %v15646_v48 = vmax.f32 %v19879_v40, %v10918_v49  ;;  %v19882_v56 = vld [vmem:[#allocation161_spill] sm:$0xff]  ;;  %v19883_v49 = vpack.i.bf16 %v14977_v54, %v14952_v60 }
 0x30e   : > { %v6958_v59 = vsel %vm1215_vm1, %v6770_v17, %v11278_v57  ;;  %v6959_v6 = vsel %vm1215_vm1, %v6771_v11, %v11279_v51  ;;  %v15626_v27 = vpop.permute.xlu1 %11296  ;;  %v19875_v17 = vld [vmem:[#allocation98_spill] sm:$0xff]  ;;  %v19877_v51 = vld [vmem:[#allocation96_spill] sm:$0xff] }
 0x30f   : > { %v15632_v46 = vpop.permute.xlu0 %11281  ;;  %v7134_v33 = vpack.c.bf16 %v6959_v6, %v6958_v59  ;;  %v15640_v11 = vmax.f32 %v19875_v17, %v10894_v63  ;;  %v15643_v57 = vmax.f32 %v19877_v51, %v10893_v31  ;;  %19880 = vst [vmem:[#allocation102_spill] sm:$0xff] %v15646_v48  ;;  %v19881_v6 = vld [vmem:[#allocation160_spill] sm:$0xff] }
 0x310   : > { %11591 = vrot.lane.b32.xlu1 %v11590_v12, %s13039_s10  ;;  %v6584_v58 = vsel %vm6556_vm2, %v19881_v6, %v11114_v62  ;;  %v6583_v12 = vsel %vm6556_vm2, %v19882_v56, %v11113_v42  ;;  %v19884_v42 = vld [vmem:[#allocation196_spill] sm:$0xff] }
 0x311   : > { %10113 = vmatprep.mubr.msk.bf16.mxu1 %vm7239_vm4, %v7134_v33  ;;  %11576 = vrot.lane.b32.xlu0 %v11575_v47, %s13042_s19  ;;  %19876 = vst [vmem:[#allocation20_spill] sm:$0xff] %v15640_v11  ;;  %19878 = vst [vmem:[#allocation193_spill] sm:$0xff] %v15643_v57  ;;  %v6773_v63 = vsel %vm6745_vm3, %v6584_v58, %v11269_v45  ;;  %v6772_v17 = vsel %vm6745_vm3, %v6583_v12, %v11268_v20  ;;  %v10914_v51 = vunpack.i.h.bf16 %v19884_v42  ;;  %v19887_v12 = vld [vmem:[#allocation25_spill] sm:$0xff] }
 0x312   : > { %v11307_v59 = vpop.permute.xlu1 %11306  ;;  %v10913_v40 = vunpack.i.l.bf16 %v19884_v42  ;;  %v11605_v45 = vpack.i.bf16 %v15646_v48, %v15584_v37  ;;  %v10919_v20 = vunpack.i.h.bf16 %v19874_v28  ;;  %v11585_v56 = vpack.i.bf16 %v15640_v11, %v15643_v57 }
 0x313   : > { %v15652_v35 = vpop.permute.xlu0 %11286  ;;  %v11309_v33 = vunpack.i.h.bf16 %v11307_v59  ;;  %v11308_v52 = vunpack.i.l.bf16 %v11307_v59  ;;  %v11133_v57 = vunpack.i.l.bf16 %v15297_v30 }
 0x314   : > { %11596 = vrot.lane.b32.xlu1 %v19883_v49, %s13038_s26 }
 0x315   : > { %v6961_v31 = vsel %vm1215_vm1, %v6773_v63, %v11309_v33  ;;  %v6960_v62 = vsel %vm1215_vm1, %v6772_v17, %v11308_v52  ;;  %11581 = vrot.lane.b32.xlu0 %v11575_v47, %s13040_s12  ;;  %v19885_v52 = vld [vmem:[#allocation27_spill] sm:$0xff]  ;;  %v15681_v33 = vmax.f32 %v19887_v12, %v10913_v40  ;;  %v19889_v63 = vld [vmem:[#allocation201_spill] sm:$0xff]  ;;  %v19892_v40 = vpack.i.bf16 %v14985_v16, %v14960_v21 }
 0x316   : > { %v15665_v59 = vpop.permute.xlu1 %11311  ;;  %v7135_v58 = vpack.c.bf16 %v6961_v31, %v6960_v62  ;;  %v15678_v47 = vmax.f32 %v19885_v52, %v10914_v51  ;;  %v10929_v17 = vunpack.i.h.bf16 %v19889_v63  ;;  %v10928_v28 = vunpack.i.l.bf16 %v19889_v63  ;;  %v19890_v31 = vld [vmem:[#allocation112_spill] sm:$0xff]  ;;  %v19893_v52 = vld [vmem:[#allocation106_spill] sm:$0xff]  ;;  %v19898_v21 = vld [vmem:[#allocation171_spill] sm:$0xff] }
 0x317   : > { %v15670_v6 = vpop.permute.xlu0 %11301  ;;  %19888 = vst [vmem:[#allocation97_spill] sm:$0xff] %v15681_v33  ;;  %v15686_v62 = vmax.f32 %v19890_v31, %v10919_v20  ;;  %v19895_v63 = vld [vmem:[#allocation104_spill] sm:$0xff] }
 0x318   : > { %10114 = vmatmul.mubr.msk.bf16.gmra.mrb[36].mxu1 %vm7239_vm4, %v7135_v58  ;;  %11606 = vrot.lane.b32.xlu1 %v11605_v45, %s13042_s19  ;;  %19886 = vst [vmem:[#allocation99_spill] sm:$0xff] %v15678_v47  ;;  %v11134_v58 = vunpack.i.h.bf16 %v15297_v30  ;;  %v15696_v12 = vmax.f32 %v19893_v52, %v10929_v17  ;;  %v15699_v20 = vmax.f32 %v19895_v63, %v10928_v28  ;;  %v19899_v28 = vld [vmem:[#allocation197_spill] sm:$0xff] }
 0x319   : > { %11586 = vrot.lane.b32.xlu0 %v11585_v56, %s13039_s10  ;;  %19891 = vst [vmem:[#allocation163_spill] sm:$0xff] %v15686_v62  ;;  %v11615_v30 = vpack.i.bf16 %v15678_v47, %v15681_v33  ;;  %v10924_v63 = vunpack.i.h.bf16 %v19899_v28  ;;  %v10923_v16 = vunpack.i.l.bf16 %v19899_v28 }
 0x31a   : > { %v11317_v49 = vpop.permute.xlu1 %11316  ;;  %19894 = vst [vmem:[#allocation157_spill] sm:$0xff] %v15696_v12  ;;  %19896 = vst [vmem:[#allocation191_spill] sm:$0xff] %v15699_v20 }
 0x31b   : > { %v11322_v42 = vpop.permute.xlu0 %11321 }
 0x31c   : > { %11611 = vrot.lane.b32.xlu1 %v11605_v45, %s13040_s12  ;;  %v11324_v51 = vunpack.i.h.bf16 %v11322_v42  ;;  %v11323_v56 = vunpack.i.l.bf16 %v11322_v42  ;;  %v11620_v45 = vpack.i.bf16 %v15686_v62, %v15646_v48  ;;  %v19897_v42 = vld [vmem:[#allocation174_spill] sm:$0xff]  ;;  %v19900_v48 = vld [vmem:[#allocation203_spill] sm:$0xff] }
 0x31d   : > { %11601 = vrot.lane.b32.xlu0 %v19892_v40, %s13038_s26  ;;  %v6586_v60 = vsel %vm6556_vm2, %v19897_v42, %v11134_v58  ;;  %v6585_v40 = vsel %vm6556_vm2, %v19898_v21, %v11133_v57  ;;  %v10948_v9 = vunpack.i.l.bf16 %v19900_v48  ;;  %v11163_v42 = vunpack.i.l.bf16 %v15360_v23 }
 0x31e   : > { %v15701_v31 = vpop.permute.xlu1 %11341  ;;  %v6775_v54 = vsel %vm6745_vm3, %v6586_v60, %v11324_v51  ;;  %v6774_v37 = vsel %vm6745_vm3, %v6585_v40, %v11323_v56  ;;  %v11625_v56 = vpack.i.bf16 %v15681_v33, %v15686_v62  ;;  %v11318_v40 = vunpack.i.l.bf16 %v11317_v49 }
 0x31f   : > { %v11327_v11 = vpop.permute.xlu0 %11326 }
 0x320   : > { %v11329_v17 = vunpack.i.h.bf16 %v11327_v11  ;;  %v11328_v52 = vunpack.i.l.bf16 %v11327_v11  ;;  %11616 = vrot.lane.b32.xlu1 %v11615_v30, %s13041_s13  ;;  %v11640_v11 = vpack.i.bf16 %v15696_v12, %v15699_v20  ;;  %v11164_v30 = vunpack.i.h.bf16 %v15360_v23  ;;  %v19905_v23 = vld [vmem:[#allocation123_spill] sm:$0xff] }
 0x321   : > { %11621 = vrot.lane.b32.xlu0 %v11620_v45, %s13041_s13  ;;  %v11319_v45 = vunpack.i.h.bf16 %v11317_v49  ;;  %v15740_v28 = vmax.f32 %v19905_v23, %v10948_v9  ;;  %v19908_v49 = vld [vmem:[#allocation173_spill] sm:$0xff] }
 0x322   : > { %v6962_v58 = vsel %vm1215_vm1, %v6774_v37, %v11328_v52  ;;  %v6963_v21 = vsel %vm1215_vm1, %v6775_v54, %v11329_v17  ;;  %v15720_v57 = vpop.permute.xlu1 %11346  ;;  %v19901_v54 = vld [vmem:[#allocation105_spill] sm:$0xff]  ;;  %v19903_v17 = vld [vmem:[#allocation103_spill] sm:$0xff] }
 0x323   : > { %v15726_v60 = vpop.permute.xlu0 %11331  ;;  %v7136_v51 = vpack.c.bf16 %v6963_v21, %v6962_v58  ;;  %v15734_v37 = vmax.f32 %v19901_v54, %v10924_v63  ;;  %v15737_v52 = vmax.f32 %v19903_v17, %v10923_v16  ;;  %19906 = vst [vmem:[#allocation96_spill] sm:$0xff] %v15740_v28  ;;  %v19907_v21 = vld [vmem:[#allocation172_spill] sm:$0xff]  ;;  %v19909_v16 = vpack.i.bf16 %v15087_v44, %v15061_v38 }
 0x324   : > { %11641 = vrot.lane.b32.xlu1 %v11640_v11, %s13039_s10  ;;  %v6588_v12 = vsel %vm6556_vm2, %v19907_v21, %v11164_v30  ;;  %v6587_v11 = vsel %vm6556_vm2, %v19908_v49, %v11163_v42  ;;  %v19910_v42 = vld [vmem:[#allocation204_spill] sm:$0xff] }
 0x325   : > { %10117 = vmatprep.mubr.msk.bf16.mxu1 %vm7239_vm4, %v7136_v51  ;;  %11626 = vrot.lane.b32.xlu0 %v11625_v56, %s13042_s19  ;;  %19902 = vst [vmem:[#allocation194_spill] sm:$0xff] %v15734_v37  ;;  %19904 = vst [vmem:[#allocation98_spill] sm:$0xff] %v15737_v52  ;;  %v6777_v63 = vsel %vm6745_vm3, %v6588_v12, %v11319_v45  ;;  %v6776_v54 = vsel %vm6745_vm3, %v6587_v11, %v11318_v40  ;;  %v10944_v17 = vunpack.i.h.bf16 %v19910_v42  ;;  %v19913_v11 = vld [vmem:[#allocation28_spill] sm:$0xff] }
 0x326   : > { %v11357_v58 = vpop.permute.xlu1 %11356  ;;  %v10943_v23 = vunpack.i.l.bf16 %v19910_v42  ;;  %v11655_v45 = vpack.i.bf16 %v15740_v28, %v15678_v47  ;;  %v10949_v40 = vunpack.i.h.bf16 %v19900_v48  ;;  %v11635_v49 = vpack.i.bf16 %v15734_v37, %v15737_v52  ;;  %v19924_v44 = vld [vmem:[#allocation180_spill] sm:$0xff] }
 0x327   : > { %v15746_v20 = vpop.permute.xlu0 %11336  ;;  %v11359_v51 = vunpack.i.h.bf16 %v11357_v58  ;;  %v11358_v33 = vunpack.i.l.bf16 %v11357_v58  ;;  %v11183_v52 = vunpack.i.l.bf16 %v15432_v41 }
 0x328   : > { %11646 = vrot.lane.b32.xlu1 %v19909_v16, %s13038_s26 }
 0x329   : > { %v6965_v9 = vsel %vm1215_vm1, %v6777_v63, %v11359_v51  ;;  %v6964_v30 = vsel %vm1215_vm1, %v6776_v54, %v11358_v33  ;;  %11631 = vrot.lane.b32.xlu0 %v11625_v56, %s13040_s12  ;;  %v19911_v33 = vld [vmem:[#allocation31_spill] sm:$0xff]  ;;  %v15775_v51 = vmax.f32 %v19913_v11, %v10943_v23  ;;  %v19915_v63 = vld [vmem:[#allocation206_spill] sm:$0xff]  ;;  %v19918_v23 = vpack.i.bf16 %v15094_v13, %v15069_v29 }
 0x32a   : > { %v15759_v58 = vpop.permute.xlu1 %11361  ;;  %v7137_v12 = vpack.c.bf16 %v6965_v9, %v6964_v30  ;;  %v15772_v56 = vmax.f32 %v19911_v33, %v10944_v17  ;;  %v10959_v54 = vunpack.i.h.bf16 %v19915_v63  ;;  %v10958_v48 = vunpack.i.l.bf16 %v19915_v63  ;;  %v19916_v9 = vld [vmem:[#allocation122_spill] sm:$0xff]  ;;  %v19921_v63 = vld [vmem:[#allocation109_spill] sm:$0xff] }
 0x32b   : > { %v15764_v21 = vpop.permute.xlu0 %11351  ;;  %19914 = vst [vmem:[#allocation160_spill] sm:$0xff] %v15775_v51  ;;  %v15780_v30 = vmax.f32 %v19916_v9, %v10949_v40  ;;  %v19919_v33 = vld [vmem:[#allocation114_spill] sm:$0xff] }
 0x32c   : > { %10118 = vmatmul.mubr.msk.bf16.gmra.mrb[40].mxu1 %vm7239_vm4, %v7137_v12  ;;  %11656 = vrot.lane.b32.xlu1 %v11655_v45, %s13042_s19  ;;  %19912 = vst [vmem:[#allocation113_spill] sm:$0xff] %v15772_v56  ;;  %v11184_v12 = vunpack.i.h.bf16 %v15432_v41  ;;  %v15790_v11 = vmax.f32 %v19919_v33, %v10959_v54  ;;  %v15793_v40 = vmax.f32 %v19921_v63, %v10958_v48  ;;  %v19925_v48 = vld [vmem:[#allocation205_spill] sm:$0xff] }
 0x32d   : > { %11636 = vrot.lane.b32.xlu0 %v11635_v49, %s13039_s10  ;;  %19917 = vst [vmem:[#allocation161_spill] sm:$0xff] %v15780_v30  ;;  %v11665_v41 = vpack.i.bf16 %v15772_v56, %v15775_v51  ;;  %v10954_v63 = vunpack.i.h.bf16 %v19925_v48  ;;  %v10953_v29 = vunpack.i.l.bf16 %v19925_v48 }
 0x32e   : > { %v11367_v16 = vpop.permute.xlu1 %11366  ;;  %19920 = vst [vmem:[#allocation196_spill] sm:$0xff] %v15790_v11  ;;  %19922 = vst [vmem:[#allocation27_spill] sm:$0xff] %v15793_v40 }
 0x32f   : > { %v11372_v42 = vpop.permute.xlu0 %11371 }
 0x330   : > { %11661 = vrot.lane.b32.xlu1 %v11655_v45, %s13040_s12  ;;  %v11374_v17 = vunpack.i.h.bf16 %v11372_v42  ;;  %v11373_v49 = vunpack.i.l.bf16 %v11372_v42  ;;  %v11670_v45 = vpack.i.bf16 %v15780_v30, %v15740_v28  ;;  %v19923_v42 = vld [vmem:[#allocation183_spill] sm:$0xff]  ;;  %v19926_v28 = vld [vmem:[#allocation208_spill] sm:$0xff] }
 0x331   : > { %11651 = vrot.lane.b32.xlu0 %v19918_v23, %s13038_s26  ;;  %v6590_v38 = vsel %vm6556_vm2, %v19923_v42, %v11184_v12  ;;  %v6589_v23 = vsel %vm6556_vm2, %v19924_v44, %v11183_v52  ;;  %v10993_v62 = vunpack.i.l.bf16 %v19926_v28  ;;  %v11213_v42 = vunpack.i.l.bf16 %v15476_v22 }
 0x332   : > { %v15795_v9 = vpop.permute.xlu1 %11391  ;;  %v6779_v13 = vsel %vm6745_vm3, %v6590_v38, %v11374_v17  ;;  %v6778_v47 = vsel %vm6745_vm3, %v6589_v23, %v11373_v49  ;;  %v11675_v49 = vpack.i.bf16 %v15775_v51, %v15780_v30  ;;  %v11368_v23 = vunpack.i.l.bf16 %v11367_v16 }
 0x333   : > { %v11377_v37 = vpop.permute.xlu0 %11376 }
 0x334   : > { %v11379_v54 = vunpack.i.h.bf16 %v11377_v37  ;;  %v11378_v33 = vunpack.i.l.bf16 %v11377_v37  ;;  %11666 = vrot.lane.b32.xlu1 %v11665_v41, %s13041_s13  ;;  %v11690_v37 = vpack.i.bf16 %v15790_v11, %v15793_v40  ;;  %v11214_v41 = vunpack.i.h.bf16 %v15476_v22  ;;  %v19931_v22 = vld [vmem:[#allocation33_spill] sm:$0xff] }
 0x335   : > { %11671 = vrot.lane.b32.xlu0 %v11670_v45, %s13041_s13  ;;  %v11369_v45 = vunpack.i.h.bf16 %v11367_v16  ;;  %v15834_v48 = vmax.f32 %v19931_v22, %v10993_v62  ;;  %v19934_v16 = vld [vmem:[#allocation50_spill] sm:$0xff]  ;;  %v19936_v62 = vld [vmem:[#allocation209_spill] sm:$0xff] }
 0x336   : > { %v6966_v12 = vsel %vm1215_vm1, %v6778_v47, %v11378_v33  ;;  %v6967_v44 = vsel %vm1215_vm1, %v6779_v13, %v11379_v54  ;;  %v15814_v52 = vpop.permute.xlu1 %11396  ;;  %v19927_v13 = vld [vmem:[#allocation110_spill] sm:$0xff]  ;;  %v19929_v54 = vld [vmem:[#allocation107_spill] sm:$0xff] }
 0x337   : > { %v15820_v38 = vpop.permute.xlu0 %11381  ;;  %v7138_v17 = vpack.c.bf16 %v6967_v44, %v6966_v12  ;;  %v15828_v47 = vmax.f32 %v19927_v13, %v10954_v63  ;;  %v15831_v33 = vmax.f32 %v19929_v54, %v10953_v29  ;;  %19932 = vst [vmem:[#allocation112_spill] sm:$0xff] %v15834_v48  ;;  %v19933_v44 = vld [vmem:[#allocation182_spill] sm:$0xff]  ;;  %v19935_v29 = vpack.i.bf16 %v15197_v18, %v15171_v39 }
 0x338   : > { %11691 = vrot.lane.b32.xlu1 %v11690_v37, %s13039_s10  ;;  %v6592_v11 = vsel %vm6556_vm2, %v19933_v44, %v11214_v41  ;;  %v6591_v37 = vsel %vm6556_vm2, %v19934_v16, %v11213_v42  ;;  %v10989_v54 = vunpack.i.h.bf16 %v19936_v62  ;;  %v10988_v42 = vunpack.i.l.bf16 %v19936_v62  ;;  %v19942_v62 = vld [vmem:[#allocation137_spill] sm:$0xff] }
 0x339   : > { %10121 = vmatprep.mubr.msk.bf16.mxu1 %vm7239_vm4, %v7138_v17  ;;  %11676 = vrot.lane.b32.xlu0 %v11675_v49, %s13042_s19  ;;  %19928 = vst [vmem:[#allocation25_spill] sm:$0xff] %v15828_v47  ;;  %19930 = vst [vmem:[#allocation201_spill] sm:$0xff] %v15831_v33  ;;  %v6781_v63 = vsel %vm6745_vm3, %v6592_v11, %v11369_v45  ;;  %v6780_v13 = vsel %vm6745_vm3, %v6591_v37, %v11368_v23  ;;  %v10994_v23 = vunpack.i.h.bf16 %v19926_v28  ;;  %v19939_v37 = vld [vmem:[#allocation32_spill] sm:$0xff] }
 0x33a   : > { %v11407_v12 = vpop.permute.xlu1 %11406  ;;  %v11705_v45 = vpack.i.bf16 %v15834_v48, %v15772_v56  ;;  %v11685_v16 = vpack.i.bf16 %v15828_v47, %v15831_v33  ;;  %v11233_v33 = vunpack.i.l.bf16 %v15530_v1 }
 0x33b   : > { %v15840_v40 = vpop.permute.xlu0 %11386  ;;  %v11409_v17 = vunpack.i.h.bf16 %v11407_v12  ;;  %v11408_v51 = vunpack.i.l.bf16 %v11407_v12 }
 0x33c   : > { %11696 = vrot.lane.b32.xlu1 %v19935_v29, %s13038_s26 }
 0x33d   : > { %v6969_v41 = vsel %vm1215_vm1, %v6781_v63, %v11409_v17  ;;  %v6968_v22 = vsel %vm1215_vm1, %v6780_v13, %v11408_v51  ;;  %11681 = vrot.lane.b32.xlu0 %v11675_v49, %s13040_s12  ;;  %v19937_v51 = vld [vmem:[#allocation36_spill] sm:$0xff]  ;;  %v15869_v17 = vmax.f32 %v19939_v37, %v10988_v42  ;;  %v19941_v63 = vld [vmem:[#allocation211_spill] sm:$0xff]  ;;  %v19944_v42 = vpack.i.bf16 %v15204_v34, %v15179_v43 }
 0x33e   : > { %v15853_v12 = vpop.permute.xlu1 %11411  ;;  %v7139_v11 = vpack.c.bf16 %v6969_v41, %v6968_v22  ;;  %v15865_v49 = vmax.f32 %v19937_v51, %v10989_v54  ;;  %v11004_v13 = vunpack.i.h.bf16 %v19941_v63  ;;  %v11003_v28 = vunpack.i.l.bf16 %v19941_v63  ;;  %v19945_v51 = vld [vmem:[#allocation119_spill] sm:$0xff]  ;;  %v19947_v63 = vld [vmem:[#allocation117_spill] sm:$0xff]  ;;  %v19950_v43 = vld [vmem:[#allocation192_spill] sm:$0xff] }
 0x33f   : > { %v15858_v44 = vpop.permute.xlu0 %11401  ;;  %19940 = vst [vmem:[#allocation104_spill] sm:$0xff] %v15869_v17  ;;  %v15874_v41 = vmax.f32 %v19942_v62, %v10994_v23 }
 0x340   : > { %10122 = vmatmul.mubr.msk.bf16.gmra.mrb[44].mxu1 %vm7239_vm4, %v7139_v11  ;;  %11706 = vrot.lane.b32.xlu1 %v11705_v45, %s13042_s19  ;;  %19938 = vst [vmem:[#allocation106_spill] sm:$0xff] %v15865_v49  ;;  %v11234_v11 = vunpack.i.h.bf16 %v15530_v1  ;;  %v15884_v37 = vmax.f32 %v19945_v51, %v11004_v13  ;;  %v15887_v23 = vmax.f32 %v19947_v63, %v11003_v28  ;;  %v19951_v28 = vld [vmem:[#allocation210_spill] sm:$0xff] }
 0x341   : > { %11686 = vrot.lane.b32.xlu0 %v11685_v16, %s13039_s10  ;;  %19943 = vst [vmem:[#allocation174_spill] sm:$0xff] %v15874_v41  ;;  %v11715_v1 = vpack.i.bf16 %v15865_v49, %v15869_v17  ;;  %v10999_v63 = vunpack.i.h.bf16 %v19951_v28  ;;  %v10998_v34 = vunpack.i.l.bf16 %v19951_v28 }
 0x342   : > { %v11417_v29 = vpop.permute.xlu1 %11416  ;;  %19946 = vst [vmem:[#allocation171_spill] sm:$0xff] %v15884_v37  ;;  %19948 = vst [vmem:[#allocation197_spill] sm:$0xff] %v15887_v23 }
 0x343   : > { %v11422_v22 = vpop.permute.xlu0 %11421 }
 0x344   : > { %11711 = vrot.lane.b32.xlu1 %v11705_v45, %s13040_s12  ;;  %v11424_v54 = vunpack.i.h.bf16 %v11422_v22  ;;  %v11423_v16 = vunpack.i.l.bf16 %v11422_v22  ;;  %v11720_v45 = vpack.i.bf16 %v15874_v41, %v15834_v48  ;;  %v19949_v22 = vld [vmem:[#allocation57_spill] sm:$0xff]  ;;  %v19952_v48 = vld [vmem:[#allocation164_spill] sm:$0xff] }
 0x345   : > { %11701 = vrot.lane.b32.xlu0 %v19944_v42, %s13038_s26  ;;  %v6594_v39 = vsel %vm6556_vm2, %v19949_v22, %v11234_v11  ;;  %v6593_v42 = vsel %vm6556_vm2, %v19950_v43, %v11233_v33  ;;  %v11043_v30 = vunpack.i.l.bf16 %v19952_v48  ;;  %v11263_v22 = vunpack.i.l.bf16 %v15571_v19 }
 0x346   : > { %v15889_v62 = vpop.permute.xlu1 %11441  ;;  %v6783_v18 = vsel %vm6745_vm3, %v6594_v39, %v11424_v54  ;;  %v6782_v56 = vsel %vm6745_vm3, %v6593_v42, %v11423_v16  ;;  %v11725_v16 = vpack.i.bf16 %v15869_v17, %v15874_v41  ;;  %v11418_v42 = vunpack.i.l.bf16 %v11417_v29 }
 0x347   : > { %v11427_v47 = vpop.permute.xlu0 %11426 }
 0x348   : > { %v11429_v13 = vunpack.i.h.bf16 %v11427_v47  ;;  %v11428_v51 = vunpack.i.l.bf16 %v11427_v47  ;;  %11716 = vrot.lane.b32.xlu1 %v11715_v1, %s13041_s13  ;;  %v11740_v47 = vpack.i.bf16 %v15884_v37, %v15887_v23  ;;  %v11264_v1 = vunpack.i.h.bf16 %v15571_v19  ;;  %v19957_v19 = vld [vmem:[#allocation38_spill] sm:$0xff] }
 0x349   : > { %11721 = vrot.lane.b32.xlu0 %v11720_v45, %s13041_s13  ;;  %v11419_v45 = vunpack.i.h.bf16 %v11417_v29  ;;  %v15928_v28 = vmax.f32 %v19957_v19, %v11043_v30  ;;  %v19960_v29 = vld [vmem:[#allocation54_spill] sm:$0xff]  ;;  %v19962_v30 = vld [vmem:[#allocation169_spill] sm:$0xff] }
 0x34a   : > { %v6970_v11 = vsel %vm1215_vm1, %v6782_v56, %v11428_v51  ;;  %v6971_v43 = vsel %vm1215_vm1, %v6783_v18, %v11429_v13  ;;  %v15908_v33 = vpop.permute.xlu1 %11446  ;;  %v19953_v18 = vld [vmem:[#allocation118_spill] sm:$0xff]  ;;  %v19955_v13 = vld [vmem:[#allocation116_spill] sm:$0xff] }
 0x34b   : > { %v15914_v39 = vpop.permute.xlu0 %11431  ;;  %v7140_v54 = vpack.c.bf16 %v6971_v43, %v6970_v11  ;;  %v15922_v56 = vmax.f32 %v19953_v18, %v10999_v63  ;;  %v15925_v51 = vmax.f32 %v19955_v13, %v10998_v34  ;;  %19958 = vst [vmem:[#allocation103_spill] sm:$0xff] %v15928_v28  ;;  %v19959_v43 = vld [vmem:[#allocation195_spill] sm:$0xff]  ;;  %v19961_v34 = vpack.i.bf16 %v15307_v53, %v15283_v15  ;;  %v19976_v53 = vld [vmem:[#allocation65_spill] sm:$0xff] }
 0x34c   : > { %11741 = vrot.lane.b32.xlu1 %v11740_v47, %s13039_s10  ;;  %v6596_v37 = vsel %vm6556_vm2, %v19959_v43, %v11264_v1  ;;  %v6595_v47 = vsel %vm6556_vm2, %v19960_v29, %v11263_v22  ;;  %v11039_v13 = vunpack.i.h.bf16 %v19962_v30  ;;  %v11038_v22 = vunpack.i.l.bf16 %v19962_v30  ;;  %v19968_v30 = vld [vmem:[#allocation151_spill] sm:$0xff] }
 0x34d   : > { %10125 = vmatprep.mubr.msk.bf16.mxu1 %vm7239_vm4, %v7140_v54  ;;  %11726 = vrot.lane.b32.xlu0 %v11725_v16, %s13042_s19  ;;  %19954 = vst [vmem:[#allocation203_spill] sm:$0xff] %v15922_v56  ;;  %19956 = vst [vmem:[#allocation105_spill] sm:$0xff] %v15925_v51  ;;  %v6785_v63 = vsel %vm6745_vm3, %v6596_v37, %v11419_v45  ;;  %v6784_v18 = vsel %vm6745_vm3, %v6595_v47, %v11418_v42  ;;  %v11044_v42 = vunpack.i.h.bf16 %v19952_v48  ;;  %v19965_v47 = vld [vmem:[#allocation37_spill] sm:$0xff] }
 0x34e   : > { %v11457_v11 = vpop.permute.xlu1 %11456  ;;  %v11755_v45 = vpack.i.bf16 %v15928_v28, %v15865_v49  ;;  %v11735_v29 = vpack.i.bf16 %v15922_v56, %v15925_v51  ;;  %v11283_v51 = vunpack.i.l.bf16 %v15632_v46 }
 0x34f   : > { %v15934_v23 = vpop.permute.xlu0 %11436  ;;  %v11459_v54 = vunpack.i.h.bf16 %v11457_v11  ;;  %v11458_v17 = vunpack.i.l.bf16 %v11457_v11 }
 0x350   : > { %11746 = vrot.lane.b32.xlu1 %v19961_v34, %s13038_s26 }
 0x351   : > { %v6973_v1 = vsel %vm1215_vm1, %v6785_v63, %v11459_v54  ;;  %v6972_v19 = vsel %vm1215_vm1, %v6784_v18, %v11458_v17  ;;  %11731 = vrot.lane.b32.xlu0 %v11725_v16, %s13040_s12  ;;  %v19963_v17 = vld [vmem:[#allocation39_spill] sm:$0xff]  ;;  %v15963_v54 = vmax.f32 %v19965_v47, %v11038_v22  ;;  %v19967_v63 = vld [vmem:[#allocation213_spill] sm:$0xff]  ;;  %v19970_v22 = vpack.i.bf16 %v15314_v55, %v15289_v0 }
 0x352   : > { %v15947_v11 = vpop.permute.xlu1 %11461  ;;  %v7141_v37 = vpack.c.bf16 %v6973_v1, %v6972_v19  ;;  %v15959_v16 = vmax.f32 %v19963_v17, %v11039_v13  ;;  %v11054_v18 = vunpack.i.h.bf16 %v19967_v63  ;;  %v11053_v48 = vunpack.i.l.bf16 %v19967_v63  ;;  %v19971_v17 = vld [vmem:[#allocation127_spill] sm:$0xff]  ;;  %v19973_v63 = vld [vmem:[#allocation125_spill] sm:$0xff] }
 0x353   : > { %v15952_v43 = vpop.permute.xlu0 %11451  ;;  %19966 = vst [vmem:[#allocation172_spill] sm:$0xff] %v15963_v54  ;;  %v15968_v1 = vmax.f32 %v19968_v30, %v11044_v42 }
 0x354   : > { %10126 = vmatmul.mubr.msk.bf16.gmra.mrb[48].mxu1 %vm7239_vm4, %v7141_v37  ;;  %11756 = vrot.lane.b32.xlu1 %v11755_v45, %s13042_s19  ;;  %19964 = vst [vmem:[#allocation123_spill] sm:$0xff] %v15959_v16  ;;  %v11284_v37 = vunpack.i.h.bf16 %v15632_v46  ;;  %v15978_v47 = vmax.f32 %v19971_v17, %v11054_v18  ;;  %v15981_v42 = vmax.f32 %v19973_v63, %v11053_v48  ;;  %v19977_v48 = vld [vmem:[#allocation212_spill] sm:$0xff] }
 0x355   : > { %11736 = vrot.lane.b32.xlu0 %v11735_v29, %s13039_s10  ;;  %19969 = vst [vmem:[#allocation173_spill] sm:$0xff] %v15968_v1  ;;  %v11765_v46 = vpack.i.bf16 %v15959_v16, %v15963_v54  ;;  %v11049_v63 = vunpack.i.h.bf16 %v19977_v48  ;;  %v11048_v0 = vunpack.i.l.bf16 %v19977_v48 }
 0x356   : > { %v11467_v34 = vpop.permute.xlu1 %11466  ;;  %19972 = vst [vmem:[#allocation204_spill] sm:$0xff] %v15978_v47  ;;  %19974 = vst [vmem:[#allocation31_spill] sm:$0xff] %v15981_v42 }
 0x357   : > { %v11472_v19 = vpop.permute.xlu0 %11471 }
 0x358   : > { %11761 = vrot.lane.b32.xlu1 %v11755_v45, %s13040_s12  ;;  %v11474_v13 = vunpack.i.h.bf16 %v11472_v19  ;;  %v11473_v29 = vunpack.i.l.bf16 %v11472_v19  ;;  %v11770_v45 = vpack.i.bf16 %v15968_v1, %v15928_v28  ;;  %v19975_v19 = vld [vmem:[#allocation61_spill] sm:$0xff]  ;;  %v11093_v28 = vunpack.i.l.bf16 %v15212_v26 }
 0x359   : > { %11751 = vrot.lane.b32.xlu0 %v19970_v22, %s13038_s26  ;;  %v6598_v15 = vsel %vm6556_vm2, %v19975_v19, %v11284_v37  ;;  %v6597_v22 = vsel %vm6556_vm2, %v19976_v53, %v11283_v51  ;;  %v11313_v19 = vunpack.i.l.bf16 %v15665_v59 }
 0x35a   : > { %v15983_v30 = vpop.permute.xlu1 %11491  ;;  %v6787_v55 = vsel %vm6745_vm3, %v6598_v15, %v11474_v13  ;;  %v6786_v49 = vsel %vm6745_vm3, %v6597_v22, %v11473_v29  ;;  %v11775_v29 = vpack.i.bf16 %v15963_v54, %v15968_v1  ;;  %v11468_v22 = vunpack.i.l.bf16 %v11467_v34 }
 0x35b   : > { %v11477_v56 = vpop.permute.xlu0 %11476 }
 0x35c   : > { %v11479_v18 = vunpack.i.h.bf16 %v11477_v56  ;;  %v11478_v17 = vunpack.i.l.bf16 %v11477_v56  ;;  %11766 = vrot.lane.b32.xlu1 %v11765_v46, %s13041_s13  ;;  %v11790_v56 = vpack.i.bf16 %v15978_v47, %v15981_v42  ;;  %v11314_v46 = vunpack.i.h.bf16 %v15665_v59  ;;  %v19982_v59 = vld [vmem:[#allocation41_spill] sm:$0xff] }
 0x35d   : > { %11771 = vrot.lane.b32.xlu0 %v11770_v45, %s13041_s13  ;;  %v11469_v45 = vunpack.i.h.bf16 %v11467_v34  ;;  %v16022_v48 = vmax.f32 %v19982_v59, %v11093_v28  ;;  %v19985_v34 = vld [vmem:[#allocation60_spill] sm:$0xff]  ;;  %v11089_v28 = vunpack.i.h.bf16 %v15214_v4 }
 0x35e   : > { %v6974_v37 = vsel %vm1215_vm1, %v6786_v49, %v11478_v17  ;;  %v6975_v53 = vsel %vm1215_vm1, %v6787_v55, %v11479_v18  ;;  %v16002_v51 = vpop.permute.xlu1 %11496  ;;  %v19978_v55 = vld [vmem:[#allocation126_spill] sm:$0xff]  ;;  %v19980_v18 = vld [vmem:[#allocation124_spill] sm:$0xff] }
 0x35f   : > { %v16008_v15 = vpop.permute.xlu0 %11481  ;;  %v7142_v13 = vpack.c.bf16 %v6975_v53, %v6974_v37  ;;  %v16016_v49 = vmax.f32 %v19978_v55, %v11049_v63  ;;  %v16019_v17 = vmax.f32 %v19980_v18, %v11048_v0  ;;  %19983 = vst [vmem:[#allocation122_spill] sm:$0xff] %v16022_v48  ;;  %v19984_v53 = vld [vmem:[#allocation92_spill] sm:$0xff]  ;;  %v19986_v0 = vpack.i.bf16 %v15417_v61, %v15393_v5 }
 0x360   : > { %11791 = vrot.lane.b32.xlu1 %v11790_v56, %s13039_s10  ;;  %v6600_v47 = vsel %vm6556_vm2, %v19984_v53, %v11314_v46  ;;  %v6599_v56 = vsel %vm6556_vm2, %v19985_v34, %v11313_v19  ;;  %v11088_v19 = vunpack.i.l.bf16 %v15214_v4  ;;  %v19989_v4 = vld [vmem:[#allocation40_spill] sm:$0xff] }
 0x361   : > { %10129 = vmatprep.mubr.msk.bf16.mxu1 %vm7239_vm4, %v7142_v13  ;;  %11776 = vrot.lane.b32.xlu0 %v11775_v29, %s13042_s19  ;;  %19979 = vst [vmem:[#allocation28_spill] sm:$0xff] %v16016_v49  ;;  %19981 = vst [vmem:[#allocation206_spill] sm:$0xff] %v16019_v17  ;;  %v6789_v63 = vsel %vm6745_vm3, %v6600_v47, %v11469_v45  ;;  %v6788_v55 = vsel %vm6745_vm3, %v6599_v56, %v11468_v22  ;;  %v11094_v22 = vunpack.i.h.bf16 %v15212_v26 }
 0x362   : > { %v11507_v37 = vpop.permute.xlu1 %11506  ;;  %v11805_v45 = vpack.i.bf16 %v16022_v48, %v15959_v16  ;;  %v11785_v53 = vpack.i.bf16 %v16016_v49, %v16019_v17  ;;  %v16057_v34 = vmax.f32 %v19989_v4, %v11088_v19  ;;  %v11104_v56 = vunpack.i.h.bf16 %v15236_v32  ;;  %v19998_v17 = vld [vmem:[#allocation68_spill] sm:$0xff]  ;;  %v19999_v49 = vld [vmem:[#allocation73_spill] sm:$0xff] }
 0x363   : > { %v16028_v42 = vpop.permute.xlu0 %11486  ;;  %v11509_v13 = vunpack.i.h.bf16 %v11507_v37  ;;  %v11508_v54 = vunpack.i.l.bf16 %v11507_v37  ;;  %v11103_v26 = vunpack.i.l.bf16 %v15236_v32  ;;  %v19993_v19 = vpack.i.bf16 %v15424_v25, %v15399_v24 }
 0x364   : > { %11796 = vrot.lane.b32.xlu1 %v19986_v0, %s13038_s26  ;;  %19990 = vst [vmem:[#allocation109_spill] sm:$0xff] %v16057_v34  ;;  %v11143_v4 = vunpack.i.l.bf16 %v15322_v8 }
 0x365   : > { %v6977_v46 = vsel %vm1215_vm1, %v6789_v63, %v11509_v13  ;;  %v6976_v18 = vsel %vm1215_vm1, %v6788_v55, %v11508_v54  ;;  %11781 = vrot.lane.b32.xlu0 %v11775_v29, %s13040_s12  ;;  %v19987_v54 = vld [vmem:[#allocation42_spill] sm:$0xff]  ;;  %v19991_v63 = vld [vmem:[#allocation43_spill] sm:$0xff] }
 0x366   : > { %v16041_v59 = vpop.permute.xlu1 %11511  ;;  %v7143_v47 = vpack.c.bf16 %v6977_v46, %v6976_v18  ;;  %v16053_v29 = vmax.f32 %v19987_v54, %v11089_v28  ;;  %v16062_v55 = vmax.f32 %v19991_v63, %v11094_v22  ;;  %v11334_v46 = vunpack.i.h.bf16 %v15726_v60  ;;  %v19996_v54 = vld [vmem:[#allocation130_spill] sm:$0xff] }
 0x367   : > { %v16046_v37 = vpop.permute.xlu0 %11501  ;;  %v11333_v18 = vunpack.i.l.bf16 %v15726_v60  ;;  %v16075_v22 = vmax.f32 %v19996_v54, %v11103_v26  ;;  %v20000_v54 = vld [vmem:[#allocation8_spill] sm:$0xff] }
 0x368   : > { %10130 = vmatmul.mubr.msk.bf16.gmra.mrb[52].mxu1 %vm7239_vm4, %v7143_v47  ;;  %11806 = vrot.lane.b32.xlu1 %v11805_v45, %s13042_s19  ;;  %19988 = vst [vmem:[#allocation114_spill] sm:$0xff] %v16053_v29  ;;  %19992 = vst [vmem:[#allocation183_spill] sm:$0xff] %v16062_v55  ;;  %v11815_v60 = vpack.i.bf16 %v16053_v29, %v16057_v34  ;;  %v11099_v16 = vunpack.i.h.bf16 %v20000_v54  ;;  %v11098_v1 = vunpack.i.l.bf16 %v20000_v54  ;;  %v20007_v54 = vld [vmem:[#allocation17_spill] sm:$0xff] }
 0x369   : > { %11786 = vrot.lane.b32.xlu0 %v11785_v53, %s13039_s10  ;;  %v19994_v53 = vld [vmem:[#allocation132_spill] sm:$0xff]  ;;  %19997 = vst [vmem:[#allocation205_spill] sm:$0xff] %v16075_v22 }
 0x36a   : > { %v11517_v13 = vpop.permute.xlu1 %11516  ;;  %v16072_v32 = vmax.f32 %v19994_v53, %v11104_v56  ;;  %v6601_v56 = vsel %vm6556_vm2, %v19999_v49, %v11333_v18 }
 0x36b   : > { %v11522_v0 = vpop.permute.xlu0 %11521 }
 0x36c   : > { %11811 = vrot.lane.b32.xlu1 %v11805_v45, %s13040_s12  ;;  %v11524_v28 = vunpack.i.h.bf16 %v11522_v0  ;;  %v11523_v47 = vunpack.i.l.bf16 %v11522_v0  ;;  %19995 = vst [vmem:[#allocation180_spill] sm:$0xff] %v16072_v32  ;;  %v11820_v0 = vpack.i.bf16 %v16062_v55, %v16022_v48  ;;  %v20001_v48 = vld [vmem:[#allocation45_spill] sm:$0xff]  ;;  %v11840_v18 = vpack.i.bf16 %v16072_v32, %v16075_v22 }
 0x36d   : > { %11801 = vrot.lane.b32.xlu0 %v19993_v19, %s13038_s26  ;;  %v6602_v19 = vsel %vm6556_vm2, %v19998_v17, %v11334_v46  ;;  %v16095_v5 = vmax.f32 %v20001_v48, %v11143_v4  ;;  %v11825_v48 = vpack.i.bf16 %v16057_v34, %v16062_v55  ;;  %v11519_v4 = vunpack.i.h.bf16 %v11517_v13  ;;  %v20009_v34 = vld [vmem:[#allocation46_spill] sm:$0xff] }
 0x36e   : > { %v16078_v63 = vpop.permute.xlu1 %11541  ;;  %v6791_v24 = vsel %vm6745_vm3, %v6602_v19, %v11524_v28  ;;  %v6790_v25 = vsel %vm6745_vm3, %v6601_v56, %v11523_v47  ;;  %v11363_v28 = vunpack.i.l.bf16 %v15759_v58  ;;  %v11139_v19 = vunpack.i.h.bf16 %v15324_v36 }
 0x36f   : > { %v11527_v45 = vpop.permute.xlu0 %11526  ;;  %20002 = vst [vmem:[#allocation208_spill] sm:$0xff] %v16095_v5 }
 0x370   : > { %v11529_v53 = vunpack.i.h.bf16 %v11527_v45  ;;  %v11528_v26 = vunpack.i.l.bf16 %v11527_v45  ;;  %11816 = vrot.lane.b32.xlu1 %v11815_v60, %s13041_s13  ;;  %v11364_v60 = vunpack.i.h.bf16 %v15759_v58  ;;  %v20005_v58 = vld [vmem:[#allocation128_spill] sm:$0xff] }
 0x371   : > { %11821 = vrot.lane.b32.xlu0 %v11820_v0, %s13041_s13  ;;  %v11518_v0 = vunpack.i.l.bf16 %v11517_v13  ;;  %v16117_v56 = vmax.f32 %v20005_v58, %v11098_v1  ;;  %v16123_v13 = vld [vmem:[%s18778_s3] ss:$0 sm:$0xff] }
 0x372   : > { %v6978_v17 = vsel %vm1215_vm1, %v6790_v25, %v11528_v26  ;;  %v6979_v49 = vsel %vm1215_vm1, %v6791_v24, %v11529_v53  ;;  %v16099_v46 = vpop.permute.xlu1 %11546  ;;  %v20003_v25 = vld [vmem:[#allocation131_spill] sm:$0xff]  ;;  %v11138_v53 = vunpack.i.l.bf16 %v15324_v36 }
 0x373   : > { %v16105_v45 = vpop.permute.xlu0 %11531  ;;  %v7144_v47 = vpack.c.bf16 %v6979_v49, %v6978_v17  ;;  %v16111_v24 = vmax.f32 %v20003_v25, %v11099_v16  ;;  %20006 = vst [vmem:[#allocation107_spill] sm:$0xff] %v16117_v56  ;;  %v11845_v16 = vpack.i.bf16 %v16095_v5, %v16053_v29  ;;  %v6604_v17 = vsel %vm6556_vm2, %v20007_v54, %v11364_v60  ;;  %v20008_v49 = vld [vmem:[#allocation95_spill] sm:$0xff] }
 0x374   : > { %11841 = vrot.lane.b32.xlu1 %v11840_v18, %s13039_s10  ;;  %v6603_v18 = vsel %vm6556_vm2, %v20008_v49, %v11363_v28  ;;  %v6793_v58 = vsel %vm6745_vm3, %v6604_v17, %v11519_v4  ;;  %v16137_v29 = vmax.f32 %v20009_v34, %v11139_v19  ;;  %v20011_v49 = vld [vmem:[#allocation44_spill] sm:$0xff]  ;;  %v11154_v4 = vunpack.i.h.bf16 %v15346_v50 }
 0x375   : > { %20004 = vst [vmem:[#allocation110_spill] sm:$0xff] %v16111_v24  ;;  %10133 = vmatprep.mubr.msk.bf16.mxu1 %vm7239_vm4, %v7144_v47  ;;  %11826 = vrot.lane.b32.xlu0 %v11825_v48, %s13042_s19  ;;  %v6792_v32 = vsel %vm6745_vm3, %v6603_v18, %v11518_v0  ;;  %v16144_v55 = vmax.f32 %v20011_v49, %v11138_v53  ;;  %v11153_v0 = vunpack.i.l.bf16 %v15346_v50  ;;  %v11144_v34 = vunpack.i.h.bf16 %v15322_v8  ;;  %v20013_v8 = vld [vmem:[#allocation138_spill] sm:$0xff]  ;;  %v20015_v49 = vld [vmem:[#allocation135_spill] sm:$0xff] }
 0x376   : > { %v11557_v26 = vpop.permute.xlu1 %11556  ;;  %20010 = vst [vmem:[#allocation33_spill] sm:$0xff] %v16137_v29  ;;  %v11193_v53 = vunpack.i.l.bf16 %v15407_v10 }
 0x377   : > { %v16131_v47 = vpop.permute.xlu0 %11536  ;;  %v11559_v1 = vunpack.i.h.bf16 %v11557_v26  ;;  %v11558_v25 = vunpack.i.l.bf16 %v11557_v26  ;;  %20012 = vst [vmem:[#allocation182_spill] sm:$0xff] %v16144_v55 }
 0x378   : > { %v10091_v36 = vpop.f32.mrb[12].mxu1  ;;  %11846 = vrot.lane.b32.xlu1 %v11845_v16, %s13042_s19 }
 0x379   : > { %v7556_v22 = vpop.f32.mrb[13].mxu1  ;;  %v6981_v60 = vsel %vm1215_vm1, %v6793_v58, %v11559_v1  ;;  %v6980_v54 = vsel %vm1215_vm1, %v6792_v32, %v11558_v25  ;;  %11831 = vrot.lane.b32.xlu0 %v11825_v48, %s13040_s12  ;;  %v7565_v19 = vadd.f32 %v10091_v36, %v16123_v13  ;;  %v11835_v48 = vpack.i.bf16 %v16111_v24, %v16117_v56 }
 0x37a   : > { %v7557_v28 = vadd.f32 %v16123_v13, %v7556_v22  ;;  %v10092_v26 = vpop.f32.mrb[14].mxu1  ;;  %v16148_v18 = vpop.permute.xlu1 %11561  ;;  %v7145_v1 = vpack.c.bf16 %v6981_v60, %v6980_v54  ;;  %v16162_v36 = vmax.f32 %v20013_v8, %v11154_v4  ;;  %v11855_v60 = vpack.i.bf16 %v16137_v29, %v16144_v55 }
 0x37b   : > { %v7559_v17 = vpop.f32.mrb[15].mxu1  ;;  %v16153_v22 = vpop.permute.xlu0 %11551  ;;  %v7568_v25 = vadd.f32 %v10092_v26, %v16123_v13  ;;  %v11384_v4 = vunpack.i.h.bf16 %v15820_v38 }
 0x37c   : > { %v7560_v32 = vadd.f32 %v16123_v13, %v7559_v17  ;;  %11851 = vrot.lane.b32.xlu1 %v11845_v16, %s13040_s12  ;;  %v8263_v50 = vmax.f32 %v7557_v28, 0.0  ;;  %20014 = vst [vmem:[#allocation50_spill] sm:$0xff] %v16162_v36  ;;  %v16165_v17 = vmax.f32 %v20015_v49, %v11153_v0  ;;  %10134 = vmatmul.mubr.msk.bf16.gmra.mrb[56].mxu1 %vm7239_vm4, %v7145_v1  ;;  %v20017_v16 = vld [vmem:[#allocation47_spill] sm:$0xff]  ;;  %v8265_v28 = vmax.f32 %v7565_v19, 0.0 }
 0x37d   : > { %11836 = vrot.lane.b32.xlu0 %v11835_v48, %s13039_s10  ;;  %v16173_v54 = vmax.f32 %v20017_v16, %v11144_v34  ;;  %v20019_v48 = vld [vmem:[#allocation49_spill] sm:$0xff]  ;;  %v11383_v0 = vunpack.i.l.bf16 %v15820_v38  ;;  %v8266_v1 = vmax.f32 %v7568_v25, 0.0  ;;  %v20022_v25 = vld [vmem:[#allocation23_spill] sm:$0xff] }
 0x37e   : > { %v8264_v58 = vmax.f32 %v7560_v32, 0.0  ;;  %20016 = vst [vmem:[#allocation209_spill] sm:$0xff] %v16165_v17  ;;  %v16168_v56 = vpop.permute.xlu1 %11566  ;;  %v16176_v24 = vmax.f32 %v20019_v48, %v11193_v53  ;;  %v11880_v19 = vpack.i.bf16 %v16162_v36, %v16165_v17  ;;  %v20021_v53 = vld [vmem:[#allocation214_spill] sm:$0xff] }
 0x37f   : > { %20018 = vst [vmem:[#allocation36_spill] sm:$0xff] %v16173_v54  ;;  %v11572_v32 = vpop.permute.xlu0 %11571  ;;  %v11860_v38 = vpack.i.bf16 %v16173_v54, %v16095_v5  ;;  %v11148_v36 = vunpack.i.l.bf16 %v20021_v53 }
 0x380   : > { %v8407_v26 = vmax.f32 %v8263_v50, %v8264_v58  ;;  %20020 = vst [vmem:[#allocation32_spill] sm:$0xff] %v16176_v24  ;;  %11856 = vrot.lane.b32.xlu1 %v11855_v60, %s13041_s13  ;;  %v11574_v49 = vunpack.i.h.bf16 %v11572_v32  ;;  %v11573_v61 = vunpack.i.l.bf16 %v11572_v32  ;;  %v11149_v50 = vunpack.i.h.bf16 %v20021_v53 }
 0x381   : > { %3223 = vrot.lane.b32.xlu0 %v15558_v2, %s13038_s26  ;;  %v6606_v60 = vsel %vm6556_vm2, %v20022_v25, %v11384_v4  ;;  %v11189_v4 = vunpack.i.h.bf16 %v15458_v3  ;;  %v11188_v25 = vunpack.i.l.bf16 %v15458_v3  ;;  %v11414_v53 = vunpack.i.h.bf16 %v15853_v12 }
 0x382   : > { %v8443_v8 = vmax.f32 %v8407_v26, %v8265_v28  ;;  %v16183_v34 = vpop.permute.xlu1 %11591  ;;  %v20023_v28 = vld [vmem:[#allocation5_spill] sm:$0xff]  ;;  %v6795_v17 = vsel %vm6745_vm3, %v6606_v60, %v11574_v49  ;;  %v11413_v49 = vunpack.i.l.bf16 %v15853_v12  ;;  %v11865_v60 = vpack.i.bf16 %v16144_v55, %v16173_v54 }
 0x383   : > { %v11577_v16 = vpop.permute.xlu0 %11576  ;;  %v6605_v26 = vsel %vm6556_vm2, %v20023_v28, %v11383_v0  ;;  %v20024_v28 = vld [vmem:[#allocation136_spill] sm:$0xff]  ;;  %v11569_v3 = vunpack.i.h.bf16 %v16168_v56  ;;  %v11194_v12 = vunpack.i.h.bf16 %v15407_v10  ;;  %v20032_v54 = vld [vmem:[#allocation165_spill] sm:$0xff] }
 0x384   : > { %v16188_v58 = vmax.f32 %v8443_v8, %v8266_v1  ;;  %v11579_v32 = vunpack.i.h.bf16 %v11577_v16  ;;  %v11578_v48 = vunpack.i.l.bf16 %v11577_v16  ;;  %11881 = vrot.lane.b32.xlu1 %v11880_v19, %s13039_s10  ;;  %v6794_v1 = vsel %vm6745_vm3, %v6605_v26, %v11573_v61 }
 0x385   : > { %11861 = vrot.lane.b32.xlu0 %v11860_v38, %s13041_s13  ;;  %v11885_v8 = vpack.i.bf16 %v16176_v24, %v16137_v29  ;;  %v16216_v26 = vmax.f32 %v20024_v28, %v11149_v50  ;;  %v20030_v50 = vld [vmem:[#allocation48_spill] sm:$0xff]  ;;  %v11204_v28 = vunpack.i.h.bf16 %v15478_v14 }
 0x386   : > { %v6982_v0 = vsel %vm1215_vm1, %v6794_v1, %v11578_v48  ;;  %v6983_v16 = vsel %vm1215_vm1, %v6795_v17, %v11579_v32  ;;  %v16207_v19 = vpop.permute.xlu1 %11596  ;;  %v11568_v48 = vunpack.i.l.bf16 %v16168_v56  ;;  %v20026_v17 = vld [vmem:[#allocation134_spill] sm:$0xff]  ;;  %v20028_v1 = vld [vmem:[#allocation51_spill] sm:$0xff]  ;;  %v11203_v56 = vunpack.i.l.bf16 %v15478_v14 }
 0x387   : > { %v16211_v61 = vpop.permute.xlu0 %11581  ;;  %v7146_v38 = vpack.c.bf16 %v6983_v16, %v6982_v0  ;;  %20025 = vst [vmem:[#allocation211_spill] sm:$0xff] %v16216_v26  ;;  %v16222_v32 = vmax.f32 %v20026_v17, %v11148_v36  ;;  %v16228_v0 = vmax.f32 %v20028_v1, %v11189_v4  ;;  %v16231_v16 = vmax.f32 %v20030_v50, %v11188_v25  ;;  %v20033_v17 = vld [vmem:[#allocation22_spill] sm:$0xff] }
 0x388   : > { %11886 = vrot.lane.b32.xlu1 %v11885_v8, %s13042_s19  ;;  %v6608_v36 = vsel %vm6556_vm2, %v20032_v54, %v11414_v53  ;;  %v6607_v10 = vsel %vm6556_vm2, %v20033_v17, %v11413_v49  ;;  %v20035_v49 = vld [vmem:[#allocation142_spill] sm:$0xff] }
 0x389   : > { %20027 = vst [vmem:[#allocation137_spill] sm:$0xff] %v16222_v32  ;;  %10137 = vmatprep.mubr.msk.bf16.mxu1 %vm7239_vm4, %v7146_v38  ;;  %11866 = vrot.lane.b32.xlu0 %v11865_v60, %s13042_s19  ;;  %20029 = vst [vmem:[#allocation119_spill] sm:$0xff] %v16228_v0  ;;  %v6797_v1 = vsel %vm6745_vm3, %v6608_v36, %v11569_v3  ;;  %v6796_v25 = vsel %vm6745_vm3, %v6607_v10, %v11568_v48  ;;  %v11243_v3 = vunpack.i.l.bf16 %v15511_v7 }
 0x38a   : > { %20031 = vst [vmem:[#allocation117_spill] sm:$0xff] %v16231_v16  ;;  %v11607_v5 = vpop.permute.xlu1 %11606  ;;  %v16249_v17 = vmax.f32 %v20035_v49, %v11204_v28 }
 0x38b   : > { %v16239_v38 = vpop.permute.xlu0 %11586  ;;  %v11609_v55 = vunpack.i.h.bf16 %v11607_v5  ;;  %v11608_v29 = vunpack.i.l.bf16 %v11607_v5  ;;  %v20037_v5 = vld [vmem:[#allocation140_spill] sm:$0xff] }
 0x38c   : > { %20034 = vst [vmem:[#allocation57_spill] sm:$0xff] %v16239_v38  ;;  %v10095_v4 = vpop.f32.mrb[16].mxu1  ;;  %11891 = vrot.lane.b32.xlu1 %v11885_v8, %s13040_s12  ;;  %20036 = vst [vmem:[#allocation192_spill] sm:$0xff] %v16249_v17  ;;  %v16252_v41 = vmax.f32 %v20037_v5, %v11203_v56  ;;  %v11875_v56 = vpack.i.bf16 %v16216_v26, %v16222_v32 }
 0x38d   : > { %v7572_v50 = vpop.f32.mrb[17].mxu1  ;;  %v6985_v14 = vsel %vm1215_vm1, %v6797_v1, %v11609_v55  ;;  %v6984_v2 = vsel %vm1215_vm1, %v6796_v25, %v11608_v29  ;;  %11871 = vrot.lane.b32.xlu0 %v11865_v60, %s13040_s12  ;;  %v11895_v55 = vpack.i.bf16 %v16228_v0, %v16231_v16  ;;  %v20039_v29 = vld [vmem:[#allocation187_spill] sm:$0xff]  ;;  %v7581_v60 = vadd.f32 %v10095_v4, %v16123_v13 }
 0x38e   : > { %v7573_v54 = vadd.f32 %v16123_v13, %v7572_v50  ;;  %v10096_v53 = vpop.f32.mrb[18].mxu1  ;;  %20038 = vst [vmem:[#allocation210_spill] sm:$0xff] %v16252_v41  ;;  %v16255_v36 = vpop.permute.xlu1 %11611  ;;  %v16260_v8 = vmax.f32 %v20039_v29, %v11194_v12  ;;  %v7147_v1 = vpack.c.bf16 %v6985_v14, %v6984_v2  ;;  %v20042_v12 = vld [vmem:[#allocation129_spill] sm:$0xff]  ;;  %v11920_v2 = vpack.i.bf16 %v16249_v17, %v16252_v41 }
 0x38f   : > { %v7575_v48 = vpop.f32.mrb[19].mxu1  ;;  %v16264_v28 = vpop.permute.xlu0 %11601  ;;  %v7584_v50 = vadd.f32 %v10096_v53, %v16123_v13  ;;  %v11199_v5 = vunpack.i.h.bf16 %v20042_v12  ;;  %v11198_v4 = vunpack.i.l.bf16 %v20042_v12  ;;  %v20043_v29 = vld [vmem:[#allocation53_spill] sm:$0xff]  ;;  %v8269_v14 = vmax.f32 %v7581_v60, 0.0 }
 0x390   : > { %20040 = vst [vmem:[#allocation164_spill] sm:$0xff] %v16260_v8  ;;  %v7576_v10 = vadd.f32 %v16123_v13, %v7575_v48  ;;  %20041 = vst [vmem:[#allocation118_spill] sm:$0xff] %v16264_v28  ;;  %11896 = vrot.lane.b32.xlu1 %v11895_v55, %s13041_s13  ;;  %v8267_v25 = vmax.f32 %v7573_v54, 0.0  ;;  %v16274_v48 = vmax.f32 %v20043_v29, %v11243_v3  ;;  %10138 = vmatmul.mubr.msk.bf16.gmra.mrb[60].mxu1 %vm7239_vm4, %v7147_v1  ;;  %v20046_v60 = vld [vmem:[#allocation141_spill] sm:$0xff] }
 0x391   : > { %11876 = vrot.lane.b32.xlu0 %v11875_v56, %s13039_s10  ;;  %v11900_v55 = vpack.i.bf16 %v16260_v8, %v16176_v24  ;;  %v11434_v3 = vunpack.i.h.bf16 %v15914_v39  ;;  %v11433_v29 = vunpack.i.l.bf16 %v15914_v39  ;;  %v8270_v1 = vmax.f32 %v7584_v50, 0.0 }
 0x392   : > { %v8268_v49 = vmax.f32 %v7576_v10, 0.0  ;;  %20044 = vst [vmem:[#allocation116_spill] sm:$0xff] %v16274_v48  ;;  %v16277_v38 = vpop.permute.xlu1 %11616  ;;  %v20045_v10 = vld [vmem:[#allocation181_spill] sm:$0xff]  ;;  %v11244_v39 = vunpack.i.h.bf16 %v15511_v7  ;;  %v20055_v7 = vld [vmem:[#allocation52_spill] sm:$0xff] }
 0x393   : > { %v11622_v53 = vpop.permute.xlu0 %11621  ;;  %v11239_v56 = vunpack.i.h.bf16 %v20045_v10  ;;  %v11238_v12 = vunpack.i.l.bf16 %v20045_v10  ;;  %v11925_v10 = vpack.i.bf16 %v16274_v48, %v16228_v0 }
 0x394   : > { %v8408_v54 = vmax.f32 %v8267_v25, %v8268_v49  ;;  %11921 = vrot.lane.b32.xlu1 %v11920_v2, %s13039_s10  ;;  %v11624_v26 = vunpack.i.h.bf16 %v11622_v53  ;;  %v11623_v17 = vunpack.i.l.bf16 %v11622_v53  ;;  %v16290_v25 = vmax.f32 %v20046_v60, %v11199_v5  ;;  %v20048_v49 = vld [vmem:[#allocation139_spill] sm:$0xff]  ;;  %v20052_v53 = vld [vmem:[#allocation74_spill] sm:$0xff] }
 0x395   : > { %11901 = vrot.lane.b32.xlu0 %v11900_v55, %s13041_s13  ;;  %v16293_v41 = vmax.f32 %v20048_v49, %v11198_v4  ;;  %v6609_v4 = vsel %vm6556_vm2, %v20052_v53, %v11433_v29  ;;  %v20053_v49 = vld [vmem:[#allocation55_spill] sm:$0xff] }
 0x396   : > { %v8444_v32 = vmax.f32 %v8408_v54, %v8269_v14  ;;  %20047 = vst [vmem:[#allocation38_spill] sm:$0xff] %v16290_v25  ;;  %v16295_v24 = vpop.permute.xlu1 %11641  ;;  %v11905_v14 = vpack.i.bf16 %v16231_v16, %v16260_v8  ;;  %v20051_v54 = vld [vmem:[#allocation9_spill] sm:$0xff]  ;;  %v16310_v0 = vmax.f32 %v20053_v49, %v11239_v56  ;;  %v6798_v8 = vsel %vm6745_vm3, %v6609_v4, %v11623_v17  ;;  %v20059_v4 = vld [vmem:[#allocation56_spill] sm:$0xff] }
 0x397   : > { %20049 = vst [vmem:[#allocation195_spill] sm:$0xff] %v16293_v41  ;;  %20050 = vst [vmem:[#allocation54_spill] sm:$0xff] %v16295_v24  ;;  %v11627_v50 = vpop.permute.xlu0 %11626  ;;  %v6610_v5 = vsel %vm6556_vm2, %v20051_v54, %v11434_v3  ;;  %v20057_v3 = vld [vmem:[#allocation90_spill] sm:$0xff]  ;;  %v11464_v56 = vunpack.i.h.bf16 %v15947_v11  ;;  %v11619_v17 = vunpack.i.h.bf16 %v16277_v38 }
 0x398   : > { %v16300_v2 = vmax.f32 %v8444_v32, %v8270_v1  ;;  %v11629_v55 = vunpack.i.h.bf16 %v11627_v50  ;;  %v11628_v60 = vunpack.i.l.bf16 %v11627_v50  ;;  %11926 = vrot.lane.b32.xlu1 %v11925_v10, %s13042_s19  ;;  %20054 = vst [vmem:[#allocation169_spill] sm:$0xff] %v16310_v0  ;;  %v16313_v32 = vmax.f32 %v20055_v7, %v11238_v12 }
 0x399   : > { %v6799_v1 = vsel %vm6745_vm3, %v6610_v5, %v11624_v26  ;;  %11906 = vrot.lane.b32.xlu0 %v11905_v14, %s13042_s19  ;;  %v11254_v54 = vunpack.i.h.bf16 %v20057_v3  ;;  %v11253_v29 = vunpack.i.l.bf16 %v20057_v3  ;;  %v11463_v12 = vunpack.i.l.bf16 %v15947_v11  ;;  %v20061_v11 = vld [vmem:[#allocation150_spill] sm:$0xff]  ;;  %v20065_v3 = vld [vmem:[#allocation24_spill] sm:$0xff] }
 0x39a   : > { %20056 = vst [vmem:[#allocation39_spill] sm:$0xff] %v16313_v32  ;;  %v6986_v50 = vsel %vm1215_vm1, %v6798_v8, %v11628_v60  ;;  %v6987_v53 = vsel %vm1215_vm1, %v6799_v1, %v11629_v55  ;;  %v16322_v16 = vpop.permute.xlu1 %11646  ;;  %v11618_v5 = vunpack.i.l.bf16 %v16277_v38  ;;  %v16332_v7 = vmax.f32 %v20059_v4, %v11244_v39  ;;  %v20063_v60 = vld [vmem:[#allocation148_spill] sm:$0xff]  ;;  %v20066_v39 = vld [vmem:[#allocation26_spill] sm:$0xff] }
 0x39b   : > { %20058 = vst [vmem:[#allocation37_spill] sm:$0xff] %v16322_v16  ;;  %v16326_v49 = vpop.permute.xlu0 %11631  ;;  %v7148_v26 = vpack.c.bf16 %v6987_v53, %v6986_v50  ;;  %v11915_v8 = vpack.i.bf16 %v16290_v25, %v16293_v41  ;;  %v16339_v55 = vmax.f32 %v20061_v11, %v11254_v54  ;;  %v16342_v1 = vmax.f32 %v20063_v60, %v11253_v29 }
 0x39c   : > { %11931 = vrot.lane.b32.xlu1 %v11925_v10, %s13040_s12  ;;  %20060 = vst [vmem:[#allocation213_spill] sm:$0xff] %v16332_v7  ;;  %v11293_v38 = vunpack.i.l.bf16 %v20065_v3  ;;  %v11935_v10 = vpack.i.bf16 %v16310_v0, %v16313_v32  ;;  %v6612_v53 = vsel %vm6556_vm2, %v20066_v39, %v11464_v56  ;;  %v20069_v39 = vld [vmem:[#allocation59_spill] sm:$0xff] }
 0x39d   : > { %10141 = vmatprep.mubr.msk.bf16.mxu1 %vm7239_vm4, %v7148_v26  ;;  %11911 = vrot.lane.b32.xlu0 %v11905_v14, %s13040_s12  ;;  %20062 = vst [vmem:[#allocation151_spill] sm:$0xff] %v16339_v55  ;;  %20064 = vst [vmem:[#allocation127_spill] sm:$0xff] %v16342_v1  ;;  %v20067_v26 = vld [vmem:[#allocation115_spill] sm:$0xff]  ;;  %v6801_v29 = vsel %vm6745_vm3, %v6612_v53, %v11619_v17  ;;  %v11960_v17 = vpack.i.bf16 %v16339_v55, %v16342_v1  ;;  %v20075_v55 = vld [vmem:[#allocation58_spill] sm:$0xff]  ;;  %v11484_v1 = vunpack.i.h.bf16 %v16008_v15 }
 0x39e   : > { %v11657_v50 = vpop.permute.xlu1 %11656  ;;  %v6611_v14 = vsel %vm6556_vm2, %v20067_v26, %v11463_v12  ;;  %v16361_v26 = vmax.f32 %v20069_v39, %v11293_v38 }
 0x39f   : > { %v16351_v4 = vpop.permute.xlu0 %11636  ;;  %v11659_v41 = vunpack.i.h.bf16 %v11657_v50  ;;  %v11658_v54 = vunpack.i.l.bf16 %v11657_v50  ;;  %v6800_v60 = vsel %vm6745_vm3, %v6611_v14, %v11618_v5  ;;  %v11289_v5 = vunpack.i.h.bf16 %v15652_v35 }
 0x3a0   : > { %20068 = vst [vmem:[#allocation125_spill] sm:$0xff] %v16351_v4  ;;  %v10099_v11 = vpop.f32.mrb[20].mxu1  ;;  %11936 = vrot.lane.b32.xlu1 %v11935_v10, %s13041_s13  ;;  %20070 = vst [vmem:[#allocation61_spill] sm:$0xff] %v16361_v26 }
 0x3a1   : > { %v7588_v25 = vpop.f32.mrb[21].mxu1  ;;  %v6989_v24 = vsel %vm1215_vm1, %v6801_v29, %v11659_v41  ;;  %v6988_v16 = vsel %vm1215_vm1, %v6800_v60, %v11658_v54  ;;  %11916 = vrot.lane.b32.xlu0 %v11915_v8, %s13039_s10  ;;  %v7597_v41 = vadd.f32 %v10099_v11, %v16123_v13  ;;  %v11288_v8 = vunpack.i.l.bf16 %v15652_v35  ;;  %v20072_v60 = vld [vmem:[#allocation91_spill] sm:$0xff] }
 0x3a2   : > { %v7589_v56 = vadd.f32 %v16123_v13, %v7588_v25  ;;  %v10100_v12 = vpop.f32.mrb[22].mxu1  ;;  %v16363_v4 = vpop.permute.xlu1 %11661  ;;  %v11940_v25 = vpack.i.bf16 %v16332_v7, %v16274_v48  ;;  %v7149_v38 = vpack.c.bf16 %v6989_v24, %v6988_v16  ;;  %v11249_v11 = vunpack.i.h.bf16 %v20072_v60 }
 0x3a3   : > { %v7591_v50 = vpop.f32.mrb[23].mxu1  ;;  %v16370_v53 = vpop.permute.xlu0 %11651  ;;  %v7600_v54 = vadd.f32 %v10100_v12, %v16123_v13  ;;  %v11248_v39 = vunpack.i.l.bf16 %v20072_v60  ;;  %v11965_v35 = vpack.i.bf16 %v16361_v26, %v16310_v0  ;;  %v11945_v24 = vpack.i.bf16 %v16313_v32, %v16332_v7 }
 0x3a4   : > { %v7592_v10 = vadd.f32 %v16123_v13, %v7591_v50  ;;  %20071 = vst [vmem:[#allocation65_spill] sm:$0xff] %v16370_v53  ;;  %11961 = vrot.lane.b32.xlu1 %v11960_v17, %s13039_s10  ;;  %v8271_v14 = vmax.f32 %v7589_v56, 0.0  ;;  %10142 = vmatmul.mubr.msk.bf16.gmra.mrb[64].mxu1 %vm7239_vm4, %v7149_v38  ;;  %v11294_v16 = vunpack.i.h.bf16 %v20065_v3  ;;  %v20073_v56 = vld [vmem:[#allocation62_spill] sm:$0xff]  ;;  %v8273_v17 = vmax.f32 %v7597_v41, 0.0 }
 0x3a5   : > { %11941 = vrot.lane.b32.xlu0 %v11940_v25, %s13041_s13  ;;  %v16389_v12 = vmax.f32 %v20073_v56, %v11289_v5  ;;  %v16392_v60 = vmax.f32 %v20075_v55, %v11288_v8  ;;  %v11304_v38 = vunpack.i.h.bf16 %v15670_v6  ;;  %v11483_v48 = vunpack.i.l.bf16 %v16008_v15  ;;  %v20077_v5 = vld [vmem:[#allocation149_spill] sm:$0xff]  ;;  %v20082_v56 = vld [vmem:[#allocation63_spill] sm:$0xff] }
 0x3a6   : > { %v8272_v29 = vmax.f32 %v7592_v10, 0.0  ;;  %v16381_v50 = vpop.permute.xlu1 %11666  ;;  %v8274_v7 = vmax.f32 %v7600_v54, 0.0  ;;  %v16400_v41 = vmax.f32 %v20077_v5, %v11249_v11  ;;  %v11303_v55 = vunpack.i.l.bf16 %v15670_v6  ;;  %v20087_v6 = vld [vmem:[#allocation155_spill] sm:$0xff] }
 0x3a7   : > { %20074 = vst [vmem:[#allocation212_spill] sm:$0xff] %v16389_v12  ;;  %v11672_v25 = vpop.permute.xlu0 %11671  ;;  %20076 = vst [vmem:[#allocation126_spill] sm:$0xff] %v16392_v60  ;;  %v16409_v15 = vmax.f32 %v20082_v56, %v11294_v16 }
 0x3a8   : > { %v8409_v10 = vmax.f32 %v8271_v14, %v8272_v29  ;;  %11966 = vrot.lane.b32.xlu1 %v11965_v35, %s13042_s19  ;;  %v11674_v3 = vunpack.i.h.bf16 %v11672_v25  ;;  %v11673_v0 = vunpack.i.l.bf16 %v11672_v25  ;;  %20078 = vst [vmem:[#allocation124_spill] sm:$0xff] %v16400_v41  ;;  %v20080_v14 = vld [vmem:[#allocation146_spill] sm:$0xff]  ;;  %v20086_v25 = vld [vmem:[#allocation12_spill] sm:$0xff] }
 0x3a9   : > { %11946 = vrot.lane.b32.xlu0 %v11945_v24, %s13042_s19  ;;  %v16406_v29 = vmax.f32 %v20080_v14, %v11248_v39  ;;  %20083 = vst [vmem:[#allocation60_spill] sm:$0xff] %v16409_v15  ;;  %v6613_v11 = vsel %vm6556_vm2, %v20086_v25, %v11483_v48  ;;  %v11343_v48 = vunpack.i.l.bf16 %v15701_v31 }
 0x3aa   : > { %v8445_v32 = vmax.f32 %v8409_v10, %v8273_v17  ;;  %v16403_v8 = vpop.permute.xlu1 %11691  ;;  %v20085_v17 = vld [vmem:[#allocation30_spill] sm:$0xff]  ;;  %v6802_v16 = vsel %vm6745_vm3, %v6613_v11, %v11673_v0  ;;  %v11513_v0 = vunpack.i.l.bf16 %v16041_v59  ;;  %v11980_v11 = vpack.i.bf16 %v16409_v15, %v16361_v26 }
 0x3ab   : > { %20079 = vst [vmem:[#allocation41_spill] sm:$0xff] %v16403_v8  ;;  %20081 = vst [vmem:[#allocation92_spill] sm:$0xff] %v16406_v29  ;;  %v11677_v54 = vpop.permute.xlu0 %11676  ;;  %v6614_v10 = vsel %vm6556_vm2, %v20085_v17, %v11484_v1  ;;  %v16419_v8 = vmax.f32 %v20087_v6, %v11304_v38  ;;  %v11668_v17 = vunpack.i.l.bf16 %v16381_v50 }
 0x3ac   : > { %v16411_v53 = vmax.f32 %v8445_v32, %v8274_v7  ;;  %v11679_v5 = vunpack.i.h.bf16 %v11677_v54  ;;  %v11678_v28 = vunpack.i.l.bf16 %v11677_v54  ;;  %11971 = vrot.lane.b32.xlu1 %v11965_v35, %s13040_s12  ;;  %v6803_v39 = vsel %vm6745_vm3, %v6614_v10, %v11674_v3  ;;  %v20089_v7 = vld [vmem:[#allocation153_spill] sm:$0xff] }
 0x3ad   : > { %20088 = vst [vmem:[#allocation40_spill] sm:$0xff] %v16419_v8  ;;  %11951 = vrot.lane.b32.xlu0 %v11945_v24, %s13040_s12  ;;  %v11975_v32 = vpack.i.bf16 %v16389_v12, %v16392_v60  ;;  %v16427_v1 = vmax.f32 %v20089_v7, %v11303_v55  ;;  %v11514_v3 = vunpack.i.h.bf16 %v16041_v59  ;;  %v11955_v54 = vpack.i.bf16 %v16400_v41, %v16406_v29  ;;  %v20113_v41 = vld [vmem:[#allocation16_spill] sm:$0xff] }
 0x3ae   : > { %20084 = vst [vmem:[#allocation42_spill] sm:$0xff] %v16411_v53  ;;  %v6990_v14 = vsel %vm1215_vm1, %v6802_v16, %v11678_v28  ;;  %v6991_v35 = vsel %vm1215_vm1, %v6803_v39, %v11679_v5  ;;  %v16432_v38 = vpop.permute.xlu1 %11696  ;;  %v11669_v55 = vunpack.i.h.bf16 %v16381_v50  ;;  %v20091_v28 = vld [vmem:[#allocation67_spill] sm:$0xff]  ;;  %v20093_v5 = vld [vmem:[#allocation176_spill] sm:$0xff]  ;;  %v20094_v50 = vld [vmem:[#allocation29_spill] sm:$0xff] }
 0x3af   : > { %20090 = vst [vmem:[#allocation43_spill] sm:$0xff] %v16427_v1  ;;  %v16436_v56 = vpop.permute.xlu0 %11681  ;;  %v7150_v24 = vpack.c.bf16 %v6991_v35, %v6990_v14  ;;  %v16446_v10 = vmax.f32 %v20091_v28, %v11343_v48  ;;  %v12000_v25 = vpack.i.bf16 %v16419_v8, %v16427_v1  ;;  %v6616_v6 = vsel %vm6556_vm2, %v20093_v5, %v11514_v3 }
 0x3b0   : > { %11976 = vrot.lane.b32.xlu1 %v11975_v32, %s13041_s13  ;;  %v6615_v39 = vsel %vm6556_vm2, %v20094_v50, %v11513_v0  ;;  %v6805_v48 = vsel %vm6745_vm3, %v6616_v6, %v11669_v55  ;;  %v11298_v28 = vunpack.i.l.bf16 %v15626_v27  ;;  %v11338_v55 = vunpack.i.l.bf16 %v15746_v20 }
 0x3b1   : > { %10145 = vmatprep.mubr.msk.bf16.mxu1 %vm7239_vm4, %v7150_v24  ;;  %11956 = vrot.lane.b32.xlu0 %v11955_v54, %s13039_s10  ;;  %20092 = vst [vmem:[#allocation132_spill] sm:$0xff] %v16446_v10  ;;  %v6804_v35 = vsel %vm6745_vm3, %v6615_v39, %v11668_v17  ;;  %v11299_v54 = vunpack.i.h.bf16 %v15626_v27  ;;  %v11344_v27 = vunpack.i.h.bf16 %v15701_v31 }
 0x3b2   : > { %v11707_v59 = vpop.permute.xlu1 %11706 }
 0x3b3   : > { %v16456_v16 = vpop.permute.xlu0 %11686  ;;  %v11709_v32 = vunpack.i.h.bf16 %v11707_v59  ;;  %v11708_v7 = vunpack.i.l.bf16 %v11707_v59  ;;  %v11339_v59 = vunpack.i.h.bf16 %v15746_v20  ;;  %v20095_v20 = vld [vmem:[#allocation154_spill] sm:$0xff] }
 0x3b4   : > { %v10103_v14 = vpop.f32.mrb[24].mxu1  ;;  %12001 = vrot.lane.b32.xlu1 %v12000_v25, %s13039_s10  ;;  %v12005_v25 = vpack.i.bf16 %v16446_v10, %v16389_v12 }
 0x3b5   : > { %v7604_v24 = vpop.f32.mrb[25].mxu1  ;;  %v6993_v3 = vsel %vm1215_vm1, %v6805_v48, %v11709_v32  ;;  %v6992_v0 = vsel %vm1215_vm1, %v6804_v35, %v11708_v7  ;;  %11981 = vrot.lane.b32.xlu0 %v11980_v11, %s13041_s13  ;;  %v11985_v32 = vpack.i.bf16 %v16392_v60, %v16409_v15  ;;  %v11354_v11 = vunpack.i.h.bf16 %v15764_v21  ;;  %v20097_v48 = vld [vmem:[#allocation152_spill] sm:$0xff]  ;;  %v20099_v35 = vld [vmem:[#allocation70_spill] sm:$0xff] }
 0x3b6   : > { %v10104_v5 = vpop.f32.mrb[26].mxu1  ;;  %v16468_v17 = vpop.permute.xlu1 %11711  ;;  %v7151_v50 = vpack.c.bf16 %v6993_v3, %v6992_v0  ;;  %v16481_v7 = vmax.f32 %v20095_v20, %v11299_v54  ;;  %v11353_v14 = vunpack.i.l.bf16 %v15764_v21  ;;  %v16486_v31 = vmax.f32 %v20097_v48, %v11298_v28  ;;  %v20101_v3 = vld [vmem:[#allocation66_spill] sm:$0xff] }
 0x3b7   : > { %v7606_v6 = vpop.f32.mrb[27].mxu1  ;;  %v16473_v39 = vpop.permute.xlu0 %11701  ;;  %v16489_v24 = vmax.f32 %v20099_v35, %v11339_v59  ;;  %v16492_v0 = vmax.f32 %v20101_v3, %v11338_v55  ;;  %v11349_v54 = vunpack.i.h.bf16 %v15720_v57  ;;  %v20105_v21 = vld [vmem:[#allocation162_spill] sm:$0xff]  ;;  %v11534_v28 = vunpack.i.h.bf16 %v16105_v45 }
 0x3b8   : > { %10146 = vmatmul.mubr.msk.bf16.gmra.mrb[68].mxu1 %vm7239_vm4, %v7151_v50  ;;  %12006 = vrot.lane.b32.xlu1 %v12005_v25, %s13042_s19  ;;  %20096 = vst [vmem:[#allocation130_spill] sm:$0xff] %v16481_v7  ;;  %20098 = vst [vmem:[#allocation68_spill] sm:$0xff] %v16486_v31  ;;  %v20103_v6 = vld [vmem:[#allocation71_spill] sm:$0xff]  ;;  %v16501_v8 = vmax.f32 %v20105_v21, %v11354_v11  ;;  %v11533_v48 = vunpack.i.l.bf16 %v16105_v45  ;;  %v20107_v59 = vld [vmem:[#allocation158_spill] sm:$0xff]  ;;  %v11393_v35 = vunpack.i.l.bf16 %v15795_v9 }
 0x3b9   : > { %11986 = vrot.lane.b32.xlu0 %v11985_v32, %s13042_s19  ;;  %20100 = vst [vmem:[#allocation73_spill] sm:$0xff] %v16489_v24  ;;  %20102 = vst [vmem:[#allocation8_spill] sm:$0xff] %v16492_v0  ;;  %v16497_v50 = vmax.f32 %v20103_v6, %v11344_v27  ;;  %v16507_v55 = vmax.f32 %v20107_v59, %v11353_v14  ;;  %v11348_v6 = vunpack.i.l.bf16 %v15720_v57  ;;  %v11389_v14 = vunpack.i.h.bf16 %v15840_v40  ;;  %v20112_v57 = vld [vmem:[#allocation34_spill] sm:$0xff] }
 0x3ba   : > { %v16494_v5 = vpop.permute.xlu1 %11716  ;;  %20106 = vst [vmem:[#allocation131_spill] sm:$0xff] %v16501_v8  ;;  %v12015_v11 = vpack.i.bf16 %v16489_v24, %v16492_v0  ;;  %v11995_v45 = vpack.i.bf16 %v16481_v7, %v16486_v31  ;;  %v11388_v59 = vunpack.i.l.bf16 %v15840_v40  ;;  %v6618_v29 = vsel %vm6556_vm2, %v20112_v57, %v11534_v28 }
 0x3bb   : > { %20104 = vst [vmem:[#allocation45_spill] sm:$0xff] %v16497_v50  ;;  %v11722_v20 = vpop.permute.xlu0 %11721  ;;  %20108 = vst [vmem:[#allocation128_spill] sm:$0xff] %v16507_v55  ;;  %v6617_v26 = vsel %vm6556_vm2, %v20113_v41, %v11533_v48  ;;  %v12035_v7 = vpack.i.bf16 %v16501_v8, %v16507_v55  ;;  %v11564_v28 = vunpack.i.h.bf16 %v16148_v18  ;;  %v11563_v41 = vunpack.i.l.bf16 %v16148_v18  ;;  %v20118_v18 = vld [vmem:[#allocation108_spill] sm:$0xff] }
 0x3bc   : > { %12011 = vrot.lane.b32.xlu1 %v12005_v25, %s13040_s12  ;;  %v11724_v3 = vunpack.i.h.bf16 %v11722_v20  ;;  %v11723_v27 = vunpack.i.l.bf16 %v11722_v20  ;;  %v20110_v25 = vld [vmem:[#allocation159_spill] sm:$0xff] }
 0x3bd   : > { %11991 = vrot.lane.b32.xlu0 %v11985_v32, %s13040_s12  ;;  %v16519_v21 = vmax.f32 %v20110_v25, %v11349_v54  ;;  %v12020_v32 = vpack.i.bf16 %v16497_v50, %v16446_v10  ;;  %v20114_v54 = vld [vmem:[#allocation79_spill] sm:$0xff] }
 0x3be   : > { %v16512_v1 = vpop.permute.xlu1 %11741  ;;  %v16531_v25 = vmax.f32 %v20114_v54, %v11393_v35  ;;  %v6807_v31 = vsel %vm6745_vm3, %v6618_v29, %v11724_v3  ;;  %v6806_v40 = vsel %vm6745_vm3, %v6617_v26, %v11723_v27  ;;  %v20116_v35 = vld [vmem:[#allocation156_spill] sm:$0xff]  ;;  %v11394_v26 = vunpack.i.h.bf16 %v15795_v9 }
 0x3bf   : > { %20109 = vst [vmem:[#allocation17_spill] sm:$0xff] %v16512_v1  ;;  %20111 = vst [vmem:[#allocation95_spill] sm:$0xff] %v16519_v21  ;;  %v11727_v20 = vpop.permute.xlu0 %11726  ;;  %v16545_v57 = vmax.f32 %v20116_v35, %v11348_v6  ;;  %v16555_v54 = vmax.f32 %v20118_v18, %v11389_v14  ;;  %v11718_v6 = vunpack.i.l.bf16 %v16494_v5  ;;  %v11399_v9 = vunpack.i.h.bf16 %v15814_v52 }
 0x3c0   : > { %v11729_v15 = vunpack.i.h.bf16 %v11727_v20  ;;  %v11728_v60 = vunpack.i.l.bf16 %v11727_v20  ;;  %12016 = vrot.lane.b32.xlu1 %v12015_v11, %s13041_s13  ;;  %20115 = vst [vmem:[#allocation46_spill] sm:$0xff] %v16531_v25  ;;  %v11403_v35 = vunpack.i.l.bf16 %v15858_v44 }
 0x3c1   : > { %11996 = vrot.lane.b32.xlu0 %v11995_v45, %s13039_s10  ;;  %20117 = vst [vmem:[#allocation44_spill] sm:$0xff] %v16545_v57  ;;  %v16552_v45 = vpack.i.bf16 %v16492_v0, %v16497_v50  ;;  %20119 = vst [vmem:[#allocation138_spill] sm:$0xff] %v16555_v54 }
 0x3c2   : > { %v6994_v48 = vsel %vm1215_vm1, %v6806_v40, %v11728_v60  ;;  %v6995_v11 = vsel %vm1215_vm1, %v6807_v31, %v11729_v15  ;;  %v16542_v20 = vpop.permute.xlu1 %11746  ;;  %v20120_v60 = vld [vmem:[#allocation78_spill] sm:$0xff]  ;;  %v11719_v31 = vunpack.i.h.bf16 %v16494_v5  ;;  %v11404_v5 = vunpack.i.h.bf16 %v15858_v44 }
 0x3c3   : > { %v16548_v29 = vpop.permute.xlu0 %11731  ;;  %v10107_v3 = vpop.f32.mrb[28].mxu1  ;;  %v7152_v27 = vpack.c.bf16 %v6995_v11, %v6994_v48  ;;  %v16558_v15 = vmax.f32 %v20120_v60, %v11388_v59  ;;  %v11398_v48 = vunpack.i.l.bf16 %v15814_v52  ;;  %v16570_v59 = vpack.i.bf16 %v16531_v25, %v16489_v24  ;;  %v20123_v60 = vld [vmem:[#allocation94_spill] sm:$0xff] }
 0x3c4   : > { %v7616_v40 = vpop.f32.mrb[29].mxu1  ;;  %12036 = vrot.lane.b32.xlu1 %v12035_v7, %s13039_s10  ;;  %v20122_v7 = vld [vmem:[#allocation35_spill] sm:$0xff]  ;;  %v6619_v52 = vsel %vm6556_vm2, %v20123_v60, %v11563_v41 }
 0x3c5   : > { %20121 = vst [vmem:[#allocation135_spill] sm:$0xff] %v16558_v15  ;;  %v7617_v11 = vadd.f32 %v16123_v13, %v7616_v40  ;;  %10149 = vmatprep.mubr.msk.bf16.mxu1 %vm7239_vm4, %v7152_v27  ;;  %12021 = vrot.lane.b32.xlu0 %v12020_v32, %s13041_s13  ;;  %v10108_v14 = vpop.f32.mrb[30].mxu1  ;;  %v6620_v18 = vsel %vm6556_vm2, %v20122_v7, %v11564_v28 }
 0x3c6   : > { %v7619_v40 = vpop.f32.mrb[31].mxu1  ;;  %v11757_v8 = vpop.permute.xlu1 %11756  ;;  %v7625_v27 = vadd.f32 %v10107_v3, %v16123_v13  ;;  %v6809_v24 = vsel %vm6745_vm3, %v6620_v18, %v11719_v31  ;;  %v6808_v44 = vsel %vm6745_vm3, %v6619_v52, %v11718_v6  ;;  %v7628_v0 = vadd.f32 %v10108_v14, %v16123_v13  ;;  %v20127_v6 = vld [vmem:[#allocation167_spill] sm:$0xff] }
 0x3c7   : > { %v7620_v32 = vadd.f32 %v16123_v13, %v7619_v40  ;;  %v16580_v55 = vpop.permute.xlu0 %11736  ;;  %v11759_v10 = vunpack.i.h.bf16 %v11757_v8  ;;  %v11758_v50 = vunpack.i.l.bf16 %v11757_v8  ;;  %v12045_v28 = vpack.i.bf16 %v16555_v54, %v16558_v15  ;;  %v20125_v8 = vld [vmem:[#allocation170_spill] sm:$0xff] }
 0x3c8   : > { %20124 = vst [vmem:[#allocation47_spill] sm:$0xff] %v16580_v55  ;;  %12041 = vrot.lane.b32.xlu1 %v16570_v59, %s13042_s19  ;;  %v8275_v41 = vmax.f32 %v7617_v11, 0.0  ;;  %v16594_v31 = vmax.f32 %v20125_v8, %v11404_v5  ;;  %v16597_v14 = vmax.f32 %v20127_v6, %v11403_v35  ;;  %v11443_v18 = vunpack.i.l.bf16 %v15889_v62  ;;  %v20129_v11 = vld [vmem:[#allocation6_spill] sm:$0xff]  ;;  %v20135_v6 = vld [vmem:[#allocation81_spill] sm:$0xff] }
 0x3c9   : > { %v8276_v3 = vmax.f32 %v7620_v32, 0.0  ;;  %v6997_v7 = vsel %vm1215_vm1, %v6809_v24, %v11759_v10  ;;  %v6996_v60 = vsel %vm1215_vm1, %v6808_v44, %v11758_v50  ;;  %12026 = vrot.lane.b32.xlu0 %v16552_v45, %s13042_s19  ;;  %v16603_v32 = vmax.f32 %v20129_v11, %v11394_v26 }
 0x3ca   : > { %20126 = vst [vmem:[#allocation49_spill] sm:$0xff] %v16594_v31  ;;  %20128 = vst [vmem:[#allocation214_spill] sm:$0xff] %v16597_v14  ;;  %v16600_v52 = vpop.permute.xlu1 %11761  ;;  %v7153_v40 = vpack.c.bf16 %v6997_v7, %v6996_v60  ;;  %v8277_v10 = vmax.f32 %v7625_v27, 0.0  ;;  %v12030_v44 = vpack.i.bf16 %v16519_v21, %v16545_v57  ;;  %v11444_v5 = vunpack.i.h.bf16 %v15889_v62  ;;  %v20131_v27 = vld [vmem:[#allocation168_spill] sm:$0xff]  ;;  %v20149_v57 = vld [vmem:[#allocation143_spill] sm:$0xff] }
 0x3cb   : > { %20130 = vst [vmem:[#allocation23_spill] sm:$0xff] %v16603_v32  ;;  %v8410_v24 = vmax.f32 %v8275_v41, %v8276_v3  ;;  %v16605_v50 = vpop.permute.xlu0 %11751  ;;  %v11439_v35 = vunpack.i.h.bf16 %v15934_v23  ;;  %v11438_v7 = vunpack.i.l.bf16 %v15934_v23  ;;  %v8278_v60 = vmax.f32 %v7628_v0, 0.0  ;;  %v20133_v3 = vld [vmem:[#allocation166_spill] sm:$0xff] }
 0x3cc   : > { %10150 = vmatmul.mubr.msk.bf16.gmra.mrb[72].mxu1 %vm7239_vm4, %v7153_v40  ;;  %12046 = vrot.lane.b32.xlu1 %v12045_v28, %s13041_s13  ;;  %v16616_v41 = vmax.f32 %v20131_v27, %v11399_v9  ;;  %v16619_v8 = vmax.f32 %v20133_v3, %v11398_v48  ;;  %v16622_v62 = vmax.f32 %v20135_v6, %v11443_v18  ;;  %v11454_v23 = vunpack.i.h.bf16 %v15952_v43  ;;  %v20137_v48 = vld [vmem:[#allocation83_spill] sm:$0xff]  ;;  %v20139_v18 = vld [vmem:[#allocation82_spill] sm:$0xff]  ;;  %v20141_v6 = vld [vmem:[#allocation80_spill] sm:$0xff] }
 0x3cd   : > { %v8446_v26 = vmax.f32 %v8410_v24, %v8277_v10  ;;  %12031 = vrot.lane.b32.xlu0 %v12030_v44, %s13039_s10  ;;  %v12065_v28 = vpack.i.bf16 %v16594_v31, %v16597_v14  ;;  %v11453_v0 = vunpack.i.l.bf16 %v15952_v43  ;;  %v12050_v9 = vpack.i.bf16 %v16603_v32, %v16531_v25 }
 0x3ce   : > { %20132 = vst [vmem:[#allocation5_spill] sm:$0xff] %v16616_v41  ;;  %20134 = vst [vmem:[#allocation136_spill] sm:$0xff] %v16619_v8  ;;  %v16624_v11 = vpop.permute.xlu1 %11766  ;;  %v16635_v24 = vmax.f32 %v20137_v48, %v11444_v5  ;;  %v16638_v44 = vmax.f32 %v20139_v18, %v11439_v35  ;;  %v11584_v27 = vunpack.i.h.bf16 %v16211_v61  ;;  %v11583_v3 = vunpack.i.l.bf16 %v16211_v61 }
 0x3cf   : > { %20136 = vst [vmem:[#allocation134_spill] sm:$0xff] %v16622_v62  ;;  %v16630_v40 = vmax.f32 %v8446_v26, %v8278_v60  ;;  %v11772_v10 = vpop.permute.xlu0 %11771  ;;  %v16644_v43 = vmax.f32 %v20141_v6, %v11438_v7  ;;  %v11449_v5 = vunpack.i.h.bf16 %v15908_v33  ;;  %v16654_v48 = vpack.i.bf16 %v16622_v62, %v16555_v54  ;;  %v20148_v54 = vld [vmem:[#allocation144_spill] sm:$0xff] }
 0x3d0   : > { %20138 = vst [vmem:[#allocation51_spill] sm:$0xff] %v16635_v24  ;;  %20140 = vst [vmem:[#allocation48_spill] sm:$0xff] %v16638_v44  ;;  %12066 = vrot.lane.b32.xlu1 %v12065_v28, %s13039_s10  ;;  %v11774_v26 = vunpack.i.h.bf16 %v11772_v10  ;;  %v11773_v31 = vunpack.i.l.bf16 %v11772_v10  ;;  %v16658_v61 = vpack.i.bf16 %v16558_v15, %v16603_v32  ;;  %v12060_v7 = vpack.i.bf16 %v16616_v41, %v16619_v8  ;;  %v20144_v10 = vld [vmem:[#allocation179_spill] sm:$0xff] }
 0x3d1   : > { %20142 = vst [vmem:[#allocation165_spill] sm:$0xff] %v16644_v43  ;;  %12051 = vrot.lane.b32.xlu0 %v12050_v9, %s13041_s13  ;;  %v11448_v28 = vunpack.i.l.bf16 %v15908_v33  ;;  %v16664_v18 = vmax.f32 %v20144_v10, %v11454_v23  ;;  %v20146_v9 = vld [vmem:[#allocation177_spill] sm:$0xff]  ;;  %v11493_v60 = vunpack.i.l.bf16 %v15983_v30  ;;  %v6622_v14 = vsel %vm6556_vm2, %v20148_v54, %v11584_v27 }
 0x3d2   : > { %v16650_v35 = vpop.permute.xlu1 %11791  ;;  %v16667_v6 = vmax.f32 %v20146_v9, %v11453_v0  ;;  %v6621_v32 = vsel %vm6556_vm2, %v20149_v57, %v11583_v3  ;;  %v6811_v33 = vsel %vm6745_vm3, %v6622_v14, %v11774_v26  ;;  %v12075_v0 = vpack.i.bf16 %v16638_v44, %v16644_v43  ;;  %v20152_v26 = vld [vmem:[#allocation175_spill] sm:$0xff] }
 0x3d3   : > { %20143 = vst [vmem:[#allocation22_spill] sm:$0xff] %v16650_v35  ;;  %20145 = vst [vmem:[#allocation142_spill] sm:$0xff] %v16664_v18  ;;  %v11777_v25 = vpop.permute.xlu0 %11776  ;;  %v6810_v23 = vsel %vm6745_vm3, %v6621_v32, %v11773_v31  ;;  %v12080_v54 = vpack.i.bf16 %v16635_v24, %v16622_v62  ;;  %v11614_v57 = vunpack.i.h.bf16 %v16255_v36  ;;  %v20150_v31 = vld [vmem:[#allocation178_spill] sm:$0xff]  ;;  %v16694_v10 = vmax.f32 %v20152_v26, %v11448_v28  ;;  %v20156_v26 = vld [vmem:[#allocation88_spill] sm:$0xff] }
 0x3d4   : > { %20147 = vst [vmem:[#allocation140_spill] sm:$0xff] %v16667_v6  ;;  %v11779_v15 = vunpack.i.h.bf16 %v11777_v25  ;;  %v11778_v21 = vunpack.i.l.bf16 %v11777_v25  ;;  %12071 = vrot.lane.b32.xlu1 %v16654_v48, %s13042_s19  ;;  %v11613_v25 = vunpack.i.l.bf16 %v16255_v36  ;;  %v16691_v32 = vmax.f32 %v20150_v31, %v11449_v5 }
 0x3d5   : > { %12056 = vrot.lane.b32.xlu0 %v16658_v61, %s13042_s19  ;;  %20153 = vst [vmem:[#allocation129_spill] sm:$0xff] %v16694_v10  ;;  %v12095_v41 = vpack.i.bf16 %v16664_v18, %v16667_v6  ;;  %v11494_v36 = vunpack.i.h.bf16 %v15983_v30  ;;  %v11768_v5 = vunpack.i.l.bf16 %v16624_v11  ;;  %v11499_v28 = vunpack.i.h.bf16 %v16002_v51 }
 0x3d6   : > { %v6998_v27 = vsel %vm1215_vm1, %v6810_v23, %v11778_v21  ;;  %v6999_v3 = vsel %vm1215_vm1, %v6811_v33, %v11779_v15  ;;  %v16688_v14 = vpop.permute.xlu1 %11796  ;;  %20151 = vst [vmem:[#allocation187_spill] sm:$0xff] %v16691_v32  ;;  %v20154_v21 = vld [vmem:[#allocation87_spill] sm:$0xff]  ;;  %v11769_v15 = vunpack.i.h.bf16 %v16624_v11  ;;  %v11498_v31 = vunpack.i.l.bf16 %v16002_v51 }
 0x3d7   : > { %v16696_v9 = vpop.permute.xlu0 %11781  ;;  %v10111_v8 = vpop.f32.mrb[32].mxu1  ;;  %v7154_v62 = vpack.c.bf16 %v6999_v3, %v6998_v27  ;;  %v16702_v23 = vmax.f32 %v20154_v21, %v11493_v60  ;;  %v11489_v27 = vunpack.i.h.bf16 %v16028_v42  ;;  %v11488_v60 = vunpack.i.l.bf16 %v16028_v42  ;;  %v20157_v21 = vld [vmem:[#allocation21_spill] sm:$0xff] }
 0x3d8   : > { %v7632_v33 = vpop.f32.mrb[33].mxu1  ;;  %12076 = vrot.lane.b32.xlu1 %v12075_v0, %s13041_s13  ;;  %v11504_v11 = vunpack.i.h.bf16 %v16046_v37  ;;  %v6624_v0 = vsel %vm6556_vm2, %v20156_v26, %v11614_v57  ;;  %v6623_v18 = vsel %vm6556_vm2, %v20157_v21, %v11613_v25  ;;  %v7641_v12 = vadd.f32 %v10111_v8, %v16123_v13 }
 0x3d9   : > { %20155 = vst [vmem:[#allocation53_spill] sm:$0xff] %v16702_v23  ;;  %v7633_v3 = vadd.f32 %v16123_v13, %v7632_v33  ;;  %10153 = vmatprep.mubr.msk.bf16.mxu1 %vm7239_vm4, %v7154_v62  ;;  %12061 = vrot.lane.b32.xlu0 %v12060_v7, %s13039_s10  ;;  %v10112_v30 = vpop.f32.mrb[34].mxu1  ;;  %v11503_v42 = vunpack.i.l.bf16 %v16046_v37  ;;  %v6813_v55 = vsel %vm6745_vm3, %v6624_v0, %v11769_v15  ;;  %v20161_v37 = vld [vmem:[#allocation84_spill] sm:$0xff] }
 0x3da   : > { %v7635_v51 = vpop.f32.mrb[35].mxu1  ;;  %v11807_v6 = vpop.permute.xlu1 %11806  ;;  %v6812_v1 = vsel %vm6745_vm3, %v6623_v18, %v11768_v5  ;;  %v7644_v57 = vadd.f32 %v10112_v30, %v16123_v13  ;;  %v11543_v18 = vunpack.i.l.bf16 %v16078_v63 }
 0x3db   : > { %v7636_v33 = vadd.f32 %v16123_v13, %v7635_v51  ;;  %v16721_v62 = vpop.permute.xlu0 %11786  ;;  %v11809_v7 = vunpack.i.h.bf16 %v11807_v6  ;;  %v11808_v35 = vunpack.i.l.bf16 %v11807_v6  ;;  %v8279_v25 = vmax.f32 %v7633_v3, 0.0  ;;  %v20159_v51 = vld [vmem:[#allocation86_spill] sm:$0xff] }
 0x3dc   : > { %20158 = vst [vmem:[#allocation181_spill] sm:$0xff] %v16721_v62  ;;  %12096 = vrot.lane.b32.xlu1 %v12095_v41, %s13039_s10  ;;  %v16732_v6 = vmax.f32 %v20159_v51, %v11489_v27  ;;  %v16735_v62 = vmax.f32 %v20161_v37, %v11488_v60  ;;  %v16741_v13 = vpack.i.bf16 %v16702_v23, %v16638_v44  ;;  %v20165_v3 = vld [vmem:[#allocation186_spill] sm:$0xff]  ;;  %v20167_v60 = vld [vmem:[#allocation184_spill] sm:$0xff]  ;;  %v20173_v51 = vld [vmem:[#allocation15_spill] sm:$0xff] }
 0x3dd   : > { %v8280_v26 = vmax.f32 %v7636_v33, 0.0  ;;  %v7001_v8 = vsel %vm1215_vm1, %v6813_v55, %v11809_v7  ;;  %v7000_v21 = vsel %vm1215_vm1, %v6812_v1, %v11808_v35  ;;  %12081 = vrot.lane.b32.xlu0 %v12080_v54, %s13041_s13  ;;  %v8281_v55 = vmax.f32 %v7641_v12, 0.0  ;;  %v20163_v54 = vld [vmem:[#allocation14_spill] sm:$0xff]  ;;  %v20169_v12 = vld [vmem:[#allocation189_spill] sm:$0xff]  ;;  %v20211_v44 = vld [vmem:[#allocation96_spill] sm:$0xff] }
 0x3de   : > { %20160 = vst [vmem:[#allocation141_spill] sm:$0xff] %v16732_v6  ;;  %20162 = vst [vmem:[#allocation139_spill] sm:$0xff] %v16735_v62  ;;  %v16737_v15 = vpop.permute.xlu1 %11811  ;;  %v7155_v41 = vpack.c.bf16 %v7001_v8, %v7000_v21  ;;  %v16748_v35 = vpack.i.bf16 %v16644_v43, %v16635_v24  ;;  %v16751_v27 = vmax.f32 %v20163_v54, %v11494_v36  ;;  %v20171_v7 = vld [vmem:[#allocation185_spill] sm:$0xff] }
 0x3df   : > { %v8411_v5 = vmax.f32 %v8279_v25, %v8280_v26  ;;  %v16744_v1 = vpop.permute.xlu0 %11801  ;;  %v16754_v30 = vmax.f32 %v20165_v3, %v11499_v28  ;;  %v16757_v0 = vmax.f32 %v20167_v60, %v11498_v31  ;;  %v16763_v33 = vmax.f32 %v20169_v12, %v11504_v11  ;;  %v20175_v60 = vld [vmem:[#allocation18_spill] sm:$0xff] }
 0x3e0   : > { %20164 = vst [vmem:[#allocation9_spill] sm:$0xff] %v16751_v27  ;;  %12101 = vrot.lane.b32.xlu1 %v16741_v13, %s13042_s19  ;;  %10154 = vmatmul.mubr.msk.bf16.gmra.mrb[76].mxu1 %vm7239_vm4, %v7155_v41  ;;  %v16766_v25 = vmax.f32 %v20171_v7, %v11503_v42  ;;  %v8282_v26 = vmax.f32 %v7644_v57, 0.0  ;;  %v11544_v28 = vunpack.i.h.bf16 %v16078_v63  ;;  %v12105_v8 = vpack.i.bf16 %v16732_v6, %v16735_v62 }
 0x3e1   : > { %20166 = vst [vmem:[#allocation74_spill] sm:$0xff] %v16754_v30  ;;  %20168 = vst [vmem:[#allocation55_spill] sm:$0xff] %v16757_v0  ;;  %v8447_v36 = vmax.f32 %v8411_v5, %v8281_v55  ;;  %12086 = vrot.lane.b32.xlu0 %v16748_v35, %s13042_s19  ;;  %v12090_v21 = vpack.i.bf16 %v16691_v32, %v16694_v10  ;;  %v16776_v11 = vmax.f32 %v20173_v51, %v11543_v18  ;;  %v20176_v51 = vld [vmem:[#allocation163_spill] sm:$0xff] }
 0x3e2   : > { %20170 = vst [vmem:[#allocation52_spill] sm:$0xff] %v16763_v33  ;;  %20172 = vst [vmem:[#allocation90_spill] sm:$0xff] %v16766_v25  ;;  %v11817_v31 = vpop.permute.xlu1 %11816  ;;  %v11634_v42 = vunpack.i.h.bf16 %v16326_v49  ;;  %v11633_v57 = vunpack.i.l.bf16 %v16326_v49  ;;  %v12110_v63 = vpack.i.bf16 %v16751_v27, %v16702_v23  ;;  %v12115_v55 = vpack.i.bf16 %v16754_v30, %v16757_v0 }
 0x3e3   : > { %20174 = vst [vmem:[#allocation56_spill] sm:$0xff] %v16776_v11  ;;  %v16780_v37 = vmax.f32 %v8447_v36, %v8282_v26  ;;  %v11822_v41 = vpop.permute.xlu0 %11821  ;;  %v16789_v5 = vpack.i.bf16 %v16735_v62, %v16751_v27  ;;  %v12125_v3 = vpack.i.bf16 %v16763_v33, %v16766_v25  ;;  %v16797_v12 = vmax.f32 %v20175_v60, %v11544_v28  ;;  %v20179_v33 = vld [vmem:[#allocation97_spill] sm:$0xff] }
 0x3e4   : > { %12106 = vrot.lane.b32.xlu1 %v12105_v8, %s13041_s13  ;;  %v11824_v54 = vunpack.i.h.bf16 %v11822_v41  ;;  %v11823_v49 = vunpack.i.l.bf16 %v11822_v41  ;;  %v11549_v7 = vunpack.i.h.bf16 %v16099_v46  ;;  %v11548_v26 = vunpack.i.l.bf16 %v16099_v46  ;;  %v20177_v41 = vld [vmem:[#allocation102_spill] sm:$0xff] }
 0x3e5   : > { %12091 = vrot.lane.b32.xlu0 %v12090_v21, %s13039_s10  ;;  %v11664_v36 = vunpack.i.h.bf16 %v16363_v4  ;;  %v6626_v18 = vsel %vm6556_vm2, %v20176_v51, %v11634_v42  ;;  %v6625_v21 = vsel %vm6556_vm2, %v20177_v41, %v11633_v57  ;;  %v11663_v0 = vunpack.i.l.bf16 %v16363_v4  ;;  %v20178_v41 = vld [vmem:[#allocation99_spill] sm:$0xff] }
 0x3e6   : > { %v16802_v8 = vpop.permute.xlu1 %11841  ;;  %v16811_v28 = vpack.i.bf16 %v16776_v11, %v16732_v6  ;;  %v11819_v60 = vunpack.i.h.bf16 %v11817_v31  ;;  %v11818_v27 = vunpack.i.l.bf16 %v11817_v31  ;;  %v11539_v30 = vunpack.i.h.bf16 %v16131_v47 }
 0x3e7   : > { %v11827_v23 = vpop.permute.xlu0 %11826  ;;  %v11554_v42 = vunpack.i.h.bf16 %v16153_v22  ;;  %v6815_v51 = vsel %vm6745_vm3, %v6626_v18, %v11824_v54  ;;  %v6814_v57 = vsel %vm6745_vm3, %v6625_v21, %v11823_v49  ;;  %v11553_v4 = vunpack.i.l.bf16 %v16153_v22 }
 0x3e8   : > { %v11829_v46 = vunpack.i.h.bf16 %v11827_v23  ;;  %v11828_v62 = vunpack.i.l.bf16 %v11827_v23  ;;  %12126 = vrot.lane.b32.xlu1 %v12125_v3, %s13039_s10  ;;  %v6628_v6 = vsel %vm6556_vm2, %v20178_v41, %v11664_v36  ;;  %v6627_v25 = vsel %vm6556_vm2, %v20179_v33, %v11663_v0 }
 0x3e9   : > { %12111 = vrot.lane.b32.xlu0 %v12110_v63, %s13041_s13  ;;  %v20180_v63 = vld [vmem:[#allocation200_spill] sm:$0xff]  ;;  %v11538_v22 = vunpack.i.l.bf16 %v16131_v47  ;;  %v6817_v36 = vsel %vm6745_vm3, %v6628_v6, %v11819_v60  ;;  %v11593_v0 = vunpack.i.l.bf16 %v16183_v34  ;;  %v20184_v60 = vld [vmem:[#allocation199_spill] sm:$0xff] }
 0x3ea   : > { %v7002_v31 = vsel %vm1215_vm1, %v6814_v57, %v11828_v62  ;;  %v7003_v23 = vsel %vm1215_vm1, %v6815_v51, %v11829_v46  ;;  %v11847_v3 = vpop.permute.xlu1 %11846  ;;  %v16829_v21 = vmax.f32 %v20180_v63, %v11549_v7  ;;  %v6816_v62 = vsel %vm6745_vm3, %v6627_v25, %v11818_v27  ;;  %v16842_v7 = vld [vmem:[%s18778_s3] ss:$0 sm:$0xff]  ;;  %v20182_v27 = vld [vmem:[#allocation202_spill] sm:$0xff] }
 0x3eb   : > { %v11849_v10 = vunpack.i.h.bf16 %v11847_v3  ;;  %v11848_v32 = vunpack.i.l.bf16 %v11847_v3  ;;  %v16826_v18 = vpop.permute.xlu0 %11831  ;;  %v10115_v54 = vpop.f32.mrb[36].mxu1  ;;  %v7156_v49 = vpack.c.bf16 %v7003_v23, %v7002_v31  ;;  %v16848_v25 = vmax.f32 %v20182_v27, %v11554_v42  ;;  %v20186_v23 = vld [vmem:[#allocation198_spill] sm:$0xff] }
 0x3ec   : > { %20181 = vst [vmem:[#allocation150_spill] sm:$0xff] %v16829_v21  ;;  %v7648_v46 = vpop.f32.mrb[37].mxu1  ;;  %12131 = vrot.lane.b32.xlu1 %v16811_v28, %s13042_s19  ;;  %v16851_v57 = vmax.f32 %v20184_v60, %v11553_v4  ;;  %v16858_v3 = vmax.f32 %v20186_v23, %v11548_v26  ;;  %v20191_v4 = vld [vmem:[#allocation147_spill] sm:$0xff]  ;;  %v20193_v60 = vld [vmem:[#allocation190_spill] sm:$0xff] }
 0x3ed   : > { %v7004_v33 = vsel %vm1215_vm1, %v6816_v62, %v11848_v32  ;;  %v7005_v51 = vsel %vm1215_vm1, %v6817_v36, %v11849_v10  ;;  %v7649_v47 = vadd.f32 %v16842_v7, %v7648_v46  ;;  %10157 = vmatprep.mubr.msk.bf16.mxu1 %vm7239_vm4, %v7156_v49  ;;  %12116 = vrot.lane.b32.xlu0 %v12115_v55, %s13039_s10  ;;  %v10116_v6 = vpop.f32.mrb[38].mxu1  ;;  %v11599_v32 = vunpack.i.h.bf16 %v16207_v19  ;;  %v20188_v49 = vld [vmem:[#allocation89_spill] sm:$0xff]  ;;  %v20192_v46 = vld [vmem:[#allocation118_spill] sm:$0xff] }
 0x3ee   : > { %20183 = vst [vmem:[#allocation148_spill] sm:$0xff] %v16848_v25  ;;  %20185 = vst [vmem:[#allocation24_spill] sm:$0xff] %v16851_v57  ;;  %v11598_v10 = vunpack.i.l.bf16 %v16207_v19  ;;  %v7651_v41 = vpop.f32.mrb[39].mxu1  ;;  %v16855_v31 = vpop.permute.xlu1 %11851  ;;  %v16861_v63 = vmax.f32 %v20188_v49, %v11539_v30  ;;  %v7657_v55 = vadd.f32 %v16842_v7, %v10115_v54  ;;  %v16868_v62 = vmax.f32 %v20191_v4, %v11538_v22  ;;  %v20195_v22 = vld [vmem:[#allocation93_spill] sm:$0xff]  ;;  %v20197_v4 = vld [vmem:[#allocation64_spill] sm:$0xff] }
 0x3ef   : > { %20187 = vst [vmem:[#allocation26_spill] sm:$0xff] %v16858_v3  ;;  %v7652_v42 = vadd.f32 %v16842_v7, %v7651_v41  ;;  %v16865_v36 = vpop.permute.xlu0 %11836  ;;  %v11604_v19 = vunpack.i.h.bf16 %v20192_v46  ;;  %v11603_v27 = vunpack.i.l.bf16 %v20192_v46  ;;  %v7157_v26 = vpack.c.bf16 %v7005_v51, %v7004_v33 }
 0x3f0   : > { %20189 = vst [vmem:[#allocation115_spill] sm:$0xff] %v16861_v63  ;;  %20190 = vst [vmem:[#allocation59_spill] sm:$0xff] %v16865_v36  ;;  %12146 = vrot.lane.b32.xlu1 %v16570_v59, %s13040_s12  ;;  %v16875_v30 = vmax.f32 %v20193_v60, %v11593_v0  ;;  %v8283_v23 = vmax.f32 %v7649_v47, 0.0  ;;  %v7660_v54 = vadd.f32 %v16842_v7, %v10116_v6  ;;  %v8285_v33 = vmax.f32 %v7657_v55, 0.0 }
 0x3f1   : > { %v8284_v41 = vmax.f32 %v7652_v42, 0.0  ;;  %12121 = vrot.lane.b32.xlu0 %v16789_v5, %s13042_s19  ;;  %v16881_v49 = vmax.f32 %v20195_v22, %v11599_v32  ;;  %v16884_v24 = vmax.f32 %v20197_v4, %v11598_v10  ;;  %10158 = vmatmul.mubr.msk.bf16.gmra.mrb[80].mxu1 %vm7239_vm4, %v7157_v26  ;;  %v12150_v0 = vpack.i.bf16 %v16848_v25, %v16851_v57  ;;  %v20199_v42 = vld [vmem:[#allocation207_spill] sm:$0xff] }
 0x3f2   : > { %20194 = vst [vmem:[#allocation91_spill] sm:$0xff] %v16875_v30  ;;  %v11857_v59 = vpop.permute.xlu1 %11856  ;;  %v12135_v6 = vpack.i.bf16 %v16829_v21, %v16858_v3  ;;  %v16894_v46 = vmax.f32 %v20199_v42, %v11604_v19  ;;  %v20201_v32 = vld [vmem:[#allocation19_spill] sm:$0xff]  ;;  %v12160_v10 = vpack.i.bf16 %v16797_v12, %v16776_v11  ;;  %v8286_v26 = vmax.f32 %v7660_v54, 0.0  ;;  %v20203_v19 = vld [vmem:[#allocation65_spill] sm:$0xff] }
 0x3f3   : > { %20196 = vst [vmem:[#allocation62_spill] sm:$0xff] %v16881_v49  ;;  %20198 = vst [vmem:[#allocation58_spill] sm:$0xff] %v16884_v24  ;;  %v8412_v51 = vmax.f32 %v8283_v23, %v8284_v41  ;;  %v16889_v47 = vpop.permute.xlu0 %3223  ;;  %v16897_v60 = vmax.f32 %v20201_v32, %v11603_v27  ;;  %v12165_v55 = vpack.i.bf16 %v16861_v63, %v16868_v62  ;;  %v11654_v41 = vunpack.i.h.bf16 %v20203_v19  ;;  %v20207_v21 = vld [vmem:[#allocation37_spill] sm:$0xff] }
 0x3f4   : > { %20200 = vst [vmem:[#allocation149_spill] sm:$0xff] %v16894_v46  ;;  %12151 = vrot.lane.b32.xlu1 %v12150_v0, %s13039_s10  ;;  %v16907_v23 = vpack.i.bf16 %v16875_v30, %v16861_v63  ;;  %v11684_v27 = vunpack.i.h.bf16 %v16436_v56  ;;  %v11683_v4 = vunpack.i.l.bf16 %v16436_v56  ;;  %v12155_v54 = vpack.i.bf16 %v16881_v49, %v16884_v24 }
 0x3f5   : > { %20202 = vst [vmem:[#allocation146_spill] sm:$0xff] %v16897_v60  ;;  %v8448_v22 = vmax.f32 %v8412_v51, %v8285_v33  ;;  %12136 = vrot.lane.b32.xlu0 %v12135_v6, %s13039_s10  ;;  %v20205_v33 = vld [vmem:[#allocation57_spill] sm:$0xff]  ;;  %v11714_v6 = vunpack.i.h.bf16 %v16468_v17  ;;  %v11713_v42 = vunpack.i.l.bf16 %v16468_v17  ;;  %v11649_v25 = vunpack.i.h.bf16 %v20207_v21  ;;  %v20208_v17 = vld [vmem:[#allocation100_spill] sm:$0xff] }
 0x3f6   : > { %v16912_v0 = vpop.permute.xlu1 %11881  ;;  %v11589_v51 = vunpack.i.h.bf16 %v20205_v33  ;;  %v11859_v11 = vunpack.i.h.bf16 %v11857_v59  ;;  %v11858_v63 = vunpack.i.l.bf16 %v11857_v59  ;;  %v12170_v56 = vpack.i.bf16 %v16894_v46, %v16897_v60  ;;  %v20212_v46 = vld [vmem:[#allocation113_spill] sm:$0xff] }
 0x3f7   : > { %20204 = vst [vmem:[#allocation63_spill] sm:$0xff] %v16912_v0  ;;  %v16919_v32 = vmax.f32 %v8448_v22, %v8286_v26  ;;  %v11862_v3 = vpop.permute.xlu0 %11861  ;;  %v11648_v24 = vunpack.i.l.bf16 %v20207_v21  ;;  %v16931_v26 = vmax.f32 %v20208_v17, %v11654_v41  ;;  %v11653_v59 = vunpack.i.l.bf16 %v20203_v19  ;;  %v20210_v22 = vld [vmem:[#allocation161_spill] sm:$0xff]  ;;  %v20213_v0 = vld [vmem:[#allocation160_spill] sm:$0xff] }
 0x3f8   : > { %12166 = vrot.lane.b32.xlu1 %v12165_v55, %s13041_s13  ;;  %v11864_v57 = vunpack.i.h.bf16 %v11862_v3  ;;  %v11863_v43 = vunpack.i.l.bf16 %v11862_v3  ;;  %v6630_v55 = vsel %vm6556_vm2, %v20210_v22, %v11684_v27  ;;  %v6629_v60 = vsel %vm6556_vm2, %v20211_v44, %v11683_v4 }
 0x3f9   : > { %20206 = vst [vmem:[#allocation30_spill] sm:$0xff] %v16919_v32  ;;  %12141 = vrot.lane.b32.xlu0 %v16552_v45, %s13040_s12  ;;  %20209 = vst [vmem:[#allocation12_spill] sm:$0xff] %v16931_v26  ;;  %v6632_v49 = vsel %vm6556_vm2, %v20212_v46, %v11714_v6  ;;  %v6631_v3 = vsel %vm6556_vm2, %v20213_v0, %v11713_v42  ;;  %v20214_v0 = vld [vmem:[#allocation72_spill] sm:$0xff]  ;;  %v20216_v42 = vld [vmem:[#allocation101_spill] sm:$0xff]  ;;  %v11699_v22 = vunpack.i.h.bf16 %v16432_v38 }
 0x3fa   : > { %v11887_v21 = vpop.permute.xlu1 %11886  ;;  %v6821_v41 = vsel %vm6745_vm3, %v6632_v49, %v11859_v11  ;;  %v6820_v19 = vsel %vm6745_vm3, %v6631_v3, %v11858_v63  ;;  %v6819_v44 = vsel %vm6745_vm3, %v6630_v55, %v11864_v57  ;;  %v6818_v27 = vsel %vm6745_vm3, %v6629_v60, %v11863_v43  ;;  %v20218_v60 = vld [vmem:[#allocation69_spill] sm:$0xff] }
 0x3fb   : > { %v11889_v32 = vunpack.i.h.bf16 %v11887_v21  ;;  %v11888_v45 = vunpack.i.l.bf16 %v11887_v21  ;;  %v11867_v53 = vpop.permute.xlu0 %11866  ;;  %v16951_v6 = vmax.f32 %v20214_v0, %v11653_v59  ;;  %v11588_v57 = vunpack.i.l.bf16 %v20205_v33  ;;  %v20226_v0 = vld [vmem:[#allocation111_spill] sm:$0xff] }
 0x3fc   : > { %v11869_v17 = vunpack.i.h.bf16 %v11867_v53  ;;  %v11868_v36 = vunpack.i.l.bf16 %v11867_v53  ;;  %12171 = vrot.lane.b32.xlu1 %v12170_v56, %s13039_s10  ;;  %v16959_v43 = vmax.f32 %v20216_v42, %v11649_v25  ;;  %v16962_v56 = vmax.f32 %v20218_v60, %v11648_v24 }
 0x3fd   : > { %v7008_v46 = vsel %vm1215_vm1, %v6820_v19, %v11888_v45  ;;  %v7009_v4 = vsel %vm1215_vm1, %v6821_v41, %v11889_v32  ;;  %12156 = vrot.lane.b32.xlu0 %v12155_v54, %s13039_s10  ;;  %20215 = vst [vmem:[#allocation155_spill] sm:$0xff] %v16951_v6  ;;  %v11704_v55 = vunpack.i.h.bf16 %v16473_v39  ;;  %v11703_v21 = vunpack.i.l.bf16 %v16473_v39  ;;  %v20220_v45 = vld [vmem:[#allocation20_spill] sm:$0xff]  ;;  %v20221_v39 = vld [vmem:[#allocation193_spill] sm:$0xff] }
 0x3fe   : > { %v7006_v11 = vsel %vm1215_vm1, %v6818_v27, %v11868_v36  ;;  %v7007_v63 = vsel %vm1215_vm1, %v6819_v44, %v11869_v17  ;;  %v16955_v53 = vpop.permute.xlu1 %11891  ;;  %v7159_v49 = vpack.c.bf16 %v7009_v4, %v7008_v46  ;;  %20217 = vst [vmem:[#allocation153_spill] sm:$0xff] %v16959_v43  ;;  %20219 = vst [vmem:[#allocation67_spill] sm:$0xff] %v16962_v56  ;;  %v11698_v36 = vunpack.i.l.bf16 %v16432_v38  ;;  %v20222_v44 = vld [vmem:[#allocation75_spill] sm:$0xff]  ;;  %v20224_v46 = vld [vmem:[#allocation76_spill] sm:$0xff] }
 0x3ff   : > { %v16964_v32 = vpop.permute.xlu0 %11871  ;;  %v10119_v54 = vpop.f32.mrb[40].mxu1  ;;  %v7158_v59 = vpack.c.bf16 %v7007_v63, %v7006_v11  ;;  %v12190_v38 = vpack.i.bf16 %v16931_v26, %v16951_v6  ;;  %v16978_v41 = vmax.f32 %v20220_v45, %v11589_v51  ;;  %v16981_v19 = vmax.f32 %v20221_v39, %v11588_v57  ;;  %v20228_v63 = vld [vmem:[#allocation77_spill] sm:$0xff] }
 0x400   : > { %v7664_v3 = vpop.f32.mrb[41].mxu1  ;;  %12186 = vrot.lane.b32.xlu1 %v16907_v23, %s13042_s19  ;;  %v16988_v27 = vmax.f32 %v20222_v44, %v11699_v22  ;;  %v16991_v4 = vmax.f32 %v20224_v46, %v11698_v36  ;;  %v16994_v11 = vmax.f32 %v20226_v0, %v11704_v55  ;;  %v16997_v51 = vmax.f32 %v20228_v63, %v11703_v21  ;;  %v20230_v22 = vld [vmem:[#allocation54_spill] sm:$0xff]  ;;  %v20232_v46 = vld [vmem:[#allocation112_spill] sm:$0xff] }
 0x401   : > { %12161 = vrot.lane.b32.xlu0 %v12160_v10, %s13041_s13  ;;  %10161 = vmatprep.mubr.msk.bf16.mxu1 %vm7239_vm4, %v7158_v59  ;;  %v10120_v24 = vpop.f32.mrb[42].mxu1  ;;  %v12175_v10 = vpack.i.bf16 %v16959_v43, %v16962_v56  ;;  %v11594_v57 = vunpack.i.h.bf16 %v16183_v34  ;;  %v11734_v42 = vunpack.i.h.bf16 %v16548_v29  ;;  %v11733_v60 = vunpack.i.l.bf16 %v16548_v29  ;;  %v20231_v44 = vld [vmem:[#allocation174_spill] sm:$0xff] }
 0x402   : > { %10162 = vmatmul.mubr.msk.bf16.gmra.mrb[84].mxu1 %vm7239_vm4, %v7159_v49  ;;  %v7666_v25 = vpop.f32.mrb[43].mxu1  ;;  %v11897_v33 = vpop.permute.xlu1 %11896  ;;  %20223 = vst [vmem:[#allocation176_spill] sm:$0xff] %v16988_v27  ;;  %20225 = vst [vmem:[#allocation29_spill] sm:$0xff] %v16991_v4  ;;  %v17003_v49 = vpack.i.bf16 %v16868_v62, %v16797_v12  ;;  %v11764_v54 = vunpack.i.h.bf16 %v16600_v52  ;;  %v11643_v36 = vunpack.i.l.bf16 %v20230_v22  ;;  %v11763_v55 = vunpack.i.l.bf16 %v16600_v52  ;;  %v20233_v0 = vld [vmem:[#allocation106_spill] sm:$0xff] }
 0x403   : > { %v16983_v17 = vpop.permute.xlu0 %11876  ;;  %20227 = vst [vmem:[#allocation154_spill] sm:$0xff] %v16994_v11  ;;  %20229 = vst [vmem:[#allocation152_spill] sm:$0xff] %v16997_v51  ;;  %v11754_v21 = vunpack.i.h.bf16 %v16605_v50  ;;  %v12225_v24 = vpack.i.bf16 %v16978_v41, %v16981_v19  ;;  %v11899_v25 = vunpack.i.h.bf16 %v11897_v33  ;;  %v11898_v34 = vunpack.i.l.bf16 %v11897_v33 }
 0x404   : > { %12191 = vrot.lane.b32.xlu1 %v12190_v38, %s13039_s10  ;;  %v12210_v29 = vpack.i.bf16 %v16994_v11, %v16997_v51  ;;  %v12195_v38 = vpack.i.bf16 %v16988_v27, %v16991_v4  ;;  %v11749_v45 = vunpack.i.h.bf16 %v16542_v20  ;;  %v11748_v52 = vunpack.i.l.bf16 %v16542_v20  ;;  %v20234_v11 = vld [vmem:[#allocation104_spill] sm:$0xff] }
 0x405   : > { %12176 = vrot.lane.b32.xlu0 %v12175_v10, %s13039_s10  ;;  %v6634_v33 = vsel %vm6556_vm2, %v20231_v44, %v11734_v42  ;;  %v6636_v63 = vsel %vm6556_vm2, %v20233_v0, %v11764_v54  ;;  %v11753_v4 = vunpack.i.l.bf16 %v16605_v50  ;;  %v6635_v20 = vsel %vm6556_vm2, %v20234_v11, %v11763_v55  ;;  %v20235_v51 = vld [vmem:[#allocation120_spill] sm:$0xff] }
 0x406   : > { %v17009_v59 = vpop.permute.xlu1 %11921  ;;  %v6825_v42 = vsel %vm6745_vm3, %v6636_v63, %v11899_v25  ;;  %v6824_v44 = vsel %vm6745_vm3, %v6635_v20, %v11898_v34  ;;  %v11799_v63 = vunpack.i.h.bf16 %v16688_v14  ;;  %v11798_v20 = vunpack.i.l.bf16 %v16688_v14 }
 0x407   : > { %v11902_v3 = vpop.permute.xlu0 %11901 }
 0x408   : > { %12206 = vrot.lane.b32.xlu1 %v16654_v48, %s13040_s12  ;;  %v11904_v39 = vunpack.i.h.bf16 %v11902_v3  ;;  %v11903_v10 = vunpack.i.l.bf16 %v11902_v3  ;;  %v6633_v48 = vsel %vm6556_vm2, %v20232_v46, %v11733_v60  ;;  %v17036_v3 = vmax.f32 %v20235_v51, %v11754_v21 }
 0x409   : > { %12181 = vrot.lane.b32.xlu0 %v17003_v49, %s13042_s19 }
 0x40a   : > { %v11927_v27 = vpop.permute.xlu1 %11926  ;;  %20236 = vst [vmem:[#allocation70_spill] sm:$0xff] %v17036_v3  ;;  %v6823_v50 = vsel %vm6745_vm3, %v6634_v33, %v11904_v39  ;;  %v6822_v54 = vsel %vm6745_vm3, %v6633_v48, %v11903_v10  ;;  %v20241_v10 = vld [vmem:[#allocation121_spill] sm:$0xff]  ;;  %v20245_v48 = vld [vmem:[#allocation191_spill] sm:$0xff] }
 0x40b   : > { %v11929_v56 = vunpack.i.h.bf16 %v11927_v27  ;;  %v11928_v43 = vunpack.i.l.bf16 %v11927_v27  ;;  %v11907_v6 = vpop.permute.xlu0 %11906  ;;  %v20237_v27 = vld [vmem:[#allocation10_spill] sm:$0xff]  ;;  %v17057_v33 = vmax.f32 %v20241_v10, %v11749_v45  ;;  %v17065_v0 = vmax.f32 %v20245_v48, %v11643_v36 }
 0x40c   : > { %v11909_v60 = vunpack.i.h.bf16 %v11907_v6  ;;  %v11908_v46 = vunpack.i.l.bf16 %v11907_v6  ;;  %12211 = vrot.lane.b32.xlu1 %v12210_v29, %s13039_s10  ;;  %v17047_v55 = vmax.f32 %v20237_v27, %v11753_v4  ;;  %v20239_v29 = vld [vmem:[#allocation145_spill] sm:$0xff]  ;;  %v11803_v45 = vunpack.i.l.bf16 %v16744_v1 }
 0x40d   : > { %v7012_v11 = vsel %vm1215_vm1, %v6824_v44, %v11928_v43  ;;  %v7013_v51 = vsel %vm1215_vm1, %v6825_v42, %v11929_v56  ;;  %12196 = vrot.lane.b32.xlu0 %v12195_v38, %s13039_s10  ;;  %v17054_v39 = vmax.f32 %v20239_v29, %v11594_v57  ;;  %20242 = vst [vmem:[#allocation162_spill] sm:$0xff] %v17057_v33  ;;  %v20243_v43 = vld [vmem:[#allocation7_spill] sm:$0xff]  ;;  %20246 = vst [vmem:[#allocation159_spill] sm:$0xff] %v17065_v0  ;;  %v20249_v27 = vld [vmem:[#allocation13_spill] sm:$0xff] }
 0x40e   : > { %20238 = vst [vmem:[#allocation66_spill] sm:$0xff] %v17047_v55  ;;  %v7010_v21 = vsel %vm1215_vm1, %v6822_v54, %v11908_v46  ;;  %v7011_v25 = vsel %vm1215_vm1, %v6823_v50, %v11909_v60  ;;  %v17051_v6 = vpop.permute.xlu1 %11931  ;;  %v7161_v34 = vpack.c.bf16 %v7013_v51, %v7012_v11  ;;  %v17060_v56 = vmax.f32 %v20243_v43, %v11748_v52  ;;  %v20247_v11 = vld [vmem:[#allocation85_spill] sm:$0xff]  ;;  %v20253_v43 = vld [vmem:[#allocation11_spill] sm:$0xff] }
 0x40f   : > { %20240 = vst [vmem:[#allocation71_spill] sm:$0xff] %v17054_v39  ;;  %v17062_v38 = vpop.permute.xlu0 %11911  ;;  %v7160_v4 = vpack.c.bf16 %v7011_v25, %v7010_v21  ;;  %v11804_v57 = vunpack.i.h.bf16 %v16744_v1  ;;  %v12230_v36 = vpack.i.bf16 %v17036_v3, %v17047_v55  ;;  %v12220_v44 = vpack.i.bf16 %v17054_v39, %v16875_v30  ;;  %v20251_v29 = vld [vmem:[#allocation133_spill] sm:$0xff]  ;;  %v20259_v55 = vld [vmem:[#allocation172_spill] sm:$0xff] }
 0x410   : > { %20244 = vst [vmem:[#allocation158_spill] sm:$0xff] %v17060_v56  ;;  %12226 = vrot.lane.b32.xlu1 %v12225_v24, %s13041_s13  ;;  %v11784_v24 = vunpack.i.h.bf16 %v16696_v9  ;;  %v11783_v60 = vunpack.i.l.bf16 %v16696_v9  ;;  %v11814_v1 = vunpack.i.h.bf16 %v16737_v15  ;;  %v17090_v50 = vpack.i.bf16 %v17065_v0, %v16978_v41 }
 0x411   : > { %12201 = vrot.lane.b32.xlu0 %v16658_v61, %s13040_s12  ;;  %10165 = vmatprep.mubr.msk.bf16.mxu1 %vm7239_vm4, %v7160_v4  ;;  %v12215_v61 = vpack.i.bf16 %v17057_v33, %v17060_v56  ;;  %v17094_v54 = vpack.i.bf16 %v16981_v19, %v17054_v39  ;;  %v17097_v51 = vmax.f32 %v20247_v11, %v11799_v63  ;;  %v11813_v9 = vunpack.i.l.bf16 %v16737_v15  ;;  %v20256_v56 = vld [vmem:[#allocation173_spill] sm:$0xff] }
 0x412   : > { %10166 = vmatmul.mubr.msk.bf16.gmra.mrb[88].mxu1 %vm7239_vm4, %v7161_v34  ;;  %v11937_v52 = vpop.permute.xlu1 %11936  ;;  %v17100_v21 = vmax.f32 %v20249_v27, %v11798_v20  ;;  %v17106_v10 = vmax.f32 %v20251_v29, %v11804_v57  ;;  %v17109_v4 = vmax.f32 %v20253_v43, %v11803_v45  ;;  %v20255_v20 = vld [vmem:[#allocation125_spill] sm:$0xff]  ;;  %v6638_v15 = vsel %vm6556_vm2, %v20256_v56, %v11784_v24  ;;  %v20257_v57 = vld [vmem:[#allocation103_spill] sm:$0xff] }
 0x413   : > { %v17079_v42 = vpop.permute.xlu0 %11916  ;;  %v10123_v14 = vpop.f32.mrb[44].mxu1  ;;  %20248 = vst [vmem:[#allocation34_spill] sm:$0xff] %v17097_v51  ;;  %v11939_v48 = vunpack.i.h.bf16 %v11937_v52  ;;  %v11639_v27 = vunpack.i.h.bf16 %v20255_v20  ;;  %v6637_v29 = vsel %vm6556_vm2, %v20257_v57, %v11783_v60  ;;  %v20258_v45 = vld [vmem:[#allocation123_spill] sm:$0xff]  ;;  %v6639_v56 = vsel %vm6556_vm2, %v20259_v55, %v11813_v9 }
 0x414   : > { %v7676_v46 = vpop.f32.mrb[45].mxu1  ;;  %12231 = vrot.lane.b32.xlu1 %v12230_v36, %s13039_s10  ;;  %20250 = vst [vmem:[#allocation16_spill] sm:$0xff] %v17100_v21  ;;  %20252 = vst [vmem:[#allocation79_spill] sm:$0xff] %v17106_v10  ;;  %v11938_v36 = vunpack.i.l.bf16 %v11937_v52  ;;  %v6640_v43 = vsel %vm6556_vm2, %v20258_v45, %v11814_v1  ;;  %v12255_v1 = vpack.i.bf16 %v17106_v10, %v17109_v4  ;;  %v20296_v10 = vld [vmem:[#allocation33_spill] sm:$0xff] }
 0x415   : > { %v7677_v25 = vadd.f32 %v16842_v7, %v7676_v46  ;;  %12216 = vrot.lane.b32.xlu0 %v12215_v61, %s13039_s10  ;;  %v10124_v34 = vpop.f32.mrb[46].mxu1  ;;  %20254 = vst [vmem:[#allocation156_spill] sm:$0xff] %v17109_v4  ;;  %v7685_v46 = vadd.f32 %v16842_v7, %v10123_v14  ;;  %v6829_v60 = vsel %vm6745_vm3, %v6640_v43, %v11939_v48 }
 0x416   : > { %v7679_v63 = vpop.f32.mrb[47].mxu1  ;;  %v17111_v11 = vpop.permute.xlu1 %11961  ;;  %v7688_v52 = vadd.f32 %v16842_v7, %v10124_v34  ;;  %v12235_v34 = vpack.i.bf16 %v17097_v51, %v17100_v21 }
 0x417   : > { %v7680_v61 = vadd.f32 %v16842_v7, %v7679_v63  ;;  %v11942_v33 = vpop.permute.xlu0 %11941  ;;  %v8287_v24 = vmax.f32 %v7677_v25, 0.0  ;;  %v6828_v63 = vsel %vm6745_vm3, %v6639_v56, %v11938_v36  ;;  %v8289_v45 = vmax.f32 %v7685_v46, 0.0 }
 0x418   : > { %v11944_v3 = vunpack.i.h.bf16 %v11942_v33  ;;  %12246 = vrot.lane.b32.xlu1 %v17090_v50, %s13042_s19  ;;  %v11943_v26 = vunpack.i.l.bf16 %v11942_v33  ;;  %v8290_v25 = vmax.f32 %v7688_v52, 0.0  ;;  %v11638_v46 = vunpack.i.l.bf16 %v20255_v20 }
 0x419   : > { %v8288_v14 = vmax.f32 %v7680_v61, 0.0  ;;  %12221 = vrot.lane.b32.xlu0 %v12220_v44, %s13041_s13 }
 0x41a   : > { %v11967_v57 = vpop.permute.xlu1 %11966  ;;  %v6827_v33 = vsel %vm6745_vm3, %v6638_v15, %v11944_v3  ;;  %v6826_v36 = vsel %vm6745_vm3, %v6637_v29, %v11943_v26 }
 0x41b   : > { %v8413_v30 = vmax.f32 %v8287_v24, %v8288_v14  ;;  %v11969_v39 = vunpack.i.h.bf16 %v11967_v57  ;;  %v11968_v55 = vunpack.i.l.bf16 %v11967_v57  ;;  %v11947_v9 = vpop.permute.xlu0 %11946  ;;  %v11644_v14 = vunpack.i.h.bf16 %v20230_v22  ;;  %v20262_v22 = vld [vmem:[#allocation194_spill] sm:$0xff] }
 0x41c   : > { %v11949_v44 = vunpack.i.h.bf16 %v11947_v9  ;;  %v11948_v61 = vunpack.i.l.bf16 %v11947_v9  ;;  %12256 = vrot.lane.b32.xlu1 %v12255_v1, %s13039_s10  ;;  %v20263_v1 = vld [vmem:[#allocation98_spill] sm:$0xff]  ;;  %v20269_v9 = vld [vmem:[#allocation27_spill] sm:$0xff] }
 0x41d   : > { %v8449_v48 = vmax.f32 %v8413_v30, %v8289_v45  ;;  %v7016_v43 = vsel %vm1215_vm1, %v6828_v63, %v11968_v55  ;;  %v7017_v56 = vsel %vm1215_vm1, %v6829_v60, %v11969_v39  ;;  %12236 = vrot.lane.b32.xlu0 %v12235_v34, %s13039_s10  ;;  %v20260_v30 = vld [vmem:[#allocation41_spill] sm:$0xff]  ;;  %v20261_v39 = vmax.f32 %v16188_v58, %v16630_v40  ;;  %v20265_v45 = vld [vmem:[#allocation188_spill] sm:$0xff] }
 0x41e   : > { %v7014_v24 = vsel %vm1215_vm1, %v6826_v36, %v11948_v61  ;;  %v7015_v52 = vsel %vm1215_vm1, %v6827_v33, %v11949_v44  ;;  %v17143_v3 = vpop.permute.xlu1 %11971  ;;  %v7163_v15 = vpack.c.bf16 %v7017_v56, %v7016_v43  ;;  %v11693_v57 = vunpack.i.l.bf16 %v20260_v30  ;;  %v20267_v40 = vld [vmem:[#allocation157_spill] sm:$0xff] }
 0x41f   : > { %v8485_v26 = vmax.f32 %v8449_v48, %v8290_v25  ;;  %v17147_v29 = vpop.permute.xlu0 %11951  ;;  %v7162_v63 = vpack.c.bf16 %v7015_v52, %v7014_v24  ;;  %v17160_v60 = vmax.f32 %v20262_v22, %v11639_v27  ;;  %v17163_v34 = vmax.f32 %v20263_v1, %v11638_v46  ;;  %v20275_v1 = vld [vmem:[#allocation183_spill] sm:$0xff] }
 0x420   : > { %12261 = vrot.lane.b32.xlu1 %v16741_v13, %s13040_s12  ;;  %v17167_v55 = vmax.f32 %v20265_v45, %v16889_v47  ;;  %v17171_v13 = vmax.f32 %v20267_v40, %v11644_v14  ;;  %v17174_v25 = vmax.f32 %v20269_v9, %v11693_v57  ;;  %v11689_v27 = vunpack.i.h.bf16 %v16456_v16  ;;  %v20277_v9 = vld [vmem:[#allocation109_spill] sm:$0xff] }
 0x421   : > { %v17154_v20 = vmax.f32 %v20261_v39, %v8485_v26  ;;  %12241 = vrot.lane.b32.xlu0 %v17094_v54, %s13042_s19  ;;  %10169 = vmatprep.mubr.msk.bf16.mxu1 %vm7239_vm4, %v7162_v63  ;;  %20264 = vst [vmem:[#allocation108_spill] sm:$0xff] %v17163_v34  ;;  %v11688_v44 = vunpack.i.l.bf16 %v16456_v16  ;;  %v11834_v47 = vunpack.i.h.bf16 %v16826_v18  ;;  %v11854_v61 = vunpack.i.h.bf16 %v16855_v31  ;;  %v20273_v26 = vld [vmem:[#allocation201_spill] sm:$0xff] }
 0x422   : > { %20266 = vst [vmem:[#allocation78_spill] sm:$0xff] %v17167_v55  ;;  %10170 = vmatmul.mubr.msk.bf16.gmra.mrb[92].mxu1 %vm7239_vm4, %v7163_v15  ;;  %v11977_v58 = vpop.permute.xlu1 %11976  ;;  %20268 = vst [vmem:[#allocation35_spill] sm:$0xff] %v17171_v13  ;;  %v11853_v48 = vunpack.i.l.bf16 %v16855_v31  ;;  %v11833_v36 = vunpack.i.l.bf16 %v16826_v18  ;;  %v12270_v16 = vpack.i.bf16 %v17160_v60, %v17163_v34  ;;  %v11694_v24 = vunpack.i.h.bf16 %v20260_v30  ;;  %v20271_v18 = vld [vmem:[#allocation25_spill] sm:$0xff] }
 0x423   : > { %20270 = vst [vmem:[#allocation94_spill] sm:$0xff] %v17174_v25  ;;  %v17176_v33 = vpop.permute.xlu0 %11956  ;;  %v11979_v43 = vunpack.i.h.bf16 %v11977_v58  ;;  %v11978_v56 = vunpack.i.l.bf16 %v11977_v58  ;;  %v12265_v14 = vpack.i.bf16 %v17171_v13, %v17065_v0  ;;  %v17197_v31 = vpack.i.bf16 %v17163_v34, %v17171_v13  ;;  %v20276_v58 = vld [vmem:[#allocation114_spill] sm:$0xff] }
 0x424   : > { %4248 = vrot.lane.b32.xlu1 %v17167_v55, %s13039_s10  ;;  %v17204_v57 = vmax.f32 %v20271_v18, %v11689_v27  ;;  %v17207_v63 = vmax.f32 %v20273_v26, %v11688_v44  ;;  %v6642_v45 = vsel %vm6556_vm2, %v20275_v1, %v11834_v47  ;;  %v6644_v40 = vsel %vm6556_vm2, %v20276_v58, %v11854_v61  ;;  %v20278_v18 = vld [vmem:[#allocation122_spill] sm:$0xff] }
 0x425   : > { %12251 = vrot.lane.b32.xlu0 %v16748_v35, %s13040_s12  ;;  %v17201_v35 = vpack.i.bf16 %v17174_v25, %v17160_v60  ;;  %v6643_v55 = vsel %vm6556_vm2, %v20277_v9, %v11853_v48 }
 0x426   : > { %v17188_v46 = vpop.permute.xlu1 %12001  ;;  %20272 = vst [vmem:[#allocation170_spill] sm:$0xff] %v17204_v57  ;;  %20274 = vst [vmem:[#allocation167_spill] sm:$0xff] %v17207_v63  ;;  %v6832_v26 = vsel %vm6745_vm3, %v6643_v55, %v11978_v56 }
 0x427   : > { %v11982_v52 = vpop.permute.xlu0 %11981  ;;  %v10127_v15 = vpop.f32.mrb[48].mxu1 }
 0x428   : > { %v11984_v30 = vunpack.i.h.bf16 %v11982_v52  ;;  %v11983_v39 = vunpack.i.l.bf16 %v11982_v52  ;;  %v7692_v22 = vpop.f32.mrb[49].mxu1  ;;  %12271 = vrot.lane.b32.xlu1 %v12270_v16, %s13041_s13  ;;  %v6641_v52 = vsel %vm6556_vm2, %v20278_v18, %v11833_v36  ;;  %v6833_v16 = vsel %vm6745_vm3, %v6644_v40, %v11979_v43 }
 0x429   : > { %v7693_v27 = vadd.f32 %v16842_v7, %v7692_v22  ;;  %12266 = vrot.lane.b32.xlu0 %v12265_v14, %s13041_s13  ;;  %v10128_v44 = vpop.f32.mrb[50].mxu1  ;;  %v7701_v47 = vadd.f32 %v16842_v7, %v10127_v15 }
 0x42a   : > { %v7695_v1 = vpop.f32.mrb[51].mxu1  ;;  %v12007_v21 = vpop.permute.xlu1 %12006  ;;  %v6831_v61 = vsel %vm6745_vm3, %v6642_v45, %v11984_v30  ;;  %v6830_v14 = vsel %vm6745_vm3, %v6641_v52, %v11983_v39  ;;  %v7704_v51 = vadd.f32 %v16842_v7, %v10128_v44  ;;  %v20280_v52 = vld [vmem:[#allocation196_spill] sm:$0xff] }
 0x42b   : > { %v7696_v48 = vadd.f32 %v16842_v7, %v7695_v1  ;;  %v12009_v58 = vunpack.i.h.bf16 %v12007_v21  ;;  %v12008_v22 = vunpack.i.l.bf16 %v12007_v21  ;;  %v11987_v9 = vpop.permute.xlu0 %11986  ;;  %v8291_v55 = vmax.f32 %v7693_v27, 0.0  ;;  %v20279_v21 = vld [vmem:[#allocation17_spill] sm:$0xff] }
 0x42c   : > { %v11989_v36 = vunpack.i.h.bf16 %v11987_v9  ;;  %v11988_v18 = vunpack.i.l.bf16 %v11987_v9  ;;  %12281 = vrot.lane.b32.xlu1 %v17201_v35, %s13042_s19  ;;  %v11743_v30 = vunpack.i.l.bf16 %v20279_v21  ;;  %v17239_v1 = vmax.f32 %v20280_v52, %v11694_v24  ;;  %v20282_v9 = vld [vmem:[#allocation47_spill] sm:$0xff] }
 0x42d   : > { %v8292_v43 = vmax.f32 %v7696_v48, 0.0  ;;  %v7020_v56 = vsel %vm1215_vm1, %v6832_v26, %v12008_v22  ;;  %v7021_v15 = vsel %vm1215_vm1, %v6833_v16, %v12009_v58  ;;  %12276 = vrot.lane.b32.xlu0 %v17197_v31, %s13042_s19  ;;  %v8293_v27 = vmax.f32 %v7701_v47, 0.0  ;;  %v12939_v58 = vld [vmem:[%s18779_s4 + $0x8] sm:$0xff]   ;;  %v20283_v47 = vld [vmem:[#allocation197_spill] sm:$0xff] }
 0x42e   : > { %v7018_v39 = vsel %vm1215_vm1, %v6830_v14, %v11988_v18  ;;  %v7019_v45 = vsel %vm1215_vm1, %v6831_v61, %v11989_v36  ;;  %v17236_v40 = vpop.permute.xlu1 %12011  ;;  %v7165_v44 = vpack.c.bf16 %v7021_v15, %v7020_v56  ;;  %20281 = vst [vmem:[#allocation6_spill] sm:$0xff] %v17239_v1  ;;  %v11744_v22 = vunpack.i.h.bf16 %v20279_v21  ;;  %v20285_v15 = vld [vmem:[#allocation171_spill] sm:$0xff] }
 0x42f   : > { %v8414_v48 = vmax.f32 %v8291_v55, %v8292_v43  ;;  %v17241_v26 = vpop.permute.xlu0 %11991  ;;  %v7164_v16 = vpack.c.bf16 %v7019_v45, %v7018_v39  ;;  %v11739_v14 = vunpack.i.h.bf16 %v20282_v9  ;;  %v11738_v61 = vunpack.i.l.bf16 %v20282_v9  ;;  %v20289_v45 = vld [vmem:[#allocation105_spill] sm:$0xff] }
 0x430   : > { %12291 = vrot.lane.b32.xlu1 %v16811_v28, %s13040_s12  ;;  %v8294_v24 = vmax.f32 %v7704_v51, 0.0  ;;  %v17255_v18 = vmax.f32 %v20283_v47, %v11743_v30  ;;  %v12300_v43 = vpack.i.bf16 %v17204_v57, %v17207_v63  ;;  %v19292_v56 = vmov 0.0   ;;  %v20287_v30 = vld [vmem:[#allocation203_spill] sm:$0xff] }
 0x431   : > { %v8450_v36 = vmax.f32 %v8414_v48, %v8293_v27  ;;  %12286 = vrot.lane.b32.xlu0 %v16789_v5, %s13040_s12  ;;  %10173 = vmatprep.mubr.msk.bf16.mxu1 %vm7239_vm4, %v7164_v16  ;;  %v12295_v5 = vpack.i.bf16 %v17239_v1, %v17174_v25  ;;  %v17266_v21 = vmax.f32 %v20285_v15, %v11744_v22  ;;  %v20292_v48 = vld [vmem:[#allocation22_spill] sm:$0xff]  ;;  %v20298_v25 = vld [vmem:[#allocation36_spill] sm:$0xff] }
 0x432   : > { %20284 = vst [vmem:[#allocation168_spill] sm:$0xff] %v17255_v18  ;;  %10174 = vmatmul.mubr.msk.bf16.gmra.mrb[96].mxu1 %vm7239_vm4, %v7165_v44  ;;  %v12017_v55 = vpop.permute.xlu1 %12016  ;;  %10277 = vmatprep.subr.bf16.mxu1 %v19292_v56  ;;  %v17269_v39 = vmax.f32 %v20287_v30, %v11739_v14  ;;  %v17272_v44 = vmax.f32 %v20289_v45, %v11738_v61  ;;  %v11793_v16 = vunpack.i.l.bf16 %v20292_v48  ;;  %v11893_v14 = vunpack.i.l.bf16 %v16955_v53  ;;  %v20295_v45 = vld [vmem:[#allocation181_spill] sm:$0xff] }
 0x433   : > { %v8486_v28 = vmax.f32 %v8450_v36, %v8294_v24  ;;  %v17261_v51 = vpop.permute.xlu0 %11996  ;;  %10278 = vmatpush3.bf16.msra.mxu1 %v12939_v58  ;;  %20286 = vst [vmem:[#allocation166_spill] sm:$0xff] %v17266_v21  ;;  %v20291_v52 = vmax.f32 %v16300_v2, %v16780_v37  ;;  %v11894_v58 = vunpack.i.h.bf16 %v16955_v53  ;;  %v17288_v9 = vpack.i.bf16 %v17255_v18, %v17204_v57 }
 0x434   : > { %20288 = vst [vmem:[#allocation81_spill] sm:$0xff] %v17269_v39  ;;  %20290 = vst [vmem:[#allocation83_spill] sm:$0xff] %v17272_v44  ;;  %12301 = vrot.lane.b32.xlu1 %v12300_v43, %s13041_s13  ;;  %10283 = vmatprep.subr.bf16.mxu1 %v19292_v56  ;;  %v11874_v61 = vunpack.i.h.bf16 %v16964_v32  ;;  %v17294_v2 = vpack.i.bf16 %v17207_v63, %v17239_v1  ;;  %v11873_v37 = vunpack.i.l.bf16 %v16964_v32  ;;  %v12018_v36 = vunpack.i.l.bf16 %v12017_v55  ;;  %v20293_v32 = vld [vmem:[#allocation31_spill] sm:$0xff] }
 0x435   : > { %v17279_v27 = vmax.f32 %v20291_v52, %v8486_v28  ;;  %12296 = vrot.lane.b32.xlu0 %v12295_v5, %s13041_s13  ;;  %v12325_v47 = vpack.i.bf16 %v17266_v21, %v17255_v18  ;;  %v12330_v43 = vpack.i.bf16 %v17269_v39, %v17272_v44  ;;  %v12019_v53 = vunpack.i.h.bf16 %v12017_v55  ;;  %v20297_v18 = vld [vmem:[#allocation182_spill] sm:$0xff] }
 0x436   : > { %v17284_v22 = vpop.permute.xlu1 %12036  ;;  %v17307_v15 = vpack.i.bf16 %v17272_v44, %v17266_v21  ;;  %v17310_v30 = vmax.f32 %v20293_v32, %v11793_v16  ;;  %v11789_v52 = vunpack.i.h.bf16 %v20295_v45  ;;  %v11788_v56 = vunpack.i.l.bf16 %v20295_v45  ;;  %v20299_v16 = vld [vmem:[#allocation208_spill] sm:$0xff] }
 0x437   : > { %v12022_v24 = vpop.permute.xlu0 %12021  ;;  %v6648_v4 = vsel %vm6556_vm2, %v20296_v10, %v11894_v58  ;;  %v6646_v1 = vsel %vm6556_vm2, %v20298_v25, %v11874_v61  ;;  %v6645_v32 = vsel %vm6556_vm2, %v20299_v16, %v11873_v37 }
 0x438   : > { %12311 = vrot.lane.b32.xlu1 %v17288_v9, %s13042_s19  ;;  %v12024_v28 = vunpack.i.h.bf16 %v12022_v24  ;;  %v12023_v5 = vunpack.i.l.bf16 %v12022_v24  ;;  %20294 = vst [vmem:[#allocation82_spill] sm:$0xff] %v17310_v30  ;;  %v6647_v24 = vsel %vm6556_vm2, %v20297_v18, %v11893_v14  ;;  %v6837_v10 = vsel %vm6745_vm3, %v6648_v4, %v12019_v53 }
 0x439   : > { %12306 = vrot.lane.b32.xlu0 %v17294_v2, %s13042_s19  ;;  %v6836_v0 = vsel %vm6745_vm3, %v6647_v24, %v12018_v36  ;;  %v11794_v53 = vunpack.i.h.bf16 %v20292_v48 }
 0x43a   : > { %v12042_v55 = vpop.permute.xlu1 %12041  ;;  %v6834_v18 = vsel %vm6745_vm3, %v6645_v32, %v12023_v5  ;;  %v6835_v25 = vsel %vm6745_vm3, %v6646_v1, %v12024_v28  ;;  %v11843_v5 = vunpack.i.l.bf16 %v16802_v8  ;;  %v11934_v32 = vunpack.i.h.bf16 %v17051_v6 }
 0x43b   : > { %v12044_v63 = vunpack.i.h.bf16 %v12042_v55  ;;  %v12043_v21 = vunpack.i.l.bf16 %v12042_v55  ;;  %v12027_v44 = vpop.permute.xlu0 %12026  ;;  %v10131_v57 = vpop.f32.mrb[52].mxu1 }
 0x43c   : > { %v12029_v45 = vunpack.i.h.bf16 %v12027_v44  ;;  %v12028_v13 = vunpack.i.l.bf16 %v12027_v44  ;;  %v7708_v34 = vpop.f32.mrb[53].mxu1  ;;  %12321 = vrot.lane.b32.xlu1 %v16907_v23, %s13040_s12  ;;  %v7717_v1 = vadd.f32 %v16842_v7, %v10131_v57 }
 0x43d   : > { %v7709_v58 = vadd.f32 %v16842_v7, %v7708_v34  ;;  %12316 = vrot.lane.b32.xlu0 %v17003_v49, %s13040_s12  ;;  %v10132_v14 = vpop.f32.mrb[54].mxu1  ;;  %v7024_v61 = vsel %vm1215_vm1, %v6836_v0, %v12043_v21  ;;  %v7025_v44 = vsel %vm1215_vm1, %v6837_v10, %v12044_v63  ;;  %v17342_v49 = vpack.i.bf16 %v17310_v30, %v17269_v39  ;;  %v20300_v0 = vld [vmem:[#allocation28_spill] sm:$0xff] }
 0x43e   : > { %v7022_v37 = vsel %vm1215_vm1, %v6834_v18, %v12028_v13  ;;  %v7023_v23 = vsel %vm1215_vm1, %v6835_v25, %v12029_v45  ;;  %v7711_v36 = vpop.f32.mrb[55].mxu1  ;;  %v12047_v4 = vpop.permute.xlu1 %12046  ;;  %v17345_v63 = vmax.f32 %v20300_v0, %v11789_v52  ;;  %v20302_v13 = vld [vmem:[#allocation206_spill] sm:$0xff]  ;;  %v7720_v55 = vadd.f32 %v16842_v7, %v10132_v14  ;;  %v20306_v14 = vld [vmem:[#allocation205_spill] sm:$0xff] }
 0x43f   : > { %v7712_v34 = vadd.f32 %v16842_v7, %v7711_v36  ;;  %v17338_v28 = vpop.permute.xlu0 %12031  ;;  %v17348_v21 = vmax.f32 %v20302_v13, %v11788_v56  ;;  %v7166_v48 = vpack.c.bf16 %v7023_v23, %v7022_v37  ;;  %v8295_v57 = vmax.f32 %v7709_v58, 0.0  ;;  %v20308_v37 = vld [vmem:[#allocation59_spill] sm:$0xff]  ;;  %v20310_v13 = vld [vmem:[#allocation117_spill] sm:$0xff] }
 0x440   : > { %20301 = vst [vmem:[#allocation80_spill] sm:$0xff] %v17345_v63  ;;  %12331 = vrot.lane.b32.xlu1 %v12330_v43, %s13041_s13  ;;  %v7167_v16 = vpack.c.bf16 %v7025_v44, %v7024_v61  ;;  %v11933_v52 = vunpack.i.l.bf16 %v17051_v6  ;;  %v11914_v45 = vunpack.i.h.bf16 %v17062_v38  ;;  %v11913_v56 = vunpack.i.l.bf16 %v17062_v38  ;;  %v20304_v43 = vld [vmem:[#allocation204_spill] sm:$0xff] }
 0x441   : > { %20303 = vst [vmem:[#allocation179_spill] sm:$0xff] %v17348_v21  ;;  %v8296_v24 = vmax.f32 %v7712_v34, 0.0  ;;  %12326 = vrot.lane.b32.xlu0 %v12325_v47, %s13041_s13  ;;  %10177 = vmatprep.mubr.msk.bf16.mxu1 %vm7239_vm4, %v7166_v48  ;;  %v17362_v18 = vmax.f32 %v20304_v43, %v11794_v53  ;;  %v8297_v7 = vmax.f32 %v7717_v1, 0.0  ;;  %v12048_v58 = vunpack.i.l.bf16 %v12047_v4  ;;  %v20309_v34 = vld [vmem:[#allocation119_spill] sm:$0xff] }
 0x442   : > { %v17359_v10 = vpop.permute.xlu1 %12066  ;;  %10178 = vmatmul.mubr.msk.bf16.gmra.mrb[100].mxu1 %vm7239_vm4, %v7167_v16  ;;  %v17366_v61 = vmax.f32 %v20306_v14, %v11843_v5  ;;  %v12049_v6 = vunpack.i.h.bf16 %v12047_v4  ;;  %v12360_v38 = vpack.i.bf16 %v17345_v63, %v17348_v21  ;;  %v11839_v23 = vunpack.i.h.bf16 %v20308_v37  ;;  %v20311_v5 = vld [vmem:[#allocation164_spill] sm:$0xff] }
 0x443   : > { %20305 = vst [vmem:[#allocation177_spill] sm:$0xff] %v17362_v18  ;;  %v8415_v25 = vmax.f32 %v8295_v57, %v8296_v24  ;;  %v12052_v47 = vpop.permute.xlu0 %12051  ;;  %v8298_v36 = vmax.f32 %v7720_v55, 0.0  ;;  %v6652_v0 = vsel %vm6556_vm2, %v20309_v34, %v11934_v32  ;;  %v6651_v4 = vsel %vm6556_vm2, %v20310_v13, %v11933_v52  ;;  %v20312_v57 = vld [vmem:[#allocation32_spill] sm:$0xff]  ;;  %v20313_v52 = vld [vmem:[#allocation42_spill] sm:$0xff] }
 0x444   : > { %20307 = vst [vmem:[#allocation144_spill] sm:$0xff] %v17366_v61  ;;  %v12053_v44 = vunpack.i.l.bf16 %v12052_v47  ;;  %12341 = vrot.lane.b32.xlu1 %v17342_v49, %s13042_s19  ;;  %v12054_v1 = vunpack.i.h.bf16 %v12052_v47  ;;  %v6650_v48 = vsel %vm6556_vm2, %v20311_v5, %v11914_v45  ;;  %v6649_v24 = vsel %vm6556_vm2, %v20312_v57, %v11913_v56  ;;  %v20314_v45 = vld [vmem:[#allocation30_spill] sm:$0xff] }
 0x445   : > { %v8451_v53 = vmax.f32 %v8415_v25, %v8297_v7  ;;  %12336 = vrot.lane.b32.xlu0 %v17307_v15, %s13042_s19  ;;  %v6840_v55 = vsel %vm6745_vm3, %v6651_v4, %v12048_v58  ;;  %v6841_v14 = vsel %vm6745_vm3, %v6652_v0, %v12049_v6  ;;  %v20315_v13 = vmax.f32 %v20313_v52, %v20314_v45 }
 0x446   : > { %v12072_v16 = vpop.permute.xlu1 %12071  ;;  %v6838_v32 = vsel %vm6745_vm3, %v6649_v24, %v12053_v44  ;;  %v11838_v6 = vunpack.i.l.bf16 %v20308_v37  ;;  %v11844_v57 = vunpack.i.h.bf16 %v16802_v8  ;;  %v20318_v24 = vld [vmem:[#allocation107_spill] sm:$0xff] }
 0x447   : > { %v8487_v43 = vmax.f32 %v8451_v53, %v8298_v36  ;;  %v12074_v7 = vunpack.i.h.bf16 %v12072_v16  ;;  %v12073_v25 = vunpack.i.l.bf16 %v12072_v16  ;;  %v12057_v47 = vpop.permute.xlu0 %12056  ;;  %v6839_v36 = vsel %vm6745_vm3, %v6650_v48, %v12054_v1 }
 0x448   : > { %v12059_v34 = vunpack.i.h.bf16 %v12057_v47  ;;  %v12058_v39 = vunpack.i.l.bf16 %v12057_v47  ;;  %12351 = vrot.lane.b32.xlu1 %v17090_v50, %s13040_s12  ;;  %v12355_v1 = vpack.i.bf16 %v17362_v18, %v17310_v30  ;;  %v17417_v16 = vmax.f32 %v20318_v24, %v11838_v6 }
 0x449   : > { %v17391_v56 = vmax.f32 %v20315_v13, %v8487_v43  ;;  %v7028_v58 = vsel %vm1215_vm1, %v6840_v55, %v12073_v25  ;;  %v7029_v53 = vsel %vm1215_vm1, %v6841_v14, %v12074_v7  ;;  %12346 = vrot.lane.b32.xlu0 %v17094_v54, %s13040_s12  ;;  %v17411_v54 = vpack.i.bf16 %v17366_v61, %v17345_v63 }
 0x44a   : > { %v7026_v44 = vsel %vm1215_vm1, %v6838_v32, %v12058_v39  ;;  %v7027_v50 = vsel %vm1215_vm1, %v6839_v36, %v12059_v34  ;;  %v12077_v0 = vpop.permute.xlu1 %12076  ;;  %v7169_v4 = vpack.c.bf16 %v7029_v53, %v7028_v58  ;;  %v20316_v39 = vld [vmem:[#allocation110_spill] sm:$0xff]  ;;  %20319 = vst [vmem:[#allocation178_spill] sm:$0xff] %v17417_v16  ;;  %v11974_v43 = vunpack.i.h.bf16 %v17143_v3  ;;  %v20320_v32 = vld [vmem:[#allocation180_spill] sm:$0xff]  ;;  %v20323_v36 = vld [vmem:[#allocation169_spill] sm:$0xff] }
 0x44b   : > { %v17401_v5 = vpop.permute.xlu0 %12061  ;;  %v7168_v48 = vpack.c.bf16 %v7027_v50, %v7026_v44  ;;  %v17414_v37 = vmax.f32 %v20316_v39, %v11839_v23  ;;  %v11954_v55 = vunpack.i.h.bf16 %v17147_v29  ;;  %v11953_v7 = vunpack.i.l.bf16 %v17147_v29  ;;  %v20322_v29 = vld [vmem:[#allocation63_spill] sm:$0xff] }
 0x44c   : > { %12361 = vrot.lane.b32.xlu1 %v12360_v38, %s13041_s13  ;;  %v11973_v38 = vunpack.i.l.bf16 %v17143_v3  ;;  %v17428_v23 = vpack.i.bf16 %v17348_v21, %v17362_v18  ;;  %v12079_v47 = vunpack.i.h.bf16 %v12077_v0  ;;  %v12078_v14 = vunpack.i.l.bf16 %v12077_v0  ;;  %v20324_v53 = vld [vmem:[#allocation39_spill] sm:$0xff] }
 0x44d   : > { %12356 = vrot.lane.b32.xlu0 %v12355_v1, %s13041_s13  ;;  %10181 = vmatprep.mubr.msk.bf16.mxu1 %vm7239_vm4, %v7168_v48  ;;  %20317 = vst [vmem:[#allocation143_spill] sm:$0xff] %v17414_v37  ;;  %v17433_v3 = vmax.f32 %v20320_v32, %v11844_v57  ;;  %v11883_v13 = vunpack.i.l.bf16 %v20322_v29  ;;  %v6656_v58 = vsel %vm6556_vm2, %v20323_v36, %v11974_v43  ;;  %v20326_v48 = vld [vmem:[#allocation116_spill] sm:$0xff]  ;;  %v20379_v21 = vld [vmem:[#allocation23_spill] sm:$0xff] }
 0x44e   : > { %10182 = vmatmul.mubr.msk.bf16.gmra.mrb[104].mxu1 %vm7239_vm4, %v7169_v4  ;;  %v17422_v8 = vpop.permute.xlu1 %12096  ;;  %v6655_v6 = vsel %vm6556_vm2, %v20324_v53, %v11973_v38  ;;  %v12390_v0 = vpack.i.bf16 %v17414_v37, %v17417_v16  ;;  %v20325_v4 = vld [vmem:[#allocation213_spill] sm:$0xff]  ;;  %v6653_v57 = vsel %vm6556_vm2, %v20326_v48, %v11953_v7 }
 0x44f   : > { %v12082_v25 = vpop.permute.xlu0 %12081  ;;  %20321 = vst [vmem:[#allocation175_spill] sm:$0xff] %v17433_v3  ;;  %v10135_v45 = vpop.f32.mrb[56].mxu1  ;;  %v6654_v1 = vsel %vm6556_vm2, %v20325_v4, %v11954_v55  ;;  %v6844_v43 = vsel %vm6745_vm3, %v6655_v6, %v12078_v14  ;;  %v20327_v14 = vld [vmem:[#allocation209_spill] sm:$0xff] }
 0x450   : > { %12371 = vrot.lane.b32.xlu1 %v17411_v54, %s13042_s19  ;;  %v12084_v34 = vunpack.i.h.bf16 %v12082_v25  ;;  %v12083_v52 = vunpack.i.l.bf16 %v12082_v25  ;;  %v7724_v44 = vpop.f32.mrb[57].mxu1  ;;  %v6845_v45 = vsel %vm6745_vm3, %v6656_v58, %v12079_v47  ;;  %v17459_v6 = vmax.f32 %v20327_v14, %v11883_v13 }
 0x451   : > { %12366 = vrot.lane.b32.xlu0 %v17428_v23, %s13042_s19  ;;  %v10136_v39 = vpop.f32.mrb[58].mxu1  ;;  %v11878_v13 = vunpack.i.l.bf16 %v16983_v17  ;;  %v11993_v14 = vunpack.i.l.bf16 %v17241_v26 }
 0x452   : > { %v12102_v50 = vpop.permute.xlu1 %12101  ;;  %v7726_v38 = vpop.f32.mrb[59].mxu1  ;;  %v6842_v44 = vsel %vm6745_vm3, %v6653_v57, %v12083_v52  ;;  %v6843_v55 = vsel %vm6745_vm3, %v6654_v1, %v12084_v34  ;;  %20328 = vst [vmem:[#allocation87_spill] sm:$0xff] %v17459_v6  ;;  %v12385_v34 = vpack.i.bf16 %v17433_v3, %v17366_v61  ;;  %v11884_v1 = vunpack.i.h.bf16 %v20322_v29 }
 0x453   : > { %v12104_v24 = vunpack.i.h.bf16 %v12102_v50  ;;  %v12103_v25 = vunpack.i.l.bf16 %v12102_v50  ;;  %v12087_v32 = vpop.permute.xlu0 %12086  ;;  %v11923_v57 = vunpack.i.l.bf16 %v17009_v59  ;;  %v17483_v29 = vpack.i.bf16 %v17417_v16, %v17433_v3 }
 0x454   : > { %v12089_v36 = vunpack.i.h.bf16 %v12087_v32  ;;  %v12088_v53 = vunpack.i.l.bf16 %v12087_v32  ;;  %12381 = vrot.lane.b32.xlu1 %v17201_v35, %s13040_s12  ;;  %v20331_v32 = vld [vmem:[#allocation211_spill] sm:$0xff] }
 0x455   : > { %v7032_v7 = vsel %vm1215_vm1, %v6844_v43, %v12103_v25  ;;  %v7033_v4 = vsel %vm1215_vm1, %v6845_v45, %v12104_v24  ;;  %12376 = vrot.lane.b32.xlu0 %v17197_v31, %s13040_s12  ;;  %v11879_v31 = vunpack.i.h.bf16 %v16983_v17  ;;  %v17479_v24 = vpack.i.bf16 %v17459_v6, %v17414_v37  ;;  %v20329_v17 = vld [vmem:[#allocation50_spill] sm:$0xff]  ;;  %v20333_v45 = vld [vmem:[#allocation137_spill] sm:$0xff] }
 0x456   : > { %v7030_v47 = vsel %vm1215_vm1, %v6842_v44, %v12088_v53  ;;  %v7031_v58 = vsel %vm1215_vm1, %v6843_v55, %v12089_v36  ;;  %v12107_v50 = vpop.permute.xlu1 %12106  ;;  %v7171_v35 = vpack.c.bf16 %v7033_v4, %v7032_v7  ;;  %v17490_v25 = vmax.f32 %v20329_v17, %v11884_v1  ;;  %v20335_v36 = vld [vmem:[#allocation210_spill] sm:$0xff] }
 0x457   : > { %v17463_v48 = vpop.permute.xlu0 %12091  ;;  %v7170_v52 = vpack.c.bf16 %v7031_v58, %v7030_v47  ;;  %v17493_v43 = vmax.f32 %v20331_v32, %v11879_v31  ;;  %v17496_v38 = vmax.f32 %v20333_v45, %v11878_v13  ;;  %v17499_v53 = vmax.f32 %v20335_v36, %v11923_v57  ;;  %v20339_v32 = vld [vmem:[#allocation60_spill] sm:$0xff]  ;;  %v20340_v45 = vld [vmem:[#allocation61_spill] sm:$0xff] }
 0x458   : > { %12391 = vrot.lane.b32.xlu1 %v12390_v0, %s13041_s13  ;;  %20330 = vst [vmem:[#allocation88_spill] sm:$0xff] %v17490_v25  ;;  %v12014_v55 = vunpack.i.h.bf16 %v17236_v40  ;;  %v12013_v7 = vunpack.i.l.bf16 %v17236_v40  ;;  %v11994_v4 = vunpack.i.h.bf16 %v17241_v26  ;;  %v12109_v58 = vunpack.i.h.bf16 %v12107_v50 }
 0x459   : > { %12386 = vrot.lane.b32.xlu0 %v12385_v34, %s13041_s13  ;;  %10185 = vmatprep.mubr.msk.bf16.mxu1 %vm7239_vm4, %v7170_v52  ;;  %20332 = vst [vmem:[#allocation21_spill] sm:$0xff] %v17493_v43  ;;  %20334 = vst [vmem:[#allocation86_spill] sm:$0xff] %v17496_v38  ;;  %v12415_v40 = vpack.i.bf16 %v17490_v25, %v17459_v6  ;;  %v12420_v26 = vpack.i.bf16 %v17493_v43, %v17496_v38 }
 0x45a   : > { %10186 = vmatmul.mubr.msk.bf16.gmra.mrb[108].mxu1 %vm7239_vm4, %v7171_v35  ;;  %v17475_v39 = vpop.permute.xlu1 %12126  ;;  %20336 = vst [vmem:[#allocation84_spill] sm:$0xff] %v17499_v53  ;;  %v12108_v35 = vunpack.i.l.bf16 %v12107_v50  ;;  %v17519_v50 = vpack.i.bf16 %v17499_v53, %v17493_v43  ;;  %v6657_v36 = vsel %vm6556_vm2, %v20340_v45, %v11993_v14  ;;  %v11919_v14 = vunpack.i.h.bf16 %v17079_v42  ;;  %v20343_v45 = vld [vmem:[#allocation195_spill] sm:$0xff] }
 0x45b   : > { %v12112_v0 = vpop.permute.xlu0 %12111 }
 0x45c   : > { %12401 = vrot.lane.b32.xlu1 %v17479_v24, %s13042_s19  ;;  %v12114_v34 = vunpack.i.h.bf16 %v12112_v0  ;;  %v12113_v52 = vunpack.i.l.bf16 %v12112_v0  ;;  %v20338_v0 = vld [vmem:[#allocation126_spill] sm:$0xff] }
 0x45d   : > { %12396 = vrot.lane.b32.xlu0 %v17483_v29, %s13042_s19  ;;  %v6659_v17 = vsel %vm6556_vm2, %v20338_v0, %v12013_v7 }
 0x45e   : > { %v12132_v44 = vpop.permute.xlu1 %12131  ;;  %v6848_v6 = vsel %vm6745_vm3, %v6659_v17, %v12108_v35  ;;  %v11918_v35 = vunpack.i.l.bf16 %v17079_v42  ;;  %v17554_v42 = vpack.i.bf16 %v17496_v38, %v17490_v25  ;;  %v20361_v25 = vld [vmem:[#allocation132_spill] sm:$0xff] }
 0x45f   : > { %v17505_v47 = vpop.permute.xlu0 %12116  ;;  %v12134_v1 = vunpack.i.h.bf16 %v12132_v44  ;;  %v12133_v31 = vunpack.i.l.bf16 %v12132_v44 }
 0x460   : > { %12411 = vrot.lane.b32.xlu1 %v17288_v9, %s13040_s12  ;;  %v20337_v9 = vld [vmem:[#allocation212_spill] sm:$0xff] }
 0x461   : > { %12406 = vrot.lane.b32.xlu0 %v17294_v2, %s13040_s12  ;;  %v6660_v57 = vsel %vm6556_vm2, %v20337_v9, %v12014_v55  ;;  %v6658_v2 = vsel %vm6556_vm2, %v20339_v32, %v11994_v4  ;;  %v6846_v55 = vsel %vm6745_vm3, %v6657_v36, %v12113_v52  ;;  %v7036_v7 = vsel %vm1215_vm1, %v6848_v6, %v12133_v31  ;;  %v20341_v32 = vld [vmem:[#allocation38_spill] sm:$0xff] }
 0x462   : > { %v17511_v13 = vpop.permute.xlu1 %12146  ;;  %v6849_v16 = vsel %vm6745_vm3, %v6660_v57, %v12109_v58  ;;  %v6847_v9 = vsel %vm6745_vm3, %v6658_v2, %v12114_v34  ;;  %v11924_v34 = vunpack.i.h.bf16 %v17009_v59  ;;  %v17564_v2 = vmax.f32 %v20341_v32, %v11919_v14 }
 0x463   : > { %v12122_v44 = vpop.permute.xlu0 %12121  ;;  %v7037_v4 = vsel %vm1215_vm1, %v6849_v16, %v12134_v1  ;;  %v10139_v0 = vpop.f32.mrb[60].mxu1  ;;  %v17547_v16 = vld [vmem:[%s18778_s3] ss:$0 sm:$0xff]  ;;  %v17567_v36 = vmax.f32 %v20343_v45, %v11918_v35  ;;  %v12003_v45 = vunpack.i.l.bf16 %v17188_v46 }
 0x464   : > { %v12124_v61 = vunpack.i.h.bf16 %v12122_v44  ;;  %v12123_v43 = vunpack.i.l.bf16 %v12122_v44  ;;  %12421 = vrot.lane.b32.xlu1 %v12420_v26, %s13041_s13  ;;  %v7736_v26 = vpop.f32.mrb[61].mxu1  ;;  %v7173_v59 = vpack.c.bf16 %v7037_v4, %v7036_v7  ;;  %v7745_v31 = vadd.f32 %v17547_v16, %v10139_v0  ;;  %20342 = vst [vmem:[#allocation14_spill] sm:$0xff] %v17564_v2  ;;  %v20347_v35 = vld [vmem:[#allocation127_spill] sm:$0xff] }
 0x465   : > { %12416 = vrot.lane.b32.xlu0 %v12415_v40, %s13041_s13  ;;  %v7737_v6 = vadd.f32 %v17547_v16, %v7736_v26  ;;  %v10140_v52 = vpop.f32.mrb[62].mxu1  ;;  %20344 = vst [vmem:[#allocation186_spill] sm:$0xff] %v17567_v36  ;;  %v11963_v44 = vunpack.i.l.bf16 %v17111_v11 }
 0x466   : > { %v7034_v58 = vsel %vm1215_vm1, %v6846_v55, %v12123_v43  ;;  %v7035_v57 = vsel %vm1215_vm1, %v6847_v9, %v12124_v61  ;;  %v17541_v17 = vpop.permute.xlu1 %12151  ;;  %v7739_v43 = vpop.f32.mrb[63].mxu1  ;;  %v20345_v9 = vld [vmem:[#allocation192_spill] sm:$0xff]  ;;  %v7748_v0 = vadd.f32 %v17547_v16, %v10140_v52  ;;  %v8301_v14 = vmax.f32 %v7745_v31, 0.0 }
 0x467   : > { %v17550_v1 = vpop.permute.xlu0 %12136  ;;  %v7172_v61 = vpack.c.bf16 %v7035_v57, %v7034_v58  ;;  %v7740_v40 = vadd.f32 %v17547_v16, %v7739_v43  ;;  %v17572_v7 = vmax.f32 %v20345_v9, %v11924_v34  ;;  %v8299_v4 = vmax.f32 %v7737_v6, 0.0 }
 0x468   : > { %12431 = vrot.lane.b32.xlu1 %v17519_v50, %s13042_s19  ;;  %v12450_v34 = vpack.i.bf16 %v17564_v2, %v17567_v36  ;;  %v8302_v6 = vmax.f32 %v7748_v0, 0.0  ;;  %v11964_v31 = vunpack.i.h.bf16 %v17111_v11 }
 0x469   : > { %12426 = vrot.lane.b32.xlu0 %v17554_v42, %s13042_s19  ;;  %10189 = vmatprep.mubr.msk.bf16.mxu1 %vm7239_vm4, %v7172_v61  ;;  %20346 = vst [vmem:[#allocation184_spill] sm:$0xff] %v17572_v7  ;;  %v8300_v58 = vmax.f32 %v7740_v40, 0.0  ;;  %v17580_v61 = vmax.f32 %v20347_v35, %v11963_v44  ;;  %v11958_v40 = vunpack.i.l.bf16 %v17176_v33  ;;  %v17605_v0 = vpack.i.bf16 %v17567_v36, %v17572_v7  ;;  %v20354_v35 = vld [vmem:[#allocation92_spill] sm:$0xff] }
 0x46a   : > { %10190 = vmatmul.mubr.msk.bf16.gmra.mrb[112].mxu1 %vm7239_vm4, %v7173_v59  ;;  %v12167_v55 = vpop.permute.xlu1 %12166 }
 0x46b   : > { %v12142_v57 = vpop.permute.xlu0 %12141  ;;  %v8416_v26 = vmax.f32 %v8299_v4, %v8300_v58  ;;  %20348 = vst [vmem:[#allocation189_spill] sm:$0xff] %v17580_v61  ;;  %v17598_v9 = vpack.i.bf16 %v17580_v61, %v17564_v2  ;;  %v20350_v58 = vld [vmem:[#allocation151_spill] sm:$0xff] }
 0x46c   : > { %12441 = vrot.lane.b32.xlu1 %v17342_v49, %s13040_s12  ;;  %v12445_v49 = vpack.i.bf16 %v17572_v7, %v17499_v53 }
 0x46d   : > { %12436 = vrot.lane.b32.xlu0 %v17307_v15, %s13040_s12  ;;  %v8452_v52 = vmax.f32 %v8416_v26, %v8301_v14  ;;  %v11959_v15 = vunpack.i.h.bf16 %v17176_v33  ;;  %v17608_v33 = vmax.f32 %v20350_v58, %v11964_v31  ;;  %v20352_v14 = vld [vmem:[#allocation124_spill] sm:$0xff]  ;;  %v12168_v31 = vunpack.i.l.bf16 %v12167_v55 }
 0x46e   : > { %v17582_v43 = vpop.permute.xlu1 %12171  ;;  %v12169_v58 = vunpack.i.h.bf16 %v12167_v55 }
 0x46f   : > { %v17586_v59 = vpop.permute.xlu0 %12156  ;;  %v8488_v32 = vmax.f32 %v8452_v52, %v8302_v6  ;;  %20351 = vst [vmem:[#allocation15_spill] sm:$0xff] %v17608_v33  ;;  %v17613_v26 = vmax.f32 %v20352_v14, %v11959_v15  ;;  %v20356_v6 = vld [vmem:[#allocation43_spill] sm:$0xff]  ;;  %v12143_v15 = vunpack.i.l.bf16 %v12142_v57 }
 0x470   : > { %12451 = vrot.lane.b32.xlu1 %v12450_v34, %s13041_s13  ;;  %v17616_v34 = vmax.f32 %v20354_v35, %v11958_v40  ;;  %v17622_v52 = vmax.f32 %v20356_v6, %v12003_v45  ;;  %v12004_v40 = vunpack.i.h.bf16 %v17188_v46  ;;  %v12475_v45 = vpack.i.bf16 %v17608_v33, %v17580_v61  ;;  %v20358_v6 = vld [vmem:[#allocation8_spill] sm:$0xff] }
 0x471   : > { %12446 = vrot.lane.b32.xlu0 %v12445_v49, %s13041_s13  ;;  %v17601_v4 = vmax.f32 %v17154_v20, %v8488_v32  ;;  %20353 = vst [vmem:[#allocation18_spill] sm:$0xff] %v17613_v26  ;;  %v12148_v20 = vunpack.i.l.bf16 %v17511_v13  ;;  %v12149_v49 = vunpack.i.h.bf16 %v17511_v13 }
 0x472   : > { %v12187_v44 = vpop.permute.xlu1 %12186  ;;  %20355 = vst [vmem:[#allocation163_spill] sm:$0xff] %v17616_v34  ;;  %20357 = vst [vmem:[#allocation102_spill] sm:$0xff] %v17622_v52  ;;  %v12480_v46 = vpack.i.bf16 %v17613_v26, %v17616_v34 }
 0x473   : > { %20349 = vst [vmem:[#allocation185_spill] sm:$0xff] %v17601_v4  ;;  %v12162_v11 = vpop.permute.xlu0 %12161  ;;  %v12144_v4 = vunpack.i.h.bf16 %v12142_v57  ;;  %v12189_v35 = vunpack.i.h.bf16 %v12187_v44  ;;  %v12188_v53 = vunpack.i.l.bf16 %v12187_v44  ;;  %v6663_v13 = vsel %vm6556_vm2, %v20358_v6, %v12148_v20  ;;  %v20359_v57 = vld [vmem:[#allocation73_spill] sm:$0xff] }
 0x474   : > { %12461 = vrot.lane.b32.xlu1 %v17598_v9, %s13042_s19  ;;  %v12164_v36 = vunpack.i.h.bf16 %v12162_v11  ;;  %v12163_v2 = vunpack.i.l.bf16 %v12162_v11  ;;  %v6664_v44 = vsel %vm6556_vm2, %v20359_v57, %v12149_v49  ;;  %v17647_v20 = vpack.i.bf16 %v17616_v34, %v17608_v33  ;;  %v20360_v6 = vld [vmem:[#allocation45_spill] sm:$0xff] }
 0x475   : > { %12456 = vrot.lane.b32.xlu0 %v17605_v0, %s13042_s19  ;;  %v17651_v11 = vpack.i.bf16 %v17622_v52, %v17613_v26  ;;  %v6662_v61 = vsel %vm6556_vm2, %v20360_v6, %v12144_v4  ;;  %v6661_v49 = vsel %vm6556_vm2, %v20361_v25, %v12143_v15 }
 0x476   : > { %v17625_v32 = vpop.permute.xlu1 %12191  ;;  %v6851_v4 = vsel %vm6745_vm3, %v6662_v61, %v12164_v36 }
 0x477   : > { %v17627_v14 = vpop.permute.xlu0 %12176  ;;  %v10143_v55 = vpop.f32.mrb[64].mxu1 }
 0x478   : > { %12471 = vrot.lane.b32.xlu1 %v17411_v54, %s13040_s12  ;;  %v6852_v54 = vsel %vm6745_vm3, %v6663_v13, %v12168_v31  ;;  %v7752_v7 = vpop.f32.mrb[65].mxu1 }
 0x479   : > { %12466 = vrot.lane.b32.xlu0 %v17428_v23, %s13040_s12  ;;  %v6853_v23 = vsel %vm6745_vm3, %v6664_v44, %v12169_v58  ;;  %v7753_v31 = vadd.f32 %v17547_v16, %v7752_v7  ;;  %v10144_v13 = vpop.f32.mrb[66].mxu1  ;;  %v7040_v3 = vsel %vm1215_vm1, %v6852_v54, %v12188_v53  ;;  %v6850_v58 = vsel %vm6745_vm3, %v6661_v49, %v12163_v2 }
 0x47a   : > { %v17643_v38 = vpop.permute.xlu1 %12206  ;;  %v7041_v34 = vsel %vm1215_vm1, %v6853_v23, %v12189_v35  ;;  %v7755_v33 = vpop.f32.mrb[67].mxu1  ;;  %v7761_v44 = vadd.f32 %v17547_v16, %v10143_v55  ;;  %v11999_v7 = vunpack.i.h.bf16 %v17261_v51  ;;  %v11998_v53 = vunpack.i.l.bf16 %v17261_v51  ;;  %v20362_v51 = vld [vmem:[#allocation130_spill] sm:$0xff] }
 0x47b   : > { %v12182_v57 = vpop.permute.xlu0 %12181  ;;  %v7756_v25 = vadd.f32 %v17547_v16, %v7755_v33  ;;  %v7764_v2 = vadd.f32 %v17547_v16, %v10144_v13  ;;  %v7175_v33 = vpack.c.bf16 %v7041_v34, %v7040_v3  ;;  %v12038_v49 = vunpack.i.l.bf16 %v17284_v22  ;;  %v20366_v3 = vld [vmem:[#allocation40_spill] sm:$0xff] }
 0x47c   : > { %v12184_v37 = vunpack.i.h.bf16 %v12182_v57  ;;  %v12183_v26 = vunpack.i.l.bf16 %v12182_v57  ;;  %12481 = vrot.lane.b32.xlu1 %v12480_v46, %s13041_s13  ;;  %v8303_v46 = vmax.f32 %v7753_v31, 0.0  ;;  %v17692_v34 = vmax.f32 %v20366_v3, %v12004_v40 }
 0x47d   : > { %12476 = vrot.lane.b32.xlu0 %v12475_v45, %s13041_s13  ;;  %v8304_v36 = vmax.f32 %v7756_v25, 0.0  ;;  %v8305_v45 = vmax.f32 %v7761_v44, 0.0  ;;  %v8306_v13 = vmax.f32 %v7764_v2, 0.0  ;;  %v12034_v44 = vunpack.i.h.bf16 %v17338_v28  ;;  %v20372_v2 = vld [vmem:[#allocation95_spill] sm:$0xff] }
 0x47e   : > { %v7038_v15 = vsel %vm1215_vm1, %v6850_v58, %v12183_v26  ;;  %v7039_v35 = vsel %vm1215_vm1, %v6851_v4, %v12184_v37  ;;  %v17671_v54 = vpop.permute.xlu1 %12211  ;;  %v17682_v37 = vmax.f32 %v20362_v51, %v11999_v7  ;;  %v20364_v26 = vld [vmem:[#allocation68_spill] sm:$0xff]  ;;  %20367 = vst [vmem:[#allocation200_spill] sm:$0xff] %v17692_v34  ;;  %v12039_v4 = vunpack.i.h.bf16 %v17284_v22 }
 0x47f   : > { %v17674_v61 = vpop.permute.xlu0 %12196  ;;  %v7174_v55 = vpack.c.bf16 %v7039_v35, %v7038_v15  ;;  %v8417_v23 = vmax.f32 %v8303_v46, %v8304_v36  ;;  %v17685_v6 = vmax.f32 %v20364_v26, %v11998_v53  ;;  %v12033_v25 = vunpack.i.l.bf16 %v17338_v28  ;;  %v20368_v53 = vld [vmem:[#allocation128_spill] sm:$0xff]  ;;  %v20371_v46 = vld [vmem:[#allocation131_spill] sm:$0xff] }
 0x480   : > { %12491 = vrot.lane.b32.xlu1 %v17651_v11, %s13042_s19  ;;  %20363 = vst [vmem:[#allocation99_spill] sm:$0xff] %v17682_v37  ;;  %v17704_v40 = vmax.f32 %v20368_v53, %v12038_v49  ;;  %v12505_v28 = vpack.i.bf16 %v17692_v34, %v17622_v52  ;;  %v17722_v36 = vmax.f32 %v20372_v2, %v12034_v44 }
 0x481   : > { %12486 = vrot.lane.b32.xlu0 %v17647_v20, %s13042_s19  ;;  %10193 = vmatprep.mubr.msk.bf16.mxu1 %vm7239_vm4, %v7174_v55  ;;  %20365 = vst [vmem:[#allocation97_spill] sm:$0xff] %v17685_v6  ;;  %v8453_v57 = vmax.f32 %v8417_v23, %v8305_v45  ;;  %v12510_v35 = vpack.i.bf16 %v17682_v37, %v17685_v6  ;;  %v20373_v55 = vld [vmem:[#allocation44_spill] sm:$0xff]  ;;  %v12209_v45 = vunpack.i.h.bf16 %v17643_v38 }
 0x482   : > { %10194 = vmatmul.mubr.msk.bf16.gmra.mrb[116].mxu1 %vm7239_vm4, %v7175_v33  ;;  %v17689_v31 = vpop.permute.xlu1 %12226  ;;  %20369 = vst [vmem:[#allocation202_spill] sm:$0xff] %v17704_v40  ;;  %v17725_v33 = vmax.f32 %v20373_v55, %v12033_v25  ;;  %v17732_v51 = vpack.i.bf16 %v17704_v40, %v17682_v37  ;;  %v17736_v3 = vpack.i.bf16 %v17685_v6, %v17692_v34 }
 0x483   : > { %v17694_v58 = vpop.permute.xlu0 %12201  ;;  %v8489_v7 = vmax.f32 %v8453_v57, %v8306_v13  ;;  %v12208_v13 = vunpack.i.l.bf16 %v17643_v38  ;;  %v12228_v2 = vunpack.i.l.bf16 %v17689_v31 }
 0x484   : > { %12501 = vrot.lane.b32.xlu1 %v17479_v24, %s13040_s12  ;;  %v12540_v53 = vpack.i.bf16 %v17722_v36, %v17725_v33 }
 0x485   : > { %12496 = vrot.lane.b32.xlu0 %v17483_v29, %s13040_s12  ;;  %v17711_v24 = vmax.f32 %v17279_v27, %v8489_v7  ;;  %v17719_v29 = vmax.f32 %v20371_v46, %v12039_v4  ;;  %v12068_v27 = vunpack.i.l.bf16 %v17359_v10  ;;  %v12069_v4 = vunpack.i.h.bf16 %v17359_v10 }
 0x486   : > { %v17706_v15 = vpop.permute.xlu1 %12231  ;;  %v12229_v10 = vunpack.i.h.bf16 %v17689_v31 }
 0x487   : > { %20370 = vst [vmem:[#allocation199_spill] sm:$0xff] %v17711_v24  ;;  %v17713_v22 = vpop.permute.xlu0 %12216  ;;  %v12535_v7 = vpack.i.bf16 %v17719_v29, %v17704_v40  ;;  %v12204_v24 = vunpack.i.h.bf16 %v17694_v58  ;;  %v12203_v40 = vunpack.i.l.bf16 %v17694_v58 }
 0x488   : > { %12511 = vrot.lane.b32.xlu1 %v12510_v35, %s13041_s13  ;;  %v20374_v35 = vld [vmem:[#allocation214_spill] sm:$0xff] }
 0x489   : > { %12506 = vrot.lane.b32.xlu0 %v12505_v28, %s13041_s13  ;;  %v17750_v38 = vmax.f32 %v20374_v35, %v12068_v27  ;;  %v20375_v28 = vld [vmem:[#allocation138_spill] sm:$0xff]  ;;  %v20378_v35 = vld [vmem:[#allocation135_spill] sm:$0xff] }
 0x48a   : > { %v12247_v23 = vpop.permute.xlu1 %12246  ;;  %v6668_v46 = vsel %vm6556_vm2, %v20375_v28, %v12209_v45  ;;  %v6667_v45 = vsel %vm6556_vm2, %v20378_v35, %v12208_v13 }
 0x48b   : > { %v12222_v26 = vpop.permute.xlu0 %12221  ;;  %v10147_v49 = vpop.f32.mrb[68].mxu1  ;;  %v12249_v28 = vunpack.i.h.bf16 %v12247_v23  ;;  %v12248_v34 = vunpack.i.l.bf16 %v12247_v23  ;;  %v6856_v13 = vsel %vm6745_vm3, %v6667_v45, %v12228_v2  ;;  %v6857_v23 = vsel %vm6745_vm3, %v6668_v46, %v12229_v10 }
 0x48c   : > { %v7768_v57 = vpop.f32.mrb[69].mxu1  ;;  %12521 = vrot.lane.b32.xlu1 %v17732_v51, %s13042_s19  ;;  %v7777_v37 = vadd.f32 %v17547_v16, %v10147_v49  ;;  %v12224_v6 = vunpack.i.h.bf16 %v12222_v26  ;;  %v12223_v31 = vunpack.i.l.bf16 %v12222_v26  ;;  %v12064_v49 = vunpack.i.h.bf16 %v17401_v5  ;;  %v20380_v26 = vld [vmem:[#allocation46_spill] sm:$0xff] }
 0x48d   : > { %v7769_v44 = vadd.f32 %v17547_v16, %v7768_v57  ;;  %12516 = vrot.lane.b32.xlu0 %v17736_v3, %s13042_s19  ;;  %v10148_v25 = vpop.f32.mrb[70].mxu1 }
 0x48e   : > { %v7771_v55 = vpop.f32.mrb[71].mxu1  ;;  %v17756_v57 = vpop.permute.xlu1 %12256  ;;  %v7780_v18 = vadd.f32 %v17547_v16, %v10148_v25  ;;  %v8309_v25 = vmax.f32 %v7777_v37, 0.0 }
 0x48f   : > { %20376 = vst [vmem:[#allocation198_spill] sm:$0xff] %v17756_v57  ;;  %v7772_v52 = vadd.f32 %v17547_v16, %v7771_v55  ;;  %v17762_v27 = vpop.permute.xlu0 %12236  ;;  %v8307_v30 = vmax.f32 %v7769_v44, 0.0  ;;  %v12063_v55 = vunpack.i.l.bf16 %v17401_v5  ;;  %v6665_v44 = vsel %vm6556_vm2, %v20380_v26, %v12203_v40 }
 0x490   : > { %20377 = vst [vmem:[#allocation89_spill] sm:$0xff] %v17762_v27  ;;  %12531 = vrot.lane.b32.xlu1 %v17519_v50, %s13040_s12  ;;  %v6666_v50 = vsel %vm6556_vm2, %v20379_v21, %v12204_v24  ;;  %v7045_v27 = vsel %vm1215_vm1, %v6857_v23, %v12249_v28  ;;  %v6854_v46 = vsel %vm6745_vm3, %v6665_v44, %v12223_v31  ;;  %v8310_v2 = vmax.f32 %v7780_v18, 0.0 }
 0x491   : > { %v8308_v58 = vmax.f32 %v7772_v52, 0.0  ;;  %12526 = vrot.lane.b32.xlu0 %v17554_v42, %s13040_s12  ;;  %v7044_v42 = vsel %vm1215_vm1, %v6856_v13, %v12248_v34  ;;  %v6855_v10 = vsel %vm6745_vm3, %v6666_v50, %v12224_v6  ;;  %v17791_v34 = vpack.i.bf16 %v17750_v38, %v17722_v36 }
 0x492   : > { %v12262_v35 = vpop.permute.xlu1 %12261  ;;  %v17798_v18 = vpack.i.bf16 %v17725_v33, %v17719_v29 }
 0x493   : > { %v8418_v52 = vmax.f32 %v8307_v30, %v8308_v58  ;;  %v12242_v63 = vpop.permute.xlu0 %12241  ;;  %v7177_v58 = vpack.c.bf16 %v7045_v27, %v7044_v42  ;;  %v12264_v23 = vunpack.i.h.bf16 %v12262_v35 }
 0x494   : > { %v12244_v57 = vunpack.i.h.bf16 %v12242_v63  ;;  %v12243_v5 = vunpack.i.l.bf16 %v12242_v63  ;;  %12541 = vrot.lane.b32.xlu1 %v12540_v53, %s13041_s13  ;;  %v20381_v63 = vld [vmem:[#allocation49_spill] sm:$0xff] }
 0x495   : > { %v8454_v21 = vmax.f32 %v8418_v52, %v8309_v25  ;;  %12536 = vrot.lane.b32.xlu0 %v12535_v7, %s13041_s13  ;;  %v17794_v24 = vmax.f32 %v20381_v63, %v12069_v4  ;;  %v20382_v7 = vld [vmem:[#allocation5_spill] sm:$0xff]  ;;  %v12098_v4 = vunpack.i.l.bf16 %v17422_v8  ;;  %v12099_v25 = vunpack.i.h.bf16 %v17422_v8 }
 0x496   : > { %v7042_v37 = vsel %vm1215_vm1, %v6854_v46, %v12243_v5  ;;  %v7043_v30 = vsel %vm1215_vm1, %v6855_v10, %v12244_v57  ;;  %v17787_v40 = vpop.permute.xlu1 %4248  ;;  %v17801_v28 = vmax.f32 %v20382_v7, %v12064_v49  ;;  %v20383_v57 = vld [vmem:[#allocation136_spill] sm:$0xff]  ;;  %v12263_v49 = vunpack.i.l.bf16 %v12262_v35  ;;  %v20390_v7 = vld [vmem:[#allocation134_spill] sm:$0xff] }
 0x497   : > { %v8490_v53 = vmax.f32 %v8454_v21, %v8310_v2  ;;  %v12252_v45 = vpop.permute.xlu0 %12251  ;;  %v7176_v6 = vpack.c.bf16 %v7043_v30, %v7042_v37  ;;  %v17804_v31 = vmax.f32 %v20383_v57, %v12063_v55  ;;  %v12565_v27 = vpack.i.bf16 %v17794_v24, %v17750_v38  ;;  %v20385_v35 = vld [vmem:[#allocation140_spill] sm:$0xff]  ;;  %v20388_v30 = vld [vmem:[#allocation165_spill] sm:$0xff] }
 0x498   : > { %12551 = vrot.lane.b32.xlu1 %v17791_v34, %s13042_s19  ;;  %v12254_v50 = vunpack.i.h.bf16 %v12252_v45  ;;  %v12253_v26 = vunpack.i.l.bf16 %v12252_v45  ;;  %v17824_v5 = vmax.f32 %v20385_v35, %v12098_v4  ;;  %v12094_v46 = vunpack.i.h.bf16 %v17463_v48  ;;  %v20387_v37 = vld [vmem:[#allocation48_spill] sm:$0xff]  ;;  %v20389_v45 = vld [vmem:[#allocation51_spill] sm:$0xff] }
 0x499   : > { %v17810_v13 = vmax.f32 %v17391_v56, %v8490_v53  ;;  %12546 = vrot.lane.b32.xlu0 %v17798_v18, %s13042_s19  ;;  %10197 = vmatprep.mubr.msk.bf16.mxu1 %vm7239_vm4, %v7176_v6  ;;  %v12570_v42 = vpack.i.bf16 %v17801_v28, %v17804_v31  ;;  %v12093_v8 = vunpack.i.l.bf16 %v17463_v48  ;;  %v12128_v21 = vunpack.i.l.bf16 %v17475_v39 }
 0x49a   : > { %10198 = vmatmul.mubr.msk.bf16.gmra.mrb[120].mxu1 %vm7239_vm4, %v7177_v58  ;;  %v12272_v55 = vpop.permute.xlu1 %12271  ;;  %20386 = vst [vmem:[#allocation118_spill] sm:$0xff] %v17824_v5  ;;  %v6671_v63 = vsel %vm6556_vm2, %v20388_v30, %v12263_v49  ;;  %v6670_v6 = vsel %vm6556_vm2, %v20389_v45, %v12254_v50  ;;  %v6669_v57 = vsel %vm6556_vm2, %v20390_v7, %v12253_v26  ;;  %v20391_v7 = vld [vmem:[#allocation142_spill] sm:$0xff] }
 0x49b   : > { %20384 = vst [vmem:[#allocation147_spill] sm:$0xff] %v17810_v13  ;;  %v12267_v44 = vpop.permute.xlu0 %12266  ;;  %v12274_v56 = vunpack.i.h.bf16 %v12272_v55  ;;  %v12273_v52 = vunpack.i.l.bf16 %v12272_v55 }
 0x49c   : > { %12561 = vrot.lane.b32.xlu1 %v17598_v9, %s13040_s12  ;;  %v12269_v10 = vunpack.i.h.bf16 %v12267_v44  ;;  %v12268_v2 = vunpack.i.l.bf16 %v12267_v44  ;;  %v6672_v9 = vsel %vm6556_vm2, %v20387_v37, %v12264_v23 }
 0x49d   : > { %12556 = vrot.lane.b32.xlu0 %v17605_v0, %s13040_s12  ;;  %v6861_v48 = vsel %vm6745_vm3, %v6672_v9, %v12274_v56  ;;  %v6860_v44 = vsel %vm6745_vm3, %v6671_v63, %v12273_v52 }
 0x49e   : > { %v12282_v53 = vpop.permute.xlu1 %12281  ;;  %v6858_v49 = vsel %vm6745_vm3, %v6669_v57, %v12268_v2  ;;  %v6859_v50 = vsel %vm6745_vm3, %v6670_v6, %v12269_v10  ;;  %v17855_v10 = vpack.i.bf16 %v17804_v31, %v17794_v24  ;;  %v20392_v57 = vld [vmem:[#allocation187_spill] sm:$0xff] }
 0x49f   : > { %v12284_v58 = vunpack.i.h.bf16 %v12282_v53  ;;  %v12283_v4 = vunpack.i.l.bf16 %v12282_v53  ;;  %v12277_v0 = vpop.permute.xlu0 %12276  ;;  %v10151_v55 = vpop.f32.mrb[72].mxu1 }
 0x4a0   : > { %v12279_v35 = vunpack.i.h.bf16 %v12277_v0  ;;  %v12278_v23 = vunpack.i.l.bf16 %v12277_v0  ;;  %v7784_v37 = vpop.f32.mrb[73].mxu1  ;;  %12571 = vrot.lane.b32.xlu1 %v12570_v42, %s13041_s13  ;;  %v17851_v42 = vpack.i.bf16 %v17824_v5, %v17801_v28  ;;  %v12129_v55 = vunpack.i.h.bf16 %v17475_v39 }
 0x4a1   : > { %v7048_v30 = vsel %vm1215_vm1, %v6860_v44, %v12283_v4  ;;  %v7049_v26 = vsel %vm1215_vm1, %v6861_v48, %v12284_v58  ;;  %12566 = vrot.lane.b32.xlu0 %v12565_v27, %s13041_s13  ;;  %v10152_v53 = vpop.f32.mrb[74].mxu1  ;;  %v17858_v27 = vmax.f32 %v20391_v7, %v12099_v25  ;;  %v17861_v58 = vmax.f32 %v20392_v57, %v12094_v46  ;;  %v20393_v4 = vld [vmem:[#allocation129_spill] sm:$0xff]  ;;  %v20394_v48 = vld [vmem:[#allocation90_spill] sm:$0xff]  ;;  %v20398_v7 = vld [vmem:[#allocation139_spill] sm:$0xff] }
 0x4a2   : > { %v7046_v56 = vsel %vm1215_vm1, %v6858_v49, %v12278_v23  ;;  %v7047_v52 = vsel %vm1215_vm1, %v6859_v50, %v12279_v35  ;;  %v7786_v9 = vpop.f32.mrb[75].mxu1  ;;  %v12292_v63 = vpop.permute.xlu1 %12291  ;;  %v7179_v2 = vpack.c.bf16 %v7049_v26, %v7048_v30  ;;  %v17864_v0 = vmax.f32 %v20393_v4, %v12093_v8  ;;  %v20395_v26 = vld [vmem:[#allocation52_spill] sm:$0xff] }
 0x4a3   : > { %v12287_v45 = vpop.permute.xlu0 %12286  ;;  %v7178_v6 = vpack.c.bf16 %v7047_v52, %v7046_v56  ;;  %v17870_v44 = vmax.f32 %v20394_v48, %v12128_v21  ;;  %v12119_v25 = vunpack.i.h.bf16 %v17505_v47  ;;  %v12294_v46 = vunpack.i.h.bf16 %v12292_v63 }
 0x4a4   : > { %12581 = vrot.lane.b32.xlu1 %v17851_v42, %s13042_s19  ;;  %v12293_v35 = vunpack.i.l.bf16 %v12292_v63  ;;  %v12289_v23 = vunpack.i.h.bf16 %v12287_v45  ;;  %v12288_v37 = vunpack.i.l.bf16 %v12287_v45  ;;  %v12595_v21 = vpack.i.bf16 %v17858_v27, %v17824_v5  ;;  %v20396_v63 = vld [vmem:[#allocation74_spill] sm:$0xff]  ;;  %v20397_v45 = vld [vmem:[#allocation141_spill] sm:$0xff] }
 0x4a5   : > { %12576 = vrot.lane.b32.xlu0 %v17855_v10, %s13042_s19  ;;  %10201 = vmatprep.mubr.msk.bf16.mxu1 %vm7239_vm4, %v7178_v6  ;;  %v12600_v30 = vpack.i.bf16 %v17861_v58, %v17864_v0  ;;  %v17884_v53 = vmax.f32 %v20395_v26, %v12129_v55  ;;  %v17890_v9 = vpack.i.bf16 %v17870_v44, %v17861_v58  ;;  %v20399_v55 = vld [vmem:[#allocation9_spill] sm:$0xff] }
 0x4a6   : > { %10202 = vmatmul.mubr.msk.bf16.gmra.mrb[124].mxu1 %vm7239_vm4, %v7179_v2  ;;  %v12302_v8 = vpop.permute.xlu1 %12301  ;;  %v12118_v2 = vunpack.i.l.bf16 %v17505_v47  ;;  %v6676_v6 = vsel %vm6556_vm2, %v20397_v45, %v12294_v46  ;;  %v6675_v57 = vsel %vm6556_vm2, %v20398_v7, %v12293_v35  ;;  %v6674_v48 = vsel %vm6556_vm2, %v20399_v55, %v12289_v23 }
 0x4a7   : > { %v12297_v49 = vpop.permute.xlu0 %12296  ;;  %v12304_v50 = vunpack.i.h.bf16 %v12302_v8  ;;  %v12303_v39 = vunpack.i.l.bf16 %v12302_v8 }
 0x4a8   : > { %12591 = vrot.lane.b32.xlu1 %v17651_v11, %s13040_s12  ;;  %v12299_v56 = vunpack.i.h.bf16 %v12297_v49  ;;  %v12298_v52 = vunpack.i.l.bf16 %v12297_v49  ;;  %v17893_v11 = vmax.f32 %v20396_v63, %v12119_v25 }
 0x4a9   : > { %12586 = vrot.lane.b32.xlu0 %v17647_v20, %s13040_s12  ;;  %v20400_v20 = vld [vmem:[#allocation53_spill] sm:$0xff]  ;;  %v6864_v25 = vsel %vm6745_vm3, %v6675_v57, %v12303_v39  ;;  %v6865_v47 = vsel %vm6745_vm3, %v6676_v6, %v12304_v50  ;;  %v12153_v57 = vunpack.i.l.bf16 %v17541_v17 }
 0x4aa   : > { %v12312_v4 = vpop.permute.xlu1 %12311  ;;  %v6673_v8 = vsel %vm6556_vm2, %v20400_v20, %v12288_v37  ;;  %v6863_v35 = vsel %vm6745_vm3, %v6674_v48, %v12299_v56  ;;  %v20401_v37 = vld [vmem:[#allocation55_spill] sm:$0xff]  ;;  %v12625_v48 = vpack.i.bf16 %v17884_v53, %v17870_v44 }
 0x4ab   : > { %v12314_v49 = vunpack.i.h.bf16 %v12312_v4  ;;  %v12313_v26 = vunpack.i.l.bf16 %v12312_v4  ;;  %v12307_v13 = vpop.permute.xlu0 %12306  ;;  %v6862_v46 = vsel %vm6745_vm3, %v6673_v8, %v12298_v52  ;;  %v17913_v7 = vmax.f32 %v20401_v37, %v12118_v2 }
 0x4ac   : > { %v12309_v63 = vunpack.i.h.bf16 %v12307_v13  ;;  %v12308_v5 = vunpack.i.l.bf16 %v12307_v13  ;;  %12601 = vrot.lane.b32.xlu1 %v12600_v30, %s13041_s13  ;;  %v17919_v52 = vpack.i.bf16 %v17864_v0, %v17858_v27  ;;  %v12154_v8 = vunpack.i.h.bf16 %v17541_v17 }
 0x4ad   : > { %v7052_v23 = vsel %vm1215_vm1, %v6864_v25, %v12313_v26  ;;  %v7053_v45 = vsel %vm1215_vm1, %v6865_v47, %v12314_v49  ;;  %12596 = vrot.lane.b32.xlu0 %v12595_v21, %s13041_s13  ;;  %v12630_v20 = vpack.i.bf16 %v17893_v11, %v17913_v7  ;;  %v12139_v49 = vunpack.i.h.bf16 %v17550_v1 }
 0x4ae   : > { %v7050_v39 = vsel %vm1215_vm1, %v6862_v46, %v12308_v5  ;;  %v7051_v50 = vsel %vm1215_vm1, %v6863_v35, %v12309_v63  ;;  %v12322_v13 = vpop.permute.xlu1 %12321  ;;  %v7181_v6 = vpack.c.bf16 %v7053_v45, %v7052_v23  ;;  %v20402_v46 = vld [vmem:[#allocation24_spill] sm:$0xff]  ;;  %v12138_v23 = vunpack.i.l.bf16 %v17550_v1 }
 0x4af   : > { %v12317_v30 = vpop.permute.xlu0 %12316  ;;  %v7180_v56 = vpack.c.bf16 %v7051_v50, %v7050_v39  ;;  %v12324_v21 = vunpack.i.h.bf16 %v12322_v13  ;;  %v12323_v2 = vunpack.i.l.bf16 %v12322_v13  ;;  %v17935_v35 = vmax.f32 %v20402_v46, %v12153_v57  ;;  %v20404_v50 = vld [vmem:[#allocation115_spill] sm:$0xff] }
 0x4b0   : > { %12611 = vrot.lane.b32.xlu1 %v17890_v9, %s13042_s19  ;;  %v12319_v4 = vunpack.i.h.bf16 %v12317_v30  ;;  %v12318_v5 = vunpack.i.l.bf16 %v12317_v30 }
 0x4b1   : > { %12606 = vrot.lane.b32.xlu0 %v17919_v52, %s13042_s19  ;;  %10205 = vmatprep.mubr.msk.bf16.mxu1 %vm7239_vm4, %v7180_v56  ;;  %20403 = vst [vmem:[#allocation190_spill] sm:$0xff] %v17935_v35  ;;  %v6680_v17 = vsel %vm6556_vm2, %v20404_v50, %v12324_v21  ;;  %v6679_v13 = vsel %vm6556_vm2, %v16868_v62, %v12323_v2  ;;  %v20405_v56 = vld [vmem:[#allocation56_spill] sm:$0xff] }
 0x4b2   : > { %10206 = vmatmul.mubr.msk.bf16.gmra.mrb[128].mxu1 %vm7239_vm4, %v7181_v6  ;;  %v12332_v55 = vpop.permute.xlu1 %12331  ;;  %v6678_v6 = vsel %vm6556_vm2, %v16797_v12, %v12319_v4  ;;  %v6677_v57 = vsel %vm6556_vm2, %v20405_v56, %v12318_v5 }
 0x4b3   : > { %v12334_v26 = vunpack.i.h.bf16 %v12332_v55  ;;  %v12333_v25 = vunpack.i.l.bf16 %v12332_v55  ;;  %v12327_v47 = vpop.permute.xlu0 %12326  ;;  %v10155_v63 = vpop.f32.mrb[76].mxu1 }
 0x4b4   : > { %v12329_v45 = vunpack.i.h.bf16 %v12327_v47  ;;  %v12328_v37 = vunpack.i.l.bf16 %v12327_v47  ;;  %v7796_v39 = vpop.f32.mrb[77].mxu1  ;;  %12621 = vrot.lane.b32.xlu1 %v17732_v51, %s13040_s12  ;;  %v7805_v21 = vadd.f32 %v17547_v16, %v10155_v63 }
 0x4b5   : > { %v7797_v30 = vadd.f32 %v17547_v16, %v7796_v39  ;;  %12616 = vrot.lane.b32.xlu0 %v17736_v3, %s13040_s12  ;;  %v10156_v1 = vpop.f32.mrb[78].mxu1  ;;  %v6868_v51 = vsel %vm6745_vm3, %v6679_v13, %v12333_v25  ;;  %v6869_v55 = vsel %vm6745_vm3, %v6680_v17, %v12334_v26 }
 0x4b6   : > { %v7799_v47 = vpop.f32.mrb[79].mxu1  ;;  %v12342_v62 = vpop.permute.xlu1 %12341  ;;  %v6866_v2 = vsel %vm6745_vm3, %v6677_v57, %v12328_v37  ;;  %v6867_v3 = vsel %vm6745_vm3, %v6678_v6, %v12329_v45  ;;  %v7808_v50 = vadd.f32 %v17547_v16, %v10156_v1  ;;  %v17966_v6 = vpack.i.bf16 %v17935_v35, %v17893_v11 }
 0x4b7   : > { %v7800_v12 = vadd.f32 %v17547_v16, %v7799_v47  ;;  %v12344_v4 = vunpack.i.h.bf16 %v12342_v62  ;;  %v12343_v46 = vunpack.i.l.bf16 %v12342_v62  ;;  %v12337_v39 = vpop.permute.xlu0 %12336  ;;  %v8311_v26 = vmax.f32 %v7797_v30, 0.0  ;;  %v20408_v62 = vld [vmem:[#allocation150_spill] sm:$0xff] }
 0x4b8   : > { %v12339_v5 = vunpack.i.h.bf16 %v12337_v39  ;;  %v12338_v56 = vunpack.i.l.bf16 %v12337_v39  ;;  %12631 = vrot.lane.b32.xlu1 %v12630_v20, %s13041_s13  ;;  %v8313_v1 = vmax.f32 %v7805_v21, 0.0  ;;  %v12174_v21 = vunpack.i.h.bf16 %v17582_v43 }
 0x4b9   : > { %v8312_v25 = vmax.f32 %v7800_v12, 0.0  ;;  %v7056_v63 = vsel %vm1215_vm1, %v6868_v51, %v12343_v46  ;;  %v7057_v17 = vsel %vm1215_vm1, %v6869_v55, %v12344_v4  ;;  %12626 = vrot.lane.b32.xlu0 %v12625_v48, %s13041_s13  ;;  %v17970_v51 = vpack.i.bf16 %v17913_v7, %v17884_v53  ;;  %v20406_v55 = vld [vmem:[#allocation148_spill] sm:$0xff]  ;;  %v20409_v12 = vld [vmem:[#allocation26_spill] sm:$0xff] }
 0x4ba   : > { %v7183_v37 = vpack.c.bf16 %v7057_v17, %v7056_v63  ;;  %v7054_v13 = vsel %vm1215_vm1, %v6866_v2, %v12338_v56  ;;  %v7055_v57 = vsel %vm1215_vm1, %v6867_v3, %v12339_v5  ;;  %v12352_v45 = vpop.permute.xlu1 %12351  ;;  %v17973_v48 = vmax.f32 %v20406_v55, %v12154_v8 }
 0x4bb   : > { %v8419_v20 = vmax.f32 %v8311_v26, %v8312_v25  ;;  %v7182_v30 = vpack.c.bf16 %v7055_v57, %v7054_v13  ;;  %v12347_v47 = vpop.permute.xlu0 %12346  ;;  %v17976_v2 = vmax.f32 %v20408_v62, %v12139_v49  ;;  %v17979_v4 = vmax.f32 %v20409_v12, %v12138_v23  ;;  %v20410_v57 = vld [vmem:[#allocation149_spill] sm:$0xff] }
 0x4bc   : > { %20407 = vst [vmem:[#allocation93_spill] sm:$0xff] %v17973_v48  ;;  %12641 = vrot.lane.b32.xlu1 %v17966_v6, %s13042_s19  ;;  %v12173_v46 = vunpack.i.l.bf16 %v17582_v43  ;;  %v8314_v39 = vmax.f32 %v7808_v50, 0.0  ;;  %v12159_v8 = vunpack.i.h.bf16 %v17586_v59  ;;  %v12158_v49 = vunpack.i.l.bf16 %v17586_v59 }
 0x4bd   : > { %v8455_v3 = vmax.f32 %v8419_v20, %v8313_v1  ;;  %12636 = vrot.lane.b32.xlu0 %v17970_v51, %s13042_s19  ;;  %10209 = vmatprep.mubr.msk.bf16.mxu1 %vm7239_vm4, %v7182_v30  ;;  %v12354_v23 = vunpack.i.h.bf16 %v12352_v45  ;;  %v12353_v5 = vunpack.i.l.bf16 %v12352_v45  ;;  %v12349_v25 = vunpack.i.h.bf16 %v12347_v47 }
 0x4be   : > { %10210 = vmatmul.mubr.msk.bf16.gmra.mrb[132].mxu1 %vm7239_vm4, %v7183_v37  ;;  %v12362_v56 = vpop.permute.xlu1 %12361  ;;  %v12348_v43 = vunpack.i.l.bf16 %v12347_v47  ;;  %v12655_v13 = vpack.i.bf16 %v17973_v48, %v17935_v35  ;;  %v12660_v59 = vpack.i.bf16 %v17976_v2, %v17979_v4  ;;  %v18000_v45 = vmax.f32 %v20410_v57, %v12174_v21  ;;  %v20412_v37 = vld [vmem:[#allocation146_spill] sm:$0xff]  ;;  %v20421_v35 = vld [vmem:[#allocation155_spill] sm:$0xff] }
 0x4bf   : > { %v17991_v26 = vmax.f32 %v8455_v3, %v8314_v39  ;;  %v12357_v50 = vpop.permute.xlu0 %12356  ;;  %v12364_v63 = vunpack.i.h.bf16 %v12362_v56  ;;  %v12363_v17 = vunpack.i.l.bf16 %v12362_v56  ;;  %v18003_v1 = vmax.f32 %v20412_v37, %v12173_v46  ;;  %v20414_v47 = vld [vmem:[#allocation62_spill] sm:$0xff]  ;;  %v20418_v46 = vld [vmem:[#allocation71_spill] sm:$0xff] }
 0x4c0   : > { %12651 = vrot.lane.b32.xlu1 %v17791_v34, %s13040_s12  ;;  %20411 = vst [vmem:[#allocation64_spill] sm:$0xff] %v18000_v45  ;;  %v12359_v20 = vunpack.i.h.bf16 %v12357_v50  ;;  %v12358_v30 = vunpack.i.l.bf16 %v12357_v50  ;;  %v18008_v55 = vmax.f32 %v20414_v47, %v12159_v8  ;;  %v20416_v34 = vld [vmem:[#allocation58_spill] sm:$0xff]  ;;  %v6684_v12 = vsel %vm6556_vm2, %v16978_v41, %v12354_v23  ;;  %v20419_v56 = vld [vmem:[#allocation91_spill] sm:$0xff] }
 0x4c1   : > { %20413 = vst [vmem:[#allocation207_spill] sm:$0xff] %v18003_v1  ;;  %12646 = vrot.lane.b32.xlu0 %v17798_v18, %s13040_s12  ;;  %v18011_v62 = vmax.f32 %v20416_v34, %v12158_v49  ;;  %v6683_v21 = vsel %vm6556_vm2, %v16981_v19, %v12353_v5  ;;  %v6682_v3 = vsel %vm6556_vm2, %v20418_v46, %v12349_v25 }
 0x4c2   : > { %20415 = vst [vmem:[#allocation19_spill] sm:$0xff] %v18008_v55  ;;  %v12372_v39 = vpop.permute.xlu1 %12371  ;;  %v6681_v50 = vsel %vm6556_vm2, %v20419_v56, %v12348_v43  ;;  %v6872_v37 = vsel %vm6745_vm3, %v6683_v21, %v12363_v17  ;;  %v6873_v49 = vsel %vm6745_vm3, %v6684_v12, %v12364_v63  ;;  %v6871_v19 = vsel %vm6745_vm3, %v6682_v3, %v12359_v20 }
 0x4c3   : > { %20417 = vst [vmem:[#allocation65_spill] sm:$0xff] %v18011_v62  ;;  %v12374_v18 = vunpack.i.h.bf16 %v12372_v39  ;;  %v12373_v57 = vunpack.i.l.bf16 %v12372_v39  ;;  %v12367_v8 = vpop.permute.xlu0 %12366  ;;  %v6870_v41 = vsel %vm6745_vm3, %v6681_v50, %v12358_v30  ;;  %v18038_v3 = vpack.i.bf16 %v17979_v4, %v17973_v48 }
 0x4c4   : > { %v12369_v47 = vunpack.i.h.bf16 %v12367_v8  ;;  %v12368_v34 = vunpack.i.l.bf16 %v12367_v8  ;;  %12661 = vrot.lane.b32.xlu1 %v12660_v59, %s13041_s13  ;;  %v10159_v25 = vpop.f32.mrb[80].mxu1  ;;  %v18033_v59 = vpack.i.bf16 %v18003_v1, %v17976_v2  ;;  %v12193_v56 = vunpack.i.l.bf16 %v17625_v32 }
 0x4c5   : > { %v7060_v23 = vsel %vm1215_vm1, %v6872_v37, %v12373_v57  ;;  %v7061_v5 = vsel %vm1215_vm1, %v6873_v49, %v12374_v18  ;;  %12656 = vrot.lane.b32.xlu0 %v12655_v13, %s13041_s13  ;;  %v7812_v12 = vpop.f32.mrb[81].mxu1  ;;  %v12194_v13 = vunpack.i.h.bf16 %v17625_v32  ;;  %v12685_v18 = vpack.i.bf16 %v18000_v45, %v18003_v1 }
 0x4c6   : > { %v7185_v43 = vpack.c.bf16 %v7061_v5, %v7060_v23  ;;  %v7058_v17 = vsel %vm1215_vm1, %v6870_v41, %v12368_v34  ;;  %v7059_v63 = vsel %vm1215_vm1, %v6871_v19, %v12369_v47  ;;  %v12382_v21 = vpop.permute.xlu1 %12381  ;;  %v7813_v20 = vadd.f32 %v17547_v16, %v7812_v12  ;;  %v10160_v39 = vpop.f32.mrb[82].mxu1 }
 0x4c7   : > { %v7184_v30 = vpack.c.bf16 %v7059_v63, %v7058_v17  ;;  %v12377_v46 = vpop.permute.xlu0 %12376  ;;  %v7815_v50 = vpop.f32.mrb[83].mxu1  ;;  %v12690_v57 = vpack.i.bf16 %v18008_v55, %v18011_v62  ;;  %v12179_v8 = vunpack.i.h.bf16 %v17627_v14  ;;  %v7821_v37 = vadd.f32 %v17547_v16, %v10159_v25 }
 0x4c8   : > { %12671 = vrot.lane.b32.xlu1 %v18033_v59, %s13042_s19  ;;  %v7816_v49 = vadd.f32 %v17547_v16, %v7815_v50  ;;  %v12384_v47 = vunpack.i.h.bf16 %v12382_v21  ;;  %v7824_v32 = vadd.f32 %v17547_v16, %v10160_v39  ;;  %v12383_v34 = vunpack.i.l.bf16 %v12382_v21  ;;  %v20420_v50 = vld [vmem:[#allocation12_spill] sm:$0xff] }
 0x4c9   : > { %12666 = vrot.lane.b32.xlu0 %v18038_v3, %s13042_s19  ;;  %10213 = vmatprep.mubr.msk.bf16.mxu1 %vm7239_vm4, %v7184_v30  ;;  %v12379_v41 = vunpack.i.h.bf16 %v12377_v46  ;;  %v12378_v19 = vunpack.i.l.bf16 %v12377_v46  ;;  %v12178_v5 = vunpack.i.l.bf16 %v17627_v14  ;;  %v8315_v17 = vmax.f32 %v7813_v20, 0.0  ;;  %v20422_v46 = vld [vmem:[#allocation108_spill] sm:$0xff] }
 0x4ca   : > { %10214 = vmatmul.mubr.msk.bf16.gmra.mrb[136].mxu1 %vm7239_vm4, %v7185_v43  ;;  %v12392_v23 = vpop.permute.xlu1 %12391  ;;  %v8316_v25 = vmax.f32 %v7816_v49, 0.0  ;;  %v18058_v1 = vmax.f32 %v20420_v50, %v12194_v13  ;;  %v18061_v48 = vmax.f32 %v20421_v35, %v12193_v56  ;;  %v8317_v21 = vmax.f32 %v7821_v37, 0.0  ;;  %v20423_v35 = vld [vmem:[#allocation35_spill] sm:$0xff] }
 0x4cb   : > { %v12393_v63 = vunpack.i.l.bf16 %v12392_v23  ;;  %v12387_v12 = vpop.permute.xlu0 %12386  ;;  %v12394_v30 = vunpack.i.h.bf16 %v12392_v23  ;;  %v6688_v14 = vsel %vm6556_vm2, %v17160_v60, %v12384_v47  ;;  %v8318_v39 = vmax.f32 %v7824_v32, 0.0  ;;  %v20424_v49 = vld [vmem:[#allocation159_spill] sm:$0xff] }
 0x4cc   : > { %v12388_v16 = vunpack.i.l.bf16 %v12387_v12  ;;  %12681 = vrot.lane.b32.xlu1 %v17851_v42, %s13040_s12  ;;  %v8420_v43 = vmax.f32 %v8315_v17, %v8316_v25  ;;  %v12389_v20 = vunpack.i.h.bf16 %v12387_v12  ;;  %v6687_v13 = vsel %vm6556_vm2, %v20422_v46, %v12383_v34 }
 0x4cd   : > { %12676 = vrot.lane.b32.xlu0 %v17855_v10, %s13040_s12  ;;  %v6686_v56 = vsel %vm6556_vm2, %v20423_v35, %v12379_v41  ;;  %v6685_v23 = vsel %vm6556_vm2, %v20424_v49, %v12378_v19  ;;  %v6876_v17 = vsel %vm6745_vm3, %v6687_v13, %v12393_v63  ;;  %v6877_v12 = vsel %vm6745_vm3, %v6688_v14, %v12394_v30 }
 0x4ce   : > { %v12402_v42 = vpop.permute.xlu1 %12401  ;;  %v8456_v37 = vmax.f32 %v8420_v43, %v8317_v21  ;;  %v6874_v10 = vsel %vm6745_vm3, %v6685_v23, %v12388_v16  ;;  %v6875_v41 = vsel %vm6745_vm3, %v6686_v56, %v12389_v20  ;;  %v18089_v14 = vpack.i.bf16 %v18061_v48, %v18008_v55  ;;  %v20426_v20 = vld [vmem:[#allocation67_spill] sm:$0xff] }
 0x4cf   : > { %v12404_v25 = vunpack.i.h.bf16 %v12402_v42  ;;  %v12403_v60 = vunpack.i.l.bf16 %v12402_v42  ;;  %v12397_v47 = vpop.permute.xlu0 %12396  ;;  %v18095_v46 = vmax.f32 %v20426_v20, %v12178_v5  ;;  %v12213_v56 = vunpack.i.l.bf16 %v17671_v54 }
 0x4d0   : > { %v12399_v32 = vunpack.i.h.bf16 %v12397_v47  ;;  %v12398_v50 = vunpack.i.l.bf16 %v12397_v47  ;;  %12691 = vrot.lane.b32.xlu1 %v12690_v57, %s13041_s13  ;;  %v18079_v34 = vmax.f32 %v8456_v37, %v8318_v39  ;;  %v20425_v57 = vld [vmem:[#allocation153_spill] sm:$0xff]  ;;  %v12715_v5 = vpack.i.bf16 %v18058_v1, %v18061_v48 }
 0x4d1   : > { %v7064_v19 = vsel %vm1215_vm1, %v6876_v17, %v12403_v60  ;;  %v7065_v21 = vsel %vm1215_vm1, %v6877_v12, %v12404_v25  ;;  %12686 = vrot.lane.b32.xlu0 %v12685_v18, %s13041_s13  ;;  %v18092_v39 = vmax.f32 %v20425_v57, %v12179_v8  ;;  %v18099_v18 = vpack.i.bf16 %v18011_v62, %v18000_v45  ;;  %v18114_v60 = vld [vmem:[%s18778_s3] ss:$0 sm:$0xff] }
 0x4d2   : > { %v7187_v63 = vpack.c.bf16 %v7065_v21, %v7064_v19  ;;  %v7062_v43 = vsel %vm1215_vm1, %v6874_v10, %v12398_v50  ;;  %v7063_v30 = vsel %vm1215_vm1, %v6875_v41, %v12399_v32  ;;  %v12412_v16 = vpop.permute.xlu1 %12411  ;;  %v12214_v37 = vunpack.i.h.bf16 %v17671_v54  ;;  %v20427_v21 = vld [vmem:[#allocation152_spill] sm:$0xff] }
 0x4d3   : > { %v7186_v13 = vpack.c.bf16 %v7063_v30, %v7062_v43  ;;  %v12407_v35 = vpop.permute.xlu0 %12406  ;;  %v12414_v49 = vunpack.i.h.bf16 %v12412_v16  ;;  %v12413_v23 = vunpack.i.l.bf16 %v12412_v16  ;;  %v12199_v17 = vunpack.i.h.bf16 %v17674_v61  ;;  %v20428_v30 = vld [vmem:[#allocation170_spill] sm:$0xff] }
 0x4d4   : > { %12701 = vrot.lane.b32.xlu1 %v18089_v14, %s13042_s19  ;;  %v12409_v42 = vunpack.i.h.bf16 %v12407_v35  ;;  %v12408_v25 = vunpack.i.l.bf16 %v12407_v35  ;;  %v12198_v32 = vunpack.i.l.bf16 %v17674_v61  ;;  %v12720_v19 = vpack.i.bf16 %v18092_v39, %v18095_v46  ;;  %v20429_v61 = vld [vmem:[#allocation167_spill] sm:$0xff]  ;;  %v20430_v35 = vld [vmem:[#allocation6_spill] sm:$0xff] }
 0x4d5   : > { %12696 = vrot.lane.b32.xlu0 %v18099_v18, %s13042_s19  ;;  %v10163_v8 = vpop.f32.mrb[84].mxu1  ;;  %10217 = vmatprep.mubr.msk.bf16.mxu1 %vm7239_vm4, %v7186_v13  ;;  %v18123_v43 = vmax.f32 %v20427_v21, %v12213_v56  ;;  %v6692_v16 = vsel %vm6556_vm2, %v20428_v30, %v12414_v49  ;;  %v6691_v13 = vsel %vm6556_vm2, %v20429_v61, %v12413_v23  ;;  %v20431_v56 = vld [vmem:[#allocation94_spill] sm:$0xff] }
 0x4d6   : > { %v7837_v47 = vadd.f32 %v18114_v60, %v10163_v8  ;;  %v7828_v12 = vpop.f32.mrb[85].mxu1  ;;  %10218 = vmatmul.mubr.msk.bf16.gmra.mrb[140].mxu1 %vm7239_vm4, %v7187_v63  ;;  %v12422_v10 = vpop.permute.xlu1 %12421  ;;  %v6690_v8 = vsel %vm6556_vm2, %v20430_v35, %v12409_v42  ;;  %v6689_v49 = vsel %vm6556_vm2, %v20431_v56, %v12408_v25 }
 0x4d7   : > { %v7829_v48 = vadd.f32 %v18114_v60, %v7828_v12  ;;  %v12417_v50 = vpop.permute.xlu0 %12416  ;;  %v12424_v54 = vunpack.i.h.bf16 %v12422_v10  ;;  %v10164_v41 = vpop.f32.mrb[86].mxu1  ;;  %v12423_v20 = vunpack.i.l.bf16 %v12422_v10 }
 0x4d8   : > { %v12418_v57 = vunpack.i.l.bf16 %v12417_v50  ;;  %v7831_v63 = vpop.f32.mrb[87].mxu1  ;;  %12711 = vrot.lane.b32.xlu1 %v17890_v9, %s13040_s12  ;;  %v12419_v12 = vunpack.i.h.bf16 %v12417_v50  ;;  %v8321_v10 = vmax.f32 %v7837_v47, 0.0  ;;  %v7840_v30 = vadd.f32 %v18114_v60, %v10164_v41 }
 0x4d9   : > { %v7832_v45 = vadd.f32 %v18114_v60, %v7831_v63  ;;  %12706 = vrot.lane.b32.xlu0 %v17919_v52, %s13040_s12  ;;  %v8319_v21 = vmax.f32 %v7829_v48, 0.0  ;;  %v6881_v62 = vsel %vm6745_vm3, %v6692_v16, %v12424_v54  ;;  %v6880_v63 = vsel %vm6745_vm3, %v6691_v13, %v12423_v20 }
 0x4da   : > { %v12432_v9 = vpop.permute.xlu1 %12431  ;;  %v6878_v50 = vsel %vm6745_vm3, %v6689_v49, %v12418_v57  ;;  %v6879_v25 = vsel %vm6745_vm3, %v6690_v8, %v12419_v12  ;;  %v12730_v20 = vpack.i.bf16 %v18123_v43, %v18092_v39  ;;  %v8322_v13 = vmax.f32 %v7840_v30, 0.0  ;;  %v20432_v49 = vld [vmem:[#allocation154_spill] sm:$0xff] }
 0x4db   : > { %v8320_v23 = vmax.f32 %v7832_v45, 0.0  ;;  %v12427_v61 = vpop.permute.xlu0 %12426  ;;  %v12434_v55 = vunpack.i.h.bf16 %v12432_v9  ;;  %v12433_v42 = vunpack.i.l.bf16 %v12432_v9  ;;  %v12725_v12 = vpack.i.bf16 %v18095_v46, %v18058_v1 }
 0x4dc   : > { %v12429_v35 = vunpack.i.h.bf16 %v12427_v61  ;;  %v12428_v52 = vunpack.i.l.bf16 %v12427_v61  ;;  %12721 = vrot.lane.b32.xlu1 %v12720_v19, %s13041_s13  ;;  %v12233_v39 = vunpack.i.l.bf16 %v17706_v15 }
 0x4dd   : > { %v8421_v47 = vmax.f32 %v8319_v21, %v8320_v23  ;;  %v7068_v48 = vsel %vm1215_vm1, %v6880_v63, %v12433_v42  ;;  %v7069_v41 = vsel %vm1215_vm1, %v6881_v62, %v12434_v55  ;;  %12716 = vrot.lane.b32.xlu0 %v12715_v5, %s13041_s13  ;;  %v4648_v55 = vmax.f32 %v20432_v49, %v12214_v37  ;;  %v20433_v62 = vld [vmem:[#allocation176_spill] sm:$0xff]  ;;  %v20434_v21 = vld [vmem:[#allocation29_spill] sm:$0xff] }
 0x4de   : > { %v7067_v45 = vsel %vm1215_vm1, %v6879_v25, %v12429_v35  ;;  %v7066_v54 = vsel %vm1215_vm1, %v6878_v50, %v12428_v52  ;;  %v7189_v16 = vpack.c.bf16 %v7069_v41, %v7068_v48  ;;  %v12442_v57 = vpop.permute.xlu1 %12441  ;;  %v4650_v5 = vmax.f32 %v20433_v62, %v12199_v17  ;;  %v20435_v48 = vld [vmem:[#allocation66_spill] sm:$0xff] }
 0x4df   : > { %v8457_v19 = vmax.f32 %v8421_v47, %v8321_v10  ;;  %v7188_v56 = vpack.c.bf16 %v7067_v45, %v7066_v54  ;;  %v12437_v8 = vpop.permute.xlu0 %12436  ;;  %v4649_v9 = vmax.f32 %v20434_v21, %v12198_v32  ;;  %v12444_v10 = vunpack.i.h.bf16 %v12442_v57  ;;  %v20436_v54 = vld [vmem:[#allocation81_spill] sm:$0xff] }
 0x4e0   : > { %12731 = vrot.lane.b32.xlu1 %v12730_v20, %s13042_s19  ;;  %v12443_v30 = vunpack.i.l.bf16 %v12442_v57  ;;  %v12439_v46 = vunpack.i.h.bf16 %v12437_v8  ;;  %v12438_v37 = vunpack.i.l.bf16 %v12437_v8  ;;  %v12745_v42 = vpack.i.bf16 %v4648_v55, %v18123_v43  ;;  %v20437_v43 = vld [vmem:[#allocation83_spill] sm:$0xff]  ;;  %v20438_v20 = vld [vmem:[#allocation166_spill] sm:$0xff] }
 0x4e1   : > { %v18157_v23 = vmax.f32 %v8457_v19, %v8322_v13  ;;  %12726 = vrot.lane.b32.xlu0 %v12725_v12, %s13042_s19  ;;  %10221 = vmatprep.mubr.msk.bf16.mxu1 %vm7239_vm4, %v7188_v56  ;;  %v12750_v50 = vpack.i.bf16 %v4650_v5, %v4649_v9  ;;  %v12234_v63 = vunpack.i.h.bf16 %v17706_v15  ;;  %v12219_v35 = vunpack.i.h.bf16 %v17713_v22  ;;  %v20439_v19 = vld [vmem:[#allocation168_spill] sm:$0xff] }
 0x4e2   : > { %10222 = vmatmul.mubr.msk.bf16.gmra.mrb[144].mxu1 %vm7239_vm4, %v7189_v16  ;;  %v12452_v1 = vpop.permute.xlu1 %12451  ;;  %v18171_v41 = vmax.f32 %v20435_v48, %v12233_v39  ;;  %v12218_v45 = vunpack.i.l.bf16 %v17713_v22  ;;  %v6695_v16 = vsel %vm6556_vm2, %v20437_v43, %v12443_v30  ;;  %v6694_v13 = vsel %vm6556_vm2, %v20438_v20, %v12439_v46 }
 0x4e3   : > { %v12447_v17 = vpop.permute.xlu0 %12446  ;;  %v12454_v61 = vunpack.i.h.bf16 %v12452_v1  ;;  %v12453_v32 = vunpack.i.l.bf16 %v12452_v1 }
 0x4e4   : > { %12741 = vrot.lane.b32.xlu1 %v17966_v6, %s13040_s12  ;;  %v12449_v52 = vunpack.i.h.bf16 %v12447_v17  ;;  %v12448_v25 = vunpack.i.l.bf16 %v12447_v17  ;;  %v6696_v6 = vsel %vm6556_vm2, %v20436_v54, %v12444_v10  ;;  %v12760_v48 = vpack.i.bf16 %v18171_v41, %v4650_v5 }
 0x4e5   : > { %12736 = vrot.lane.b32.xlu0 %v17970_v51, %s13040_s12  ;;  %v10167_v47 = vpop.f32.mrb[88].mxu1  ;;  %v6693_v51 = vsel %vm6556_vm2, %v20439_v19, %v12438_v37  ;;  %v6884_v22 = vsel %vm6745_vm3, %v6695_v16, %v12453_v32  ;;  %v6885_v62 = vsel %vm6745_vm3, %v6696_v6, %v12454_v61  ;;  %v12755_v6 = vpack.i.bf16 %v4649_v9, %v4648_v55 }
 0x4e6   : > { %v7844_v15 = vpop.f32.mrb[89].mxu1  ;;  %v12462_v57 = vpop.permute.xlu1 %12461  ;;  %v6882_v30 = vsel %vm6745_vm3, %v6693_v51, %v12448_v25  ;;  %v6883_v1 = vsel %vm6745_vm3, %v6694_v13, %v12449_v52  ;;  %v20440_v25 = vld [vmem:[#allocation70_spill] sm:$0xff] }
 0x4e7   : > { %v12457_v56 = vpop.permute.xlu0 %12456  ;;  %v12464_v8 = vunpack.i.h.bf16 %v12462_v57  ;;  %v12463_v12 = vunpack.i.l.bf16 %v12462_v57  ;;  %v10168_v49 = vpop.f32.mrb[90].mxu1  ;;  %v18194_v43 = vmax.f32 %v20440_v25, %v12234_v63  ;;  %v20441_v52 = vld [vmem:[#allocation162_spill] sm:$0xff] }
 0x4e8   : > { %v12459_v21 = vunpack.i.h.bf16 %v12457_v56  ;;  %v12458_v39 = vunpack.i.l.bf16 %v12457_v56  ;;  %v7846_v10 = vpop.f32.mrb[91].mxu1  ;;  %12751 = vrot.lane.b32.xlu1 %v12750_v50, %s13041_s13  ;;  %v4654_v16 = vmax.f32 %v20441_v52, %v12219_v35  ;;  %v20442_v15 = vld [vmem:[#allocation158_spill] sm:$0xff] }
 0x4e9   : > { %v7072_v46 = vsel %vm1215_vm1, %v6884_v22, %v12463_v12  ;;  %v7073_v37 = vsel %vm1215_vm1, %v6885_v62, %v12464_v8  ;;  %12746 = vrot.lane.b32.xlu0 %v12745_v42, %s13041_s13  ;;  %v4653_v57 = vmax.f32 %v20442_v15, %v12218_v45  ;;  %v20443_v42 = vld [vmem:[#allocation198_spill] sm:$0xff]  ;;  %v12775_v45 = vpack.i.bf16 %v18194_v43, %v18171_v41  ;;  %v20444_v12 = vld [vmem:[#allocation89_spill] sm:$0xff] }
 0x4ea   : > { %v7070_v17 = vsel %vm1215_vm1, %v6882_v30, %v12458_v39  ;;  %v7071_v32 = vsel %vm1215_vm1, %v6883_v1, %v12459_v21  ;;  %v7191_v61 = vpack.c.bf16 %v7073_v37, %v7072_v46  ;;  %v12472_v47 = vpop.permute.xlu1 %12471  ;;  %v12258_v20 = vunpack.i.l.bf16 %v20443_v42  ;;  %v20445_v21 = vld [vmem:[#allocation156_spill] sm:$0xff]  ;;  %v20447_v1 = vld [vmem:[#allocation179_spill] sm:$0xff]  ;;  %v20448_v37 = vld [vmem:[#allocation177_spill] sm:$0xff] }
 0x4eb   : > { %v7190_v54 = vpack.c.bf16 %v7071_v32, %v7070_v17  ;;  %v12467_v50 = vpop.permute.xlu0 %12466  ;;  %v12474_v13 = vunpack.i.h.bf16 %v12472_v47  ;;  %v12473_v5 = vunpack.i.l.bf16 %v12472_v47  ;;  %v12780_v56 = vpack.i.bf16 %v4654_v16, %v4653_v57  ;;  %v20446_v30 = vld [vmem:[#allocation80_spill] sm:$0xff]  ;;  %v20449_v32 = vld [vmem:[#allocation82_spill] sm:$0xff] }
 0x4ec   : > { %12761 = vrot.lane.b32.xlu1 %v12760_v48, %s13042_s19  ;;  %v12469_v9 = vunpack.i.h.bf16 %v12467_v50  ;;  %v12468_v63 = vunpack.i.l.bf16 %v12467_v50  ;;  %v12259_v8 = vunpack.i.h.bf16 %v20443_v42  ;;  %v12239_v49 = vunpack.i.h.bf16 %v20444_v12 }
 0x4ed   : > { %12756 = vrot.lane.b32.xlu0 %v12755_v6, %s13042_s19  ;;  %10225 = vmatprep.mubr.msk.bf16.mxu1 %vm7239_vm4, %v7190_v54  ;;  %v18212_v39 = vmax.f32 %v20445_v21, %v12258_v20  ;;  %v12238_v10 = vunpack.i.l.bf16 %v20444_v12  ;;  %v6699_v41 = vsel %vm6556_vm2, %v20447_v1, %v12473_v5  ;;  %v20452_v1 = vld [vmem:[#allocation16_spill] sm:$0xff] }
 0x4ee   : > { %10226 = vmatmul.mubr.msk.bf16.gmra.mrb[148].mxu1 %vm7239_vm4, %v7191_v61  ;;  %v12482_v55 = vpop.permute.xlu1 %12481  ;;  %v6698_v17 = vsel %vm6556_vm2, %v20448_v37, %v12469_v9  ;;  %v6697_v61 = vsel %vm6556_vm2, %v20449_v32, %v12468_v63 }
 0x4ef   : > { %v12477_v19 = vpop.permute.xlu0 %12476  ;;  %v12484_v51 = vunpack.i.h.bf16 %v12482_v55  ;;  %v12483_v35 = vunpack.i.l.bf16 %v12482_v55 }
 0x4f0   : > { %12771 = vrot.lane.b32.xlu1 %v18033_v59, %s13040_s12  ;;  %v12479_v22 = vunpack.i.h.bf16 %v12477_v19  ;;  %v12478_v62 = vunpack.i.l.bf16 %v12477_v19  ;;  %v6700_v59 = vsel %vm6556_vm2, %v20446_v30, %v12474_v13  ;;  %v20451_v30 = vld [vmem:[#allocation34_spill] sm:$0xff] }
 0x4f1   : > { %12766 = vrot.lane.b32.xlu0 %v18038_v3, %s13040_s12  ;;  %v6888_v54 = vsel %vm6745_vm3, %v6699_v41, %v12483_v35  ;;  %v6889_v50 = vsel %vm6745_vm3, %v6700_v59, %v12484_v51  ;;  %v12790_v51 = vpack.i.bf16 %v18212_v39, %v4654_v16  ;;  %v20450_v35 = vld [vmem:[#allocation79_spill] sm:$0xff]  ;;  %v4658_v59 = vmax.f32 %v20451_v30, %v12239_v49 }
 0x4f2   : > { %v12492_v46 = vpop.permute.xlu1 %12491  ;;  %v6886_v52 = vsel %vm6745_vm3, %v6697_v61, %v12478_v62  ;;  %v6887_v15 = vsel %vm6745_vm3, %v6698_v17, %v12479_v22  ;;  %v4657_v41 = vmax.f32 %v20452_v1, %v12238_v10 }
 0x4f3   : > { %v12487_v47 = vpop.permute.xlu0 %12486  ;;  %v12494_v3 = vunpack.i.h.bf16 %v12492_v46  ;;  %v12493_v48 = vunpack.i.l.bf16 %v12492_v46 }
 0x4f4   : > { %v12489_v6 = vunpack.i.h.bf16 %v12487_v47  ;;  %v12488_v25 = vunpack.i.l.bf16 %v12487_v47  ;;  %12781 = vrot.lane.b32.xlu1 %v12780_v56, %s13041_s13  ;;  %v18235_v56 = vmax.f32 %v20450_v35, %v12259_v8 }
 0x4f5   : > { %v7076_v42 = vsel %vm1215_vm1, %v6888_v54, %v12493_v48  ;;  %v7077_v20 = vsel %vm1215_vm1, %v6889_v50, %v12494_v3  ;;  %12776 = vrot.lane.b32.xlu0 %v12775_v45, %s13041_s13  ;;  %v10171_v13 = vpop.f32.mrb[92].mxu1  ;;  %v12785_v45 = vpack.i.bf16 %v4653_v57, %v18194_v43  ;;  %v20453_v54 = vld [vmem:[#allocation78_spill] sm:$0xff] }
 0x4f6   : > { %v7074_v5 = vsel %vm1215_vm1, %v6886_v52, %v12488_v25  ;;  %v7075_v55 = vsel %vm1215_vm1, %v6887_v15, %v12489_v6  ;;  %v7193_v9 = vpack.c.bf16 %v7077_v20, %v7076_v42  ;;  %v7856_v63 = vpop.f32.mrb[93].mxu1  ;;  %v12502_v19 = vpop.permute.xlu1 %12501  ;;  %v7865_v37 = vadd.f32 %v18114_v60, %v10171_v13  ;;  %v20454_v42 = vld [vmem:[#allocation143_spill] sm:$0xff] }
 0x4f7   : > { %v7192_v12 = vpack.c.bf16 %v7075_v55, %v7074_v5  ;;  %v7857_v22 = vadd.f32 %v18114_v60, %v7856_v63  ;;  %v12497_v62 = vpop.permute.xlu0 %12496  ;;  %v10172_v21 = vpop.f32.mrb[94].mxu1  ;;  %v12504_v16 = vunpack.i.h.bf16 %v12502_v19  ;;  %v12503_v61 = vunpack.i.l.bf16 %v12502_v19  ;;  %v20455_v55 = vld [vmem:[#allocation175_spill] sm:$0xff]  ;;  %v20457_v63 = vld [vmem:[#allocation178_spill] sm:$0xff] }
 0x4f8   : > { %v7859_v46 = vpop.f32.mrb[95].mxu1  ;;  %12791 = vrot.lane.b32.xlu1 %v12790_v51, %s13042_s19  ;;  %v12499_v17 = vunpack.i.h.bf16 %v12497_v62  ;;  %v12498_v32 = vunpack.i.l.bf16 %v12497_v62  ;;  %v7868_v43 = vadd.f32 %v18114_v60, %v10172_v21  ;;  %v12805_v48 = vpack.i.bf16 %v18235_v56, %v18212_v39 }
 0x4f9   : > { %v7860_v8 = vadd.f32 %v18114_v60, %v7859_v46  ;;  %12786 = vrot.lane.b32.xlu0 %v12785_v45, %s13042_s19  ;;  %10229 = vmatprep.mubr.msk.bf16.mxu1 %vm7239_vm4, %v7192_v12  ;;  %v8323_v49 = vmax.f32 %v7857_v22, 0.0  ;;  %v4659_v50 = vmax.f32 %v20453_v54, %v17787_v40  ;;  %v12810_v52 = vpack.i.bf16 %v4658_v59, %v4657_v41 }
 0x4fa   : > { %10230 = vmatmul.mubr.msk.bf16.gmra.mrb[152].mxu1 %vm7239_vm4, %v7193_v9  ;;  %v12512_v57 = vpop.permute.xlu1 %12511  ;;  %v8325_v15 = vmax.f32 %v7865_v37, 0.0  ;;  %v6704_v20 = vsel %vm6556_vm2, %v20454_v42, %v12504_v16  ;;  %v6702_v39 = vsel %vm6556_vm2, %v20455_v55, %v12499_v17  ;;  %v20456_v9 = vld [vmem:[#allocation144_spill] sm:$0xff]  ;;  %v6703_v19 = vsel %vm6556_vm2, %v20457_v63, %v12503_v61 }
 0x4fb   : > { %v8324_v10 = vmax.f32 %v7860_v8, 0.0  ;;  %v12507_v47 = vpop.permute.xlu0 %12506  ;;  %v12513_v3 = vunpack.i.l.bf16 %v12512_v57  ;;  %v12514_v25 = vunpack.i.h.bf16 %v12512_v57  ;;  %v6701_v40 = vsel %vm6556_vm2, %v20456_v9, %v12498_v32 }
 0x4fc   : > { %v12508_v6 = vunpack.i.l.bf16 %v12507_v47  ;;  %12801 = vrot.lane.b32.xlu1 %v18089_v14, %s13040_s12  ;;  %v12509_v5 = vunpack.i.h.bf16 %v12507_v47  ;;  %v8326_v14 = vmax.f32 %v7868_v43, 0.0  ;;  %v12820_v17 = vpack.i.bf16 %v4659_v50, %v4658_v59 }
 0x4fd   : > { %v8422_v13 = vmax.f32 %v8323_v49, %v8324_v10  ;;  %12796 = vrot.lane.b32.xlu0 %v18099_v18, %s13040_s12  ;;  %v6892_v12 = vsel %vm6745_vm3, %v6703_v19, %v12513_v3  ;;  %v6893_v18 = vsel %vm6745_vm3, %v6704_v20, %v12514_v25  ;;  %v12815_v3 = vpack.i.bf16 %v4657_v41, %v18235_v56  ;;  %v20460_v19 = vld [vmem:[#allocation86_spill] sm:$0xff]  ;;  %s18733_s12 = scalar_lea.hbm %s18783_s8, %s9573_s17 }
 0x4fe   : > { %v12522_v51 = vpop.permute.xlu1 %12521  ;;  %v6890_v45 = vsel %vm6745_vm3, %v6701_v40, %v12508_v6  ;;  %v6891_v37 = vsel %vm6745_vm3, %v6702_v39, %v12509_v5  ;;  %v20459_v40 = vld [vmem:[#allocation88_spill] sm:$0xff] }
 0x4ff   : > { %v8458_v35 = vmax.f32 %v8422_v13, %v8325_v15  ;;  %v12517_v22 = vpop.permute.xlu0 %12516  ;;  %v12524_v62 = vunpack.i.h.bf16 %v12522_v51  ;;  %v12523_v21 = vunpack.i.l.bf16 %v12522_v51  ;;  %v20458_v13 = vld [vmem:[#allocation21_spill] sm:$0xff] }
 0x500   : > { %v12519_v30 = vunpack.i.h.bf16 %v12517_v22  ;;  %v12518_v1 = vunpack.i.l.bf16 %v12517_v22  ;;  %12811 = vrot.lane.b32.xlu1 %v12810_v52, %s13041_s13 }
 0x501   : > { %v18268_v46 = vmax.f32 %v8458_v35, %v8326_v14  ;;  %v7080_v16 = vsel %vm1215_vm1, %v6892_v12, %v12523_v21  ;;  %v7081_v8 = vsel %vm1215_vm1, %v6893_v18, %v12524_v62  ;;  %12806 = vrot.lane.b32.xlu0 %v12805_v48, %s13041_s13  ;;  %v20461_v12 = vld [vmem:[#allocation87_spill] sm:$0xff]  ;;  %s12974_s13 = scalar_lea.vmem %s18735_s20, 128 }
 0x502   : > { %v7078_v32 = vsel %vm1215_vm1, %v6890_v45, %v12518_v1  ;;  %v7079_v61 = vsel %vm1215_vm1, %v6891_v37, %v12519_v30  ;;  %v7195_v43 = vpack.c.bf16 %v7081_v8, %v7080_v16  ;;  %v12532_v57 = vpop.permute.xlu1 %12531  ;;  %p12975_p11 = scmp.ne.s32.totalorder %s18735_s20, %s12974_s13 }
 0x503   : > { %v8518_v49 = vmax.f32 %v17991_v26, %v18268_v46  ;;  %v7194_v10 = vpack.c.bf16 %v7079_v61, %v7078_v32  ;;  %v12527_v47 = vpop.permute.xlu0 %12526  ;;  %v12534_v54 = vunpack.i.h.bf16 %v12532_v57  ;;  %v12533_v25 = vunpack.i.l.bf16 %v12532_v57 }
 0x504   : > { %12821 = vrot.lane.b32.xlu1 %v12820_v17, %s13042_s19  ;;  %v12529_v6 = vunpack.i.h.bf16 %v12527_v47  ;;  %v12528_v48 = vunpack.i.l.bf16 %v12527_v47  ;;  %p12976_p12 = pnand %p12975_p11, %p13129_p5 }
 0x505   : > { %12816 = vrot.lane.b32.xlu0 %v12815_v3, %s13042_s19  ;;  %v10175_v59 = vpop.f32.mrb[96].mxu1  ;;  %10233 = vmatprep.mubr.msk.bf16.mxu1 %vm7239_vm4, %v7194_v10  ;;  %v6708_v5 = vsel %vm6556_vm2, %v20458_v13, %v12534_v54  ;;  %v6707_v14 = vsel %vm6556_vm2, %v20460_v19, %v12533_v25 }
 0x506   : > { %v7881_v50 = vadd.f32 %v18114_v60, %v10175_v59  ;;  %v7872_v52 = vpop.f32.mrb[97].mxu1  ;;  %10234 = vmatmul.mubr.msk.bf16.gmra.mrb[156].mxu1 %vm7239_vm4, %v7195_v43  ;;  %v12542_v15 = vpop.permute.xlu1 %12541  ;;  %v6706_v63 = vsel %vm6556_vm2, %v20459_v40, %v12529_v6  ;;  %v6705_v22 = vsel %vm6556_vm2, %v20461_v12, %v12528_v48  ;;  %p12977_p13 = pneg %p12976_p12 }
 0x507   : > { %v7873_v42 = vadd.f32 %v18114_v60, %v7872_v52  ;;  %v12537_v56 = vpop.permute.xlu0 %12536  ;;  %v12543_v41 = vunpack.i.l.bf16 %v12542_v15  ;;  %v10176_v20 = vpop.f32.mrb[98].mxu1  ;;  %v12544_v39 = vunpack.i.h.bf16 %v12542_v15 }
 0x508   : > { %v12538_v55 = vunpack.i.l.bf16 %v12537_v56  ;;  %v7875_v9 = vpop.f32.mrb[99].mxu1  ;;  %v12539_v51 = vunpack.i.h.bf16 %v12537_v56  ;;  %v8329_v62 = vmax.f32 %v7881_v50, 0.0  ;;  %v7884_v45 = vadd.f32 %v18114_v60, %v10176_v20 }
 0x509   : > { %v7876_v35 = vadd.f32 %v18114_v60, %v7875_v9  ;;  %v8327_v21 = vmax.f32 %v7873_v42, 0.0  ;;  %v6896_v30 = vsel %vm6745_vm3, %v6707_v14, %v12543_v41  ;;  %v6897_v32 = vsel %vm6745_vm3, %v6708_v5, %v12544_v39  ;;  %v20462_v14 = vld [vmem:[#allocation184_spill] sm:$0xff] }
 0x50a   : > { %v12552_v18 = vpop.permute.xlu1 %12551  ;;  %v6894_v17 = vsel %vm6745_vm3, %v6705_v22, %v12538_v55  ;;  %v6895_v57 = vsel %vm6745_vm3, %v6706_v63, %v12539_v51  ;;  %v8330_v48 = vmax.f32 %v7884_v45, 0.0  ;;  %v20464_v22 = vld [vmem:[#allocation186_spill] sm:$0xff] }
 0x50b   : > { %v8328_v1 = vmax.f32 %v7876_v35, 0.0  ;;  %v12547_v37 = vpop.permute.xlu0 %12546  ;;  %v12554_v16 = vunpack.i.h.bf16 %v12552_v18  ;;  %v12553_v8 = vunpack.i.l.bf16 %v12552_v18  ;;  %v20463_v35 = vld [vmem:[#allocation14_spill] sm:$0xff]  ;;  %v20465_v18 = vld [vmem:[#allocation84_spill] sm:$0xff] }
 0x50c   : > { %v12549_v61 = vunpack.i.h.bf16 %v12547_v37  ;;  %v12548_v43 = vunpack.i.l.bf16 %v12547_v37 }
 0x50d   : > { %v8423_v10 = vmax.f32 %v8327_v21, %v8328_v1  ;;  %v7084_v47 = vsel %vm1215_vm1, %v6896_v30, %v12553_v8  ;;  %v7085_v3 = vsel %vm1215_vm1, %v6897_v32, %v12554_v16 }
 0x50e   : > { %v7082_v54 = vsel %vm1215_vm1, %v6894_v17, %v12548_v43  ;;  %v7083_v6 = vsel %vm1215_vm1, %v6895_v57, %v12549_v61  ;;  %v7197_v25 = vpack.c.bf16 %v7085_v3, %v7084_v47  ;;  %v12562_v59 = vpop.permute.xlu1 %12561 }
 0x50f   : > { %v8459_v50 = vmax.f32 %v8423_v10, %v8329_v62  ;;  %v7196_v52 = vpack.c.bf16 %v7083_v6, %v7082_v54  ;;  %v12557_v15 = vpop.permute.xlu0 %12556  ;;  %v12564_v41 = vunpack.i.h.bf16 %v12562_v59  ;;  %v12563_v20 = vunpack.i.l.bf16 %v12562_v59 }
 0x510   : > { %v12559_v56 = vunpack.i.h.bf16 %v12557_v15  ;;  %v12558_v55 = vunpack.i.l.bf16 %v12557_v15 }
 0x511   : > { %v18303_v42 = vmax.f32 %v8459_v50, %v8330_v48  ;;  %10237 = vmatprep.mubr.msk.bf16.mxu1 %vm7239_vm4, %v7196_v52  ;;  %v6712_v12 = vsel %vm6556_vm2, %v20463_v35, %v12564_v41  ;;  %v6711_v62 = vsel %vm6556_vm2, %v20464_v22, %v12563_v20 }
 0x512   : > { %10238 = vmatmul.mubr.msk.bf16.gmra.mrb[160].mxu1 %vm7239_vm4, %v7197_v25  ;;  %v12572_v13 = vpop.permute.xlu1 %12571  ;;  %v6710_v51 = vsel %vm6556_vm2, %v20462_v14, %v12559_v56  ;;  %v6709_v30 = vsel %vm6556_vm2, %v20465_v18, %v12558_v55 }
 0x513   : > { %v8519_v5 = vmax.f32 %v18079_v34, %v18303_v42  ;;  %v12567_v39 = vpop.permute.xlu0 %12566  ;;  %v12573_v9 = vunpack.i.l.bf16 %v12572_v13  ;;  %v12574_v63 = vunpack.i.h.bf16 %v12572_v13 }
 0x514   : > { %v12568_v40 = vunpack.i.l.bf16 %v12567_v39  ;;  %v12569_v19 = vunpack.i.h.bf16 %v12567_v39 }
 0x515   : > { %v10179_v21 = vpop.f32.mrb[100].mxu1  ;;  %v6900_v1 = vsel %vm6745_vm3, %v6711_v62, %v12573_v9  ;;  %v6901_v61 = vsel %vm6745_vm3, %v6712_v12, %v12574_v63 }
 0x516   : > { %v12582_v45 = vpop.permute.xlu1 %12581  ;;  %v7888_v37 = vpop.f32.mrb[101].mxu1  ;;  %v6898_v32 = vsel %vm6745_vm3, %v6709_v30, %v12568_v40  ;;  %v6899_v47 = vsel %vm6745_vm3, %v6710_v51, %v12569_v19  ;;  %v7897_v15 = vadd.f32 %v18114_v60, %v10179_v21 }
 0x517   : > { %v12577_v16 = vpop.permute.xlu0 %12576  ;;  %v12584_v8 = vunpack.i.h.bf16 %v12582_v45  ;;  %v12583_v17 = vunpack.i.l.bf16 %v12582_v45  ;;  %v10180_v10 = vpop.f32.mrb[102].mxu1  ;;  %v7889_v3 = vadd.f32 %v18114_v60, %v7888_v37  ;;  %v20466_v37 = vld [vmem:[#allocation15_spill] sm:$0xff] }
 0x518   : > { %v12579_v43 = vunpack.i.h.bf16 %v12577_v16  ;;  %v12578_v57 = vunpack.i.l.bf16 %v12577_v16  ;;  %v7891_v25 = vpop.f32.mrb[103].mxu1  ;;  %v7900_v55 = vadd.f32 %v18114_v60, %v10180_v10  ;;  %v8333_v51 = vmax.f32 %v7897_v15, 0.0 }
 0x519   : > { %v7088_v54 = vsel %vm1215_vm1, %v6900_v1, %v12583_v17  ;;  %v7089_v6 = vsel %vm1215_vm1, %v6901_v61, %v12584_v8  ;;  %v7892_v41 = vadd.f32 %v18114_v60, %v7891_v25  ;;  %v8331_v13 = vmax.f32 %v7889_v3, 0.0  ;;  %v20467_v8 = vld [vmem:[#allocation189_spill] sm:$0xff] }
 0x51a   : > { %v7086_v59 = vsel %vm1215_vm1, %v6898_v32, %v12578_v57  ;;  %v7087_v48 = vsel %vm1215_vm1, %v6899_v47, %v12579_v43  ;;  %v7199_v50 = vpack.c.bf16 %v7089_v6, %v7088_v54  ;;  %v12592_v52 = vpop.permute.xlu1 %12591  ;;  %v8334_v45 = vmax.f32 %v7900_v55, 0.0  ;;  %v20468_v32 = vld [vmem:[#allocation18_spill] sm:$0xff]  ;;  %v20469_v43 = vld [vmem:[#allocation163_spill] sm:$0xff] }
 0x51b   : > { %v7198_v56 = vpack.c.bf16 %v7087_v48, %v7086_v59  ;;  %v12587_v20 = vpop.permute.xlu0 %12586  ;;  %v8332_v39 = vmax.f32 %v7892_v41, 0.0  ;;  %v12594_v63 = vunpack.i.h.bf16 %v12592_v52  ;;  %v12593_v19 = vunpack.i.l.bf16 %v12592_v52 }
 0x51c   : > { %v12589_v9 = vunpack.i.h.bf16 %v12587_v20  ;;  %v12588_v40 = vunpack.i.l.bf16 %v12587_v20 }
 0x51d   : > { %10241 = vmatprep.mubr.msk.bf16.mxu1 %vm7239_vm4, %v7198_v56  ;;  %v8424_v35 = vmax.f32 %v8331_v13, %v8332_v39  ;;  %v6716_v61 = vsel %vm6556_vm2, %v20468_v32, %v12594_v63  ;;  %v6715_v57 = vsel %vm6556_vm2, %v20469_v43, %v12593_v19  ;;  %v20471_v32 = vld [vmem:[#allocation200_spill] sm:$0xff]  ;;  %v20472_v43 = vld [vmem:[#allocation102_spill] sm:$0xff] }
 0x51e   : > { %10242 = vmatmul.mubr.msk.bf16.gmra.mrb[164].mxu1 %vm7239_vm4, %v7199_v50  ;;  %v12602_v14 = vpop.permute.xlu1 %12601  ;;  %v6714_v16 = vsel %vm6556_vm2, %v20466_v37, %v12589_v9  ;;  %v6713_v17 = vsel %vm6556_vm2, %v20467_v8, %v12588_v40 }
 0x51f   : > { %v12597_v12 = vpop.permute.xlu0 %12596  ;;  %v12603_v22 = vunpack.i.l.bf16 %v12602_v14  ;;  %v12604_v21 = vunpack.i.h.bf16 %v12602_v14  ;;  %v8460_v18 = vmax.f32 %v8424_v35, %v8333_v51 }
 0x520   : > { %v12598_v62 = vunpack.i.l.bf16 %v12597_v12  ;;  %v12599_v30 = vunpack.i.h.bf16 %v12597_v12 }
 0x521   : > { %v10183_v1 = vpop.f32.mrb[104].mxu1  ;;  %v18339_v3 = vmax.f32 %v8460_v18, %v8334_v45  ;;  %v6904_v54 = vsel %vm6745_vm3, %v6715_v57, %v12603_v22  ;;  %v6905_v52 = vsel %vm6745_vm3, %v6716_v61, %v12604_v21 }
 0x522   : > { %v7904_v10 = vpop.f32.mrb[105].mxu1  ;;  %v12612_v47 = vpop.permute.xlu1 %12611  ;;  %v6902_v50 = vsel %vm6745_vm3, %v6713_v17, %v12598_v62  ;;  %v6903_v13 = vsel %vm6745_vm3, %v6714_v16, %v12599_v30  ;;  %v20470_v16 = vld [vmem:[#allocation97_spill] sm:$0xff] }
 0x523   : > { %v12607_v6 = vpop.permute.xlu0 %12606  ;;  %v12614_v25 = vunpack.i.h.bf16 %v12612_v47  ;;  %v12613_v59 = vunpack.i.l.bf16 %v12612_v47  ;;  %v10184_v48 = vpop.f32.mrb[106].mxu1  ;;  %v8520_v20 = vmax.f32 %v18157_v23, %v18339_v3  ;;  %v20473_v10 = vld [vmem:[#allocation99_spill] sm:$0xff] }
 0x524   : > { %v12609_v15 = vunpack.i.h.bf16 %v12607_v6  ;;  %v12608_v56 = vunpack.i.l.bf16 %v12607_v6  ;;  %v7906_v41 = vpop.f32.mrb[107].mxu1 }
 0x525   : > { %v7092_v55 = vsel %vm1215_vm1, %v6904_v54, %v12613_v59  ;;  %v7093_v39 = vsel %vm1215_vm1, %v6905_v52, %v12614_v25 }
 0x526   : > { %v7090_v9 = vsel %vm1215_vm1, %v6902_v50, %v12608_v56  ;;  %v7091_v40 = vsel %vm1215_vm1, %v6903_v13, %v12609_v15  ;;  %v7201_v63 = vpack.c.bf16 %v7093_v39, %v7092_v55  ;;  %v12622_v19 = vpop.permute.xlu1 %12621 }
 0x527   : > { %v7200_v14 = vpack.c.bf16 %v7091_v40, %v7090_v9  ;;  %v12617_v51 = vpop.permute.xlu0 %12616  ;;  %v12623_v35 = vunpack.i.l.bf16 %v12622_v19  ;;  %v12624_v62 = vunpack.i.h.bf16 %v12622_v19 }
 0x528   : > { %v12619_v12 = vunpack.i.h.bf16 %v12617_v51  ;;  %v12618_v22 = vunpack.i.l.bf16 %v12617_v51 }
 0x529   : > { %10245 = vmatprep.mubr.msk.bf16.mxu1 %vm7239_vm4, %v7200_v14  ;;  %v6719_v8 = vsel %vm6556_vm2, %v20470_v16, %v12623_v35  ;;  %v6720_v47 = vsel %vm6556_vm2, %v20473_v10, %v12624_v62 }
 0x52a   : > { %10246 = vmatmul.mubr.msk.bf16.gmra.mrb[168].mxu1 %vm7239_vm4, %v7201_v63  ;;  %v12632_v21 = vpop.permute.xlu1 %12631  ;;  %v6718_v61 = vsel %vm6556_vm2, %v20471_v32, %v12619_v12  ;;  %v6717_v57 = vsel %vm6556_vm2, %v20472_v43, %v12618_v22 }
 0x52b   : > { %v12627_v45 = vpop.permute.xlu0 %12626  ;;  %v12634_v18 = vunpack.i.h.bf16 %v12632_v21  ;;  %v12633_v30 = vunpack.i.l.bf16 %v12632_v21 }
 0x52c   : > { %v12629_v1 = vunpack.i.h.bf16 %v12627_v45  ;;  %v12628_v37 = vunpack.i.l.bf16 %v12627_v45 }
 0x52d   : > { %v10187_v17 = vpop.f32.mrb[108].mxu1  ;;  %v6908_v54 = vsel %vm6745_vm3, %v6719_v8, %v12633_v30  ;;  %v6909_v59 = vsel %vm6745_vm3, %v6720_v47, %v12634_v18 }
 0x52e   : > { %v7916_v6 = vpop.f32.mrb[109].mxu1  ;;  %v12642_v25 = vpop.permute.xlu1 %12641  ;;  %v6906_v41 = vsel %vm6745_vm3, %v6717_v57, %v12628_v37  ;;  %v6907_v13 = vsel %vm6745_vm3, %v6718_v61, %v12629_v1  ;;  %v7925_v40 = vadd.f32 %v18114_v60, %v10187_v17 }
 0x52f   : > { %v7917_v48 = vadd.f32 %v18114_v60, %v7916_v6  ;;  %v12637_v50 = vpop.permute.xlu0 %12636  ;;  %v12644_v52 = vunpack.i.h.bf16 %v12642_v25  ;;  %v12643_v15 = vunpack.i.l.bf16 %v12642_v25  ;;  %v10188_v56 = vpop.f32.mrb[110].mxu1 }
 0x530   : > { %v12639_v55 = vunpack.i.h.bf16 %v12637_v50  ;;  %v12638_v39 = vunpack.i.l.bf16 %v12637_v50  ;;  %v7919_v9 = vpop.f32.mrb[111].mxu1  ;;  %v7928_v45 = vadd.f32 %v18114_v60, %v10188_v56  ;;  %v8337_v1 = vmax.f32 %v7925_v40, 0.0 }
 0x531   : > { %v7096_v63 = vsel %vm1215_vm1, %v6908_v54, %v12643_v15  ;;  %v7097_v19 = vsel %vm1215_vm1, %v6909_v59, %v12644_v52  ;;  %v7920_v14 = vadd.f32 %v18114_v60, %v7919_v9  ;;  %v8335_v62 = vmax.f32 %v7917_v48, 0.0 }
 0x532   : > { %v7094_v51 = vsel %vm1215_vm1, %v6906_v41, %v12638_v39  ;;  %v7095_v35 = vsel %vm1215_vm1, %v6907_v13, %v12639_v55  ;;  %v7203_v12 = vpack.c.bf16 %v7097_v19, %v7096_v63  ;;  %v12652_v22 = vpop.permute.xlu1 %12651  ;;  %v8338_v61 = vmax.f32 %v7928_v45, 0.0  ;;  %v20474_v41 = vld [vmem:[#allocation202_spill] sm:$0xff] }
 0x533   : > { %v7202_v21 = vpack.c.bf16 %v7095_v35, %v7094_v51  ;;  %v8336_v18 = vmax.f32 %v7920_v14, 0.0  ;;  %v12647_v30 = vpop.permute.xlu0 %12646  ;;  %v12654_v8 = vunpack.i.h.bf16 %v12652_v22  ;;  %v12653_v17 = vunpack.i.l.bf16 %v12652_v22 }
 0x534   : > { %v12649_v16 = vunpack.i.h.bf16 %v12647_v30  ;;  %v12648_v57 = vunpack.i.l.bf16 %v12647_v30 }
 0x535   : > { %v8425_v37 = vmax.f32 %v8335_v62, %v8336_v18  ;;  %10249 = vmatprep.mubr.msk.bf16.mxu1 %vm7239_vm4, %v7202_v21  ;;  %v6724_v50 = vsel %vm6556_vm2, %v17722_v36, %v12654_v8  ;;  %v6723_v52 = vsel %vm6556_vm2, %v17725_v33, %v12653_v17 }
 0x536   : > { %10250 = vmatmul.mubr.msk.bf16.gmra.mrb[172].mxu1 %vm7239_vm4, %v7203_v12  ;;  %v12662_v32 = vpop.permute.xlu1 %12661  ;;  %v6722_v48 = vsel %vm6556_vm2, %v17719_v29, %v12649_v16  ;;  %v6721_v13 = vsel %vm6556_vm2, %v20474_v41, %v12648_v57 }
 0x537   : > { %v8461_v43 = vmax.f32 %v8425_v37, %v8337_v1  ;;  %v12657_v10 = vpop.permute.xlu0 %12656  ;;  %v12664_v47 = vunpack.i.h.bf16 %v12662_v32  ;;  %v12663_v54 = vunpack.i.l.bf16 %v12662_v32 }
 0x538   : > { %v12659_v25 = vunpack.i.h.bf16 %v12657_v10  ;;  %v12658_v59 = vunpack.i.l.bf16 %v12657_v10 }
 0x539   : > { %v8497_v6 = vmax.f32 %v8461_v43, %v8338_v61  ;;  %v6912_v29 = vsel %vm6745_vm3, %v6723_v52, %v12663_v54  ;;  %v6913_v40 = vsel %vm6745_vm3, %v6724_v50, %v12664_v47 }
 0x53a   : > { %v12672_v15 = vpop.permute.xlu1 %12671  ;;  %v6910_v33 = vsel %vm6745_vm3, %v6721_v13, %v12658_v59  ;;  %v6911_v19 = vsel %vm6745_vm3, %v6722_v48, %v12659_v25 }
 0x53b   : > { %v18384_v56 = vmax.f32 %v8518_v49, %v8497_v6  ;;  %v12667_v55 = vpop.permute.xlu0 %12666  ;;  %v12674_v39 = vunpack.i.h.bf16 %v12672_v15  ;;  %v12673_v9 = vunpack.i.l.bf16 %v12672_v15 }
 0x53c   : > { %v12669_v36 = vunpack.i.h.bf16 %v12667_v55  ;;  %v12668_v63 = vunpack.i.l.bf16 %v12667_v55 }
 0x53d   : > { %v7100_v26 = vsel %vm1215_vm1, %v6912_v29, %v12673_v9  ;;  %v7101_v46 = vsel %vm1215_vm1, %v6913_v40, %v12674_v39  ;;  %v10191_v49 = vpop.f32.mrb[112].mxu1 }
 0x53e   : > { %v7098_v14 = vsel %vm1215_vm1, %v6910_v33, %v12668_v63  ;;  %v7099_v51 = vsel %vm1215_vm1, %v6911_v19, %v12669_v36  ;;  %v7205_v35 = vpack.c.bf16 %v7101_v46, %v7100_v26  ;;  %v7932_v12 = vpop.f32.mrb[113].mxu1  ;;  %v12682_v22 = vpop.permute.xlu1 %12681  ;;  %v7941_v1 = vadd.f32 %v18114_v60, %v10191_v49 }
 0x53f   : > { %v7204_v62 = vpack.c.bf16 %v7099_v51, %v7098_v14  ;;  %v7933_v21 = vadd.f32 %v18114_v60, %v7932_v12  ;;  %v12677_v45 = vpop.permute.xlu0 %12676  ;;  %v10192_v18 = vpop.f32.mrb[114].mxu1  ;;  %v12684_v37 = vunpack.i.h.bf16 %v12682_v22  ;;  %v12683_v32 = vunpack.i.l.bf16 %v12682_v22 }
 0x540   : > { %v7935_v30 = vpop.f32.mrb[115].mxu1  ;;  %v12679_v8 = vunpack.i.h.bf16 %v12677_v45  ;;  %v12678_v17 = vunpack.i.l.bf16 %v12677_v45  ;;  %v7944_v61 = vadd.f32 %v18114_v60, %v10192_v18  ;;  %v8341_v59 = vmax.f32 %v7941_v1, 0.0 }
 0x541   : > { %v7936_v16 = vadd.f32 %v18114_v60, %v7935_v30  ;;  %10253 = vmatprep.mubr.msk.bf16.mxu1 %vm7239_vm4, %v7204_v62  ;;  %v8339_v57 = vmax.f32 %v7933_v21, 0.0  ;;  %v6728_v48 = vsel %vm6556_vm2, %v17801_v28, %v12684_v37  ;;  %v6727_v41 = vsel %vm6556_vm2, %v17804_v31, %v12683_v32 }
 0x542   : > { %10254 = vmatmul.mubr.msk.bf16.gmra.mrb[176].mxu1 %vm7239_vm4, %v7205_v35  ;;  %v12692_v43 = vpop.permute.xlu1 %12691  ;;  %v6726_v15 = vsel %vm6556_vm2, %v17794_v24, %v12679_v8  ;;  %v6725_v60 = vsel %vm6556_vm2, %v17750_v38, %v12678_v17  ;;  %v8342_v13 = vmax.f32 %v7944_v61, 0.0  ;;  %v20475_v61 = vld [vmem:[#allocation118_spill] sm:$0xff] }
 0x543   : > { %v8340_v10 = vmax.f32 %v7936_v16, 0.0  ;;  %v12687_v47 = vpop.permute.xlu0 %12686  ;;  %v12693_v54 = vunpack.i.l.bf16 %v12692_v43  ;;  %v12694_v25 = vunpack.i.h.bf16 %v12692_v43 }
 0x544   : > { %v12688_v6 = vunpack.i.l.bf16 %v12687_v47  ;;  %v12689_v52 = vunpack.i.h.bf16 %v12687_v47 }
 0x545   : > { %v8426_v50 = vmax.f32 %v8339_v57, %v8340_v10  ;;  %v6916_v9 = vsel %vm6745_vm3, %v6727_v41, %v12693_v54  ;;  %v6917_v63 = vsel %vm6745_vm3, %v6728_v48, %v12694_v25 }
 0x546   : > { %v12702_v55 = vpop.permute.xlu1 %12701  ;;  %v6914_v28 = vsel %vm6745_vm3, %v6725_v60, %v12688_v6  ;;  %v6915_v38 = vsel %vm6745_vm3, %v6726_v15, %v12689_v52 }
 0x547   : > { %v8462_v39 = vmax.f32 %v8426_v50, %v8341_v59  ;;  %v12697_v29 = vpop.permute.xlu0 %12696  ;;  %v12704_v40 = vunpack.i.h.bf16 %v12702_v55  ;;  %v12703_v36 = vunpack.i.l.bf16 %v12702_v55 }
 0x548   : > { %v12699_v33 = vunpack.i.h.bf16 %v12697_v29  ;;  %v12698_v24 = vunpack.i.l.bf16 %v12697_v29 }
 0x549   : > { %v8498_v19 = vmax.f32 %v8462_v39, %v8342_v13  ;;  %v7104_v26 = vsel %vm1215_vm1, %v6916_v9, %v12703_v36  ;;  %v7105_v31 = vsel %vm1215_vm1, %v6917_v63, %v12704_v40  ;;  %v18444_v39 = vld [vmem:[%s18778_s3] ss:$0 sm:$0xff] }
 0x54a   : > { %v7102_v46 = vsel %vm1215_vm1, %v6914_v28, %v12698_v24  ;;  %v7103_v49 = vsel %vm1215_vm1, %v6915_v38, %v12699_v33  ;;  %v7207_v14 = vpack.c.bf16 %v7105_v31, %v7104_v26  ;;  %v12712_v51 = vpop.permute.xlu1 %12711 }
 0x54b   : > { %v18421_v35 = vmax.f32 %v8519_v5, %v8498_v19  ;;  %v7206_v12 = vpack.c.bf16 %v7103_v49, %v7102_v46  ;;  %v12707_v22 = vpop.permute.xlu0 %12706  ;;  %v12714_v62 = vunpack.i.h.bf16 %v12712_v51  ;;  %v12713_v21 = vunpack.i.l.bf16 %v12712_v51 }
 0x54c   : > { %v12709_v18 = vunpack.i.h.bf16 %v12707_v22  ;;  %v12708_v30 = vunpack.i.l.bf16 %v12707_v22 }
 0x54d   : > { %10257 = vmatprep.mubr.msk.bf16.mxu1 %vm7239_vm4, %v7206_v12  ;;  %v6732_v34 = vsel %vm6556_vm2, %v17861_v58, %v12714_v62  ;;  %v6731_v42 = vsel %vm6556_vm2, %v17864_v0, %v12713_v21 }
 0x54e   : > { %10258 = vmatmul.mubr.msk.bf16.gmra.mrb[180].mxu1 %vm7239_vm4, %v7207_v14  ;;  %v12722_v45 = vpop.permute.xlu1 %12721  ;;  %v6730_v32 = vsel %vm6556_vm2, %v17858_v27, %v12709_v18  ;;  %v6729_v43 = vsel %vm6556_vm2, %v20475_v61, %v12708_v30 }
 0x54f   : > { %v12717_v1 = vpop.permute.xlu0 %12716  ;;  %v12724_v37 = vunpack.i.h.bf16 %v12722_v45  ;;  %v12723_v16 = vunpack.i.l.bf16 %v12722_v45 }
 0x550   : > { %v12719_v8 = vunpack.i.h.bf16 %v12717_v1  ;;  %v12718_v17 = vunpack.i.l.bf16 %v12717_v1 }
 0x551   : > { %v6920_v54 = vsel %vm6745_vm3, %v6731_v42, %v12723_v16  ;;  %v6921_v6 = vsel %vm6745_vm3, %v6732_v34, %v12724_v37 }
 0x552   : > { %v12732_v5 = vpop.permute.xlu1 %12731  ;;  %v6918_v58 = vsel %vm6745_vm3, %v6729_v43, %v12718_v17  ;;  %v6919_v0 = vsel %vm6745_vm3, %v6730_v32, %v12719_v8 }
 0x553   : > { %v12727_v57 = vpop.permute.xlu0 %12726  ;;  %v12734_v10 = vunpack.i.h.bf16 %v12732_v5  ;;  %v12733_v47 = vunpack.i.l.bf16 %v12732_v5 }
 0x554   : > { %v12729_v25 = vunpack.i.h.bf16 %v12727_v57  ;;  %v12728_v59 = vunpack.i.l.bf16 %v12727_v57 }
 0x555   : > { %v7108_v48 = vsel %vm1215_vm1, %v6920_v54, %v12733_v47  ;;  %v7109_v27 = vsel %vm1215_vm1, %v6921_v6, %v12734_v10  ;;  %v10195_v50 = vpop.f32.mrb[116].mxu1 }
 0x556   : > { %v7106_v52 = vsel %vm1215_vm1, %v6918_v58, %v12728_v59  ;;  %v7107_v15 = vsel %vm1215_vm1, %v6919_v0, %v12729_v25  ;;  %v7209_v60 = vpack.c.bf16 %v7109_v27, %v7108_v48  ;;  %v7948_v41 = vpop.f32.mrb[117].mxu1  ;;  %v12742_v13 = vpop.permute.xlu1 %12741  ;;  %v7957_v28 = vadd.f32 %v18444_v39, %v10195_v50 }
 0x557   : > { %v7208_v55 = vpack.c.bf16 %v7107_v15, %v7106_v52  ;;  %v7949_v9 = vadd.f32 %v18444_v39, %v7948_v41  ;;  %v12737_v29 = vpop.permute.xlu0 %12736  ;;  %v10196_v40 = vpop.f32.mrb[118].mxu1  ;;  %v12744_v63 = vunpack.i.h.bf16 %v12742_v13  ;;  %v12743_v38 = vunpack.i.l.bf16 %v12742_v13 }
 0x558   : > { %v7951_v36 = vpop.f32.mrb[119].mxu1  ;;  %v12739_v24 = vunpack.i.h.bf16 %v12737_v29  ;;  %v12738_v19 = vunpack.i.l.bf16 %v12737_v29  ;;  %v7960_v26 = vadd.f32 %v18444_v39, %v10196_v40  ;;  %v8345_v62 = vmax.f32 %v7957_v28, 0.0  ;;  %v20476_v29 = vld [vmem:[#allocation93_spill] sm:$0xff] }
 0x559   : > { %v7952_v33 = vadd.f32 %v18444_v39, %v7951_v36  ;;  %10261 = vmatprep.mubr.msk.bf16.mxu1 %vm7239_vm4, %v7208_v55  ;;  %v8343_v46 = vmax.f32 %v7949_v9, 0.0  ;;  %v6736_v21 = vsel %vm6556_vm2, %v17893_v11, %v12744_v63  ;;  %v6735_v37 = vsel %vm6556_vm2, %v17913_v7, %v12743_v38  ;;  %v20477_v36 = vld [vmem:[#allocation190_spill] sm:$0xff] }
 0x55a   : > { %10262 = vmatmul.mubr.msk.bf16.gmra.mrb[184].mxu1 %vm7239_vm4, %v7209_v60  ;;  %v12752_v31 = vpop.permute.xlu1 %12751  ;;  %v6734_v30 = vsel %vm6556_vm2, %v17884_v53, %v12739_v24  ;;  %v6733_v1 = vsel %vm6556_vm2, %v17870_v44, %v12738_v19  ;;  %v8346_v16 = vmax.f32 %v7960_v26, 0.0 }
 0x55b   : > { %v8344_v49 = vmax.f32 %v7952_v33, 0.0  ;;  %v12747_v14 = vpop.permute.xlu0 %12746  ;;  %v12753_v51 = vunpack.i.l.bf16 %v12752_v31  ;;  %v12754_v22 = vunpack.i.h.bf16 %v12752_v31 }
 0x55c   : > { %v12748_v12 = vunpack.i.l.bf16 %v12747_v14  ;;  %v12749_v18 = vunpack.i.h.bf16 %v12747_v14 }
 0x55d   : > { %v8427_v45 = vmax.f32 %v8343_v46, %v8344_v49  ;;  %v6924_v34 = vsel %vm6745_vm3, %v6735_v37, %v12753_v51  ;;  %v6925_v61 = vsel %vm6745_vm3, %v6736_v21, %v12754_v22 }
 0x55e   : > { %v12762_v8 = vpop.permute.xlu1 %12761  ;;  %v6922_v11 = vsel %vm6745_vm3, %v6733_v1, %v12748_v12  ;;  %v6923_v44 = vsel %vm6745_vm3, %v6734_v30, %v12749_v18 }
 0x55f   : > { %v8463_v17 = vmax.f32 %v8427_v45, %v8345_v62  ;;  %v12757_v42 = vpop.permute.xlu0 %12756  ;;  %v12764_v5 = vunpack.i.h.bf16 %v12762_v8  ;;  %v12763_v32 = vunpack.i.l.bf16 %v12762_v8 }
 0x560   : > { %v12759_v43 = vunpack.i.h.bf16 %v12757_v42  ;;  %v12758_v53 = vunpack.i.l.bf16 %v12757_v42 }
 0x561   : > { %v8499_v57 = vmax.f32 %v8463_v17, %v8346_v16  ;;  %v7112_v10 = vsel %vm1215_vm1, %v6924_v34, %v12763_v32  ;;  %v7113_v7 = vsel %vm1215_vm1, %v6925_v61, %v12764_v5 }
 0x562   : > { %v7110_v47 = vsel %vm1215_vm1, %v6922_v11, %v12758_v53  ;;  %v7111_v54 = vsel %vm1215_vm1, %v6923_v44, %v12759_v43  ;;  %v7211_v6 = vpack.c.bf16 %v7113_v7, %v7112_v10  ;;  %v12772_v25 = vpop.permute.xlu1 %12771  ;;  %v20478_v43 = vld [vmem:[#allocation19_spill] sm:$0xff]  ;;  %v20480_v7 = vld [vmem:[#allocation64_spill] sm:$0xff] }
 0x563   : > { %v18471_v59 = vmax.f32 %v8520_v20, %v8499_v57  ;;  %v7210_v58 = vpack.c.bf16 %v7111_v54, %v7110_v47  ;;  %v12767_v0 = vpop.permute.xlu0 %12766  ;;  %v12774_v48 = vunpack.i.h.bf16 %v12772_v25  ;;  %v12773_v27 = vunpack.i.l.bf16 %v12772_v25  ;;  %v20479_v57 = vld [vmem:[#allocation65_spill] sm:$0xff]  ;;  %v20481_v54 = vld [vmem:[#allocation207_spill] sm:$0xff] }
 0x564   : > { %v12769_v52 = vunpack.i.h.bf16 %v12767_v0  ;;  %v12768_v15 = vunpack.i.l.bf16 %v12767_v0 }
 0x565   : > { %10265 = vmatprep.mubr.msk.bf16.mxu1 %vm7239_vm4, %v7210_v58  ;;  %v6740_v23 = vsel %vm6556_vm2, %v17976_v2, %v12774_v48  ;;  %v6739_v3 = vsel %vm6556_vm2, %v17979_v4, %v12773_v27 }
 0x566   : > { %10266 = vmatmul.mubr.msk.bf16.gmra.mrb[188].mxu1 %vm7239_vm4, %v7211_v6  ;;  %v12782_v50 = vpop.permute.xlu1 %12781  ;;  %v6738_v40 = vsel %vm6556_vm2, %v20476_v29, %v12769_v52  ;;  %v6737_v28 = vsel %vm6556_vm2, %v20477_v36, %v12768_v15 }
 0x567   : > { %v12777_v60 = vpop.permute.xlu0 %12776  ;;  %v12784_v41 = vunpack.i.h.bf16 %v12782_v50  ;;  %v12783_v13 = vunpack.i.l.bf16 %v12782_v50 }
 0x568   : > { %v12779_v55 = vunpack.i.h.bf16 %v12777_v60  ;;  %v12778_v9 = vunpack.i.l.bf16 %v12777_v60 }
 0x569   : > { %v6928_v19 = vsel %vm6745_vm3, %v6739_v3, %v12783_v13  ;;  %v6929_v38 = vsel %vm6745_vm3, %v6740_v23, %v12784_v41 }
 0x56a   : > { %v12792_v20 = vpop.permute.xlu1 %12791  ;;  %v6926_v2 = vsel %vm6745_vm3, %v6737_v28, %v12778_v9  ;;  %v6927_v4 = vsel %vm6745_vm3, %v6738_v40, %v12779_v55 }
 0x56b   : > { %v12787_v63 = vpop.permute.xlu0 %12786  ;;  %v12794_v33 = vunpack.i.h.bf16 %v12792_v20  ;;  %v12793_v24 = vunpack.i.l.bf16 %v12792_v20 }
 0x56c   : > { %v12789_v26 = vunpack.i.h.bf16 %v12787_v63  ;;  %v12788_v31 = vunpack.i.l.bf16 %v12787_v63 }
 0x56d   : > { %v7116_v46 = vsel %vm1215_vm1, %v6928_v19, %v12793_v24  ;;  %v7117_v49 = vsel %vm1215_vm1, %v6929_v38, %v12794_v33  ;;  %v10199_v14 = vpop.f32.mrb[120].mxu1 }
 0x56e   : > { %v7114_v51 = vsel %vm1215_vm1, %v6926_v2, %v12788_v31  ;;  %v7115_v12 = vsel %vm1215_vm1, %v6927_v4, %v12789_v26  ;;  %v7213_v22 = vpack.c.bf16 %v7117_v49, %v7116_v46  ;;  %v7964_v62 = vpop.f32.mrb[121].mxu1  ;;  %v12802_v21 = vpop.permute.xlu1 %12801  ;;  %v20482_v26 = vmov 0.0   ;;  %v12940_v49 = vld [vmem:[%s18779_s4] sm:$0xff]  }
 0x56f   : > { %v7212_v45 = vpack.c.bf16 %v7115_v12, %v7114_v51  ;;  %v12797_v18 = vpop.permute.xlu0 %12796  ;;  %v10200_v30 = vpop.f32.mrb[122].mxu1  ;;  %v12804_v37 = vunpack.i.h.bf16 %v12802_v21  ;;  %v12803_v16 = vunpack.i.l.bf16 %v12802_v21  ;;  %v20483_v14 = vld [vmem:[#allocation199_spill] sm:$0xff] }
 0x570   : > { %v7966_v1 = vpop.f32.mrb[123].mxu1  ;;  %v12799_v17 = vunpack.i.h.bf16 %v12797_v18  ;;  %v12798_v34 = vunpack.i.l.bf16 %v12797_v18  ;;  %v8545_v51 = vpack.c.bf16 %v20483_v14, %v20483_v14 }
 0x571   : > { %10269 = vmatprep.mubr.msk.bf16.mxu1 %vm7239_vm4, %v7212_v45  ;;  %v6744_v53 = vsel %vm6556_vm2, %v20478_v43, %v12804_v37  ;;  %v6743_v44 = vsel %vm6556_vm2, %v20479_v57, %v12803_v16 }
 0x572   : > { %10270 = vmatmul.mubr.msk.bf16.gmra.mrb[192].mxu1 %vm7239_vm4, %v7213_v22  ;;  %v12812_v8 = vpop.permute.xlu1 %12811  ;;  %v6742_v47 = vsel %vm6556_vm2, %v20480_v7, %v12799_v17  ;;  %v6741_v6 = vsel %vm6556_vm2, %v20481_v54, %v12798_v34  ;;  %v20484_v34 = vld [vmem:[#allocation185_spill] sm:$0xff]  ;;  %v20485_v54 = vld [vmem:[#allocation147_spill] sm:$0xff] }
 0x573   : > { %v12807_v42 = vpop.permute.xlu0 %12806  ;;  %v12814_v5 = vunpack.i.h.bf16 %v12812_v8  ;;  %v12813_v32 = vunpack.i.l.bf16 %v12812_v8 }
 0x574   : > { %v12809_v11 = vunpack.i.h.bf16 %v12807_v42  ;;  %v12808_v61 = vunpack.i.l.bf16 %v12807_v42  ;;  %v8542_v42 = vpack.c.bf16 %v20484_v34, %v20484_v34 }
 0x575   : > { %v6932_v48 = vsel %vm6745_vm3, %v6743_v44, %v12813_v32  ;;  %v6933_v27 = vsel %vm6745_vm3, %v6744_v53, %v12814_v5 }
 0x576   : > { %v12822_v10 = vpop.permute.xlu1 %12821  ;;  %v6930_v15 = vsel %vm6745_vm3, %v6741_v6, %v12808_v61  ;;  %v6931_v60 = vsel %vm6745_vm3, %v6742_v47, %v12809_v11  ;;  %v12942_v47 = vld [vmem:[%s18779_s4 + $0x18] sm:$0xff]   ;;  %v8646_v6 = vpack.c.bf16 %v20485_v54, %v20485_v54 }
 0x577   : > { %v12817_v25 = vpop.permute.xlu0 %12816  ;;  %v12824_v58 = vunpack.i.h.bf16 %v12822_v10  ;;  %v12823_v0 = vunpack.i.l.bf16 %v12822_v10 }
 0x578   : > { %v12819_v50 = vunpack.i.h.bf16 %v12817_v25  ;;  %v12818_v52 = vunpack.i.l.bf16 %v12817_v25 }
 0x579   : > { %v7120_v41 = vsel %vm1215_vm1, %v6932_v48, %v12823_v0  ;;  %v7121_v13 = vsel %vm1215_vm1, %v6933_v27, %v12824_v58  ;;  %v10203_v55 = vpop.f32.mrb[124].mxu1 }
 0x57a   : > { %v7118_v9 = vsel %vm1215_vm1, %v6930_v15, %v12818_v52  ;;  %v7119_v23 = vsel %vm1215_vm1, %v6931_v60, %v12819_v50  ;;  %v7215_v3 = vpack.c.bf16 %v7121_v13, %v7120_v41  ;;  %v7976_v20 = vpop.f32.mrb[125].mxu1  ;;  %v7985_v63 = vadd.f32 %v18444_v39, %v10203_v55  ;;  %v12943_v41 = vld [vmem:[%s18779_s4 + $0x20] sm:$0xff]  }
 0x57b   : > { %v7214_v29 = vpack.c.bf16 %v7119_v23, %v7118_v9  ;;  %v7977_v40 = vadd.f32 %v18444_v39, %v7976_v20  ;;  %v10204_v36 = vpop.f32.mrb[126].mxu1 }
 0x57c   : > { %v7979_v28 = vpop.f32.mrb[127].mxu1  ;;  %v7988_v19 = vadd.f32 %v18444_v39, %v10204_v36  ;;  %v8349_v31 = vmax.f32 %v7985_v63, 0.0 }
 0x57d   : > { %v7980_v33 = vadd.f32 %v18444_v39, %v7979_v28  ;;  %10273 = vmatprep.mubr.msk.bf16.mxu1 %vm7239_vm4, %v7214_v29  ;;  %v8347_v24 = vmax.f32 %v7977_v40, 0.0  ;;  %v12944_v40 = vld [vmem:[%s18779_s4 + $0x28] sm:$0xff]  }
 0x57e   : > { %10274 = vmatmul.mubr.msk.bf16.gmra.mrb[196].mxu1 %vm7239_vm4, %v7215_v3  ;;  %v8350_v4 = vmax.f32 %v7988_v19, 0.0 }
 0x57f   : > { %v8348_v38 = vmax.f32 %v7980_v33, 0.0  ;;  %10279 = vmatprep.mubr.msk.bf16.mxu1 %vm13044_vm5, %v20482_v26 }
 0x581   : > { %v8428_v2 = vmax.f32 %v8347_v24, %v8348_v38 }
 0x583   : > { %v8464_v46 = vmax.f32 %v8428_v2, %v8349_v31 }
 0x585   : > { %v8500_v12 = vmax.f32 %v8464_v46, %v8350_v4  ;;  %v10207_v22 = vpop.f32.mrb[128].mxu1 }
 0x586   : > { %v7992_v62 = vpop.f32.mrb[129].mxu1  ;;  %10280 = vmatmul.mubr.msk.bf16.vlgmr.msra.gmra.mrb[200].mxu1 %vm6745_vm3, %v8545_v51  ;;  %v8001_v1 = vadd.f32 %v18444_v39, %v10207_v22 }
 0x587   : > { %v8536_v21 = vmax.f32 %v18384_v56, %v8500_v12  ;;  %v7993_v45 = vadd.f32 %v18444_v39, %v7992_v62  ;;  %v10208_v18 = vpop.f32.mrb[130].mxu1  ;;  %10284 = vmatpush3.bf16.msra.mxu1 %v12940_v49  ;;  %10285 = vmatprep.mubr.msk.bf16.mxu1 %vm13044_vm5, %v20482_v26  ;;  %v12941_v56 = vld [vmem:[%s18779_s4 + $0x10] sm:$0xff]  }
 0x588   : > { %v7995_v30 = vpop.f32.mrb[131].mxu1  ;;  %10289 = vmatprep.subr.bf16.mxu1 %v20482_v26  ;;  %v8004_v8 = vadd.f32 %v18444_v39, %v10208_v18  ;;  %v8353_v5 = vmax.f32 %v8001_v1, 0.0 }
 0x589   : > { %v7996_v37 = vadd.f32 %v18444_v39, %v7995_v30  ;;  %v8351_v16 = vmax.f32 %v7993_v45, 0.0  ;;  %v8699_v13 = vpack.c.bf16 %v8536_v21, %v8536_v21 }
 0x58a   : > { %v8354_v11 = vmax.f32 %v8004_v8, 0.0 }
 0x58b   : > { %v8352_v17 = vmax.f32 %v7996_v37, 0.0 }
 0x58d   : > { %v8429_v32 = vmax.f32 %v8351_v16, %v8352_v17 }
 0x58e   : > { %10286 = vmatmul.mubr.msk.bf16.vlgmr.msra.gmra.mrb[204].mxu1 %vm6745_vm3, %v8542_v42 }
 0x58f   : > { %v8465_v61 = vmax.f32 %v8429_v32, %v8353_v5  ;;  %10290 = vmatpush3.bf16.msra.mxu1 %v12941_v56  ;;  %10291 = vmatprep.mubr.msk.bf16.mxu1 %vm13044_vm5, %v20482_v26 }
 0x590   : > { %10295 = vmatprep.subr.bf16.mxu1 %v20482_v26 }
 0x591   : > { %v8501_v43 = vmax.f32 %v8465_v61, %v8354_v11  ;;  %v10211_v53 = vpop.f32.mrb[132].mxu1 }
 0x592   : > { %v8008_v57 = vpop.f32.mrb[133].mxu1  ;;  %v8017_v58 = vadd.f32 %v18444_v39, %v10211_v53 }
 0x593   : > { %v8537_v44 = vmax.f32 %v18421_v35, %v8501_v43  ;;  %v8009_v10 = vadd.f32 %v18444_v39, %v8008_v57  ;;  %v10212_v7 = vpop.f32.mrb[134].mxu1 }
 0x594   : > { %v8011_v25 = vpop.f32.mrb[135].mxu1  ;;  %v8020_v35 = vadd.f32 %v18444_v39, %v10212_v7  ;;  %v8357_v50 = vmax.f32 %v8017_v58, 0.0 }
 0x595   : > { %v8012_v0 = vadd.f32 %v18444_v39, %v8011_v25  ;;  %v8355_v48 = vmax.f32 %v8009_v10, 0.0  ;;  %v8752_v36 = vpack.c.bf16 %v8537_v44, %v8537_v44 }
 0x596   : > { %10292 = vmatmul.mubr.msk.bf16.vlgmr.msra.gmra.mrb[208].mxu1 %vm6745_vm3, %v8646_v6  ;;  %v8358_v15 = vmax.f32 %v8020_v35, 0.0 }
 0x597   : > { %v8356_v27 = vmax.f32 %v8012_v0, 0.0  ;;  %10296 = vmatpush3.bf16.msra.mxu1 %v12942_v47  ;;  %10297 = vmatprep.mubr.msk.bf16.mxu1 %vm13044_vm5, %v20482_v26 }
 0x598   : > { %10301 = vmatprep.subr.bf16.mxu1 %v20482_v26 }
 0x599   : > { %v8430_v52 = vmax.f32 %v8355_v48, %v8356_v27  ;;  %v12945_v48 = vld [vmem:[%s18779_s4 + $0x30] sm:$0xff]  }
 0x59b   : > { %v8466_v60 = vmax.f32 %v8430_v52, %v8357_v50 }
 0x59d   : > { %v8502_v55 = vmax.f32 %v8466_v60, %v8358_v15  ;;  %v10215_v9 = vpop.f32.mrb[136].mxu1 }
 0x59e   : > { %v8024_v23 = vpop.f32.mrb[137].mxu1  ;;  %10298 = vmatmul.mubr.msk.bf16.vlgmr.msra.gmra.mrb[212].mxu1 %vm6745_vm3, %v8699_v13 }
 0x59f   : > { %v8538_v3 = vmax.f32 %v18471_v59, %v8502_v55  ;;  %v10216_v20 = vpop.f32.mrb[138].mxu1  ;;  %10302 = vmatpush3.bf16.msra.mxu1 %v12943_v41  ;;  %10303 = vmatprep.mubr.msk.bf16.mxu1 %vm13044_vm5, %v20482_v26 }
 0x5a0   : > { %v8026_v29 = vpop.f32.mrb[139].mxu1  ;;  %10307 = vmatprep.subr.bf16.mxu1 %v20482_v26 }
 0x5a1   : > { %v8805_v24 = vpack.c.bf16 %v8538_v3, %v8538_v3 }
 0x5a6   : > { %10304 = vmatmul.mubr.msk.bf16.vlgmr.msra.gmra.mrb[216].mxu1 %vm6745_vm3, %v8752_v36 }
 0x5a7   : > { %10308 = vmatpush3.bf16.msra.mxu1 %v12944_v40  ;;  %10309 = vmatprep.mubr.msk.bf16.mxu1 %vm13044_vm5, %v20482_v26 }
 0x5a8   : > { %10313 = vmatprep.subr.bf16.mxu1 %v20482_v26 }
 0x5a9   : > { %v10219_v59 = vpop.f32.mrb[140].mxu1 }
 0x5aa   : > { %v8036_v28 = vpop.f32.mrb[141].mxu1  ;;  %v8045_v38 = vadd.f32 %v18444_v39, %v10219_v59 }
 0x5ab   : > { %v8037_v63 = vadd.f32 %v18444_v39, %v8036_v28  ;;  %v10220_v33 = vpop.f32.mrb[142].mxu1 }
 0x5ac   : > { %v8039_v19 = vpop.f32.mrb[143].mxu1  ;;  %v8048_v4 = vadd.f32 %v18444_v39, %v10220_v33  ;;  %v8361_v49 = vmax.f32 %v8045_v38, 0.0 }
 0x5ad   : > { %v8040_v31 = vadd.f32 %v18444_v39, %v8039_v19  ;;  %v8359_v2 = vmax.f32 %v8037_v63, 0.0 }
 0x5ae   : > { %10310 = vmatmul.mubr.msk.bf16.vlgmr.msra.gmra.mrb[220].mxu1 %vm6745_vm3, %v8805_v24  ;;  %v8362_v51 = vmax.f32 %v8048_v4, 0.0 }
 0x5af   : > { %v8360_v46 = vmax.f32 %v8040_v31, 0.0  ;;  %10315 = vmatprep.mubr.msk.bf16.mxu1 %vm13044_vm5, %v20482_v26  ;;  %10314 = vmatpush3.bf16.msra.mxu1 %v12945_v48  ;;  %v12950_v48 = vld [vmem:[%s13149_s25 + $0x350] sm:$0xff]  }
 0x5b0   : > { %10319 = vmatprep.subr.bf16.mxu1 %v20482_v26 }
 0x5b1   : > { %v8431_v14 = vmax.f32 %v8359_v2, %v8360_v46 }
 0x5b3   : > { %v8467_v12 = vmax.f32 %v8431_v14, %v8361_v49 }
 0x5b5   : > { %v18576_v22 = vmax.f32 %v8467_v12, %v8362_v51  ;;  %v10223_v62 = vpop.f32.mrb[144].mxu1 }
 0x5b6   : > { %v8052_v21 = vpop.f32.mrb[145].mxu1  ;;  %v8061_v1 = vadd.f32 %v18444_v39, %v10223_v62 }
 0x5b7   : > { %v8053_v45 = vadd.f32 %v18444_v39, %v8052_v21  ;;  %v10224_v18 = vpop.f32.mrb[146].mxu1 }
 0x5b8   : > { %v8055_v30 = vpop.f32.mrb[147].mxu1  ;;  %v8064_v8 = vadd.f32 %v18444_v39, %v10224_v18  ;;  %v8365_v56 = vmax.f32 %v8061_v1, 0.0 }
 0x5b9   : > { %v8056_v37 = vadd.f32 %v18444_v39, %v8055_v30  ;;  %v8363_v16 = vmax.f32 %v8053_v45, 0.0 }
 0x5ba   : > { %v8366_v42 = vmax.f32 %v8064_v8, 0.0 }
 0x5bb   : > { %v8364_v17 = vmax.f32 %v8056_v37, 0.0 }
 0x5bd   : > { %v8432_v34 = vmax.f32 %v8363_v16, %v8364_v17 }
 0x5bf   : > { %v8468_v5 = vmax.f32 %v8432_v34, %v8365_v56 }
 0x5c1   : > { %v18582_v32 = vmax.f32 %v8468_v5, %v8366_v42  ;;  %v10227_v11 = vpop.f32.mrb[148].mxu1 }
 0x5c2   : > { %v8068_v61 = vpop.f32.mrb[149].mxu1  ;;  %v8077_v44 = vadd.f32 %v18444_v39, %v10227_v11 }
 0x5c3   : > { %v8069_v43 = vadd.f32 %v18444_v39, %v8068_v61  ;;  %v10228_v53 = vpop.f32.mrb[150].mxu1 }
 0x5c4   : > { %v8071_v57 = vpop.f32.mrb[151].mxu1  ;;  %v8080_v47 = vadd.f32 %v18444_v39, %v10228_v53  ;;  %v8369_v6 = vmax.f32 %v8077_v44, 0.0 }
 0x5c5   : > { %v8072_v10 = vadd.f32 %v18444_v39, %v8071_v57  ;;  %v8367_v7 = vmax.f32 %v8069_v43, 0.0 }
 0x5c6   : > { %v8370_v58 = vmax.f32 %v8080_v47, 0.0 }
 0x5c7   : > { %v8368_v54 = vmax.f32 %v8072_v10, 0.0 }
 0x5c9   : > { %v8433_v25 = vmax.f32 %v8367_v7, %v8368_v54 }
 0x5cb   : > { %v8469_v0 = vmax.f32 %v8433_v25, %v8369_v6 }
 0x5cd   : > { %v18591_v35 = vmax.f32 %v8469_v0, %v8370_v58  ;;  %v10231_v27 = vpop.f32.mrb[152].mxu1  ;;  %v12948_v58 = vld [vmem:[%s13149_s25 + $0x340] sm:$0xff]   ;;  %v12949_v0 = vld [vmem:[%s13149_s25 + $0x348] sm:$0xff]  }
 0x5ce   : > { %v8084_v50 = vpop.f32.mrb[153].mxu1  ;;  %10037 = vmatprep.mubr.msk.bf16.mxu0 %vm1215_vm1, %v12948_v58 }
 0x5cf   : > { %v10232_v52 = vpop.f32.mrb[154].mxu1  ;;  %10038 = vmatmul.mubr.msk.bf16.gmra.mrb[208].mxu0 %vm1215_vm1, %v12949_v0 }
 0x5d0   : > { %v8086_v15 = vpop.f32.mrb[155].mxu1  ;;  %10041 = vmatprep.mubr.msk.bf16.mxu0 %vm1215_vm1, %v12950_v48 }
 0x5d9   : > { %v10235_v60 = vpop.f32.mrb[156].mxu1 }
 0x5da   : > { %v8096_v41 = vpop.f32.mrb[157].mxu1  ;;  %v8105_v23 = vadd.f32 %v18444_v39, %v10235_v60  ;;  %v12951_v60 = vld [vmem:[%s13149_s25 + $0x358] sm:$0xff]  }
 0x5db   : > { %v8097_v13 = vadd.f32 %v18444_v39, %v8096_v41  ;;  %v10236_v55 = vpop.f32.mrb[158].mxu1  ;;  %10042 = vmatmul.mubr.msk.bf16.gmra.mrb[212].mxu0 %vm1215_vm1, %v12951_v60 }
 0x5dc   : > { %v8099_v9 = vpop.f32.mrb[159].mxu1  ;;  %v8108_v29 = vadd.f32 %v18444_v39, %v10236_v55  ;;  %v8373_v36 = vmax.f32 %v8105_v23, 0.0 }
 0x5dd   : > { %v8100_v3 = vadd.f32 %v18444_v39, %v8099_v9  ;;  %v8371_v20 = vmax.f32 %v8097_v13, 0.0  ;;  %v12952_v13 = vld [vmem:[%s13149_s25 + $0x360] sm:$0xff]  }
 0x5de   : > { %v8374_v28 = vmax.f32 %v8108_v29, 0.0  ;;  %10045 = vmatprep.mubr.msk.bf16.mxu0 %vm1215_vm1, %v12952_v13 }
 0x5df   : > { %v8372_v40 = vmax.f32 %v8100_v3, 0.0 }
 0x5e1   : > { %v8434_v59 = vmax.f32 %v8371_v20, %v8372_v40 }
 0x5e3   : > { %v8470_v63 = vmax.f32 %v8434_v59, %v8373_v36 }
 0x5e5   : > { %v18598_v33 = vmax.f32 %v8470_v63, %v8374_v28  ;;  %v10239_v24 = vpop.f32.mrb[160].mxu1  ;;  %v12953_v28 = vld [vmem:[%s13149_s25 + $0x368] sm:$0xff]   ;;  %v12954_v63 = vld [vmem:[%s13149_s25 + $0x370] sm:$0xff]  }
 0x5e6   : > { %v8112_v19 = vpop.f32.mrb[161].mxu1  ;;  %v8121_v46 = vadd.f32 %v18444_v39, %v10239_v24  ;;  %10046 = vmatmul.mubr.msk.bf16.gmra.mrb[216].mxu0 %vm1215_vm1, %v12953_v28 }
 0x5e7   : > { %v8521_v38 = vmax.f32 %v18576_v22, %v18598_v33  ;;  %v8113_v31 = vadd.f32 %v18444_v39, %v8112_v19  ;;  %v10240_v2 = vpop.f32.mrb[162].mxu1  ;;  %10049 = vmatprep.mubr.msk.bf16.mxu0 %vm1215_vm1, %v12954_v63  ;;  %v12956_v22 = vld [vmem:[%s13149_s25 + $0x380] sm:$0xff]  }
 0x5e8   : > { %v8115_v4 = vpop.f32.mrb[163].mxu1  ;;  %v8124_v51 = vadd.f32 %v18444_v39, %v10240_v2  ;;  %v8377_v62 = vmax.f32 %v8121_v46, 0.0 }
 0x5e9   : > { %v8116_v49 = vadd.f32 %v18444_v39, %v8115_v4  ;;  %v8375_v14 = vmax.f32 %v8113_v31, 0.0 }
 0x5ea   : > { %v8378_v45 = vmax.f32 %v8124_v51, 0.0 }
 0x5eb   : > { %v8376_v12 = vmax.f32 %v8116_v49, 0.0 }
 0x5ed   : > { %v8435_v21 = vmax.f32 %v8375_v14, %v8376_v12 }
 0x5ef   : > { %v8471_v18 = vmax.f32 %v8435_v21, %v8377_v62 }
 0x5f1   : > { %v18606_v30 = vmax.f32 %v8471_v18, %v8378_v45  ;;  %v10243_v1 = vpop.f32.mrb[164].mxu1  ;;  %v12955_v45 = vld [vmem:[%s13149_s25 + $0x378] sm:$0xff]  }
 0x5f2   : > { %v8128_v37 = vpop.f32.mrb[165].mxu1  ;;  %v8137_v34 = vadd.f32 %v18444_v39, %v10243_v1  ;;  %10050 = vmatmul.mubr.msk.bf16.gmra.mrb[220].mxu0 %vm1215_vm1, %v12955_v45 }
 0x5f3   : > { %v8522_v16 = vmax.f32 %v18582_v32, %v18606_v30  ;;  %v8129_v8 = vadd.f32 %v18444_v39, %v8128_v37  ;;  %v10244_v17 = vpop.f32.mrb[166].mxu1  ;;  %10053 = vmatprep.mubr.msk.bf16.mxu0 %vm1215_vm1, %v12956_v22 }
 0x5f4   : > { %v8131_v56 = vpop.f32.mrb[167].mxu1  ;;  %v8140_v11 = vadd.f32 %v18444_v39, %v10244_v17  ;;  %v8381_v43 = vmax.f32 %v8137_v34, 0.0 }
 0x5f5   : > { %v8132_v42 = vadd.f32 %v18444_v39, %v8131_v56  ;;  %v8379_v5 = vmax.f32 %v8129_v8, 0.0 }
 0x5f6   : > { %v8382_v57 = vmax.f32 %v8140_v11, 0.0 }
 0x5f7   : > { %v8380_v61 = vmax.f32 %v8132_v42, 0.0 }
 0x5f9   : > { %v8436_v53 = vmax.f32 %v8379_v5, %v8380_v61  ;;  %v12957_v5 = vld [vmem:[%s13149_s25 + $0x388] sm:$0xff]  }
 0x5fa   : > { %10054 = vmatmul.mubr.msk.bf16.gmra.mrb[224].mxu0 %vm1215_vm1, %v12957_v5 }
 0x5fb   : > { %v8472_v44 = vmax.f32 %v8436_v53, %v8381_v43 }
 0x5fd   : > { %v18614_v10 = vmax.f32 %v8472_v44, %v8382_v57  ;;  %v10247_v7 = vpop.f32.mrb[168].mxu1 }
 0x5fe   : > { %v8144_v47 = vpop.f32.mrb[169].mxu1 }
 0x5ff   : > { %v8523_v54 = vmax.f32 %v18591_v35, %v18614_v10  ;;  %v10248_v6 = vpop.f32.mrb[170].mxu1 }
 0x600   : > { %v8146_v25 = vpop.f32.mrb[171].mxu1 }
 0x609   : > { %v10251_v27 = vpop.f32.mrb[172].mxu1 }
 0x60a   : > { %v8156_v50 = vpop.f32.mrb[173].mxu1  ;;  %v8165_v55 = vadd.f32 %v18444_v39, %v10251_v27 }
 0x60b   : > { %v8157_v52 = vadd.f32 %v18444_v39, %v8156_v50  ;;  %v10252_v15 = vpop.f32.mrb[174].mxu1 }
 0x60c   : > { %v8159_v41 = vpop.f32.mrb[175].mxu1  ;;  %v8168_v3 = vadd.f32 %v18444_v39, %v10252_v15  ;;  %v8385_v29 = vmax.f32 %v8165_v55, 0.0 }
 0x60d   : > { %v8160_v9 = vadd.f32 %v18444_v39, %v8159_v41  ;;  %v8383_v23 = vmax.f32 %v8157_v52, 0.0 }
 0x60e   : > { %v8386_v36 = vmax.f32 %v8168_v3, 0.0 }
 0x60f   : > { %v8384_v20 = vmax.f32 %v8160_v9, 0.0 }
 0x611   : > { %v8437_v40 = vmax.f32 %v8383_v23, %v8384_v20 }
 0x613   : > { %v8473_v59 = vmax.f32 %v8437_v40, %v8385_v29 }
 0x615   : > { %v8509_v24 = vmax.f32 %v8473_v59, %v8386_v36  ;;  %v10255_v19 = vpop.f32.mrb[176].mxu1 }
 0x616   : > { %v8172_v31 = vpop.f32.mrb[177].mxu1  ;;  %v8181_v14 = vadd.f32 %v18444_v39, %v10255_v19 }
 0x617   : > { %v8530_v2 = vmax.f32 %v8521_v38, %v8509_v24  ;;  %v8173_v4 = vadd.f32 %v18444_v39, %v8172_v31  ;;  %v10256_v46 = vpop.f32.mrb[178].mxu1  ;;  %v12946_v24 = vld [vmem:[%s18779_s4 + $0x38] sm:$0xff]  }
 0x618   : > { %v8175_v49 = vpop.f32.mrb[179].mxu1  ;;  %v8184_v62 = vadd.f32 %v18444_v39, %v10256_v46  ;;  %v8389_v33 = vmax.f32 %v8181_v14, 0.0 }
 0x619   : > { %v8176_v51 = vadd.f32 %v18444_v39, %v8175_v49  ;;  %v8387_v12 = vmax.f32 %v8173_v4, 0.0 }
 0x61a   : > { %v8390_v18 = vmax.f32 %v8184_v62, 0.0 }
 0x61b   : > { %v8388_v21 = vmax.f32 %v8176_v51, 0.0 }
 0x61d   : > { %v8438_v38 = vmax.f32 %v8387_v12, %v8388_v21 }
 0x61f   : > { %v8474_v1 = vmax.f32 %v8438_v38, %v8389_v33 }
 0x621   : > { %v8510_v37 = vmax.f32 %v8474_v1, %v8390_v18  ;;  %v10259_v8 = vpop.f32.mrb[180].mxu1 }
 0x622   : > { %v8188_v17 = vpop.f32.mrb[181].mxu1  ;;  %v8197_v61 = vadd.f32 %v18444_v39, %v10259_v8 }
 0x623   : > { %v8531_v56 = vmax.f32 %v8522_v16, %v8510_v37  ;;  %v8189_v34 = vadd.f32 %v18444_v39, %v8188_v17  ;;  %v10260_v42 = vpop.f32.mrb[182].mxu1  ;;  %v12947_v37 = vld [vmem:[%s18779_s4 + $0x40] sm:$0xff]  }
 0x624   : > { %v8191_v11 = vpop.f32.mrb[183].mxu1  ;;  %v8200_v57 = vadd.f32 %v18444_v39, %v10260_v42  ;;  %v8393_v7 = vmax.f32 %v8197_v61, 0.0 }
 0x625   : > { %v8192_v43 = vadd.f32 %v18444_v39, %v8191_v11  ;;  %v8391_v53 = vmax.f32 %v8189_v34, 0.0 }
 0x626   : > { %v8394_v6 = vmax.f32 %v8200_v57, 0.0 }
 0x627   : > { %v8392_v44 = vmax.f32 %v8192_v43, 0.0 }
 0x629   : > { %v8439_v47 = vmax.f32 %v8391_v53, %v8392_v44 }
 0x62b   : > { %v8475_v32 = vmax.f32 %v8439_v47, %v8393_v7 }
 0x62d   : > { %v8511_v30 = vmax.f32 %v8475_v32, %v8394_v6  ;;  %v10263_v16 = vpop.f32.mrb[184].mxu1 }
 0x62e   : > { %v8204_v25 = vpop.f32.mrb[185].mxu1 }
 0x62f   : > { %v18659_v58 = vmax.f32 %v8523_v54, %v8511_v30  ;;  %v10264_v0 = vpop.f32.mrb[186].mxu1 }
 0x630   : > { %v8206_v48 = vpop.f32.mrb[187].mxu1 }
 0x639   : > { %v10267_v27 = vpop.f32.mrb[188].mxu1 }
 0x63a   : > { %v8216_v50 = vpop.f32.mrb[189].mxu1  ;;  %v8225_v41 = vadd.f32 %v18444_v39, %v10267_v27 }
 0x63b   : > { %v8217_v52 = vadd.f32 %v18444_v39, %v8216_v50  ;;  %v10268_v15 = vpop.f32.mrb[190].mxu1 }
 0x63c   : > { %v8219_v60 = vpop.f32.mrb[191].mxu1  ;;  %v8228_v9 = vadd.f32 %v18444_v39, %v10268_v15  ;;  %v8397_v3 = vmax.f32 %v8225_v41, 0.0 }
 0x63d   : > { %v8220_v13 = vadd.f32 %v18444_v39, %v8219_v60  ;;  %v8395_v55 = vmax.f32 %v8217_v52, 0.0 }
 0x63e   : > { %v8398_v10 = vmax.f32 %v8228_v9, 0.0 }
 0x63f   : > { %v8396_v23 = vmax.f32 %v8220_v13, 0.0 }
 0x641   : > { %v8440_v35 = vmax.f32 %v8395_v55, %v8396_v23 }
 0x643   : > { %v8476_v54 = vmax.f32 %v8440_v35, %v8397_v3 }
 0x645   : > { %v8512_v20 = vmax.f32 %v8476_v54, %v8398_v10  ;;  %v10271_v29 = vpop.f32.mrb[192].mxu1 }
 0x646   : > { %v8232_v40 = vpop.f32.mrb[193].mxu1  ;;  %v8241_v31 = vadd.f32 %v18444_v39, %v10271_v29 }
 0x647   : > { %v8539_v36 = vmax.f32 %v8530_v2, %v8512_v20  ;;  %v8233_v59 = vadd.f32 %v18444_v39, %v8232_v40  ;;  %v10272_v28 = vpop.f32.mrb[194].mxu1 }
 0x648   : > { %v8235_v63 = vpop.f32.mrb[195].mxu1  ;;  %v8244_v49 = vadd.f32 %v18444_v39, %v10272_v28  ;;  %v8401_v2 = vmax.f32 %v8241_v31, 0.0  ;;  %v12958_v28 = vld [vmem:[%s13149_s25 + $0x390] sm:$0xff]   ;;  %v12962_v31 = vld [vmem:[%s18781_s6] sm:$0xff]  }
 0x649   : > { %v8858_v19 = vpack.c.bf16 %v8539_v36, %v8539_v36  ;;  %v8236_v4 = vadd.f32 %v18444_v39, %v8235_v63  ;;  %v8399_v46 = vmax.f32 %v8233_v59, 0.0  ;;  %v12959_v63 = vld [vmem:[%s13149_s25 + $0x398] sm:$0xff]   ;;  %10057 = vmatprep.mubr.msk.bf16.mxu0 %vm1215_vm1, %v12958_v28 }
 0x64a   : > { %v8402_v12 = vmax.f32 %v8244_v49, 0.0  ;;  %10058 = vmatmul.mubr.msk.bf16.gmra.mrb[228].mxu0 %vm1215_vm1, %v12959_v63  ;;  %v12965_v49 = vld [vmem:[%s13149_s25 + $0x3b8] sm:$0xff]  }
 0x64b   : > { %v8400_v14 = vmax.f32 %v8236_v4, 0.0  ;;  %10316 = vmatmul.mubr.msk.bf16.vlgmr.msra.gmra.mrb[224].mxu1 %vm6745_vm3, %v8858_v19  ;;  %v12961_v19 = vld [vmem:[%s13149_s25 + $0x3a8] sm:$0xff]   ;;  %v12963_v4 = vld [vmem:[%s13149_s25 + $0x3b0] sm:$0xff]  }
 0x64c   : > { %10320 = vmatpush3.bf16.msra.mxu1 %v12946_v24  ;;  %10321 = vmatprep.mubr.msk.bf16.mxu1 %vm13044_vm5, %v20482_v26  ;;  %v12960_v24 = vld [vmem:[%s13149_s25 + $0x3a0] sm:$0xff]  }
 0x64d   : > { %v8441_v51 = vmax.f32 %v8399_v46, %v8400_v14  ;;  %10325 = vmatprep.subr.bf16.mxu1 %v20482_v26  ;;  %10061 = vmatprep.mubr.msk.bf16.mxu0 %vm1215_vm1, %v12960_v24  ;;  %v12964_v46 = vld [vmem:[%s18781_s6 + $0x8] sm:$0xff]   ;;  %v12966_v14 = vld [vmem:[%s18781_s6 + $0x10] sm:$0xff]  }
 0x64f   : > { %v8477_v62 = vmax.f32 %v8441_v51, %v8401_v2  ;;  %v12967_v2 = vld [vmem:[%s13149_s25 + $0x3c0] sm:$0xff]   ;;  %v12969_v51 = vld [vmem:[%s13149_s25 + $0x3c8] sm:$0xff]   ;;  %s13045_s25 = smov [#allocation2]  }
 0x650   : > { %s12978_s19 = sshll.u32 %s13045_s25, 4  ;;  %s12979_s19 = int_to_ptr.vmem [resolvable:$false] %s12978_s19 }
 0x651   : > { %v8513_v21 = vmax.f32 %v8477_v62, %v8402_v12  ;;  %v10275_v45 = vpop.f32.mrb[196].mxu1  ;;  %v12968_v12 = vld [vmem:[%s18781_s6 + $0x18] sm:$0xff]   ;;  %s12980_s24 = scalar_lea.vmem %s12979_s19, 256  ;;  %p12981_p0 = scmp.lt.s32.totalorder %s18735_s20, %s12979_s19 }
 0x652   : > { %v8248_v22 = vpop.f32.mrb[197].mxu1  ;;  %v8257_v17 = vadd.f32 %v18444_v39, %v10275_v45  ;;  %10062 = vmatmul.mubr.msk.bf16.gmra.mrb[232].mxu0 %vm1215_vm1, %v12961_v19  ;;  %v9566_v19 = vld [vmem:[%s18782_s7] ss:$0 sm:$0xff]  ;;  %p12982_p1 = scmp.lt.s32.totalorder %s12980_s24, %s12974_s13 }
 0x653   : > { %v8540_v33 = vmax.f32 %v8531_v56, %v8513_v21  ;;  %v8249_v38 = vadd.f32 %v18444_v39, %v8248_v22  ;;  %v10276_v18 = vpop.f32.mrb[198].mxu1  ;;  %10065 = vmatprep.mubr.msk.bf16.mxu0 %vm1215_vm1, %v12963_v4 }
 0x654   : > { %v8251_v1 = vpop.f32.mrb[199].mxu1  ;;  %v8260_v5 = vadd.f32 %v18444_v39, %v10276_v18  ;;  %v8405_v56 = vmax.f32 %v8257_v17, 0.0  ;;  %p12983_p2 = por %p12982_p1, %p12981_p0 }
 0x655   : > { %v8911_v8 = vpack.c.bf16 %v8540_v33, %v8540_v33  ;;  %v8252_v34 = vadd.f32 %v18444_v39, %v8251_v1  ;;  %v8403_v42 = vmax.f32 %v8249_v38, 0.0 }
 0x656   : > { %v8406_v57 = vmax.f32 %v8260_v5, 0.0  ;;  %p12984_p3 = pnand %p12983_p2, %p12977_p13 }
 0x657   : > { %v8404_v11 = vmax.f32 %v8252_v34, 0.0  ;;  %10322 = vmatmul.mubr.msk.bf16.vlgmr.msra.gmra.mrb[228].mxu1 %vm6745_vm3, %v8911_v8 }
 0x658   : > { %10326 = vmatpush3.bf16.msra.mxu1 %v12947_v37  ;;  %10327 = vmatprep.mubr.msk.bf16.mxu1 %vm13044_vm5, %v20482_v26 }
 0x659   : > { %v8442_v61 = vmax.f32 %v8403_v42, %v8404_v11  ;;  %v8591_v43 = vpop.f32.mrb[200].mxu1  ;;  %10331 = vmatprep.subr.bf16.mxu1 %v20482_v26 }
 0x65a   : > { %v10281_v53 = vpop.f32.mrb[201].mxu1  ;;  %10066 = vmatmul.mubr.msk.bf16.gmra.mrb[236].mxu0 %vm1215_vm1, %v12965_v49 }
 0x65b   : > { %v8478_v44 = vmax.f32 %v8442_v61, %v8405_v56  ;;  %v8594_v7 = vpop.f32.mrb[202].mxu1  ;;  %10069 = vmatprep.mubr.msk.bf16.mxu0 %vm1215_vm1, %v12967_v2 }
 0x65c   : > { %v10282_v47 = vpop.f32.mrb[203].mxu1 }
 0x65d   : > { %v8514_v6 = vmax.f32 %v8478_v44, %v8406_v57 }
 0x65f   : > { %v8541_v39 = vmax.f32 %v18659_v58, %v8514_v6 }
 0x661   : > { %v8964_v32 = vpack.c.bf16 %v8541_v39, %v8541_v39  ;;  %v8640_v30 = vpop.f32.mrb[204].mxu1 }
 0x662   : > { %v8641_v16 = vadd.f32 %v8640_v30, %v8591_v43  ;;  %v10287_v25 = vpop.f32.mrb[205].mxu1  ;;  %10070 = vmatmul.mubr.msk.bf16.gmra.mrb[240].mxu0 %vm1215_vm1, %v12969_v51 }
 0x663   : > { %v8643_v0 = vpop.f32.mrb[206].mxu1  ;;  %10328 = vmatmul.mubr.msk.bf16.vlgmr.msra.gmra.mrb[232].mxu1 %vm6745_vm3, %v8964_v32 }
 0x664   : > { %v10288_v48 = vpop.f32.mrb[207].mxu1  ;;  %10339 = vmatprep.mubr.msk.bf16.mxu1 %vm13044_vm5, %v20482_v26  ;;  %10332 = vmatpush3.bf16.msra.mxu1 %v12962_v31 }
 0x665   : > { %10333 = vmatprep.subr.bf16.mxu1 %v20482_v26  ;;  %v9565_v48 = vld [vmem:[%s18780_s5] ss:$0 sm:$0xff] }
 0x668   : > { %10334 = vmatpush3.bf16.msra.mxu1 %v12964_v46 }
 0x669   : > { %v8692_v27 = vpop.f32.mrb[208].mxu1  ;;  %10335 = vmatprep.subr.bf16.mxu1 %v20482_v26 }
 0x66a   : > { %v8698_v50 = vadd.f32 %v8692_v27, %v8641_v16  ;;  %v10293_v52 = vpop.f32.mrb[209].mxu1 }
 0x66b   : > { %v8695_v15 = vpop.f32.mrb[210].mxu1 }
 0x66c   : > { %v10294_v60 = vpop.f32.mrb[211].mxu1  ;;  %10336 = vmatpush3.bf16.msra.mxu1 %v12966_v14 }
 0x66d   : > { %10337 = vmatprep.subr.bf16.mxu1 %v20482_v26 }
 0x670   : > { %10338 = vmatpush3.bf16.msra.mxu1 %v12968_v12 }
 0x671   : > { %v8745_v41 = vpop.f32.mrb[212].mxu1 }
 0x672   : > { %v8751_v58 = vadd.f32 %v8745_v41, %v8698_v50  ;;  %v10299_v13 = vpop.f32.mrb[213].mxu1 }
 0x673   : > { %v8748_v55 = vpop.f32.mrb[214].mxu1 }
 0x674   : > { %v10300_v9 = vpop.f32.mrb[215].mxu1 }
 0x679   : > { %v8798_v23 = vpop.f32.mrb[216].mxu1 }
 0x67a   : > { %v8804_v3 = vadd.f32 %v8798_v23, %v8751_v58  ;;  %v10305_v35 = vpop.f32.mrb[217].mxu1 }
 0x67b   : > { %v8801_v10 = vpop.f32.mrb[218].mxu1 }
 0x67c   : > { %v10306_v54 = vpop.f32.mrb[219].mxu1 }
 0x681   : > { %v8851_v20 = vpop.f32.mrb[220].mxu1 }
 0x682   : > { %v8857_v29 = vadd.f32 %v8851_v20, %v8804_v3  ;;  %v10311_v40 = vpop.f32.mrb[221].mxu1 }
 0x683   : > { %v8854_v36 = vpop.f32.mrb[222].mxu1 }
 0x684   : > { %v10312_v59 = vpop.f32.mrb[223].mxu1 }
 0x6a2   : > { %v10039_v62 = vpop.f32.mrb[208].mxu0 }
 0x6a3   : > { %v2467_v21 = vpop.f32.mrb[209].mxu0 }
 0x6a4   : > { %v10040_v45 = vpop.f32.mrb[210].mxu0 }
 0x6a5   : > { %v2469_v22 = vpop.f32.mrb[211].mxu0 }
 0x6ae   : > { %v10043_v33 = vpop.f32.mrb[212].mxu0 }
 0x6af   : > { %v2479_v38 = vpop.f32.mrb[213].mxu0 }
 0x6b0   : > { %v10044_v18 = vpop.f32.mrb[214].mxu0 }
 0x6b1   : > { %v2481_v1 = vpop.f32.mrb[215].mxu0 }
 0x6b9   : > { %v10047_v37 = vpop.f32.mrb[216].mxu0 }
 0x6ba   : > { %v2491_v8 = vpop.f32.mrb[217].mxu0 }
 0x6bb   : > { %v10048_v17 = vpop.f32.mrb[218].mxu0 }
 0x6bc   : > { %v2493_v34 = vpop.f32.mrb[219].mxu0 }
 0x6c5   : > { %v10051_v42 = vpop.f32.mrb[220].mxu0 }
 0x6c6   : > { %v2503_v5 = vpop.f32.mrb[221].mxu0 }
 0x6c7   : > { %v10052_v26 = vpop.f32.mrb[222].mxu0 }
 0x6c8   : > { %v2505_v11 = vpop.f32.mrb[223].mxu0 }
 0x6cd   : > { %v10055_v56 = vpop.f32.mrb[224].mxu0 }
 0x6ce   : > { %v2515_v61 = vpop.f32.mrb[225].mxu0 }
 0x6cf   : > { %v10056_v43 = vpop.f32.mrb[226].mxu0 }
 0x6d0   : > { %v2517_v53 = vpop.f32.mrb[227].mxu0 }
 0x71d   : > { %v10059_v13 = vpop.f32.mrb[228].mxu0 }
 0x71e   : > { %v8904_v57 = vpop.f32.mrb[224].mxu1  ;;  %v2527_v55 = vpop.f32.mrb[229].mxu0 }
 0x71f   : > { %v8910_v44 = vadd.f32 %v8904_v57, %v8857_v29  ;;  %v10317_v7 = vpop.f32.mrb[225].mxu1  ;;  %v10060_v9 = vpop.f32.mrb[230].mxu0 }
 0x720   : > { %v8907_v47 = vpop.f32.mrb[226].mxu1  ;;  %v2529_v23 = vpop.f32.mrb[231].mxu0 }
 0x721   : > { %v10318_v6 = vpop.f32.mrb[227].mxu1 }
 0x725   : > { %v10063_v3 = vpop.f32.mrb[232].mxu0 }
 0x726   : > { %v2539_v35 = vpop.f32.mrb[233].mxu0 }
 0x727   : > { %v10064_v10 = vpop.f32.mrb[234].mxu0 }
 0x728   : > { %v2541_v54 = vpop.f32.mrb[235].mxu0 }
 0x72a   : > { %v8957_v39 = vpop.f32.mrb[228].mxu1 }
 0x72b   : > { %v8963_v32 = vadd.f32 %v8957_v39, %v8910_v44  ;;  %v10323_v30 = vpop.f32.mrb[229].mxu1 }
 0x72c   : > { %v8960_v16 = vpop.f32.mrb[230].mxu1 }
 0x72d   : > { %v10324_v25 = vpop.f32.mrb[231].mxu1  ;;  %v10067_v20 = vpop.f32.mrb[236].mxu0 }
 0x72e   : > { %v2551_v29 = vpop.f32.mrb[237].mxu0 }
 0x72f   : > { %v10068_v40 = vpop.f32.mrb[238].mxu0 }
 0x730   : > { %v2553_v36 = vpop.f32.mrb[239].mxu0 }
 0x735   : > { %v10071_v59 = vpop.f32.mrb[240].mxu0 }
 0x736   : > { %v9010_v0 = vpop.f32.mrb[232].mxu1  ;;  %v2563_v28 = vpop.f32.mrb[241].mxu0 }
 0x737   : > { %v9016_v27 = vadd.f32 %v9010_v0, %v8963_v32  ;;  %v10329_v50 = vpop.f32.mrb[233].mxu1  ;;  %v10072_v63 = vpop.f32.mrb[242].mxu0 }
 0x738   : > { %v9013_v52 = vpop.f32.mrb[234].mxu1  ;;  %v2565_v24 = vpop.f32.mrb[243].mxu0 }
 0x739   : > { %v9024_v15 = vadd.f32 %v9565_v48, %v9016_v27  ;;  %v10330_v60 = vpop.f32.mrb[235].mxu1 }
 0x73b   : > { %v9025_v41 = vmax.f32 %v9024_v15, 0.0 }
 0x73d   : > { %v9026_v58 = vpack.c.bf16 %v9025_v41, %v9025_v41 }
 0x73f   : > { %10340 = vmatmul.mubr.msk.bf16.vlgmr.msra.gmra.mrb[236].mxu1 %vm9066_vm6, %v9026_v58 }
 0x812   : > { %v9104_v31 = vpop.f32.mrb[236].mxu1 }
 0x813   : > { %v9105_v4 = vadd.f32 %v9566_v19, %v9104_v31  ;;  %v10341_v46 = vpop.f32.mrb[237].mxu1 }
 0x814   : > { %v9107_v49 = vpop.f32.mrb[238].mxu1 }
 0x815   : > { %v10342_v14 = vpop.f32.mrb[239].mxu1  ;;  %9111 = vst.msk [vmem:[%s299_s18] sm:$0xff] %vm9110_vm7, %v9105_v4 }
 0x816   : > { %12987 = shalt.err (!%p12984_p3)
}
 0x817   : > { %s12988_s23 = scalar_lea.hbm %s18733_s12, 128  ;;  %s12992_s17 = scalar_lea.hbm %s18783_s8, 256 }
 0x818   : > { %p12989_p4 = scmp.ne.s32.totalorder %s18733_s12, %s12988_s23  ;;  %p12993_p9 = scmp.lt.u32.totalorder %s18733_s12, %s18783_s8 }
 0x819   : > { %p12994_p10 = scmp.lt.u32.totalorder %s12992_s17, %s12988_s23  ;;  %p12996_p12 = scmp.lt.u32.totalorder %s12988_s23, %s18733_s12 }
 0x81a   : > { %p12990_p7 = pnand %p12989_p4, %p13129_p5 }
 0x81b   : > { %p12995_p11 = por %p12994_p10, %p12993_p9 }
 0x81c   : > { %p12991_p8 = pneg %p12990_p7 }
 0x81d   : > { %p12997_p13 = por %p12996_p12, %p12995_p11 }
 0x81f   : > { %p12998_p0 = pnand %p12997_p13, %p12991_p8 }
 0x821   : > { %13001 = shalt.err (!%p12998_p0)
}
 0x822   : > { %10349 = dma.vmem_to_hbm [thread:$0]  (%p13129_p5), %s18735_s20, 128, %s18733_s12, %s9113_s9  }
 0x823 PF: > { %p10355_p1 = scmp.ge.s32.totalorder %s13036_s30, 2  ;;  %s9138_s22 = sand.u32 1, %s13024_s27  }
 0x824   : > { %s9139_s13 = scalar_lea.sflag [#allocation3], %s9138_s22 }
 0x825   : > { %p10352_p2 = pnand %p10355_p1, %p13133_p6 }
 0x827   : > { %13019 = dma.done.wait (!%p10352_p2), %s9139_s13, 128  }
 0x828   : > { %13021 = vsyncadd (!%p10352_p2), %s9139_s13, 4294967168  ;;  %p18_p3 = scmp.ge.s32.totalorder %s13116_s11, 4   ;;  %s20486_s27 = smov %s13028_s28 }
 0x829   : > { %s20487_s28 = smov %s13032_s29  ;;  %s20488_s29 = smov %s13127_s14 }
 0x82a   : > { %s20489_s30 = smov %s13116_s11  ;;  %20 = sbr.rel (!%p18_p3) target bundleno = 3 (0x3), region = 87 }
 0x831   :  { %9144 = vsyncpa [#allocation3], 1 }
 0x832   :  { %9146 = vsyncpa [#allocation3 + $0x1], 1 }

</bundles_post_ra>
